<compile_context>
chip_gen: v6e
topology: v6e:2x2x1
jax: 0.10.0
libtpu: 0.0.40
codegen_flags: <defaults>
</compile_context>

<pallas_src>
import jax
import jax.numpy as jnp
from jax.experimental import pallas as pl
from jax.experimental.pallas import tpu as pltpu

LANES = 128                  # TPU lane width; channel dims padded to this
ACT_DTYPE = jnp.bfloat16     # storage dtype for activations / weights
STEM_K = 256                 # 7*7*3 = 147 zero-padded to a lane/MXU friendly K


def _round_up(x, m):
    return ((x + m - 1) // m) * m


def _choose_tm(m, max_tile=1024):
    """Row tile for matmul kernels.

    M <= max_tile -> a single full block (v5e/v6e grids are serial loops, so
    extra steps are pure overhead).  Otherwise the largest divisor <= max_tile,
    preferring an even number of steps (v7x: 2 TCs share a 'parallel' axis)."""
    if m <= max_tile:
        return m
    cands = [t for t in range(8, max_tile + 1, 8) if m % t == 0]
    if not cands:
        return m
    even = [t for t in cands if (m // t) % 2 == 0]
    return max(even) if even else max(cands)


# ---------------- fused matmul + BN (+proj | +res) (+ReLU) (+pool) -----------
# Y = act(A@W * s + b  [+ A2@W2 * s2 + b2]  [+ res]);   out = P @ Y  (optional)
# Covers: stem im2col conv, every 1x1 conv, w3 + fused downsample projection,
# and the final w3 with the (6,1) adaptive avg-pool folded in as a tiny matmul.

def _make_fused_kernel(relu, has_proj, has_res, has_pool):
    def kernel(*refs):
        i = 0
        a_ref = refs[i]; w_ref = refs[i + 1]; i += 2
        if has_proj:
            a2_ref, w2_ref, s2_ref, b2_ref = refs[i:i + 4]; i += 4
        if has_res:
            r_ref = refs[i]; i += 1
        s_ref, b_ref = refs[i:i + 2]; i += 2
        if has_pool:
            p_ref = refs[i]; i += 1
        o_ref = refs[i]

        y = jnp.dot(a_ref[...], w_ref[...], preferred_element_type=jnp.float32)
        y = y * s_ref[...] + b_ref[...]              # folded eval-mode BN
        if has_proj:                                  # downsample shortcut
            y2 = jnp.dot(a2_ref[...], w2_ref[...],
                         preferred_element_type=jnp.float32)
            y = y + (y2 * s2_ref[...] + b2_ref[...])
        if has_res:                                   # identity shortcut
            y = y + r_ref[...].astype(jnp.float32)
        if relu:
            y = jnp.maximum(y, 0.0)
        if has_pool:                                  # adaptive avg-pool = P@Y
            y = jnp.dot(p_ref[...], y, preferred_element_type=jnp.float32)
        o_ref[...] = y.astype(o_ref.dtype)
    return kernel


def fused_matmul(a, w, scale, bias, *, relu, proj=None, res=None, pool=None,
                 out_dtype=ACT_DTYPE):
    m, k = a.shape
    n = w.shape[1]
    tm = m if pool is not None else _choose_tm(m)   # pooling mixes all rows
    if m % tm != 0:
        tm = m
    steps = m // tm

    args = [a, w]
    in_specs = [pl.BlockSpec((tm, k), lambda r: (r, 0)),
                pl.BlockSpec((k, n), lambda r: (0, 0))]
    flops = 2 * m * k * n
    if proj is not None:
        a2, w2, s2, b2 = proj
        k2 = a2.shape[1]
        args += [a2, w2, s2.reshape(1, n), b2.reshape(1, n)]
        in_specs += [pl.BlockSpec((tm, k2), lambda r: (r, 0)),
                     pl.BlockSpec((k2, n), lambda r: (0, 0)),
                     pl.BlockSpec((1, n), lambda r: (0, 0)),
                     pl.BlockSpec((1, n), lambda r: (0, 0))]
        flops += 2 * m * k2 * n
    if res is not None:
        args.append(res)
        in_specs.append(pl.BlockSpec((tm, n), lambda r: (r, 0)))
    args += [scale.reshape(1, n), bias.reshape(1, n)]
    in_specs += [pl.BlockSpec((1, n), lambda r: (0, 0)),
                 pl.BlockSpec((1, n), lambda r: (0, 0))]
    if pool is not None:
        assert steps == 1, "pooling fusion needs a single row block"
        args.append(pool)
        in_specs.append(pl.BlockSpec(pool.shape, lambda r: (0, 0)))
        out_rows = pool.shape[0]
        flops += 2 * out_rows * m * n
    else:
        out_rows = m
    out_tm = out_rows if pool is not None else tm

    bytes_accessed = (sum(int(v.size) * v.dtype.itemsize for v in args)
                      + out_rows * n * jnp.dtype(out_dtype).itemsize)
    return pl.pallas_call(
        _make_fused_kernel(relu, proj is not None, res is not None,
                           pool is not None),
        out_shape=jax.ShapeDtypeStruct((out_rows, n), out_dtype),
        grid=(steps,),
        in_specs=in_specs,
        out_specs=pl.BlockSpec((out_tm, n), lambda r: (r, 0)),
        compiler_params=pltpu.CompilerParams(dimension_semantics=("parallel",)),
        cost_estimate=pl.CostEstimate(flops=int(flops), transcendentals=0,
                                      bytes_accessed=int(bytes_accessed)),
    )(*args)


# --------------------- flattened 3x3 window decomposition --------------------
# Flatten the spatially padded NHWC map to rows of width Wp=W+2; output row m
# of tap (di,dj) reads flat row s*m + (di*Wp + dj).  Splitting into `stride`
# row-phases makes every tap a contiguous row-slice of a VMEM-resident buffer,
# so no im2col / tap-stack is ever written to HBM.  Phases stay f32 so dynamic,
# unaligned sublane slicing works on unpacked 32-bit data.
# TODO(synk): producer-side writes into this padded flat layout (out_specs
# index_map) would remove the XLA pad/reshape pass entirely.

def _flat_phases(x, *, stride, pad_value, tm):
    b, h, w, c = x.shape
    hp, wp = h + 2, w + 2
    assert hp % stride == 0 and (hp * wp) % stride == 0
    xp = jnp.pad(x.astype(jnp.float32), ((0, 0), (1, 1), (1, 1), (0, 0)),
                 constant_values=pad_value)
    flat = xp.reshape(b * hp * wp, c)
    m_out = b * hp * wp // stride
    m_pad = _round_up(m_out, tm)
    max_off = 2 * wp + 2
    rp = _round_up(m_pad + max_off // stride + 1, 8)
    flat = jnp.pad(flat, ((0, stride * rp - flat.shape[0]), (0, 0)),
                   constant_values=pad_value)
    phases = [flat[p::stride] for p in range(stride)]
    taps = [((di * wp + dj) % stride, (di * wp + dj) // stride)
            for di in range(3) for dj in range(3)]
    return phases, taps, m_out, m_pad, (hp, wp)


def _make_conv3x3_kernel(nphase, taps, tm):
    def kernel(*refs):
        ph = refs[:nphase]
        w_ref, s_ref, b_ref, o_ref = refs[nphase:]
        base = pl.multiple_of(pl.program_id(0) * tm, tm)

        def tap(t):
            p, off = taps[t]
            return ph[p][pl.ds(base + off, tm), :].astype(ACT_DTYPE)

        # Pairwise K=256 contractions (static, aligned weight slices) fill the
        # 256-wide MXUs on v6e/v7x; tm=128 keeps the f32 accumulator small.
        acc = jnp.dot(jnp.concatenate([tap(0), tap(1)], axis=-1),
                      w_ref[0:2 * LANES, :], preferred_element_type=jnp.float32)
        for t in (2, 4, 6):
            lhs = jnp.concatenate([tap(t), tap(t + 1)], axis=-1)
            acc = acc + jnp.dot(lhs, w_ref[t * LANES:(t + 2) * LANES, :],
                                preferred_element_type=jnp.float32)
        acc = acc + jnp.dot(tap(8), w_ref[8 * LANES:9 * LANES, :],
                            preferred_element_type=jnp.float32)
        y = jnp.maximum(acc * s_ref[...] + b_ref[...], 0.0)
        o_ref[...] = y.astype(o_ref.dtype)
    return kernel


def conv3x3_bn_relu(x, w_flat, scale, bias, *, stride):
    """3x3 conv (pad=1, stride 1 or 2) fused with folded BN + ReLU."""
    b, h, w, c = x.shape
    n = w_flat.shape[1]
    ho, wo = (h - 1) // stride + 1, (w - 1) // stride + 1
    m0 = b * (h + 2) * (w + 2) // stride
    tm = 128 if m0 > 128 else _round_up(m0, 16)
    phases, taps, m_out, m_pad, (hp, wp) = _flat_phases(
        x, stride=stride, pad_value=0.0, tm=tm)
    specs = [pl.BlockSpec(ph.shape, lambda r: (0, 0)) for ph in phases]
    specs += [pl.BlockSpec(w_flat.shape, lambda r: (0, 0)),
              pl.BlockSpec((1, n), lambda r: (0, 0)),
              pl.BlockSpec((1, n), lambda r: (0, 0))]
    out = pl.pallas_call(
        _make_conv3x3_kernel(len(phases), taps, tm),
        out_shape=jax.ShapeDtypeStruct((m_pad, n), ACT_DTYPE),
        grid=(m_pad // tm,),
        in_specs=specs,
        out_specs=pl.BlockSpec((tm, n), lambda r: (r, 0)),
        compiler_params=pltpu.CompilerParams(dimension_semantics=("parallel",)),
        cost_estimate=pl.CostEstimate(
            flops=2 * m_pad * 9 * c * n, transcendentals=0,
            bytes_accessed=int(sum(int(p.size) * 4 for p in phases)
                               + int(w_flat.size) * 2 + m_pad * n * 2)),
    )(*phases, w_flat, scale.reshape(1, n), bias.reshape(1, n))
    # TODO(synk): let the consuming w3 kernel read this uncropped flat layout
    # (scalar-prefetched row map) to avoid the crop/reshape HBM pass.
    out = out[:m_out].reshape(b, hp // stride, wp, n)
    return out[:, :ho, :wo, :]


def _make_maxpool_kernel(nphase, taps, tm):
    def kernel(*refs):
        ph = refs[:nphase]
        o_ref = refs[nphase]
        base = pl.multiple_of(pl.program_id(0) * tm, tm)
        p0, off0 = taps[0]
        m = ph[p0][pl.ds(base + off0, tm), :]
        for p, off in taps[1:]:
            m = jnp.maximum(m, ph[p][pl.ds(base + off, tm), :])
        o_ref[...] = m.astype(o_ref.dtype)
    return kernel


def maxpool_3x3_s2(x):
    """MaxPool2d(kernel=3, stride=2, padding=1), NHWC, no 9-tap HBM stack."""
    b, h, w, c = x.shape
    ho, wo = (h - 1) // 2 + 1, (w - 1) // 2 + 1
    m0 = b * (h + 2) * (w + 2) // 2
    tm = 128 if m0 > 128 else _round_up(m0, 8)
    phases, taps, m_out, m_pad, (hp, wp) = _flat_phases(
        x, stride=2, pad_value=-jnp.inf, tm=tm)
    specs = [pl.BlockSpec(ph.shape, lambda r: (0, 0)) for ph in phases]
    out = pl.pallas_call(
        _make_maxpool_kernel(len(phases), taps, tm),
        out_shape=jax.ShapeDtypeStruct((m_pad, c), ACT_DTYPE),
        grid=(m_pad // tm,),
        in_specs=specs,
        out_specs=pl.BlockSpec((tm, c), lambda r: (r, 0)),
        compiler_params=pltpu.CompilerParams(dimension_semantics=("parallel",)),
    )(*phases)
    out = out[:m_out].reshape(b, hp // 2, wp, c)
    return out[:, :ho, :wo, :]


# ------------------------------- stem conv -----------------------------------

def _extract_patches(x, kh, kw, stride, pad, k_pad):
    """NHWC -> (B, Ho, Wo, k_pad) patches, taps ordered (di, dj, c), zero-padded
    so K is a multiple of 128 (lane-dense A tile, no masked K loads)."""
    b, h, w, c = x.shape
    xp = jnp.pad(x, ((0, 0), (pad, pad), (pad, pad), (0, 0)))
    ho = (h + 2 * pad - kh) // stride + 1
    wo = (w + 2 * pad - kw) // stride + 1
    cols = []
    for di in range(kh):
        for dj in range(kw):
            cols.append(xp[:, di:di + stride * ho:stride,
                           dj:dj + stride * wo:stride, :])
    if k_pad > kh * kw * c:
        cols.append(jnp.zeros((b, ho, wo, k_pad - kh * kw * c), x.dtype))
    return jnp.concatenate(cols, axis=-1), ho, wo


def conv1_stem(x, w_flat, scale, bias):
    # 7x7/2 stem: small bf16 im2col (K padded 147->256) + one fused matmul;
    # bf16 output halves the maxpool's input bytes.
    patches, ho, wo = _extract_patches(x, 7, 7, 2, 3, STEM_K)
    b = x.shape[0]
    a = patches.reshape(b * ho * wo, STEM_K)
    y = fused_matmul(a, w_flat, scale, bias, relu=True, out_dtype=ACT_DTYPE)
    return y.reshape(b, ho, wo, w_flat.shape[1])


# --------------------------- parameter construction --------------------------

def _conv_w(key, kh, kw, cin, cout):
    fan_in = kh * kw * cin
    return (jax.random.normal(key, (kh, kw, cin, cout))
            / jnp.sqrt(fan_in)).astype(jnp.float32)


def _folded_bn(key, c, eps=1e-5):
    k1, k2, k3, k4 = jax.random.split(key, 4)
    gamma = 1.0 + 0.1 * jax.random.normal(k1, (c,))
    beta = 0.1 * jax.random.normal(k2, (c,))
    mean = 0.05 * jax.random.normal(k3, (c,))
    var = 1.0 + 0.1 * jax.random.uniform(k4, (c,))
    scale = gamma / jnp.sqrt(var + eps)
    bias = beta - mean * scale
    return scale.astype(jnp.float32), bias.astype(jnp.float32)


def _pad_axis(x, n, axis):
    padw = [(0, 0)] * x.ndim
    padw[axis] = (0, n - x.shape[axis])
    return jnp.pad(x, padw)


def _padded_w(w):
    """Zero-pad (kh,kw,cin,cout) channel dims to LANES, cast bf16."""
    return _pad_axis(_pad_axis(w, LANES, 2), LANES, 3).astype(ACT_DTYPE)


def _padded_bn(scale, bias):
    return (_pad_axis(scale, LANES, 0).astype(jnp.float32),
            _pad_axis(bias, LANES, 0).astype(jnp.float32))


def _init_bottleneck(key, cin, mid, stride):
    cout = 4 * mid
    keys = jax.random.split(key, 8)
    p = {"stride": stride}
    p["w1"] = _padded_w(_conv_w(keys[0], 1, 1, cin, mid)).reshape(LANES, LANES)
    # 3x3 taps flattened to (9*128, 128): static aligned K=256 pair slices.
    p["w2"] = _padded_w(_conv_w(keys[1], 3, 3, mid, mid)).reshape(9 * LANES, LANES)
    p["w3"] = _padded_w(_conv_w(keys[2], 1, 1, mid, cout)).reshape(LANES, LANES)
    p["s1"], p["b1"] = _padded_bn(*_folded_bn(keys[3], mid))
    p["s2"], p["b2"] = _padded_bn(*_folded_bn(keys[4], mid))
    p["s3"], p["b3"] = _padded_bn(*_folded_bn(keys[5], cout))
    if stride != 1 or cin != cout:
        p["wd"] = _padded_w(_conv_w(keys[6], 1, 1, cin, cout)).reshape(LANES, LANES)
        p["sd"], p["bd"] = _padded_bn(*_folded_bn(keys[7], cout))
    return p


def init_params(key, stem_c=8, mids=(4, 8, 16, 32)):
    keys = jax.random.split(key, 8)
    w1 = _conv_w(keys[0], 7, 7, 3, stem_c).reshape(7 * 7 * 3, stem_c)
    w1 = _pad_axis(_pad_axis(w1, STEM_K, 0), LANES, 1).astype(ACT_DTYPE)
    params = {"conv1_w": w1}
    params["bn1_s"], params["bn1_b"] = _padded_bn(*_folded_bn(keys[1], stem_c))
    # PCB_test modification: layer4[0].conv2 / downsample stride -> (1, 1)
    strides = (1, 2, 2, 1)
    # TODO(synk): real ResNet-50 has (3,4,6,3) blocks/stage and 64..512 widths;
    # reduced here to 1 bottleneck/stage with small logical widths, zero-padded
    # to 128 lanes so every matmul / store stays lane-dense.
    layers, cin = [], stem_c
    for i, (mid, s) in enumerate(zip(mids, strides)):
        layers.append(_init_bottleneck(keys[2 + i], cin, mid, s))
        cin = 4 * mid
    params["layers"] = layers
    return params


# ----------------------------------- forward ---------------------------------

def _pool_matrix(b, h, w, part):
    """0/1-scaled matrix P so that P @ flat(NHWC rows) = AdaptiveAvgPool2d((part,1))."""
    hb = h // part
    m = b * h * w
    idx = jnp.arange(m)
    b_i = idx // (h * w)
    p_i = (idx % (h * w)) // (hb * w)
    q = b_i * part + p_i
    P = (jnp.arange(b * part)[:, None] == q[None, :]).astype(jnp.float32)
    return P / (hb * w)


def _bottleneck(x, p, *, pool=None):
    b, h, w, c = x.shape
    s = p["stride"]
    # 1x1 conv + BN + ReLU (f32 out: feeds the 3x3 window kernel directly)
    h1 = fused_matmul(x.reshape(b * h * w, c), p["w1"], p["s1"], p["b1"],
                      relu=True, out_dtype=jnp.float32).reshape(b, h, w, c)
    # 3x3 conv (stride s) + BN + ReLU, no HBM im2col
    h2 = conv3x3_bn_relu(h1, p["w2"], p["s2"], p["b2"], stride=s)
    _, ho, wo, _ = h2.shape
    xs = (x[:, ::s, ::s, :] if s > 1 else x).reshape(b * ho * wo, c)
    out_dtype = jnp.float32 if pool is not None else ACT_DTYPE
    if "wd" in p:
        # w3 + BN + downsample projection (second matmul) + add + ReLU (+pool)
        out = fused_matmul(h2.reshape(b * ho * wo, c), p["w3"], p["s3"],
                           p["b3"], relu=True,
                           proj=(xs, p["wd"], p["sd"], p["bd"]),
                           pool=pool, out_dtype=out_dtype)
    else:
        # identity shortcut fused into the same kernel
        out = fused_matmul(h2.reshape(b * ho * wo, c), p["w3"], p["s3"],
                           p["b3"], relu=True, res=xs, pool=pool,
                           out_dtype=out_dtype)
    if pool is not None:
        return out                               # (B*part, C), already pooled
    return out.reshape(b, ho, wo, c)


def pcb_test_forward(params, x_nchw, part=6):
    x = jnp.transpose(x_nchw, (0, 2, 3, 1)).astype(ACT_DTYPE)   # NCHW -> NHWC
    x = conv1_stem(x, params["conv1_w"], params["bn1_s"], params["bn1_b"])
    x = maxpool_3x3_s2(x)
    layers = params["layers"]
    for p in layers[:-1]:
        x = _bottleneck(x, p)
    # Final bottleneck with AdaptiveAvgPool2d((part, 1)) fused into its epilogue
    b, h, w, _ = x.shape
    s = layers[-1]["stride"]
    ho, wo = (h - 1) // s + 1, (w - 1) // s + 1
    assert ho % part == 0, "feature height must be divisible by part=6"
    pooled = _bottleneck(x, layers[-1], pool=_pool_matrix(b, ho, wo, part))
    # view(B, C, part)
    return pooled.reshape(b, part, LANES).transpose(0, 2, 1)


# ------------------------------------ main ------------------------------------

if __name__ == "__main__":
    key = jax.random.PRNGKey(0)
    kp, kx = jax.random.split(key)
    params = init_params(kp)
    # Input H must be a multiple of 96 so the final feature height is 6
    # (conv1 /2, maxpool /2, layer2 /2, layer3 /2, layer4 /1 after PCB mod).
    x = jax.random.normal(kx, (2, 3, 96, 48), dtype=jnp.float32)   # NCHW
    fwd = jax.jit(lambda inp: pcb_test_forward(params, inp))
    y = fwd(x)
    jax.block_until_ready(y)
    assert y.shape == (2, 128, 6), y.shape
    assert bool(jnp.all(jnp.isfinite(y)))
    print("KERNEL_OK")
</pallas_src>

<mosaic_0001>
module attributes {stable_mosaic.version = 11 : i64} {
  func.func @kernel(%arg0: i32, %arg1: memref<576x256xbf16, #tpu.memory_space<vmem>>, %arg2: memref<256x128xbf16, #tpu.memory_space<vmem>>, %arg3: memref<1x128xf32, #tpu.memory_space<vmem>>, %arg4: memref<1x128xf32, #tpu.memory_space<vmem>>, %arg5: memref<576x128xbf16, #tpu.memory_space<vmem>>) attributes {dimension_semantics = [#tpu.dimension_semantics<parallel>], iteration_bounds = array<i64: 4>, scalar_prefetch = 0 : i64, scratch_operands = 0 : i64, tpu.core_type = #tpu.core_type<tc>, window_params = [{transform_indices = @transform_0, window_bounds = array<i64: 576, 256>}, {pipeline_mode = #tpu.pipeline_mode<synchronous>, transform_indices = @transform_1, window_bounds = array<i64: 256, 128>}, {pipeline_mode = #tpu.pipeline_mode<synchronous>, transform_indices = @transform_2, window_bounds = array<i64: 1, 128>}, {pipeline_mode = #tpu.pipeline_mode<synchronous>, transform_indices = @transform_3, window_bounds = array<i64: 1, 128>}, {transform_indices = @transform_4, window_bounds = array<i64: 576, 128>}]} {
    %c0 = arith.constant 0 : index
    %c0_0 = arith.constant 0 : index
    %0 = vector.load %arg1[%c0, %c0_0] : memref<576x256xbf16, #tpu.memory_space<vmem>>, vector<576x256xbf16>
    %c0_1 = arith.constant 0 : index
    %c0_2 = arith.constant 0 : index
    %1 = vector.load %arg2[%c0_1, %c0_2] : memref<256x128xbf16, #tpu.memory_space<vmem>>, vector<256x128xbf16>
    %cst = arith.constant dense<0.000000e+00> : vector<576x128xf32>
    %2 = tpu.matmul %0, %1, %cst {dimension_numbers = #tpu.dot_dimension_numbers<[1], [0], [0], [1], [0, 0, 1, 1], [], []>} : vector<576x256xbf16>, vector<256x128xbf16>, vector<576x128xf32> -> vector<576x128xf32>
    %c0_3 = arith.constant 0 : index
    %c0_4 = arith.constant 0 : index
    %3 = vector.load %arg3[%c0_3, %c0_4] : memref<1x128xf32, #tpu.memory_space<vmem>>, vector<1x128xf32>
    %4 = vector.broadcast %3 : vector<1x128xf32> to vector<576x128xf32>
    %5 = arith.mulf %2, %4 : vector<576x128xf32>
    %c0_5 = arith.constant 0 : index
    %c0_6 = arith.constant 0 : index
    %6 = vector.load %arg4[%c0_5, %c0_6] : memref<1x128xf32, #tpu.memory_space<vmem>>, vector<1x128xf32>
    %7 = vector.broadcast %6 : vector<1x128xf32> to vector<576x128xf32>
    %8 = arith.addf %5, %7 : vector<576x128xf32>
    %cst_7 = arith.constant 0.000000e+00 : f32
    %9 = vector.broadcast %cst_7 : f32 to vector<576x128xf32>
    %10 = arith.maximumf %8, %9 : vector<576x128xf32>
    %11 = arith.truncf %10 : vector<576x128xf32> to vector<576x128xbf16>
    %c0_8 = arith.constant 0 : index
    %c0_9 = arith.constant 0 : index
    %12 = vector.load %arg5[%c0_8, %c0_9] : memref<576x128xbf16, #tpu.memory_space<vmem>>, vector<576x128xbf16>
    tpu.vector_store %arg5[%c0_8, %c0_9], %11 {strides = array<i32>} : memref<576x128xbf16, #tpu.memory_space<vmem>>, vector<576x128xbf16>,
    return
  }
  func.func @transform_0(%arg0: i32) -> (i32, i32) {
    %c0_i32 = arith.constant 0 : i32
    %c0_i32_0 = arith.constant 0 : i32
    return %arg0, %c0_i32 : i32, i32
  }
  func.func @transform_1(%arg0: i32) -> (i32, i32) {
    %c0_i32 = arith.constant 0 : i32
    %c0_i32_0 = arith.constant 0 : i32
    %c0_i32_1 = arith.constant 0 : i32
    return %c0_i32, %c0_i32_0 : i32, i32
  }
  func.func @transform_2(%arg0: i32) -> (i32, i32) {
    %c0_i32 = arith.constant 0 : i32
    %c0_i32_0 = arith.constant 0 : i32
    %c0_i32_1 = arith.constant 0 : i32
    return %c0_i32, %c0_i32_0 : i32, i32
  }
  func.func @transform_3(%arg0: i32) -> (i32, i32) {
    %c0_i32 = arith.constant 0 : i32
    %c0_i32_0 = arith.constant 0 : i32
    %c0_i32_1 = arith.constant 0 : i32
    return %c0_i32, %c0_i32_0 : i32, i32
  }
  func.func @transform_4(%arg0: i32) -> (i32, i32) {
    %c0_i32 = arith.constant 0 : i32
    %c0_i32_0 = arith.constant 0 : i32
    return %arg0, %c0_i32 : i32, i32
  }
}

module attributes {stable_mosaic.version = 11 : i64} {
  func.func @kernel(%arg0: i32, %arg1: memref<1440x128xf32, #tpu.memory_space<vmem>>, %arg2: memref<1440x128xf32, #tpu.memory_space<vmem>>, %arg3: memref<128x128xbf16, #tpu.memory_space<vmem>>) attributes {dimension_semantics = [#tpu.dimension_semantics<parallel>], iteration_bounds = array<i64: 11>, scalar_prefetch = 0 : i64, scratch_operands = 0 : i64, tpu.core_type = #tpu.core_type<tc>, window_params = [{pipeline_mode = #tpu.pipeline_mode<synchronous>, transform_indices = @transform_0, window_bounds = array<i64: 1440, 128>}, {pipeline_mode = #tpu.pipeline_mode<synchronous>, transform_indices = @transform_1, window_bounds = array<i64: 1440, 128>}, {transform_indices = @transform_2, window_bounds = array<i64: 128, 128>}]} {
    %c128_i32 = arith.constant 128 : i32
    %0 = arith.muli %arg0, %c128_i32 : i32
    %1 = tpu.assume_multiple %0, 128 : i32
    %c0_i32 = arith.constant 0 : i32
    %2 = arith.addi %1, %c0_i32 : i32
    %3 = arith.index_cast %2 : i32 to index
    %c0 = arith.constant 0 : index
    %4 = vector.load %arg1[%3, %c0] : memref<1440x128xf32, #tpu.memory_space<vmem>>, vector<128x128xf32>
    %c0_i32_0 = arith.constant 0 : i32
    %5 = arith.addi %1, %c0_i32_0 : i32
    %6 = arith.index_cast %5 : i32 to index
    %c0_1 = arith.constant 0 : index
    %7 = vector.load %arg2[%6, %c0_1] : memref<1440x128xf32, #tpu.memory_space<vmem>>, vector<128x128xf32>
    %8 = arith.maximumf %4, %7 : vector<128x128xf32>
    %c1_i32 = arith.constant 1 : i32
    %9 = arith.addi %1, %c1_i32 : i32
    %10 = arith.index_cast %9 : i32 to index
    %c0_2 = arith.constant 0 : index
    %11 = vector.load %arg1[%10, %c0_2] : memref<1440x128xf32, #tpu.memory_space<vmem>>, vector<128x128xf32>
    %12 = arith.maximumf %8, %11 : vector<128x128xf32>
    %c13_i32 = arith.constant 13 : i32
    %13 = arith.addi %1, %c13_i32 : i32
    %14 = arith.index_cast %13 : i32 to index
    %c0_3 = arith.constant 0 : index
    %15 = vector.load %arg1[%14, %c0_3] : memref<1440x128xf32, #tpu.memory_space<vmem>>, vector<128x128xf32>
    %16 = arith.maximumf %12, %15 : vector<128x128xf32>
    %c13_i32_4 = arith.constant 13 : i32
    %17 = arith.addi %1, %c13_i32_4 : i32
    %18 = arith.index_cast %17 : i32 to index
    %c0_5 = arith.constant 0 : index
    %19 = vector.load %arg2[%18, %c0_5] : memref<1440x128xf32, #tpu.memory_space<vmem>>, vector<128x128xf32>
    %20 = arith.maximumf %16, %19 : vector<128x128xf32>
    %c14_i32 = arith.constant 14 : i32
    %21 = arith.addi %1, %c14_i32 : i32
    %22 = arith.index_cast %21 : i32 to index
    %c0_6 = arith.constant 0 : index
    %23 = vector.load %arg1[%22, %c0_6] : memref<1440x128xf32, #tpu.memory_space<vmem>>, vector<128x128xf32>
    %24 = arith.maximumf %20, %23 : vector<128x128xf32>
    %c26_i32 = arith.constant 26 : i32
    %25 = arith.addi %1, %c26_i32 : i32
    %26 = arith.index_cast %25 : i32 to index
    %c0_7 = arith.constant 0 : index
    %27 = vector.load %arg1[%26, %c0_7] : memref<1440x128xf32, #tpu.memory_space<vmem>>, vector<128x128xf32>
    %28 = arith.maximumf %24, %27 : vector<128x128xf32>
    %c26_i32_8 = arith.constant 26 : i32
    %29 = arith.addi %1, %c26_i32_8 : i32
    %30 = arith.index_cast %29 : i32 to index
    %c0_9 = arith.constant 0 : index
    %31 = vector.load %arg2[%30, %c0_9] : memref<1440x128xf32, #tpu.memory_space<vmem>>, vector<128x128xf32>
    %32 = arith.maximumf %28, %31 : vector<128x128xf32>
    %c27_i32 = arith.constant 27 : i32
    %33 = arith.addi %1, %c27_i32 : i32
    %34 = arith.index_cast %33 : i32 to index
    %c0_10 = arith.constant 0 : index
    %35 = vector.load %arg1[%34, %c0_10] : memref<1440x128xf32, #tpu.memory_space<vmem>>, vector<128x128xf32>
    %36 = arith.maximumf %32, %35 : vector<128x128xf32>
    %37 = arith.truncf %36 : vector<128x128xf32> to vector<128x128xbf16>
    %c0_11 = arith.constant 0 : index
    %c0_12 = arith.constant 0 : index
    %38 = vector.load %arg3[%c0_11, %c0_12] : memref<128x128xbf16, #tpu.memory_space<vmem>>, vector<128x128xbf16>
    tpu.vector_store %arg3[%c0_11, %c0_12], %37 {strides = array<i32>} : memref<128x128xbf16, #tpu.memory_space<vmem>>, vector<128x128xbf16>,
    return
  }
  func.func @transform_0(%arg0: i32) -> (i32, i32) {
    %c0_i32 = arith.constant 0 : i32
    %c0_i32_0 = arith.constant 0 : i32
    %c0_i32_1 = arith.constant 0 : i32
    return %c0_i32, %c0_i32_0 : i32, i32
  }
  func.func @transform_1(%arg0: i32) -> (i32, i32) {
    %c0_i32 = arith.constant 0 : i32
    %c0_i32_0 = arith.constant 0 : i32
    %c0_i32_1 = arith.constant 0 : i32
    return %c0_i32, %c0_i32_0 : i32, i32
  }
  func.func @transform_2(%arg0: i32) -> (i32, i32) {
    %c0_i32 = arith.constant 0 : i32
    %c0_i32_0 = arith.constant 0 : i32
    return %arg0, %c0_i32 : i32, i32
  }
}

module attributes {stable_mosaic.version = 11 : i64} {
  func.func @kernel(%arg0: i32, %arg1: memref<576x128xbf16, #tpu.memory_space<vmem>>, %arg2: memref<128x128xbf16, #tpu.memory_space<vmem>>, %arg3: memref<1x128xf32, #tpu.memory_space<vmem>>, %arg4: memref<1x128xf32, #tpu.memory_space<vmem>>, %arg5: memref<576x128xf32, #tpu.memory_space<vmem>>) attributes {dimension_semantics = [#tpu.dimension_semantics<parallel>], iteration_bounds = array<i64: 1>, scalar_prefetch = 0 : i64, scratch_operands = 0 : i64, tpu.core_type = #tpu.core_type<tc>, window_params = [{transform_indices = @transform_0, window_bounds = array<i64: 576, 128>}, {pipeline_mode = #tpu.pipeline_mode<synchronous>, transform_indices = @transform_1, window_bounds = array<i64: 128, 128>}, {pipeline_mode = #tpu.pipeline_mode<synchronous>, transform_indices = @transform_2, window_bounds = array<i64: 1, 128>}, {pipeline_mode = #tpu.pipeline_mode<synchronous>, transform_indices = @transform_3, window_bounds = array<i64: 1, 128>}, {transform_indices = @transform_4, window_bounds = array<i64: 576, 128>}]} {
    %c0 = arith.constant 0 : index
    %c0_0 = arith.constant 0 : index
    %0 = vector.load %arg1[%c0, %c0_0] : memref<576x128xbf16, #tpu.memory_space<vmem>>, vector<576x128xbf16>
    %c0_1 = arith.constant 0 : index
    %c0_2 = arith.constant 0 : index
    %1 = vector.load %arg2[%c0_1, %c0_2] : memref<128x128xbf16, #tpu.memory_space<vmem>>, vector<128x128xbf16>
    %cst = arith.constant dense<0.000000e+00> : vector<576x128xf32>
    %2 = tpu.matmul %0, %1, %cst {dimension_numbers = #tpu.dot_dimension_numbers<[1], [0], [0], [1], [0, 0, 1, 1], [], []>} : vector<576x128xbf16>, vector<128x128xbf16>, vector<576x128xf32> -> vector<576x128xf32>
    %c0_3 = arith.constant 0 : index
    %c0_4 = arith.constant 0 : index
    %3 = vector.load %arg3[%c0_3, %c0_4] : memref<1x128xf32, #tpu.memory_space<vmem>>, vector<1x128xf32>
    %4 = vector.broadcast %3 : vector<1x128xf32> to vector<576x128xf32>
    %5 = arith.mulf %2, %4 : vector<576x128xf32>
    %c0_5 = arith.constant 0 : index
    %c0_6 = arith.constant 0 : index
    %6 = vector.load %arg4[%c0_5, %c0_6] : memref<1x128xf32, #tpu.memory_space<vmem>>, vector<1x128xf32>
    %7 = vector.broadcast %6 : vector<1x128xf32> to vector<576x128xf32>
    %8 = arith.addf %5, %7 : vector<576x128xf32>
    %cst_7 = arith.constant 0.000000e+00 : f32
    %9 = vector.broadcast %cst_7 : f32 to vector<576x128xf32>
    %10 = arith.maximumf %8, %9 : vector<576x128xf32>
    %c0_8 = arith.constant 0 : index
    %c0_9 = arith.constant 0 : index
    %11 = vector.load %arg5[%c0_8, %c0_9] : memref<576x128xf32, #tpu.memory_space<vmem>>, vector<576x128xf32>
    tpu.vector_store %arg5[%c0_8, %c0_9], %10 {strides = array<i32>} : memref<576x128xf32, #tpu.memory_space<vmem>>, vector<576x128xf32>,
    return
  }
  func.func @transform_0(%arg0: i32) -> (i32, i32) {
    %c0_i32 = arith.constant 0 : i32
    %c0_i32_0 = arith.constant 0 : i32
    return %arg0, %c0_i32 : i32, i32
  }
  func.func @transform_1(%arg0: i32) -> (i32, i32) {
    %c0_i32 = arith.constant 0 : i32
    %c0_i32_0 = arith.constant 0 : i32
    %c0_i32_1 = arith.constant 0 : i32
    return %c0_i32, %c0_i32_0 : i32, i32
  }
  func.func @transform_2(%arg0: i32) -> (i32, i32) {
    %c0_i32 = arith.constant 0 : i32
    %c0_i32_0 = arith.constant 0 : i32
    %c0_i32_1 = arith.constant 0 : i32
    return %c0_i32, %c0_i32_0 : i32, i32
  }
  func.func @transform_3(%arg0: i32) -> (i32, i32) {
    %c0_i32 = arith.constant 0 : i32
    %c0_i32_0 = arith.constant 0 : i32
    %c0_i32_1 = arith.constant 0 : i32
    return %c0_i32, %c0_i32_0 : i32, i32
  }
  func.func @transform_4(%arg0: i32) -> (i32, i32) {
    %c0_i32 = arith.constant 0 : i32
    %c0_i32_0 = arith.constant 0 : i32
    return %arg0, %c0_i32 : i32, i32
  }
}

module attributes {stable_mosaic.version = 11 : i64} {
  func.func @kernel(%arg0: i32, %arg1: memref<800x128xf32, #tpu.memory_space<vmem>>, %arg2: memref<1152x128xbf16, #tpu.memory_space<vmem>>, %arg3: memref<1x128xf32, #tpu.memory_space<vmem>>, %arg4: memref<1x128xf32, #tpu.memory_space<vmem>>, %arg5: memref<128x128xbf16, #tpu.memory_space<vmem>>) attributes {dimension_semantics = [#tpu.dimension_semantics<parallel>], iteration_bounds = array<i64: 6>, scalar_prefetch = 0 : i64, scratch_operands = 0 : i64, tpu.core_type = #tpu.core_type<tc>, window_params = [{pipeline_mode = #tpu.pipeline_mode<synchronous>, transform_indices = @transform_0, window_bounds = array<i64: 800, 128>}, {pipeline_mode = #tpu.pipeline_mode<synchronous>, transform_indices = @transform_1, window_bounds = array<i64: 1152, 128>}, {pipeline_mode = #tpu.pipeline_mode<synchronous>, transform_indices = @transform_2, window_bounds = array<i64: 1, 128>}, {pipeline_mode = #tpu.pipeline_mode<synchronous>, transform_indices = @transform_3, window_bounds = array<i64: 1, 128>}, {transform_indices = @transform_4, window_bounds = array<i64: 128, 128>}]} {
    %c128_i32 = arith.constant 128 : i32
    %0 = arith.muli %arg0, %c128_i32 : i32
    %1 = tpu.assume_multiple %0, 128 : i32
    %c0_i32 = arith.constant 0 : i32
    %2 = arith.addi %1, %c0_i32 : i32
    %3 = arith.index_cast %2 : i32 to index
    %c0 = arith.constant 0 : index
    %4 = vector.load %arg1[%3, %c0] : memref<800x128xf32, #tpu.memory_space<vmem>>, vector<128x128xf32>
    %5 = arith.truncf %4 : vector<128x128xf32> to vector<128x128xbf16>
    %c1_i32 = arith.constant 1 : i32
    %6 = arith.addi %1, %c1_i32 : i32
    %7 = arith.index_cast %6 : i32 to index
    %c0_0 = arith.constant 0 : index
    %8 = vector.load %arg1[%7, %c0_0] : memref<800x128xf32, #tpu.memory_space<vmem>>, vector<128x128xf32>
    %9 = arith.truncf %8 : vector<128x128xf32> to vector<128x128xbf16>
    %10 = tpu.concatenate %5, %9 in 1 : vector<128x128xbf16>, vector<128x128xbf16> -> vector<128x256xbf16>
    %c0_1 = arith.constant 0 : index
    %c0_2 = arith.constant 0 : index
    %11 = vector.load %arg2[%c0_1, %c0_2] : memref<1152x128xbf16, #tpu.memory_space<vmem>>, vector<256x128xbf16>
    %cst = arith.constant dense<0.000000e+00> : vector<128x128xf32>
    %12 = tpu.matmul %10, %11, %cst {dimension_numbers = #tpu.dot_dimension_numbers<[1], [0], [0], [1], [0, 0, 1, 1], [], []>} : vector<128x256xbf16>, vector<256x128xbf16>, vector<128x128xf32> -> vector<128x128xf32>
    %c2_i32 = arith.constant 2 : i32
    %13 = arith.addi %1, %c2_i32 : i32
    %14 = arith.index_cast %13 : i32 to index
    %c0_3 = arith.constant 0 : index
    %15 = vector.load %arg1[%14, %c0_3] : memref<800x128xf32, #tpu.memory_space<vmem>>, vector<128x128xf32>
    %16 = arith.truncf %15 : vector<128x128xf32> to vector<128x128xbf16>
    %c14_i32 = arith.constant 14 : i32
    %17 = arith.addi %1, %c14_i32 : i32
    %18 = arith.index_cast %17 : i32 to index
    %c0_4 = arith.constant 0 : index
    %19 = vector.load %arg1[%18, %c0_4] : memref<800x128xf32, #tpu.memory_space<vmem>>, vector<128x128xf32>
    %20 = arith.truncf %19 : vector<128x128xf32> to vector<128x128xbf16>
    %21 = tpu.concatenate %16, %20 in 1 : vector<128x128xbf16>, vector<128x128xbf16> -> vector<128x256xbf16>
    %c256 = arith.constant 256 : index
    %c0_5 = arith.constant 0 : index
    %22 = vector.load %arg2[%c256, %c0_5] : memref<1152x128xbf16, #tpu.memory_space<vmem>>, vector<256x128xbf16>
    %cst_6 = arith.constant dense<0.000000e+00> : vector<128x128xf32>
    %23 = tpu.matmul %21, %22, %cst_6 {dimension_numbers = #tpu.dot_dimension_numbers<[1], [0], [0], [1], [0, 0, 1, 1], [], []>} : vector<128x256xbf16>, vector<256x128xbf16>, vector<128x128xf32> -> vector<128x128xf32>
    %24 = arith.addf %12, %23 : vector<128x128xf32>
    %c15_i32 = arith.constant 15 : i32
    %25 = arith.addi %1, %c15_i32 : i32
    %26 = arith.index_cast %25 : i32 to index
    %c0_7 = arith.constant 0 : index
    %27 = vector.load %arg1[%26, %c0_7] : memref<800x128xf32, #tpu.memory_space<vmem>>, vector<128x128xf32>
    %28 = arith.truncf %27 : vector<128x128xf32> to vector<128x128xbf16>
    %c16_i32 = arith.constant 16 : i32
    %29 = arith.addi %1, %c16_i32 : i32
    %30 = arith.index_cast %29 : i32 to index
    %c0_8 = arith.constant 0 : index
    %31 = vector.load %arg1[%30, %c0_8] : memref<800x128xf32, #tpu.memory_space<vmem>>, vector<128x128xf32>
    %32 = arith.truncf %31 : vector<128x128xf32> to vector<128x128xbf16>
    %33 = tpu.concatenate %28, %32 in 1 : vector<128x128xbf16>, vector<128x128xbf16> -> vector<128x256xbf16>
    %c512 = arith.constant 512 : index
    %c0_9 = arith.constant 0 : index
    %34 = vector.load %arg2[%c512, %c0_9] : memref<1152x128xbf16, #tpu.memory_space<vmem>>, vector<256x128xbf16>
    %cst_10 = arith.constant dense<0.000000e+00> : vector<128x128xf32>
    %35 = tpu.matmul %33, %34, %cst_10 {dimension_numbers = #tpu.dot_dimension_numbers<[1], [0], [0], [1], [0, 0, 1, 1], [], []>} : vector<128x256xbf16>, vector<256x128xbf16>, vector<128x128xf32> -> vector<128x128xf32>
    %36 = arith.addf %24, %35 : vector<128x128xf32>
    %c28_i32 = arith.constant 28 : i32
    %37 = arith.addi %1, %c28_i32 : i32
    %38 = arith.index_cast %37 : i32 to index
    %c0_11 = arith.constant 0 : index
    %39 = vector.load %arg1[%38, %c0_11] : memref<800x128xf32, #tpu.memory_space<vmem>>, vector<128x128xf32>
    %40 = arith.truncf %39 : vector<128x128xf32> to vector<128x128xbf16>
    %c29_i32 = arith.constant 29 : i32
    %41 = arith.addi %1, %c29_i32 : i32
    %42 = arith.index_cast %41 : i32 to index
    %c0_12 = arith.constant 0 : index
    %43 = vector.load %arg1[%42, %c0_12] : memref<800x128xf32, #tpu.memory_space<vmem>>, vector<128x128xf32>
    %44 = arith.truncf %43 : vector<128x128xf32> to vector<128x128xbf16>
    %45 = tpu.concatenate %40, %44 in 1 : vector<128x128xbf16>, vector<128x128xbf16> -> vector<128x256xbf16>
    %c768 = arith.constant 768 : index
    %c0_13 = arith.constant 0 : index
    %46 = vector.load %arg2[%c768, %c0_13] : memref<1152x128xbf16, #tpu.memory_space<vmem>>, vector<256x128xbf16>
    %cst_14 = arith.constant dense<0.000000e+00> : vector<128x128xf32>
    %47 = tpu.matmul %45, %46, %cst_14 {dimension_numbers = #tpu.dot_dimension_numbers<[1], [0], [0], [1], [0, 0, 1, 1], [], []>} : vector<128x256xbf16>, vector<256x128xbf16>, vector<128x128xf32> -> vector<128x128xf32>
    %48 = arith.addf %36, %47 : vector<128x128xf32>
    %c30_i32 = arith.constant 30 : i32
    %49 = arith.addi %1, %c30_i32 : i32
    %50 = arith.index_cast %49 : i32 to index
    %c0_15 = arith.constant 0 : index
    %51 = vector.load %arg1[%50, %c0_15] : memref<800x128xf32, #tpu.memory_space<vmem>>, vector<128x128xf32>
    %52 = arith.truncf %51 : vector<128x128xf32> to vector<128x128xbf16>
    %c1024 = arith.constant 1024 : index
    %c0_16 = arith.constant 0 : index
    %53 = vector.load %arg2[%c1024, %c0_16] : memref<1152x128xbf16, #tpu.memory_space<vmem>>, vector<128x128xbf16>
    %cst_17 = arith.constant dense<0.000000e+00> : vector<128x128xf32>
    %54 = tpu.matmul %52, %53, %cst_17 {dimension_numbers = #tpu.dot_dimension_numbers<[1], [0], [0], [1], [0, 0, 1, 1], [], []>} : vector<128x128xbf16>, vector<128x128xbf16>, vector<128x128xf32> -> vector<128x128xf32>
    %55 = arith.addf %48, %54 : vector<128x128xf32>
    %c0_18 = arith.constant 0 : index
    %c0_19 = arith.constant 0 : index
    %56 = vector.load %arg3[%c0_18, %c0_19] : memref<1x128xf32, #tpu.memory_space<vmem>>, vector<1x128xf32>
    %57 = vector.broadcast %56 : vector<1x128xf32> to vector<128x128xf32>
    %58 = arith.mulf %55, %57 : vector<128x128xf32>
    %c0_20 = arith.constant 0 : index
    %c0_21 = arith.constant 0 : index
    %59 = vector.load %arg4[%c0_20, %c0_21] : memref<1x128xf32, #tpu.memory_space<vmem>>, vector<1x128xf32>
    %60 = vector.broadcast %59 : vector<1x128xf32> to vector<128x128xf32>
    %61 = arith.addf %58, %60 : vector<128x128xf32>
    %cst_22 = arith.constant 0.000000e+00 : f32
    %62 = vector.broadcast %cst_22 : f32 to vector<128x128xf32>
    %63 = arith.maximumf %61, %62 : vector<128x128xf32>
    %64 = arith.truncf %63 : vector<128x128xf32> to vector<128x128xbf16>
    %c0_23 = arith.constant 0 : index
    %c0_24 = arith.constant 0 : index
    %65 = vector.load %arg5[%c0_23, %c0_24] : memref<128x128xbf16, #tpu.memory_space<vmem>>, vector<128x128xbf16>
    tpu.vector_store %arg5[%c0_23, %c0_24], %64 {strides = array<i32>} : memref<128x128xbf16, #tpu.memory_space<vmem>>, vector<128x128xbf16>,
    return
  }
  func.func @transform_0(%arg0: i32) -> (i32, i32) {
    %c0_i32 = arith.constant 0 : i32
    %c0_i32_0 = arith.constant 0 : i32
    %c0_i32_1 = arith.constant 0 : i32
    return %c0_i32, %c0_i32_0 : i32, i32
  }
  func.func @transform_1(%arg0: i32) -> (i32, i32) {
    %c0_i32 = arith.constant 0 : i32
    %c0_i32_0 = arith.constant 0 : i32
    %c0_i32_1 = arith.constant 0 : i32
    return %c0_i32, %c0_i32_0 : i32, i32
  }
  func.func @transform_2(%arg0: i32) -> (i32, i32) {
    %c0_i32 = arith.constant 0 : i32
    %c0_i32_0 = arith.constant 0 : i32
    %c0_i32_1 = arith.constant 0 : i32
    return %c0_i32, %c0_i32_0 : i32, i32
  }
  func.func @transform_3(%arg0: i32) -> (i32, i32) {
    %c0_i32 = arith.constant 0 : i32
    %c0_i32_0 = arith.constant 0 : i32
    %c0_i32_1 = arith.constant 0 : i32
    return %c0_i32, %c0_i32_0 : i32, i32
  }
  func.func @transform_4(%arg0: i32) -> (i32, i32) {
    %c0_i32 = arith.constant 0 : i32
    %c0_i32_0 = arith.constant 0 : i32
    return %arg0, %c0_i32 : i32, i32
  }
}

module attributes {stable_mosaic.version = 11 : i64} {
  func.func @kernel(%arg0: i32, %arg1: memref<576x128xbf16, #tpu.memory_space<vmem>>, %arg2: memref<128x128xbf16, #tpu.memory_space<vmem>>, %arg3: memref<576x128xbf16, #tpu.memory_space<vmem>>, %arg4: memref<128x128xbf16, #tpu.memory_space<vmem>>, %arg5: memref<1x128xf32, #tpu.memory_space<vmem>>, %arg6: memref<1x128xf32, #tpu.memory_space<vmem>>, %arg7: memref<1x128xf32, #tpu.memory_space<vmem>>, %arg8: memref<1x128xf32, #tpu.memory_space<vmem>>, %arg9: memref<576x128xbf16, #tpu.memory_space<vmem>>) attributes {dimension_semantics = [#tpu.dimension_semantics<parallel>], iteration_bounds = array<i64: 1>, scalar_prefetch = 0 : i64, scratch_operands = 0 : i64, tpu.core_type = #tpu.core_type<tc>, window_params = [{transform_indices = @transform_0, window_bounds = array<i64: 576, 128>}, {pipeline_mode = #tpu.pipeline_mode<synchronous>, transform_indices = @transform_1, window_bounds = array<i64: 128, 128>}, {transform_indices = @transform_2, window_bounds = array<i64: 576, 128>}, {pipeline_mode = #tpu.pipeline_mode<synchronous>, transform_indices = @transform_3, window_bounds = array<i64: 128, 128>}, {pipeline_mode = #tpu.pipeline_mode<synchronous>, transform_indices = @transform_4, window_bounds = array<i64: 1, 128>}, {pipeline_mode = #tpu.pipeline_mode<synchronous>, transform_indices = @transform_5, window_bounds = array<i64: 1, 128>}, {pipeline_mode = #tpu.pipeline_mode<synchronous>, transform_indices = @transform_6, window_bounds = array<i64: 1, 128>}, {pipeline_mode = #tpu.pipeline_mode<synchronous>, transform_indices = @transform_7, window_bounds = array<i64: 1, 128>}, {transform_indices = @transform_8, window_bounds = array<i64: 576, 128>}]} {
    %c0 = arith.constant 0 : index
    %c0_0 = arith.constant 0 : index
    %0 = vector.load %arg1[%c0, %c0_0] : memref<576x128xbf16, #tpu.memory_space<vmem>>, vector<576x128xbf16>
    %c0_1 = arith.constant 0 : index
    %c0_2 = arith.constant 0 : index
    %1 = vector.load %arg2[%c0_1, %c0_2] : memref<128x128xbf16, #tpu.memory_space<vmem>>, vector<128x128xbf16>
    %cst = arith.constant dense<0.000000e+00> : vector<576x128xf32>
    %2 = tpu.matmul %0, %1, %cst {dimension_numbers = #tpu.dot_dimension_numbers<[1], [0], [0], [1], [0, 0, 1, 1], [], []>} : vector<576x128xbf16>, vector<128x128xbf16>, vector<576x128xf32> -> vector<576x128xf32>
    %c0_3 = arith.constant 0 : index
    %c0_4 = arith.constant 0 : index
    %3 = vector.load %arg7[%c0_3, %c0_4] : memref<1x128xf32, #tpu.memory_space<vmem>>, vector<1x128xf32>
    %4 = vector.broadcast %3 : vector<1x128xf32> to vector<576x128xf32>
    %5 = arith.mulf %2, %4 : vector<576x128xf32>
    %c0_5 = arith.constant 0 : index
    %c0_6 = arith.constant 0 : index
    %6 = vector.load %arg8[%c0_5, %c0_6] : memref<1x128xf32, #tpu.memory_space<vmem>>, vector<1x128xf32>
    %7 = vector.broadcast %6 : vector<1x128xf32> to vector<576x128xf32>
    %8 = arith.addf %5, %7 : vector<576x128xf32>
    %c0_7 = arith.constant 0 : index
    %c0_8 = arith.constant 0 : index
    %9 = vector.load %arg3[%c0_7, %c0_8] : memref<576x128xbf16, #tpu.memory_space<vmem>>, vector<576x128xbf16>
    %c0_9 = arith.constant 0 : index
    %c0_10 = arith.constant 0 : index
    %10 = vector.load %arg4[%c0_9, %c0_10] : memref<128x128xbf16, #tpu.memory_space<vmem>>, vector<128x128xbf16>
    %cst_11 = arith.constant dense<0.000000e+00> : vector<576x128xf32>
    %11 = tpu.matmul %9, %10, %cst_11 {dimension_numbers = #tpu.dot_dimension_numbers<[1], [0], [0], [1], [0, 0, 1, 1], [], []>} : vector<576x128xbf16>, vector<128x128xbf16>, vector<576x128xf32> -> vector<576x128xf32>
    %c0_12 = arith.constant 0 : index
    %c0_13 = arith.constant 0 : index
    %12 = vector.load %arg5[%c0_12, %c0_13] : memref<1x128xf32, #tpu.memory_space<vmem>>, vector<1x128xf32>
    %13 = vector.broadcast %12 : vector<1x128xf32> to vector<576x128xf32>
    %14 = arith.mulf %11, %13 : vector<576x128xf32>
    %c0_14 = arith.constant 0 : index
    %c0_15 = arith.constant 0 : index
    %15 = vector.load %arg6[%c0_14, %c0_15] : memref<1x128xf32, #tpu.memory_space<vmem>>, vector<1x128xf32>
    %16 = vector.broadcast %15 : vector<1x128xf32> to vector<576x128xf32>
    %17 = arith.addf %14, %16 : vector<576x128xf32>
    %18 = arith.addf %8, %17 : vector<576x128xf32>
    %cst_16 = arith.constant 0.000000e+00 : f32
    %19 = vector.broadcast %cst_16 : f32 to vector<576x128xf32>
    %20 = arith.maximumf %18, %19 : vector<576x128xf32>
    %21 = arith.truncf %20 : vector<576x128xf32> to vector<576x128xbf16>
    %c0_17 = arith.constant 0 : index
    %c0_18 = arith.constant 0 : index
    %22 = vector.load %arg9[%c0_17, %c0_18] : memref<576x128xbf16, #tpu.memory_space<vmem>>, vector<576x128xbf16>
    tpu.vector_store %arg9[%c0_17, %c0_18], %21 {strides = array<i32>} : memref<576x128xbf16, #tpu.memory_space<vmem>>, vector<576x128xbf16>,
    return
  }
  func.func @transform_0(%arg0: i32) -> (i32, i32) {
    %c0_i32 = arith.constant 0 : i32
    %c0_i32_0 = arith.constant 0 : i32
    return %arg0, %c0_i32 : i32, i32
  }
  func.func @transform_1(%arg0: i32) -> (i32, i32) {
    %c0_i32 = arith.constant 0 : i32
    %c0_i32_0 = arith.constant 0 : i32
    %c0_i32_1 = arith.constant 0 : i32
    return %c0_i32, %c0_i32_0 : i32, i32
  }
  func.func @transform_2(%arg0: i32) -> (i32, i32) {
    %c0_i32 = arith.constant 0 : i32
    %c0_i32_0 = arith.constant 0 : i32
    return %arg0, %c0_i32 : i32, i32
  }
  func.func @transform_3(%arg0: i32) -> (i32, i32) {
    %c0_i32 = arith.constant 0 : i32
    %c0_i32_0 = arith.constant 0 : i32
    %c0_i32_1 = arith.constant 0 : i32
    return %c0_i32, %c0_i32_0 : i32, i32
  }
  func.func @transform_4(%arg0: i32) -> (i32, i32) {
    %c0_i32 = arith.constant 0 : i32
    %c0_i32_0 = arith.constant 0 : i32
    %c0_i32_1 = arith.constant 0 : i32
    return %c0_i32, %c0_i32_0 : i32, i32
  }
  func.func @transform_5(%arg0: i32) -> (i32, i32) {
    %c0_i32 = arith.constant 0 : i32
    %c0_i32_0 = arith.constant 0 : i32
    %c0_i32_1 = arith.constant 0 : i32
    return %c0_i32, %c0_i32_0 : i32, i32
  }
  func.func @transform_6(%arg0: i32) -> (i32, i32) {
    %c0_i32 = arith.constant 0 : i32
    %c0_i32_0 = arith.constant 0 : i32
    %c0_i32_1 = arith.constant 0 : i32
    return %c0_i32, %c0_i32_0 : i32, i32
  }
  func.func @transform_7(%arg0: i32) -> (i32, i32) {
    %c0_i32 = arith.constant 0 : i32
    %c0_i32_0 = arith.constant 0 : i32
    %c0_i32_1 = arith.constant 0 : i32
    return %c0_i32, %c0_i32_0 : i32, i32
  }
  func.func @transform_8(%arg0: i32) -> (i32, i32) {
    %c0_i32 = arith.constant 0 : i32
    %c0_i32_0 = arith.constant 0 : i32
    return %arg0, %c0_i32 : i32, i32
  }
}

module attributes {stable_mosaic.version = 11 : i64} {
  func.func @kernel(%arg0: i32, %arg1: memref<400x128xf32, #tpu.memory_space<vmem>>, %arg2: memref<400x128xf32, #tpu.memory_space<vmem>>, %arg3: memref<1152x128xbf16, #tpu.memory_space<vmem>>, %arg4: memref<1x128xf32, #tpu.memory_space<vmem>>, %arg5: memref<1x128xf32, #tpu.memory_space<vmem>>, %arg6: memref<128x128xbf16, #tpu.memory_space<vmem>>) attributes {dimension_semantics = [#tpu.dimension_semantics<parallel>], iteration_bounds = array<i64: 3>, scalar_prefetch = 0 : i64, scratch_operands = 0 : i64, tpu.core_type = #tpu.core_type<tc>, window_params = [{pipeline_mode = #tpu.pipeline_mode<synchronous>, transform_indices = @transform_0, window_bounds = array<i64: 400, 128>}, {pipeline_mode = #tpu.pipeline_mode<synchronous>, transform_indices = @transform_1, window_bounds = array<i64: 400, 128>}, {pipeline_mode = #tpu.pipeline_mode<synchronous>, transform_indices = @transform_2, window_bounds = array<i64: 1152, 128>}, {pipeline_mode = #tpu.pipeline_mode<synchronous>, transform_indices = @transform_3, window_bounds = array<i64: 1, 128>}, {pipeline_mode = #tpu.pipeline_mode<synchronous>, transform_indices = @transform_4, window_bounds = array<i64: 1, 128>}, {transform_indices = @transform_5, window_bounds = array<i64: 128, 128>}]} {
    %c128_i32 = arith.constant 128 : i32
    %0 = arith.muli %arg0, %c128_i32 : i32
    %1 = tpu.assume_multiple %0, 128 : i32
    %c0_i32 = arith.constant 0 : i32
    %2 = arith.addi %1, %c0_i32 : i32
    %3 = arith.index_cast %2 : i32 to index
    %c0 = arith.constant 0 : index
    %4 = vector.load %arg1[%3, %c0] : memref<400x128xf32, #tpu.memory_space<vmem>>, vector<128x128xf32>
    %5 = arith.truncf %4 : vector<128x128xf32> to vector<128x128xbf16>
    %c0_i32_0 = arith.constant 0 : i32
    %6 = arith.addi %1, %c0_i32_0 : i32
    %7 = arith.index_cast %6 : i32 to index
    %c0_1 = arith.constant 0 : index
    %8 = vector.load %arg2[%7, %c0_1] : memref<400x128xf32, #tpu.memory_space<vmem>>, vector<128x128xf32>
    %9 = arith.truncf %8 : vector<128x128xf32> to vector<128x128xbf16>
    %10 = tpu.concatenate %5, %9 in 1 : vector<128x128xbf16>, vector<128x128xbf16> -> vector<128x256xbf16>
    %c0_2 = arith.constant 0 : index
    %c0_3 = arith.constant 0 : index
    %11 = vector.load %arg3[%c0_2, %c0_3] : memref<1152x128xbf16, #tpu.memory_space<vmem>>, vector<256x128xbf16>
    %cst = arith.constant dense<0.000000e+00> : vector<128x128xf32>
    %12 = tpu.matmul %10, %11, %cst {dimension_numbers = #tpu.dot_dimension_numbers<[1], [0], [0], [1], [0, 0, 1, 1], [], []>} : vector<128x256xbf16>, vector<256x128xbf16>, vector<128x128xf32> -> vector<128x128xf32>
    %c1_i32 = arith.constant 1 : i32
    %13 = arith.addi %1, %c1_i32 : i32
    %14 = arith.index_cast %13 : i32 to index
    %c0_4 = arith.constant 0 : index
    %15 = vector.load %arg1[%14, %c0_4] : memref<400x128xf32, #tpu.memory_space<vmem>>, vector<128x128xf32>
    %16 = arith.truncf %15 : vector<128x128xf32> to vector<128x128xbf16>
    %c7_i32 = arith.constant 7 : i32
    %17 = arith.addi %1, %c7_i32 : i32
    %18 = arith.index_cast %17 : i32 to index
    %c0_5 = arith.constant 0 : index
    %19 = vector.load %arg1[%18, %c0_5] : memref<400x128xf32, #tpu.memory_space<vmem>>, vector<128x128xf32>
    %20 = arith.truncf %19 : vector<128x128xf32> to vector<128x128xbf16>
    %21 = tpu.concatenate %16, %20 in 1 : vector<128x128xbf16>, vector<128x128xbf16> -> vector<128x256xbf16>
    %c256 = arith.constant 256 : index
    %c0_6 = arith.constant 0 : index
    %22 = vector.load %arg3[%c256, %c0_6] : memref<1152x128xbf16, #tpu.memory_space<vmem>>, vector<256x128xbf16>
    %cst_7 = arith.constant dense<0.000000e+00> : vector<128x128xf32>
    %23 = tpu.matmul %21, %22, %cst_7 {dimension_numbers = #tpu.dot_dimension_numbers<[1], [0], [0], [1], [0, 0, 1, 1], [], []>} : vector<128x256xbf16>, vector<256x128xbf16>, vector<128x128xf32> -> vector<128x128xf32>
    %24 = arith.addf %12, %23 : vector<128x128xf32>
    %c7_i32_8 = arith.constant 7 : i32
    %25 = arith.addi %1, %c7_i32_8 : i32
    %26 = arith.index_cast %25 : i32 to index
    %c0_9 = arith.constant 0 : index
    %27 = vector.load %arg2[%26, %c0_9] : memref<400x128xf32, #tpu.memory_space<vmem>>, vector<128x128xf32>
    %28 = arith.truncf %27 : vector<128x128xf32> to vector<128x128xbf16>
    %c8_i32 = arith.constant 8 : i32
    %29 = arith.addi %1, %c8_i32 : i32
    %30 = arith.index_cast %29 : i32 to index
    %c0_10 = arith.constant 0 : index
    %31 = vector.load %arg1[%30, %c0_10] : memref<400x128xf32, #tpu.memory_space<vmem>>, vector<128x128xf32>
    %32 = arith.truncf %31 : vector<128x128xf32> to vector<128x128xbf16>
    %33 = tpu.concatenate %28, %32 in 1 : vector<128x128xbf16>, vector<128x128xbf16> -> vector<128x256xbf16>
    %c512 = arith.constant 512 : index
    %c0_11 = arith.constant 0 : index
    %34 = vector.load %arg3[%c512, %c0_11] : memref<1152x128xbf16, #tpu.memory_space<vmem>>, vector<256x128xbf16>
    %cst_12 = arith.constant dense<0.000000e+00> : vector<128x128xf32>
    %35 = tpu.matmul %33, %34, %cst_12 {dimension_numbers = #tpu.dot_dimension_numbers<[1], [0], [0], [1], [0, 0, 1, 1], [], []>} : vector<128x256xbf16>, vector<256x128xbf16>, vector<128x128xf32> -> vector<128x128xf32>
    %36 = arith.addf %24, %35 : vector<128x128xf32>
    %c14_i32 = arith.constant 14 : i32
    %37 = arith.addi %1, %c14_i32 : i32
    %38 = arith.index_cast %37 : i32 to index
    %c0_13 = arith.constant 0 : index
    %39 = vector.load %arg1[%38, %c0_13] : memref<400x128xf32, #tpu.memory_space<vmem>>, vector<128x128xf32>
    %40 = arith.truncf %39 : vector<128x128xf32> to vector<128x128xbf16>
    %c14_i32_14 = arith.constant 14 : i32
    %41 = arith.addi %1, %c14_i32_14 : i32
    %42 = arith.index_cast %41 : i32 to index
    %c0_15 = arith.constant 0 : index
    %43 = vector.load %arg2[%42, %c0_15] : memref<400x128xf32, #tpu.memory_space<vmem>>, vector<128x128xf32>
    %44 = arith.truncf %43 : vector<128x128xf32> to vector<128x128xbf16>
    %45 = tpu.concatenate %40, %44 in 1 : vector<128x128xbf16>, vector<128x128xbf16> -> vector<128x256xbf16>
    %c768 = arith.constant 768 : index
    %c0_16 = arith.constant 0 : index
    %46 = vector.load %arg3[%c768, %c0_16] : memref<1152x128xbf16, #tpu.memory_space<vmem>>, vector<256x128xbf16>
    %cst_17 = arith.constant dense<0.000000e+00> : vector<128x128xf32>
    %47 = tpu.matmul %45, %46, %cst_17 {dimension_numbers = #tpu.dot_dimension_numbers<[1], [0], [0], [1], [0, 0, 1, 1], [], []>} : vector<128x256xbf16>, vector<256x128xbf16>, vector<128x128xf32> -> vector<128x128xf32>
    %48 = arith.addf %36, %47 : vector<128x128xf32>
    %c15_i32 = arith.constant 15 : i32
    %49 = arith.addi %1, %c15_i32 : i32
    %50 = arith.index_cast %49 : i32 to index
    %c0_18 = arith.constant 0 : index
    %51 = vector.load %arg1[%50, %c0_18] : memref<400x128xf32, #tpu.memory_space<vmem>>, vector<128x128xf32>
    %52 = arith.truncf %51 : vector<128x128xf32> to vector<128x128xbf16>
    %c1024 = arith.constant 1024 : index
    %c0_19 = arith.constant 0 : index
    %53 = vector.load %arg3[%c1024, %c0_19] : memref<1152x128xbf16, #tpu.memory_space<vmem>>, vector<128x128xbf16>
    %cst_20 = arith.constant dense<0.000000e+00> : vector<128x128xf32>
    %54 = tpu.matmul %52, %53, %cst_20 {dimension_numbers = #tpu.dot_dimension_numbers<[1], [0], [0], [1], [0, 0, 1, 1], [], []>} : vector<128x128xbf16>, vector<128x128xbf16>, vector<128x128xf32> -> vector<128x128xf32>
    %55 = arith.addf %48, %54 : vector<128x128xf32>
    %c0_21 = arith.constant 0 : index
    %c0_22 = arith.constant 0 : index
    %56 = vector.load %arg4[%c0_21, %c0_22] : memref<1x128xf32, #tpu.memory_space<vmem>>, vector<1x128xf32>
    %57 = vector.broadcast %56 : vector<1x128xf32> to vector<128x128xf32>
    %58 = arith.mulf %55, %57 : vector<128x128xf32>
    %c0_23 = arith.constant 0 : index
    %c0_24 = arith.constant 0 : index
    %59 = vector.load %arg5[%c0_23, %c0_24] : memref<1x128xf32, #tpu.memory_space<vmem>>, vector<1x128xf32>
    %60 = vector.broadcast %59 : vector<1x128xf32> to vector<128x128xf32>
    %61 = arith.addf %58, %60 : vector<128x128xf32>
    %cst_25 = arith.constant 0.000000e+00 : f32
    %62 = vector.broadcast %cst_25 : f32 to vector<128x128xf32>
    %63 = arith.maximumf %61, %62 : vector<128x128xf32>
    %64 = arith.truncf %63 : vector<128x128xf32> to vector<128x128xbf16>
    %c0_26 = arith.constant 0 : index
    %c0_27 = arith.constant 0 : index
    %65 = vector.load %arg6[%c0_26, %c0_27] : memref<128x128xbf16, #tpu.memory_space<vmem>>, vector<128x128xbf16>
    tpu.vector_store %arg6[%c0_26, %c0_27], %64 {strides = array<i32>} : memref<128x128xbf16, #tpu.memory_space<vmem>>, vector<128x128xbf16>,
    return
  }
  func.func @transform_0(%arg0: i32) -> (i32, i32) {
    %c0_i32 = arith.constant 0 : i32
    %c0_i32_0 = arith.constant 0 : i32
    %c0_i32_1 = arith.constant 0 : i32
    return %c0_i32, %c0_i32_0 : i32, i32
  }
  func.func @transform_1(%arg0: i32) -> (i32, i32) {
    %c0_i32 = arith.constant 0 : i32
    %c0_i32_0 = arith.constant 0 : i32
    %c0_i32_1 = arith.constant 0 : i32
    return %c0_i32, %c0_i32_0 : i32, i32
  }
  func.func @transform_2(%arg0: i32) -> (i32, i32) {
    %c0_i32 = arith.constant 0 : i32
    %c0_i32_0 = arith.constant 0 : i32
    %c0_i32_1 = arith.constant 0 : i32
    return %c0_i32, %c0_i32_0 : i32, i32
  }
  func.func @transform_3(%arg0: i32) -> (i32, i32) {
    %c0_i32 = arith.constant 0 : i32
    %c0_i32_0 = arith.constant 0 : i32
    %c0_i32_1 = arith.constant 0 : i32
    return %c0_i32, %c0_i32_0 : i32, i32
  }
  func.func @transform_4(%arg0: i32) -> (i32, i32) {
    %c0_i32 = arith.constant 0 : i32
    %c0_i32_0 = arith.constant 0 : i32
    %c0_i32_1 = arith.constant 0 : i32
    return %c0_i32, %c0_i32_0 : i32, i32
  }
  func.func @transform_5(%arg0: i32) -> (i32, i32) {
    %c0_i32 = arith.constant 0 : i32
    %c0_i32_0 = arith.constant 0 : i32
    return %arg0, %c0_i32 : i32, i32
  }
}

module attributes {stable_mosaic.version = 11 : i64} {
  func.func @kernel(%arg0: i32, %arg1: memref<144x128xbf16, #tpu.memory_space<vmem>>, %arg2: memref<128x128xbf16, #tpu.memory_space<vmem>>, %arg3: memref<1x128xf32, #tpu.memory_space<vmem>>, %arg4: memref<1x128xf32, #tpu.memory_space<vmem>>, %arg5: memref<144x128xf32, #tpu.memory_space<vmem>>) attributes {dimension_semantics = [#tpu.dimension_semantics<parallel>], iteration_bounds = array<i64: 1>, scalar_prefetch = 0 : i64, scratch_operands = 0 : i64, tpu.core_type = #tpu.core_type<tc>, window_params = [{transform_indices = @transform_0, window_bounds = array<i64: 144, 128>}, {pipeline_mode = #tpu.pipeline_mode<synchronous>, transform_indices = @transform_1, window_bounds = array<i64: 128, 128>}, {pipeline_mode = #tpu.pipeline_mode<synchronous>, transform_indices = @transform_2, window_bounds = array<i64: 1, 128>}, {pipeline_mode = #tpu.pipeline_mode<synchronous>, transform_indices = @transform_3, window_bounds = array<i64: 1, 128>}, {transform_indices = @transform_4, window_bounds = array<i64: 144, 128>}]} {
    %c0 = arith.constant 0 : index
    %c0_0 = arith.constant 0 : index
    %0 = vector.load %arg1[%c0, %c0_0] : memref<144x128xbf16, #tpu.memory_space<vmem>>, vector<144x128xbf16>
    %c0_1 = arith.constant 0 : index
    %c0_2 = arith.constant 0 : index
    %1 = vector.load %arg2[%c0_1, %c0_2] : memref<128x128xbf16, #tpu.memory_space<vmem>>, vector<128x128xbf16>
    %cst = arith.constant dense<0.000000e+00> : vector<144x128xf32>
    %2 = tpu.matmul %0, %1, %cst {dimension_numbers = #tpu.dot_dimension_numbers<[1], [0], [0], [1], [0, 0, 1, 1], [], []>} : vector<144x128xbf16>, vector<128x128xbf16>, vector<144x128xf32> -> vector<144x128xf32>
    %c0_3 = arith.constant 0 : index
    %c0_4 = arith.constant 0 : index
    %3 = vector.load %arg3[%c0_3, %c0_4] : memref<1x128xf32, #tpu.memory_space<vmem>>, vector<1x128xf32>
    %4 = vector.broadcast %3 : vector<1x128xf32> to vector<144x128xf32>
    %5 = arith.mulf %2, %4 : vector<144x128xf32>
    %c0_5 = arith.constant 0 : index
    %c0_6 = arith.constant 0 : index
    %6 = vector.load %arg4[%c0_5, %c0_6] : memref<1x128xf32, #tpu.memory_space<vmem>>, vector<1x128xf32>
    %7 = vector.broadcast %6 : vector<1x128xf32> to vector<144x128xf32>
    %8 = arith.addf %5, %7 : vector<144x128xf32>
    %cst_7 = arith.constant 0.000000e+00 : f32
    %9 = vector.broadcast %cst_7 : f32 to vector<144x128xf32>
    %10 = arith.maximumf %8, %9 : vector<144x128xf32>
    %c0_8 = arith.constant 0 : index
    %c0_9 = arith.constant 0 : index
    %11 = vector.load %arg5[%c0_8, %c0_9] : memref<144x128xf32, #tpu.memory_space<vmem>>, vector<144x128xf32>
    tpu.vector_store %arg5[%c0_8, %c0_9], %10 {strides = array<i32>} : memref<144x128xf32, #tpu.memory_space<vmem>>, vector<144x128xf32>,
    return
  }
  func.func @transform_0(%arg0: i32) -> (i32, i32) {
    %c0_i32 = arith.constant 0 : i32
    %c0_i32_0 = arith.constant 0 : i32
    return %arg0, %c0_i32 : i32, i32
  }
  func.func @transform_1(%arg0: i32) -> (i32, i32) {
    %c0_i32 = arith.constant 0 : i32
    %c0_i32_0 = arith.constant 0 : i32
    %c0_i32_1 = arith.constant 0 : i32
    return %c0_i32, %c0_i32_0 : i32, i32
  }
  func.func @transform_2(%arg0: i32) -> (i32, i32) {
    %c0_i32 = arith.constant 0 : i32
    %c0_i32_0 = arith.constant 0 : i32
    %c0_i32_1 = arith.constant 0 : i32
    return %c0_i32, %c0_i32_0 : i32, i32
  }
  func.func @transform_3(%arg0: i32) -> (i32, i32) {
    %c0_i32 = arith.constant 0 : i32
    %c0_i32_0 = arith.constant 0 : i32
    %c0_i32_1 = arith.constant 0 : i32
    return %c0_i32, %c0_i32_0 : i32, i32
  }
  func.func @transform_4(%arg0: i32) -> (i32, i32) {
    %c0_i32 = arith.constant 0 : i32
    %c0_i32_0 = arith.constant 0 : i32
    return %arg0, %c0_i32 : i32, i32
  }
}

module attributes {stable_mosaic.version = 11 : i64} {
  func.func @kernel(%arg0: i32, %arg1: memref<144x128xbf16, #tpu.memory_space<vmem>>, %arg2: memref<128x128xbf16, #tpu.memory_space<vmem>>, %arg3: memref<144x128xbf16, #tpu.memory_space<vmem>>, %arg4: memref<128x128xbf16, #tpu.memory_space<vmem>>, %arg5: memref<1x128xf32, #tpu.memory_space<vmem>>, %arg6: memref<1x128xf32, #tpu.memory_space<vmem>>, %arg7: memref<1x128xf32, #tpu.memory_space<vmem>>, %arg8: memref<1x128xf32, #tpu.memory_space<vmem>>, %arg9: memref<144x128xbf16, #tpu.memory_space<vmem>>) attributes {dimension_semantics = [#tpu.dimension_semantics<parallel>], iteration_bounds = array<i64: 1>, scalar_prefetch = 0 : i64, scratch_operands = 0 : i64, tpu.core_type = #tpu.core_type<tc>, window_params = [{transform_indices = @transform_0, window_bounds = array<i64: 144, 128>}, {pipeline_mode = #tpu.pipeline_mode<synchronous>, transform_indices = @transform_1, window_bounds = array<i64: 128, 128>}, {transform_indices = @transform_2, window_bounds = array<i64: 144, 128>}, {pipeline_mode = #tpu.pipeline_mode<synchronous>, transform_indices = @transform_3, window_bounds = array<i64: 128, 128>}, {pipeline_mode = #tpu.pipeline_mode<synchronous>, transform_indices = @transform_4, window_bounds = array<i64: 1, 128>}, {pipeline_mode = #tpu.pipeline_mode<synchronous>, transform_indices = @transform_5, window_bounds = array<i64: 1, 128>}, {pipeline_mode = #tpu.pipeline_mode<synchronous>, transform_indices = @transform_6, window_bounds = array<i64: 1, 128>}, {pipeline_mode = #tpu.pipeline_mode<synchronous>, transform_indices = @transform_7, window_bounds = array<i64: 1, 128>}, {transform_indices = @transform_8, window_bounds = array<i64: 144, 128>}]} {
    %c0 = arith.constant 0 : index
    %c0_0 = arith.constant 0 : index
    %0 = vector.load %arg1[%c0, %c0_0] : memref<144x128xbf16, #tpu.memory_space<vmem>>, vector<144x128xbf16>
    %c0_1 = arith.constant 0 : index
    %c0_2 = arith.constant 0 : index
    %1 = vector.load %arg2[%c0_1, %c0_2] : memref<128x128xbf16, #tpu.memory_space<vmem>>, vector<128x128xbf16>
    %cst = arith.constant dense<0.000000e+00> : vector<144x128xf32>
    %2 = tpu.matmul %0, %1, %cst {dimension_numbers = #tpu.dot_dimension_numbers<[1], [0], [0], [1], [0, 0, 1, 1], [], []>} : vector<144x128xbf16>, vector<128x128xbf16>, vector<144x128xf32> -> vector<144x128xf32>
    %c0_3 = arith.constant 0 : index
    %c0_4 = arith.constant 0 : index
    %3 = vector.load %arg7[%c0_3, %c0_4] : memref<1x128xf32, #tpu.memory_space<vmem>>, vector<1x128xf32>
    %4 = vector.broadcast %3 : vector<1x128xf32> to vector<144x128xf32>
    %5 = arith.mulf %2, %4 : vector<144x128xf32>
    %c0_5 = arith.constant 0 : index
    %c0_6 = arith.constant 0 : index
    %6 = vector.load %arg8[%c0_5, %c0_6] : memref<1x128xf32, #tpu.memory_space<vmem>>, vector<1x128xf32>
    %7 = vector.broadcast %6 : vector<1x128xf32> to vector<144x128xf32>
    %8 = arith.addf %5, %7 : vector<144x128xf32>
    %c0_7 = arith.constant 0 : index
    %c0_8 = arith.constant 0 : index
    %9 = vector.load %arg3[%c0_7, %c0_8] : memref<144x128xbf16, #tpu.memory_space<vmem>>, vector<144x128xbf16>
    %c0_9 = arith.constant 0 : index
    %c0_10 = arith.constant 0 : index
    %10 = vector.load %arg4[%c0_9, %c0_10] : memref<128x128xbf16, #tpu.memory_space<vmem>>, vector<128x128xbf16>
    %cst_11 = arith.constant dense<0.000000e+00> : vector<144x128xf32>
    %11 = tpu.matmul %9, %10, %cst_11 {dimension_numbers = #tpu.dot_dimension_numbers<[1], [0], [0], [1], [0, 0, 1, 1], [], []>} : vector<144x128xbf16>, vector<128x128xbf16>, vector<144x128xf32> -> vector<144x128xf32>
    %c0_12 = arith.constant 0 : index
    %c0_13 = arith.constant 0 : index
    %12 = vector.load %arg5[%c0_12, %c0_13] : memref<1x128xf32, #tpu.memory_space<vmem>>, vector<1x128xf32>
    %13 = vector.broadcast %12 : vector<1x128xf32> to vector<144x128xf32>
    %14 = arith.mulf %11, %13 : vector<144x128xf32>
    %c0_14 = arith.constant 0 : index
    %c0_15 = arith.constant 0 : index
    %15 = vector.load %arg6[%c0_14, %c0_15] : memref<1x128xf32, #tpu.memory_space<vmem>>, vector<1x128xf32>
    %16 = vector.broadcast %15 : vector<1x128xf32> to vector<144x128xf32>
    %17 = arith.addf %14, %16 : vector<144x128xf32>
    %18 = arith.addf %8, %17 : vector<144x128xf32>
    %cst_16 = arith.constant 0.000000e+00 : f32
    %19 = vector.broadcast %cst_16 : f32 to vector<144x128xf32>
    %20 = arith.maximumf %18, %19 : vector<144x128xf32>
    %21 = arith.truncf %20 : vector<144x128xf32> to vector<144x128xbf16>
    %c0_17 = arith.constant 0 : index
    %c0_18 = arith.constant 0 : index
    %22 = vector.load %arg9[%c0_17, %c0_18] : memref<144x128xbf16, #tpu.memory_space<vmem>>, vector<144x128xbf16>
    tpu.vector_store %arg9[%c0_17, %c0_18], %21 {strides = array<i32>} : memref<144x128xbf16, #tpu.memory_space<vmem>>, vector<144x128xbf16>,
    return
  }
  func.func @transform_0(%arg0: i32) -> (i32, i32) {
    %c0_i32 = arith.constant 0 : i32
    %c0_i32_0 = arith.constant 0 : i32
    return %arg0, %c0_i32 : i32, i32
  }
  func.func @transform_1(%arg0: i32) -> (i32, i32) {
    %c0_i32 = arith.constant 0 : i32
    %c0_i32_0 = arith.constant 0 : i32
    %c0_i32_1 = arith.constant 0 : i32
    return %c0_i32, %c0_i32_0 : i32, i32
  }
  func.func @transform_2(%arg0: i32) -> (i32, i32) {
    %c0_i32 = arith.constant 0 : i32
    %c0_i32_0 = arith.constant 0 : i32
    return %arg0, %c0_i32 : i32, i32
  }
  func.func @transform_3(%arg0: i32) -> (i32, i32) {
    %c0_i32 = arith.constant 0 : i32
    %c0_i32_0 = arith.constant 0 : i32
    %c0_i32_1 = arith.constant 0 : i32
    return %c0_i32, %c0_i32_0 : i32, i32
  }
  func.func @transform_4(%arg0: i32) -> (i32, i32) {
    %c0_i32 = arith.constant 0 : i32
    %c0_i32_0 = arith.constant 0 : i32
    %c0_i32_1 = arith.constant 0 : i32
    return %c0_i32, %c0_i32_0 : i32, i32
  }
  func.func @transform_5(%arg0: i32) -> (i32, i32) {
    %c0_i32 = arith.constant 0 : i32
    %c0_i32_0 = arith.constant 0 : i32
    %c0_i32_1 = arith.constant 0 : i32
    return %c0_i32, %c0_i32_0 : i32, i32
  }
  func.func @transform_6(%arg0: i32) -> (i32, i32) {
    %c0_i32 = arith.constant 0 : i32
    %c0_i32_0 = arith.constant 0 : i32
    %c0_i32_1 = arith.constant 0 : i32
    return %c0_i32, %c0_i32_0 : i32, i32
  }
  func.func @transform_7(%arg0: i32) -> (i32, i32) {
    %c0_i32 = arith.constant 0 : i32
    %c0_i32_0 = arith.constant 0 : i32
    %c0_i32_1 = arith.constant 0 : i32
    return %c0_i32, %c0_i32_0 : i32, i32
  }
  func.func @transform_8(%arg0: i32) -> (i32, i32) {
    %c0_i32 = arith.constant 0 : i32
    %c0_i32_0 = arith.constant 0 : i32
    return %arg0, %c0_i32 : i32, i32
  }
}

module attributes {stable_mosaic.version = 11 : i64} {
  func.func @kernel(%arg0: i32, %arg1: memref<128x128xf32, #tpu.memory_space<vmem>>, %arg2: memref<128x128xf32, #tpu.memory_space<vmem>>, %arg3: memref<1152x128xbf16, #tpu.memory_space<vmem>>, %arg4: memref<1x128xf32, #tpu.memory_space<vmem>>, %arg5: memref<1x128xf32, #tpu.memory_space<vmem>>, %arg6: memref<112x128xbf16, #tpu.memory_space<vmem>>) attributes {dimension_semantics = [#tpu.dimension_semantics<parallel>], iteration_bounds = array<i64: 1>, scalar_prefetch = 0 : i64, scratch_operands = 0 : i64, tpu.core_type = #tpu.core_type<tc>, window_params = [{pipeline_mode = #tpu.pipeline_mode<synchronous>, transform_indices = @transform_0, window_bounds = array<i64: 128, 128>}, {pipeline_mode = #tpu.pipeline_mode<synchronous>, transform_indices = @transform_1, window_bounds = array<i64: 128, 128>}, {pipeline_mode = #tpu.pipeline_mode<synchronous>, transform_indices = @transform_2, window_bounds = array<i64: 1152, 128>}, {pipeline_mode = #tpu.pipeline_mode<synchronous>, transform_indices = @transform_3, window_bounds = array<i64: 1, 128>}, {pipeline_mode = #tpu.pipeline_mode<synchronous>, transform_indices = @transform_4, window_bounds = array<i64: 1, 128>}, {transform_indices = @transform_5, window_bounds = array<i64: 112, 128>}]} {
    %c112_i32 = arith.constant 112 : i32
    %0 = arith.muli %arg0, %c112_i32 : i32
    %1 = tpu.assume_multiple %0, 112 : i32
    %c0_i32 = arith.constant 0 : i32
    %2 = arith.addi %1, %c0_i32 : i32
    %3 = arith.index_cast %2 : i32 to index
    %c0 = arith.constant 0 : index
    %4 = vector.load %arg1[%3, %c0] : memref<128x128xf32, #tpu.memory_space<vmem>>, vector<112x128xf32>
    %5 = arith.truncf %4 : vector<112x128xf32> to vector<112x128xbf16>
    %c0_i32_0 = arith.constant 0 : i32
    %6 = arith.addi %1, %c0_i32_0 : i32
    %7 = arith.index_cast %6 : i32 to index
    %c0_1 = arith.constant 0 : index
    %8 = vector.load %arg2[%7, %c0_1] : memref<128x128xf32, #tpu.memory_space<vmem>>, vector<112x128xf32>
    %9 = arith.truncf %8 : vector<112x128xf32> to vector<112x128xbf16>
    %10 = tpu.concatenate %5, %9 in 1 : vector<112x128xbf16>, vector<112x128xbf16> -> vector<112x256xbf16>
    %c0_2 = arith.constant 0 : index
    %c0_3 = arith.constant 0 : index
    %11 = vector.load %arg3[%c0_2, %c0_3] : memref<1152x128xbf16, #tpu.memory_space<vmem>>, vector<256x128xbf16>
    %cst = arith.constant dense<0.000000e+00> : vector<112x128xf32>
    %12 = tpu.matmul %10, %11, %cst {dimension_numbers = #tpu.dot_dimension_numbers<[1], [0], [0], [1], [0, 0, 1, 1], [], []>} : vector<112x256xbf16>, vector<256x128xbf16>, vector<112x128xf32> -> vector<112x128xf32>
    %c1_i32 = arith.constant 1 : i32
    %13 = arith.addi %1, %c1_i32 : i32
    %14 = arith.index_cast %13 : i32 to index
    %c0_4 = arith.constant 0 : index
    %15 = vector.load %arg1[%14, %c0_4] : memref<128x128xf32, #tpu.memory_space<vmem>>, vector<112x128xf32>
    %16 = arith.truncf %15 : vector<112x128xf32> to vector<112x128xbf16>
    %c4_i32 = arith.constant 4 : i32
    %17 = arith.addi %1, %c4_i32 : i32
    %18 = arith.index_cast %17 : i32 to index
    %c0_5 = arith.constant 0 : index
    %19 = vector.load %arg1[%18, %c0_5] : memref<128x128xf32, #tpu.memory_space<vmem>>, vector<112x128xf32>
    %20 = arith.truncf %19 : vector<112x128xf32> to vector<112x128xbf16>
    %21 = tpu.concatenate %16, %20 in 1 : vector<112x128xbf16>, vector<112x128xbf16> -> vector<112x256xbf16>
    %c256 = arith.constant 256 : index
    %c0_6 = arith.constant 0 : index
    %22 = vector.load %arg3[%c256, %c0_6] : memref<1152x128xbf16, #tpu.memory_space<vmem>>, vector<256x128xbf16>
    %cst_7 = arith.constant dense<0.000000e+00> : vector<112x128xf32>
    %23 = tpu.matmul %21, %22, %cst_7 {dimension_numbers = #tpu.dot_dimension_numbers<[1], [0], [0], [1], [0, 0, 1, 1], [], []>} : vector<112x256xbf16>, vector<256x128xbf16>, vector<112x128xf32> -> vector<112x128xf32>
    %24 = arith.addf %12, %23 : vector<112x128xf32>
    %c4_i32_8 = arith.constant 4 : i32
    %25 = arith.addi %1, %c4_i32_8 : i32
    %26 = arith.index_cast %25 : i32 to index
    %c0_9 = arith.constant 0 : index
    %27 = vector.load %arg2[%26, %c0_9] : memref<128x128xf32, #tpu.memory_space<vmem>>, vector<112x128xf32>
    %28 = arith.truncf %27 : vector<112x128xf32> to vector<112x128xbf16>
    %c5_i32 = arith.constant 5 : i32
    %29 = arith.addi %1, %c5_i32 : i32
    %30 = arith.index_cast %29 : i32 to index
    %c0_10 = arith.constant 0 : index
    %31 = vector.load %arg1[%30, %c0_10] : memref<128x128xf32, #tpu.memory_space<vmem>>, vector<112x128xf32>
    %32 = arith.truncf %31 : vector<112x128xf32> to vector<112x128xbf16>
    %33 = tpu.concatenate %28, %32 in 1 : vector<112x128xbf16>, vector<112x128xbf16> -> vector<112x256xbf16>
    %c512 = arith.constant 512 : index
    %c0_11 = arith.constant 0 : index
    %34 = vector.load %arg3[%c512, %c0_11] : memref<1152x128xbf16, #tpu.memory_space<vmem>>, vector<256x128xbf16>
    %cst_12 = arith.constant dense<0.000000e+00> : vector<112x128xf32>
    %35 = tpu.matmul %33, %34, %cst_12 {dimension_numbers = #tpu.dot_dimension_numbers<[1], [0], [0], [1], [0, 0, 1, 1], [], []>} : vector<112x256xbf16>, vector<256x128xbf16>, vector<112x128xf32> -> vector<112x128xf32>
    %36 = arith.addf %24, %35 : vector<112x128xf32>
    %c8_i32 = arith.constant 8 : i32
    %37 = arith.addi %1, %c8_i32 : i32
    %38 = arith.index_cast %37 : i32 to index
    %c0_13 = arith.constant 0 : index
    %39 = vector.load %arg1[%38, %c0_13] : memref<128x128xf32, #tpu.memory_space<vmem>>, vector<112x128xf32>
    %40 = arith.truncf %39 : vector<112x128xf32> to vector<112x128xbf16>
    %c8_i32_14 = arith.constant 8 : i32
    %41 = arith.addi %1, %c8_i32_14 : i32
    %42 = arith.index_cast %41 : i32 to index
    %c0_15 = arith.constant 0 : index
    %43 = vector.load %arg2[%42, %c0_15] : memref<128x128xf32, #tpu.memory_space<vmem>>, vector<112x128xf32>
    %44 = arith.truncf %43 : vector<112x128xf32> to vector<112x128xbf16>
    %45 = tpu.concatenate %40, %44 in 1 : vector<112x128xbf16>, vector<112x128xbf16> -> vector<112x256xbf16>
    %c768 = arith.constant 768 : index
    %c0_16 = arith.constant 0 : index
    %46 = vector.load %arg3[%c768, %c0_16] : memref<1152x128xbf16, #tpu.memory_space<vmem>>, vector<256x128xbf16>
    %cst_17 = arith.constant dense<0.000000e+00> : vector<112x128xf32>
    %47 = tpu.matmul %45, %46, %cst_17 {dimension_numbers = #tpu.dot_dimension_numbers<[1], [0], [0], [1], [0, 0, 1, 1], [], []>} : vector<112x256xbf16>, vector<256x128xbf16>, vector<112x128xf32> -> vector<112x128xf32>
    %48 = arith.addf %36, %47 : vector<112x128xf32>
    %c9_i32 = arith.constant 9 : i32
    %49 = arith.addi %1, %c9_i32 : i32
    %50 = arith.index_cast %49 : i32 to index
    %c0_18 = arith.constant 0 : index
    %51 = vector.load %arg1[%50, %c0_18] : memref<128x128xf32, #tpu.memory_space<vmem>>, vector<112x128xf32>
    %52 = arith.truncf %51 : vector<112x128xf32> to vector<112x128xbf16>
    %c1024 = arith.constant 1024 : index
    %c0_19 = arith.constant 0 : index
    %53 = vector.load %arg3[%c1024, %c0_19] : memref<1152x128xbf16, #tpu.memory_space<vmem>>, vector<128x128xbf16>
    %cst_20 = arith.constant dense<0.000000e+00> : vector<112x128xf32>
    %54 = tpu.matmul %52, %53, %cst_20 {dimension_numbers = #tpu.dot_dimension_numbers<[1], [0], [0], [1], [0, 0, 1, 1], [], []>} : vector<112x128xbf16>, vector<128x128xbf16>, vector<112x128xf32> -> vector<112x128xf32>
    %55 = arith.addf %48, %54 : vector<112x128xf32>
    %c0_21 = arith.constant 0 : index
    %c0_22 = arith.constant 0 : index
    %56 = vector.load %arg4[%c0_21, %c0_22] : memref<1x128xf32, #tpu.memory_space<vmem>>, vector<1x128xf32>
    %57 = vector.broadcast %56 : vector<1x128xf32> to vector<112x128xf32>
    %58 = arith.mulf %55, %57 : vector<112x128xf32>
    %c0_23 = arith.constant 0 : index
    %c0_24 = arith.constant 0 : index
    %59 = vector.load %arg5[%c0_23, %c0_24] : memref<1x128xf32, #tpu.memory_space<vmem>>, vector<1x128xf32>
    %60 = vector.broadcast %59 : vector<1x128xf32> to vector<112x128xf32>
    %61 = arith.addf %58, %60 : vector<112x128xf32>
    %cst_25 = arith.constant 0.000000e+00 : f32
    %62 = vector.broadcast %cst_25 : f32 to vector<112x128xf32>
    %63 = arith.maximumf %61, %62 : vector<112x128xf32>
    %64 = arith.truncf %63 : vector<112x128xf32> to vector<112x128xbf16>
    %c0_26 = arith.constant 0 : index
    %c0_27 = arith.constant 0 : index
    %65 = vector.load %arg6[%c0_26, %c0_27] : memref<112x128xbf16, #tpu.memory_space<vmem>>, vector<112x128xbf16>
    tpu.vector_store %arg6[%c0_26, %c0_27], %64 {strides = array<i32>} : memref<112x128xbf16, #tpu.memory_space<vmem>>, vector<112x128xbf16>,
    return
  }
  func.func @transform_0(%arg0: i32) -> (i32, i32) {
    %c0_i32 = arith.constant 0 : i32
    %c0_i32_0 = arith.constant 0 : i32
    %c0_i32_1 = arith.constant 0 : i32
    return %c0_i32, %c0_i32_0 : i32, i32
  }
  func.func @transform_1(%arg0: i32) -> (i32, i32) {
    %c0_i32 = arith.constant 0 : i32
    %c0_i32_0 = arith.constant 0 : i32
    %c0_i32_1 = arith.constant 0 : i32
    return %c0_i32, %c0_i32_0 : i32, i32
  }
  func.func @transform_2(%arg0: i32) -> (i32, i32) {
    %c0_i32 = arith.constant 0 : i32
    %c0_i32_0 = arith.constant 0 : i32
    %c0_i32_1 = arith.constant 0 : i32
    return %c0_i32, %c0_i32_0 : i32, i32
  }
  func.func @transform_3(%arg0: i32) -> (i32, i32) {
    %c0_i32 = arith.constant 0 : i32
    %c0_i32_0 = arith.constant 0 : i32
    %c0_i32_1 = arith.constant 0 : i32
    return %c0_i32, %c0_i32_0 : i32, i32
  }
  func.func @transform_4(%arg0: i32) -> (i32, i32) {
    %c0_i32 = arith.constant 0 : i32
    %c0_i32_0 = arith.constant 0 : i32
    %c0_i32_1 = arith.constant 0 : i32
    return %c0_i32, %c0_i32_0 : i32, i32
  }
  func.func @transform_5(%arg0: i32) -> (i32, i32) {
    %c0_i32 = arith.constant 0 : i32
    %c0_i32_0 = arith.constant 0 : i32
    return %arg0, %c0_i32 : i32, i32
  }
}

module attributes {stable_mosaic.version = 11 : i64} {
  func.func @kernel(%arg0: i32, %arg1: memref<36x128xbf16, #tpu.memory_space<vmem>>, %arg2: memref<128x128xbf16, #tpu.memory_space<vmem>>, %arg3: memref<1x128xf32, #tpu.memory_space<vmem>>, %arg4: memref<1x128xf32, #tpu.memory_space<vmem>>, %arg5: memref<36x128xf32, #tpu.memory_space<vmem>>) attributes {dimension_semantics = [#tpu.dimension_semantics<parallel>], iteration_bounds = array<i64: 1>, scalar_prefetch = 0 : i64, scratch_operands = 0 : i64, tpu.core_type = #tpu.core_type<tc>, window_params = [{transform_indices = @transform_0, window_bounds = array<i64: 36, 128>}, {pipeline_mode = #tpu.pipeline_mode<synchronous>, transform_indices = @transform_1, window_bounds = array<i64: 128, 128>}, {pipeline_mode = #tpu.pipeline_mode<synchronous>, transform_indices = @transform_2, window_bounds = array<i64: 1, 128>}, {pipeline_mode = #tpu.pipeline_mode<synchronous>, transform_indices = @transform_3, window_bounds = array<i64: 1, 128>}, {transform_indices = @transform_4, window_bounds = array<i64: 36, 128>}]} {
    %c0 = arith.constant 0 : index
    %c0_0 = arith.constant 0 : index
    %0 = vector.load %arg1[%c0, %c0_0] : memref<36x128xbf16, #tpu.memory_space<vmem>>, vector<36x128xbf16>
    %c0_1 = arith.constant 0 : index
    %c0_2 = arith.constant 0 : index
    %1 = vector.load %arg2[%c0_1, %c0_2] : memref<128x128xbf16, #tpu.memory_space<vmem>>, vector<128x128xbf16>
    %cst = arith.constant dense<0.000000e+00> : vector<36x128xf32>
    %2 = tpu.matmul %0, %1, %cst {dimension_numbers = #tpu.dot_dimension_numbers<[1], [0], [0], [1], [0, 0, 1, 1], [], []>} : vector<36x128xbf16>, vector<128x128xbf16>, vector<36x128xf32> -> vector<36x128xf32>
    %c0_3 = arith.constant 0 : index
    %c0_4 = arith.constant 0 : index
    %3 = vector.load %arg3[%c0_3, %c0_4] : memref<1x128xf32, #tpu.memory_space<vmem>>, vector<1x128xf32>
    %4 = vector.broadcast %3 : vector<1x128xf32> to vector<36x128xf32>
    %5 = arith.mulf %2, %4 : vector<36x128xf32>
    %c0_5 = arith.constant 0 : index
    %c0_6 = arith.constant 0 : index
    %6 = vector.load %arg4[%c0_5, %c0_6] : memref<1x128xf32, #tpu.memory_space<vmem>>, vector<1x128xf32>
    %7 = vector.broadcast %6 : vector<1x128xf32> to vector<36x128xf32>
    %8 = arith.addf %5, %7 : vector<36x128xf32>
    %cst_7 = arith.constant 0.000000e+00 : f32
    %9 = vector.broadcast %cst_7 : f32 to vector<36x128xf32>
    %10 = arith.maximumf %8, %9 : vector<36x128xf32>
    %c0_8 = arith.constant 0 : index
    %c0_9 = arith.constant 0 : index
    %11 = vector.load %arg5[%c0_8, %c0_9] : memref<36x128xf32, #tpu.memory_space<vmem>>, vector<36x128xf32>
    tpu.vector_store %arg5[%c0_8, %c0_9], %10 {strides = array<i32>} : memref<36x128xf32, #tpu.memory_space<vmem>>, vector<36x128xf32>,
    return
  }
  func.func @transform_0(%arg0: i32) -> (i32, i32) {
    %c0_i32 = arith.constant 0 : i32
    %c0_i32_0 = arith.constant 0 : i32
    return %arg0, %c0_i32 : i32, i32
  }
  func.func @transform_1(%arg0: i32) -> (i32, i32) {
    %c0_i32 = arith.constant 0 : i32
    %c0_i32_0 = arith.constant 0 : i32
    %c0_i32_1 = arith.constant 0 : i32
    return %c0_i32, %c0_i32_0 : i32, i32
  }
  func.func @transform_2(%arg0: i32) -> (i32, i32) {
    %c0_i32 = arith.constant 0 : i32
    %c0_i32_0 = arith.constant 0 : i32
    %c0_i32_1 = arith.constant 0 : i32
    return %c0_i32, %c0_i32_0 : i32, i32
  }
  func.func @transform_3(%arg0: i32) -> (i32, i32) {
    %c0_i32 = arith.constant 0 : i32
    %c0_i32_0 = arith.constant 0 : i32
    %c0_i32_1 = arith.constant 0 : i32
    return %c0_i32, %c0_i32_0 : i32, i32
  }
  func.func @transform_4(%arg0: i32) -> (i32, i32) {
    %c0_i32 = arith.constant 0 : i32
    %c0_i32_0 = arith.constant 0 : i32
    return %arg0, %c0_i32 : i32, i32
  }
}

module attributes {stable_mosaic.version = 11 : i64} {
  func.func @kernel(%arg0: i32, %arg1: memref<36x128xbf16, #tpu.memory_space<vmem>>, %arg2: memref<128x128xbf16, #tpu.memory_space<vmem>>, %arg3: memref<36x128xbf16, #tpu.memory_space<vmem>>, %arg4: memref<128x128xbf16, #tpu.memory_space<vmem>>, %arg5: memref<1x128xf32, #tpu.memory_space<vmem>>, %arg6: memref<1x128xf32, #tpu.memory_space<vmem>>, %arg7: memref<1x128xf32, #tpu.memory_space<vmem>>, %arg8: memref<1x128xf32, #tpu.memory_space<vmem>>, %arg9: memref<36x128xbf16, #tpu.memory_space<vmem>>) attributes {dimension_semantics = [#tpu.dimension_semantics<parallel>], iteration_bounds = array<i64: 1>, scalar_prefetch = 0 : i64, scratch_operands = 0 : i64, tpu.core_type = #tpu.core_type<tc>, window_params = [{transform_indices = @transform_0, window_bounds = array<i64: 36, 128>}, {pipeline_mode = #tpu.pipeline_mode<synchronous>, transform_indices = @transform_1, window_bounds = array<i64: 128, 128>}, {transform_indices = @transform_2, window_bounds = array<i64: 36, 128>}, {pipeline_mode = #tpu.pipeline_mode<synchronous>, transform_indices = @transform_3, window_bounds = array<i64: 128, 128>}, {pipeline_mode = #tpu.pipeline_mode<synchronous>, transform_indices = @transform_4, window_bounds = array<i64: 1, 128>}, {pipeline_mode = #tpu.pipeline_mode<synchronous>, transform_indices = @transform_5, window_bounds = array<i64: 1, 128>}, {pipeline_mode = #tpu.pipeline_mode<synchronous>, transform_indices = @transform_6, window_bounds = array<i64: 1, 128>}, {pipeline_mode = #tpu.pipeline_mode<synchronous>, transform_indices = @transform_7, window_bounds = array<i64: 1, 128>}, {transform_indices = @transform_8, window_bounds = array<i64: 36, 128>}]} {
    %c0 = arith.constant 0 : index
    %c0_0 = arith.constant 0 : index
    %0 = vector.load %arg1[%c0, %c0_0] : memref<36x128xbf16, #tpu.memory_space<vmem>>, vector<36x128xbf16>
    %c0_1 = arith.constant 0 : index
    %c0_2 = arith.constant 0 : index
    %1 = vector.load %arg2[%c0_1, %c0_2] : memref<128x128xbf16, #tpu.memory_space<vmem>>, vector<128x128xbf16>
    %cst = arith.constant dense<0.000000e+00> : vector<36x128xf32>
    %2 = tpu.matmul %0, %1, %cst {dimension_numbers = #tpu.dot_dimension_numbers<[1], [0], [0], [1], [0, 0, 1, 1], [], []>} : vector<36x128xbf16>, vector<128x128xbf16>, vector<36x128xf32> -> vector<36x128xf32>
    %c0_3 = arith.constant 0 : index
    %c0_4 = arith.constant 0 : index
    %3 = vector.load %arg7[%c0_3, %c0_4] : memref<1x128xf32, #tpu.memory_space<vmem>>, vector<1x128xf32>
    %4 = vector.broadcast %3 : vector<1x128xf32> to vector<36x128xf32>
    %5 = arith.mulf %2, %4 : vector<36x128xf32>
    %c0_5 = arith.constant 0 : index
    %c0_6 = arith.constant 0 : index
    %6 = vector.load %arg8[%c0_5, %c0_6] : memref<1x128xf32, #tpu.memory_space<vmem>>, vector<1x128xf32>
    %7 = vector.broadcast %6 : vector<1x128xf32> to vector<36x128xf32>
    %8 = arith.addf %5, %7 : vector<36x128xf32>
    %c0_7 = arith.constant 0 : index
    %c0_8 = arith.constant 0 : index
    %9 = vector.load %arg3[%c0_7, %c0_8] : memref<36x128xbf16, #tpu.memory_space<vmem>>, vector<36x128xbf16>
    %c0_9 = arith.constant 0 : index
    %c0_10 = arith.constant 0 : index
    %10 = vector.load %arg4[%c0_9, %c0_10] : memref<128x128xbf16, #tpu.memory_space<vmem>>, vector<128x128xbf16>
    %cst_11 = arith.constant dense<0.000000e+00> : vector<36x128xf32>
    %11 = tpu.matmul %9, %10, %cst_11 {dimension_numbers = #tpu.dot_dimension_numbers<[1], [0], [0], [1], [0, 0, 1, 1], [], []>} : vector<36x128xbf16>, vector<128x128xbf16>, vector<36x128xf32> -> vector<36x128xf32>
    %c0_12 = arith.constant 0 : index
    %c0_13 = arith.constant 0 : index
    %12 = vector.load %arg5[%c0_12, %c0_13] : memref<1x128xf32, #tpu.memory_space<vmem>>, vector<1x128xf32>
    %13 = vector.broadcast %12 : vector<1x128xf32> to vector<36x128xf32>
    %14 = arith.mulf %11, %13 : vector<36x128xf32>
    %c0_14 = arith.constant 0 : index
    %c0_15 = arith.constant 0 : index
    %15 = vector.load %arg6[%c0_14, %c0_15] : memref<1x128xf32, #tpu.memory_space<vmem>>, vector<1x128xf32>
    %16 = vector.broadcast %15 : vector<1x128xf32> to vector<36x128xf32>
    %17 = arith.addf %14, %16 : vector<36x128xf32>
    %18 = arith.addf %8, %17 : vector<36x128xf32>
    %cst_16 = arith.constant 0.000000e+00 : f32
    %19 = vector.broadcast %cst_16 : f32 to vector<36x128xf32>
    %20 = arith.maximumf %18, %19 : vector<36x128xf32>
    %21 = arith.truncf %20 : vector<36x128xf32> to vector<36x128xbf16>
    %c0_17 = arith.constant 0 : index
    %c0_18 = arith.constant 0 : index
    %22 = vector.load %arg9[%c0_17, %c0_18] : memref<36x128xbf16, #tpu.memory_space<vmem>>, vector<36x128xbf16>
    tpu.vector_store %arg9[%c0_17, %c0_18], %21 {strides = array<i32>} : memref<36x128xbf16, #tpu.memory_space<vmem>>, vector<36x128xbf16>,
    return
  }
  func.func @transform_0(%arg0: i32) -> (i32, i32) {
    %c0_i32 = arith.constant 0 : i32
    %c0_i32_0 = arith.constant 0 : i32
    return %arg0, %c0_i32 : i32, i32
  }
  func.func @transform_1(%arg0: i32) -> (i32, i32) {
    %c0_i32 = arith.constant 0 : i32
    %c0_i32_0 = arith.constant 0 : i32
    %c0_i32_1 = arith.constant 0 : i32
    return %c0_i32, %c0_i32_0 : i32, i32
  }
  func.func @transform_2(%arg0: i32) -> (i32, i32) {
    %c0_i32 = arith.constant 0 : i32
    %c0_i32_0 = arith.constant 0 : i32
    return %arg0, %c0_i32 : i32, i32
  }
  func.func @transform_3(%arg0: i32) -> (i32, i32) {
    %c0_i32 = arith.constant 0 : i32
    %c0_i32_0 = arith.constant 0 : i32
    %c0_i32_1 = arith.constant 0 : i32
    return %c0_i32, %c0_i32_0 : i32, i32
  }
  func.func @transform_4(%arg0: i32) -> (i32, i32) {
    %c0_i32 = arith.constant 0 : i32
    %c0_i32_0 = arith.constant 0 : i32
    %c0_i32_1 = arith.constant 0 : i32
    return %c0_i32, %c0_i32_0 : i32, i32
  }
  func.func @transform_5(%arg0: i32) -> (i32, i32) {
    %c0_i32 = arith.constant 0 : i32
    %c0_i32_0 = arith.constant 0 : i32
    %c0_i32_1 = arith.constant 0 : i32
    return %c0_i32, %c0_i32_0 : i32, i32
  }
  func.func @transform_6(%arg0: i32) -> (i32, i32) {
    %c0_i32 = arith.constant 0 : i32
    %c0_i32_0 = arith.constant 0 : i32
    %c0_i32_1 = arith.constant 0 : i32
    return %c0_i32, %c0_i32_0 : i32, i32
  }
  func.func @transform_7(%arg0: i32) -> (i32, i32) {
    %c0_i32 = arith.constant 0 : i32
    %c0_i32_0 = arith.constant 0 : i32
    %c0_i32_1 = arith.constant 0 : i32
    return %c0_i32, %c0_i32_0 : i32, i32
  }
  func.func @transform_8(%arg0: i32) -> (i32, i32) {
    %c0_i32 = arith.constant 0 : i32
    %c0_i32_0 = arith.constant 0 : i32
    return %arg0, %c0_i32 : i32, i32
  }
}

module attributes {stable_mosaic.version = 11 : i64} {
  func.func @kernel(%arg0: i32, %arg1: memref<96x128xf32, #tpu.memory_space<vmem>>, %arg2: memref<1152x128xbf16, #tpu.memory_space<vmem>>, %arg3: memref<1x128xf32, #tpu.memory_space<vmem>>, %arg4: memref<1x128xf32, #tpu.memory_space<vmem>>, %arg5: memref<80x128xbf16, #tpu.memory_space<vmem>>) attributes {dimension_semantics = [#tpu.dimension_semantics<parallel>], iteration_bounds = array<i64: 1>, scalar_prefetch = 0 : i64, scratch_operands = 0 : i64, tpu.core_type = #tpu.core_type<tc>, window_params = [{pipeline_mode = #tpu.pipeline_mode<synchronous>, transform_indices = @transform_0, window_bounds = array<i64: 96, 128>}, {pipeline_mode = #tpu.pipeline_mode<synchronous>, transform_indices = @transform_1, window_bounds = array<i64: 1152, 128>}, {pipeline_mode = #tpu.pipeline_mode<synchronous>, transform_indices = @transform_2, window_bounds = array<i64: 1, 128>}, {pipeline_mode = #tpu.pipeline_mode<synchronous>, transform_indices = @transform_3, window_bounds = array<i64: 1, 128>}, {transform_indices = @transform_4, window_bounds = array<i64: 80, 128>}]} {
    %c80_i32 = arith.constant 80 : i32
    %0 = arith.muli %arg0, %c80_i32 : i32
    %1 = tpu.assume_multiple %0, 80 : i32
    %c0_i32 = arith.constant 0 : i32
    %2 = arith.addi %1, %c0_i32 : i32
    %3 = arith.index_cast %2 : i32 to index
    %c0 = arith.constant 0 : index
    %4 = vector.load %arg1[%3, %c0] : memref<96x128xf32, #tpu.memory_space<vmem>>, vector<80x128xf32>
    %5 = arith.truncf %4 : vector<80x128xf32> to vector<80x128xbf16>
    %c1_i32 = arith.constant 1 : i32
    %6 = arith.addi %1, %c1_i32 : i32
    %7 = arith.index_cast %6 : i32 to index
    %c0_0 = arith.constant 0 : index
    %8 = vector.load %arg1[%7, %c0_0] : memref<96x128xf32, #tpu.memory_space<vmem>>, vector<80x128xf32>
    %9 = arith.truncf %8 : vector<80x128xf32> to vector<80x128xbf16>
    %10 = tpu.concatenate %5, %9 in 1 : vector<80x128xbf16>, vector<80x128xbf16> -> vector<80x256xbf16>
    %c0_1 = arith.constant 0 : index
    %c0_2 = arith.constant 0 : index
    %11 = vector.load %arg2[%c0_1, %c0_2] : memref<1152x128xbf16, #tpu.memory_space<vmem>>, vector<256x128xbf16>
    %cst = arith.constant dense<0.000000e+00> : vector<80x128xf32>
    %12 = tpu.matmul %10, %11, %cst {dimension_numbers = #tpu.dot_dimension_numbers<[1], [0], [0], [1], [0, 0, 1, 1], [], []>} : vector<80x256xbf16>, vector<256x128xbf16>, vector<80x128xf32> -> vector<80x128xf32>
    %c2_i32 = arith.constant 2 : i32
    %13 = arith.addi %1, %c2_i32 : i32
    %14 = arith.index_cast %13 : i32 to index
    %c0_3 = arith.constant 0 : index
    %15 = vector.load %arg1[%14, %c0_3] : memref<96x128xf32, #tpu.memory_space<vmem>>, vector<80x128xf32>
    %16 = arith.truncf %15 : vector<80x128xf32> to vector<80x128xbf16>
    %c5_i32 = arith.constant 5 : i32
    %17 = arith.addi %1, %c5_i32 : i32
    %18 = arith.index_cast %17 : i32 to index
    %c0_4 = arith.constant 0 : index
    %19 = vector.load %arg1[%18, %c0_4] : memref<96x128xf32, #tpu.memory_space<vmem>>, vector<80x128xf32>
    %20 = arith.truncf %19 : vector<80x128xf32> to vector<80x128xbf16>
    %21 = tpu.concatenate %16, %20 in 1 : vector<80x128xbf16>, vector<80x128xbf16> -> vector<80x256xbf16>
    %c256 = arith.constant 256 : index
    %c0_5 = arith.constant 0 : index
    %22 = vector.load %arg2[%c256, %c0_5] : memref<1152x128xbf16, #tpu.memory_space<vmem>>, vector<256x128xbf16>
    %cst_6 = arith.constant dense<0.000000e+00> : vector<80x128xf32>
    %23 = tpu.matmul %21, %22, %cst_6 {dimension_numbers = #tpu.dot_dimension_numbers<[1], [0], [0], [1], [0, 0, 1, 1], [], []>} : vector<80x256xbf16>, vector<256x128xbf16>, vector<80x128xf32> -> vector<80x128xf32>
    %24 = arith.addf %12, %23 : vector<80x128xf32>
    %c6_i32 = arith.constant 6 : i32
    %25 = arith.addi %1, %c6_i32 : i32
    %26 = arith.index_cast %25 : i32 to index
    %c0_7 = arith.constant 0 : index
    %27 = vector.load %arg1[%26, %c0_7] : memref<96x128xf32, #tpu.memory_space<vmem>>, vector<80x128xf32>
    %28 = arith.truncf %27 : vector<80x128xf32> to vector<80x128xbf16>
    %c7_i32 = arith.constant 7 : i32
    %29 = arith.addi %1, %c7_i32 : i32
    %30 = arith.index_cast %29 : i32 to index
    %c0_8 = arith.constant 0 : index
    %31 = vector.load %arg1[%30, %c0_8] : memref<96x128xf32, #tpu.memory_space<vmem>>, vector<80x128xf32>
    %32 = arith.truncf %31 : vector<80x128xf32> to vector<80x128xbf16>
    %33 = tpu.concatenate %28, %32 in 1 : vector<80x128xbf16>, vector<80x128xbf16> -> vector<80x256xbf16>
    %c512 = arith.constant 512 : index
    %c0_9 = arith.constant 0 : index
    %34 = vector.load %arg2[%c512, %c0_9] : memref<1152x128xbf16, #tpu.memory_space<vmem>>, vector<256x128xbf16>
    %cst_10 = arith.constant dense<0.000000e+00> : vector<80x128xf32>
    %35 = tpu.matmul %33, %34, %cst_10 {dimension_numbers = #tpu.dot_dimension_numbers<[1], [0], [0], [1], [0, 0, 1, 1], [], []>} : vector<80x256xbf16>, vector<256x128xbf16>, vector<80x128xf32> -> vector<80x128xf32>
    %36 = arith.addf %24, %35 : vector<80x128xf32>
    %c10_i32 = arith.constant 10 : i32
    %37 = arith.addi %1, %c10_i32 : i32
    %38 = arith.index_cast %37 : i32 to index
    %c0_11 = arith.constant 0 : index
    %39 = vector.load %arg1[%38, %c0_11] : memref<96x128xf32, #tpu.memory_space<vmem>>, vector<80x128xf32>
    %40 = arith.truncf %39 : vector<80x128xf32> to vector<80x128xbf16>
    %c11_i32 = arith.constant 11 : i32
    %41 = arith.addi %1, %c11_i32 : i32
    %42 = arith.index_cast %41 : i32 to index
    %c0_12 = arith.constant 0 : index
    %43 = vector.load %arg1[%42, %c0_12] : memref<96x128xf32, #tpu.memory_space<vmem>>, vector<80x128xf32>
    %44 = arith.truncf %43 : vector<80x128xf32> to vector<80x128xbf16>
    %45 = tpu.concatenate %40, %44 in 1 : vector<80x128xbf16>, vector<80x128xbf16> -> vector<80x256xbf16>
    %c768 = arith.constant 768 : index
    %c0_13 = arith.constant 0 : index
    %46 = vector.load %arg2[%c768, %c0_13] : memref<1152x128xbf16, #tpu.memory_space<vmem>>, vector<256x128xbf16>
    %cst_14 = arith.constant dense<0.000000e+00> : vector<80x128xf32>
    %47 = tpu.matmul %45, %46, %cst_14 {dimension_numbers = #tpu.dot_dimension_numbers<[1], [0], [0], [1], [0, 0, 1, 1], [], []>} : vector<80x256xbf16>, vector<256x128xbf16>, vector<80x128xf32> -> vector<80x128xf32>
    %48 = arith.addf %36, %47 : vector<80x128xf32>
    %c12_i32 = arith.constant 12 : i32
    %49 = arith.addi %1, %c12_i32 : i32
    %50 = arith.index_cast %49 : i32 to index
    %c0_15 = arith.constant 0 : index
    %51 = vector.load %arg1[%50, %c0_15] : memref<96x128xf32, #tpu.memory_space<vmem>>, vector<80x128xf32>
    %52 = arith.truncf %51 : vector<80x128xf32> to vector<80x128xbf16>
    %c1024 = arith.constant 1024 : index
    %c0_16 = arith.constant 0 : index
    %53 = vector.load %arg2[%c1024, %c0_16] : memref<1152x128xbf16, #tpu.memory_space<vmem>>, vector<128x128xbf16>
    %cst_17 = arith.constant dense<0.000000e+00> : vector<80x128xf32>
    %54 = tpu.matmul %52, %53, %cst_17 {dimension_numbers = #tpu.dot_dimension_numbers<[1], [0], [0], [1], [0, 0, 1, 1], [], []>} : vector<80x128xbf16>, vector<128x128xbf16>, vector<80x128xf32> -> vector<80x128xf32>
    %55 = arith.addf %48, %54 : vector<80x128xf32>
    %c0_18 = arith.constant 0 : index
    %c0_19 = arith.constant 0 : index
    %56 = vector.load %arg3[%c0_18, %c0_19] : memref<1x128xf32, #tpu.memory_space<vmem>>, vector<1x128xf32>
    %57 = vector.broadcast %56 : vector<1x128xf32> to vector<80x128xf32>
    %58 = arith.mulf %55, %57 : vector<80x128xf32>
    %c0_20 = arith.constant 0 : index
    %c0_21 = arith.constant 0 : index
    %59 = vector.load %arg4[%c0_20, %c0_21] : memref<1x128xf32, #tpu.memory_space<vmem>>, vector<1x128xf32>
    %60 = vector.broadcast %59 : vector<1x128xf32> to vector<80x128xf32>
    %61 = arith.addf %58, %60 : vector<80x128xf32>
    %cst_22 = arith.constant 0.000000e+00 : f32
    %62 = vector.broadcast %cst_22 : f32 to vector<80x128xf32>
    %63 = arith.maximumf %61, %62 : vector<80x128xf32>
    %64 = arith.truncf %63 : vector<80x128xf32> to vector<80x128xbf16>
    %c0_23 = arith.constant 0 : index
    %c0_24 = arith.constant 0 : index
    %65 = vector.load %arg5[%c0_23, %c0_24] : memref<80x128xbf16, #tpu.memory_space<vmem>>, vector<80x128xbf16>
    tpu.vector_store %arg5[%c0_23, %c0_24], %64 {strides = array<i32>} : memref<80x128xbf16, #tpu.memory_space<vmem>>, vector<80x128xbf16>,
    return
  }
  func.func @transform_0(%arg0: i32) -> (i32, i32) {
    %c0_i32 = arith.constant 0 : i32
    %c0_i32_0 = arith.constant 0 : i32
    %c0_i32_1 = arith.constant 0 : i32
    return %c0_i32, %c0_i32_0 : i32, i32
  }
  func.func @transform_1(%arg0: i32) -> (i32, i32) {
    %c0_i32 = arith.constant 0 : i32
    %c0_i32_0 = arith.constant 0 : i32
    %c0_i32_1 = arith.constant 0 : i32
    return %c0_i32, %c0_i32_0 : i32, i32
  }
  func.func @transform_2(%arg0: i32) -> (i32, i32) {
    %c0_i32 = arith.constant 0 : i32
    %c0_i32_0 = arith.constant 0 : i32
    %c0_i32_1 = arith.constant 0 : i32
    return %c0_i32, %c0_i32_0 : i32, i32
  }
  func.func @transform_3(%arg0: i32) -> (i32, i32) {
    %c0_i32 = arith.constant 0 : i32
    %c0_i32_0 = arith.constant 0 : i32
    %c0_i32_1 = arith.constant 0 : i32
    return %c0_i32, %c0_i32_0 : i32, i32
  }
  func.func @transform_4(%arg0: i32) -> (i32, i32) {
    %c0_i32 = arith.constant 0 : i32
    %c0_i32_0 = arith.constant 0 : i32
    return %arg0, %c0_i32 : i32, i32
  }
}

module attributes {stable_mosaic.version = 11 : i64} {
  func.func @kernel(%arg0: i32, %arg1: memref<36x128xbf16, #tpu.memory_space<vmem>>, %arg2: memref<128x128xbf16, #tpu.memory_space<vmem>>, %arg3: memref<36x128xbf16, #tpu.memory_space<vmem>>, %arg4: memref<128x128xbf16, #tpu.memory_space<vmem>>, %arg5: memref<1x128xf32, #tpu.memory_space<vmem>>, %arg6: memref<1x128xf32, #tpu.memory_space<vmem>>, %arg7: memref<1x128xf32, #tpu.memory_space<vmem>>, %arg8: memref<1x128xf32, #tpu.memory_space<vmem>>, %arg9: memref<12x36xf32, #tpu.memory_space<vmem>>, %arg10: memref<12x128xf32, #tpu.memory_space<vmem>>) attributes {dimension_semantics = [#tpu.dimension_semantics<parallel>], iteration_bounds = array<i64: 1>, scalar_prefetch = 0 : i64, scratch_operands = 0 : i64, tpu.core_type = #tpu.core_type<tc>, window_params = [{transform_indices = @transform_0, window_bounds = array<i64: 36, 128>}, {pipeline_mode = #tpu.pipeline_mode<synchronous>, transform_indices = @transform_1, window_bounds = array<i64: 128, 128>}, {transform_indices = @transform_2, window_bounds = array<i64: 36, 128>}, {pipeline_mode = #tpu.pipeline_mode<synchronous>, transform_indices = @transform_3, window_bounds = array<i64: 128, 128>}, {pipeline_mode = #tpu.pipeline_mode<synchronous>, transform_indices = @transform_4, window_bounds = array<i64: 1, 128>}, {pipeline_mode = #tpu.pipeline_mode<synchronous>, transform_indices = @transform_5, window_bounds = array<i64: 1, 128>}, {pipeline_mode = #tpu.pipeline_mode<synchronous>, transform_indices = @transform_6, window_bounds = array<i64: 1, 128>}, {pipeline_mode = #tpu.pipeline_mode<synchronous>, transform_indices = @transform_7, window_bounds = array<i64: 1, 128>}, {pipeline_mode = #tpu.pipeline_mode<synchronous>, transform_indices = @transform_8, window_bounds = array<i64: 12, 36>}, {transform_indices = @transform_9, window_bounds = array<i64: 12, 128>}]} {
    %c0 = arith.constant 0 : index
    %c0_0 = arith.constant 0 : index
    %0 = vector.load %arg1[%c0, %c0_0] : memref<36x128xbf16, #tpu.memory_space<vmem>>, vector<36x128xbf16>
    %c0_1 = arith.constant 0 : index
    %c0_2 = arith.constant 0 : index
    %1 = vector.load %arg2[%c0_1, %c0_2] : memref<128x128xbf16, #tpu.memory_space<vmem>>, vector<128x128xbf16>
    %cst = arith.constant dense<0.000000e+00> : vector<36x128xf32>
    %2 = tpu.matmul %0, %1, %cst {dimension_numbers = #tpu.dot_dimension_numbers<[1], [0], [0], [1], [0, 0, 1, 1], [], []>} : vector<36x128xbf16>, vector<128x128xbf16>, vector<36x128xf32> -> vector<36x128xf32>
    %c0_3 = arith.constant 0 : index
    %c0_4 = arith.constant 0 : index
    %3 = vector.load %arg7[%c0_3, %c0_4] : memref<1x128xf32, #tpu.memory_space<vmem>>, vector<1x128xf32>
    %4 = vector.broadcast %3 : vector<1x128xf32> to vector<36x128xf32>
    %5 = arith.mulf %2, %4 : vector<36x128xf32>
    %c0_5 = arith.constant 0 : index
    %c0_6 = arith.constant 0 : index
    %6 = vector.load %arg8[%c0_5, %c0_6] : memref<1x128xf32, #tpu.memory_space<vmem>>, vector<1x128xf32>
    %7 = vector.broadcast %6 : vector<1x128xf32> to vector<36x128xf32>
    %8 = arith.addf %5, %7 : vector<36x128xf32>
    %c0_7 = arith.constant 0 : index
    %c0_8 = arith.constant 0 : index
    %9 = vector.load %arg3[%c0_7, %c0_8] : memref<36x128xbf16, #tpu.memory_space<vmem>>, vector<36x128xbf16>
    %c0_9 = arith.constant 0 : index
    %c0_10 = arith.constant 0 : index
    %10 = vector.load %arg4[%c0_9, %c0_10] : memref<128x128xbf16, #tpu.memory_space<vmem>>, vector<128x128xbf16>
    %cst_11 = arith.constant dense<0.000000e+00> : vector<36x128xf32>
    %11 = tpu.matmul %9, %10, %cst_11 {dimension_numbers = #tpu.dot_dimension_numbers<[1], [0], [0], [1], [0, 0, 1, 1], [], []>} : vector<36x128xbf16>, vector<128x128xbf16>, vector<36x128xf32> -> vector<36x128xf32>
    %c0_12 = arith.constant 0 : index
    %c0_13 = arith.constant 0 : index
    %12 = vector.load %arg5[%c0_12, %c0_13] : memref<1x128xf32, #tpu.memory_space<vmem>>, vector<1x128xf32>
    %13 = vector.broadcast %12 : vector<1x128xf32> to vector<36x128xf32>
    %14 = arith.mulf %11, %13 : vector<36x128xf32>
    %c0_14 = arith.constant 0 : index
    %c0_15 = arith.constant 0 : index
    %15 = vector.load %arg6[%c0_14, %c0_15] : memref<1x128xf32, #tpu.memory_space<vmem>>, vector<1x128xf32>
    %16 = vector.broadcast %15 : vector<1x128xf32> to vector<36x128xf32>
    %17 = arith.addf %14, %16 : vector<36x128xf32>
    %18 = arith.addf %8, %17 : vector<36x128xf32>
    %cst_16 = arith.constant 0.000000e+00 : f32
    %19 = vector.broadcast %cst_16 : f32 to vector<36x128xf32>
    %20 = arith.maximumf %18, %19 : vector<36x128xf32>
    %c0_17 = arith.constant 0 : index
    %c0_18 = arith.constant 0 : index
    %21 = vector.load %arg9[%c0_17, %c0_18] : memref<12x36xf32, #tpu.memory_space<vmem>>, vector<12x36xf32>
    %cst_19 = arith.constant dense<0.000000e+00> : vector<12x128xf32>
    %22 = tpu.matmul %21, %20, %cst_19 {dimension_numbers = #tpu.dot_dimension_numbers<[1], [0], [0], [1], [0, 0, 1, 1], [], []>} : vector<12x36xf32>, vector<36x128xf32>, vector<12x128xf32> -> vector<12x128xf32>
    %c0_20 = arith.constant 0 : index
    %c0_21 = arith.constant 0 : index
    %23 = vector.load %arg10[%c0_20, %c0_21] : memref<12x128xf32, #tpu.memory_space<vmem>>, vector<12x128xf32>
    tpu.vector_store %arg10[%c0_20, %c0_21], %22 {strides = array<i32>} : memref<12x128xf32, #tpu.memory_space<vmem>>, vector<12x128xf32>,
    return
  }
  func.func @transform_0(%arg0: i32) -> (i32, i32) {
    %c0_i32 = arith.constant 0 : i32
    %c0_i32_0 = arith.constant 0 : i32
    return %arg0, %c0_i32 : i32, i32
  }
  func.func @transform_1(%arg0: i32) -> (i32, i32) {
    %c0_i32 = arith.constant 0 : i32
    %c0_i32_0 = arith.constant 0 : i32
    %c0_i32_1 = arith.constant 0 : i32
    return %c0_i32, %c0_i32_0 : i32, i32
  }
  func.func @transform_2(%arg0: i32) -> (i32, i32) {
    %c0_i32 = arith.constant 0 : i32
    %c0_i32_0 = arith.constant 0 : i32
    return %arg0, %c0_i32 : i32, i32
  }
  func.func @transform_3(%arg0: i32) -> (i32, i32) {
    %c0_i32 = arith.constant 0 : i32
    %c0_i32_0 = arith.constant 0 : i32
    %c0_i32_1 = arith.constant 0 : i32
    return %c0_i32, %c0_i32_0 : i32, i32
  }
  func.func @transform_4(%arg0: i32) -> (i32, i32) {
    %c0_i32 = arith.constant 0 : i32
    %c0_i32_0 = arith.constant 0 : i32
    %c0_i32_1 = arith.constant 0 : i32
    return %c0_i32, %c0_i32_0 : i32, i32
  }
  func.func @transform_5(%arg0: i32) -> (i32, i32) {
    %c0_i32 = arith.constant 0 : i32
    %c0_i32_0 = arith.constant 0 : i32
    %c0_i32_1 = arith.constant 0 : i32
    return %c0_i32, %c0_i32_0 : i32, i32
  }
  func.func @transform_6(%arg0: i32) -> (i32, i32) {
    %c0_i32 = arith.constant 0 : i32
    %c0_i32_0 = arith.constant 0 : i32
    %c0_i32_1 = arith.constant 0 : i32
    return %c0_i32, %c0_i32_0 : i32, i32
  }
  func.func @transform_7(%arg0: i32) -> (i32, i32) {
    %c0_i32 = arith.constant 0 : i32
    %c0_i32_0 = arith.constant 0 : i32
    %c0_i32_1 = arith.constant 0 : i32
    return %c0_i32, %c0_i32_0 : i32, i32
  }
  func.func @transform_8(%arg0: i32) -> (i32, i32) {
    %c0_i32 = arith.constant 0 : i32
    %c0_i32_0 = arith.constant 0 : i32
    %c0_i32_1 = arith.constant 0 : i32
    return %c0_i32, %c0_i32_0 : i32, i32
  }
  func.func @transform_9(%arg0: i32) -> (i32, i32) {
    %c0_i32 = arith.constant 0 : i32
    %c0_i32_0 = arith.constant 0 : i32
    return %arg0, %c0_i32 : i32, i32
  }
}

</mosaic_0001>

<bundles_post_ra>
// kernel: _lambda_.14
= control target key start
LH: loop header
LB: loop body
LE: loop exit
PB: predicated region body
PF: predicated region fallthrough
CT: control target
= control target key end

     0   :  { %s2391_s15 = smov 0   ;;  %s2758_s0 = inlined_call_operand.vmem [shape: bf16[2304,256], index: 0, kind: input, shape index: {}]   ;;  %s2759_s1 = inlined_call_operand.vmem [shape: bf16[256,128], index: 1, kind: input, shape index: {}]   ;;  %s2760_s2 = inlined_call_operand.vmem [shape: f32[1,128], index: 2, kind: input, shape index: {}]   ;;  %s2761_s3 = inlined_call_operand.vmem [shape: f32[1,128], index: 3, kind: input, shape index: {}]   ;;  %s2762_s4 = inlined_call_operand.vmem [shape: bf16[2304,128], index: 4, kind: output, shape index: {}]  }
   0x1 LB: > { %s1732_s16 = sadd.s32 4294967295, %s2363_s15   ;;  %p1736_p0 = scmp.ge.s32.totalorder %s2363_s15, 1  ;;  %s2363_s15 = sphi %s2391_s15, %s14_s15  }
   0x2   : > { %p164_p1 = scmp.lt.s32.totalorder %s2363_s15, 5 }
   0x4   : > { %p165_p2 = pnand %p1736_p0, %p164_p1 }
   0x5   : > { %s191_s19 = smul.u32 (!%p165_p2), 72, %s1732_s16 }
   0x6   : > { %168 = sbr.rel (%p165_p2) target bundleno = 418 (0x1a2), region = 36 }
   0x7   : > { %p192_p3 = scmp.lt.s32.totalorder (!%p165_p2), %s191_s19, 287 }
   0xb   : > { %v2233_v0 = vld [vmem:[%s2759_s1 + $0x38] sm:$0xff]   ;;  %v2365_v1 = vmov 0   ;;  %v2234_v2 = vld [vmem:[%s2759_s1 + $0x30] sm:$0xff]   ;;  %v2235_v3 = vld [vmem:[%s2759_s1 + $0x28] sm:$0xff]   ;;  %s2764_s19 = smov (!%p192_p3, %s191_s19), 287 }
   0xc   : > { %765 = vmatprep.subr.bf16.mxu0 %v2365_v1  ;;  %2192 = vmatprep.subr.bf16.mxu1 %v2365_v1  ;;  %v2236_v4 = vld [vmem:[%s2759_s1 + $0x20] sm:$0xff]   ;;  %s1904_s26 = sshll.u32 %s2764_s19, 3  ;;  %v2237_v5 = vld [vmem:[%s2759_s1 + $0x18] sm:$0xff]   ;;  %v2238_v7 = vld [vmem:[%s2759_s1 + $0x10] sm:$0xff]  }
   0xd   : > { %766 = vmatpush1.bf16.msra.mxu0 %v2233_v0  ;;  %2208 = vmatpush1.bf16.msra.mxu1 %v2233_v0  ;;  %s2428_s5 = scalar_lea.vmem %s2758_s0, %s1904_s26  ;;  %v2239_v9 = vld [vmem:[%s2759_s1 + $0x8] sm:$0xff]   ;;  %v2240_v10 = vld [vmem:[%s2759_s1] sm:$0xff]   ;;  %v2241_v11 = vld [vmem:[%s2759_s1 + $0x78] sm:$0xff]  }
   0xe   : > { %767 = vmatprep.subr.bf16.mxu0 %v2365_v1  ;;  %2193 = vmatprep.subr.bf16.mxu1 %v2365_v1  ;;  %v2251_v6 = vld [vmem:[%s2428_s5 + $0x4] ss:$8 sps:$4 sm:$0xff]   ;;  %v2242_v12 = vld [vmem:[%s2759_s1 + $0x70] sm:$0xff]   ;;  %v2245_v15 = vld [vmem:[%s2759_s1 + $0x58] sm:$0xff]  }
   0xf   : > { %v2254_v8 = vld [vmem:[%s2428_s5 + $0x124] ss:$8 sps:$4 sm:$0xff]   ;;  %797 = vmatprep.mubr.bf16.mxu0 %v2251_v6  ;;  %v2246_v16 = vld [vmem:[%s2759_s1 + $0x50] sm:$0xff]   ;;  %v2249_v19 = vld [vmem:[%s2428_s5] ss:$8 sps:$4 sm:$0xff]  }
  0x10   : > { %941 = vmatprep.mubr.bf16.mxu1 %v2254_v8  ;;  %v2243_v13 = vld [vmem:[%s2759_s1 + $0x68] sm:$0xff]   ;;  %v2244_v14 = vld [vmem:[%s2759_s1 + $0x60] sm:$0xff]   ;;  %v2255_v21 = vld [vmem:[%s2428_s5 + $0x14] ss:$8 sps:$4 sm:$0xff]  }
  0x11   : > { %768 = vmatpush1.bf16.msra.mxu0 %v2234_v2  ;;  %2209 = vmatpush1.bf16.msra.mxu1 %v2234_v2  ;;  %v2247_v17 = vld [vmem:[%s2759_s1 + $0x48] sm:$0xff]   ;;  %v2248_v18 = vld [vmem:[%s2759_s1 + $0x40] sm:$0xff]   ;;  %v2257_v22 = vld [vmem:[%s2428_s5 + $0x134] ss:$8 sps:$4 sm:$0xff]  }
  0x12   : > { %769 = vmatprep.subr.bf16.mxu0 %v2365_v1  ;;  %2194 = vmatprep.subr.bf16.mxu1 %v2365_v1  ;;  %v2252_v20 = vld [vmem:[%s2428_s5 + $0x120] ss:$8 sps:$4 sm:$0xff]   ;;  %v2259_v23 = vld [vmem:[%s2428_s5 + $0x10] ss:$8 sps:$4 sm:$0xff]   ;;  %v2261_v25 = vld [vmem:[%s2428_s5 + $0x24] ss:$8 sps:$4 sm:$0xff]  }
  0x13   : > { %v2260_v24 = vld [vmem:[%s2428_s5 + $0x130] ss:$8 sps:$4 sm:$0xff]   ;;  %v2263_v26 = vld [vmem:[%s2428_s5 + $0x144] ss:$8 sps:$4 sm:$0xff]   ;;  %v2265_v27 = vld [vmem:[%s2428_s5 + $0x20] ss:$8 sps:$4 sm:$0xff]  }
  0x14   : > { %v2266_v28 = vld [vmem:[%s2428_s5 + $0x140] ss:$8 sps:$4 sm:$0xff]   ;;  %v2267_v29 = vld [vmem:[%s2428_s5 + $0x34] ss:$8 sps:$4 sm:$0xff]   ;;  %v2271_v31 = vld [vmem:[%s2428_s5 + $0x30] ss:$8 sps:$4 sm:$0xff]  }
  0x15   : > { %770 = vmatpush1.bf16.msra.mxu0 %v2235_v3  ;;  %2210 = vmatpush1.bf16.msra.mxu1 %v2235_v3  ;;  %v2269_v30 = vld [vmem:[%s2428_s5 + $0x154] ss:$8 sps:$4 sm:$0xff]   ;;  %v2272_v32 = vld [vmem:[%s2428_s5 + $0x150] ss:$8 sps:$4 sm:$0xff]   ;;  %v2273_v33 = vld [vmem:[%s2428_s5 + $0x44] ss:$8 sps:$4 sm:$0xff]  }
  0x16   : > { %771 = vmatprep.subr.bf16.mxu0 %v2365_v1  ;;  %2195 = vmatprep.subr.bf16.mxu1 %v2365_v1  ;;  %v2275_v34 = vld [vmem:[%s2428_s5 + $0x164] ss:$8 sps:$4 sm:$0xff]   ;;  %v2277_v35 = vld [vmem:[%s2428_s5 + $0x40] ss:$8 sps:$4 sm:$0xff]   ;;  %v2279_v37 = vld [vmem:[%s2428_s5 + $0x54] ss:$8 sps:$4 sm:$0xff]  }
  0x17   : > { %v2278_v36 = vld [vmem:[%s2428_s5 + $0x160] ss:$8 sps:$4 sm:$0xff]   ;;  %v2281_v38 = vld [vmem:[%s2428_s5 + $0x174] ss:$8 sps:$4 sm:$0xff]   ;;  %v2283_v39 = vld [vmem:[%s2428_s5 + $0x50] ss:$8 sps:$4 sm:$0xff]  }
  0x18   : > { %v2284_v40 = vld [vmem:[%s2428_s5 + $0x170] ss:$8 sps:$4 sm:$0xff]   ;;  %v2285_v41 = vld [vmem:[%s2428_s5 + $0x64] ss:$8 sps:$4 sm:$0xff]   ;;  %v2289_v43 = vld [vmem:[%s2428_s5 + $0x60] ss:$8 sps:$4 sm:$0xff]  }
  0x19   : > { %772 = vmatpush1.bf16.msra.mxu0 %v2236_v4  ;;  %2211 = vmatpush1.bf16.msra.mxu1 %v2236_v4  ;;  %v2287_v42 = vld [vmem:[%s2428_s5 + $0x184] ss:$8 sps:$4 sm:$0xff]   ;;  %v2290_v44 = vld [vmem:[%s2428_s5 + $0x180] ss:$8 sps:$4 sm:$0xff]   ;;  %v2291_v45 = vld [vmem:[%s2428_s5 + $0x74] ss:$8 sps:$4 sm:$0xff]  }
  0x1a   : > { %773 = vmatprep.subr.bf16.mxu0 %v2365_v1  ;;  %2196 = vmatprep.subr.bf16.mxu1 %v2365_v1  ;;  %v2293_v46 = vld [vmem:[%s2428_s5 + $0x194] ss:$8 sps:$4 sm:$0xff]   ;;  %v2295_v47 = vld [vmem:[%s2428_s5 + $0x70] ss:$8 sps:$4 sm:$0xff]   ;;  %v2297_v49 = vld [vmem:[%s2428_s5 + $0x84] ss:$8 sps:$4 sm:$0xff]  }
  0x1b   : > { %v2296_v48 = vld [vmem:[%s2428_s5 + $0x190] ss:$8 sps:$4 sm:$0xff]   ;;  %v2299_v50 = vld [vmem:[%s2428_s5 + $0x1a4] ss:$8 sps:$4 sm:$0xff]   ;;  %v2301_v51 = vld [vmem:[%s2428_s5 + $0x80] ss:$8 sps:$4 sm:$0xff]  }
  0x1c   : > { %v2302_v52 = vld [vmem:[%s2428_s5 + $0x1a0] ss:$8 sps:$4 sm:$0xff]   ;;  %v2303_v53 = vld [vmem:[%s2428_s5 + $0x94] ss:$8 sps:$4 sm:$0xff]   ;;  %v2307_v55 = vld [vmem:[%s2428_s5 + $0x90] ss:$8 sps:$4 sm:$0xff]  }
  0x1d   : > { %774 = vmatpush1.bf16.msra.mxu0 %v2237_v5  ;;  %2212 = vmatpush1.bf16.msra.mxu1 %v2237_v5  ;;  %v2305_v54 = vld [vmem:[%s2428_s5 + $0x1b4] ss:$8 sps:$4 sm:$0xff]   ;;  %v2308_v56 = vld [vmem:[%s2428_s5 + $0x1b0] ss:$8 sps:$4 sm:$0xff]   ;;  %v2309_v57 = vld [vmem:[%s2428_s5 + $0xa4] ss:$8 sps:$4 sm:$0xff]  }
  0x1e   : > { %775 = vmatprep.subr.bf16.mxu0 %v2365_v1  ;;  %2197 = vmatprep.subr.bf16.mxu1 %v2365_v1  ;;  %v2311_v58 = vld [vmem:[%s2428_s5 + $0x1c4] ss:$8 sps:$4 sm:$0xff]   ;;  %v2313_v59 = vld [vmem:[%s2428_s5 + $0xa0] ss:$8 sps:$4 sm:$0xff]   ;;  %v2315_v61 = vld [vmem:[%s2428_s5 + $0xb4] ss:$8 sps:$4 sm:$0xff]  }
  0x1f   : > { %v2314_v60 = vld [vmem:[%s2428_s5 + $0x1c0] ss:$8 sps:$4 sm:$0xff]   ;;  %v2317_v62 = vld [vmem:[%s2428_s5 + $0x1d4] ss:$8 sps:$4 sm:$0xff]   ;;  %v2319_v63 = vld [vmem:[%s2428_s5 + $0xb0] ss:$8 sps:$4 sm:$0xff]  }
  0x20   : > { %v2320_v0 = vld [vmem:[%s2428_s5 + $0x1d0] ss:$8 sps:$4 sm:$0xff]   ;;  %v2323_v2 = vld [vmem:[%s2428_s5 + $0x1e4] ss:$8 sps:$4 sm:$0xff]   ;;  %v2325_v3 = vld [vmem:[%s2428_s5 + $0xc0] ss:$8 sps:$4 sm:$0xff]  }
  0x21   : > { %776 = vmatpush1.bf16.msra.mxu0 %v2238_v7  ;;  %2213 = vmatpush1.bf16.msra.mxu1 %v2238_v7  ;;  %v2326_v4 = vld [vmem:[%s2428_s5 + $0x1e0] ss:$8 sps:$4 sm:$0xff]   ;;  %v2327_v5 = vld [vmem:[%s2428_s5 + $0xd4] ss:$8 sps:$4 sm:$0xff]   ;;  %v2331_v7 = vld [vmem:[%s2428_s5 + $0xd0] ss:$8 sps:$4 sm:$0xff]  }
  0x22   : > { %777 = vmatprep.subr.bf16.mxu0 %v2365_v1  ;;  %2198 = vmatprep.subr.bf16.mxu1 %v2365_v1  ;;  %v2329_v6 = vld [vmem:[%s2428_s5 + $0x1f4] ss:$8 sps:$4 sm:$0xff]   ;;  %v2332_v8 = vld [vmem:[%s2428_s5 + $0x1f0] ss:$8 sps:$4 sm:$0xff]  }
  0x25   : > { %778 = vmatpush1.bf16.msra.mxu0 %v2239_v9  ;;  %2214 = vmatpush1.bf16.msra.mxu1 %v2239_v9  ;;  %v2333_v9 = vld [vmem:[%s2428_s5 + $0xe4] ss:$8 sps:$4 sm:$0xff]  }
  0x26   : > { %779 = vmatprep.subr.bf16.mxu0 %v2365_v1  ;;  %2199 = vmatprep.subr.bf16.mxu1 %v2365_v1 }
  0x29   : > { %780 = vmatpush1.bf16.msra.mxu0 %v2240_v10  ;;  %2215 = vmatpush1.bf16.msra.mxu1 %v2240_v10  ;;  %v2335_v10 = vld [vmem:[%s2428_s5 + $0x204] ss:$8 sps:$4 sm:$0xff]  }
  0x2a   : > { %781 = vmatprep.subr.bf16.mxu0 %v2365_v1  ;;  %2200 = vmatprep.subr.bf16.mxu1 %v2365_v1 }
  0x2d   : > { %782 = vmatpush2.bf16.msra.mxu0 %v2241_v11  ;;  %2216 = vmatpush2.bf16.msra.mxu1 %v2241_v11  ;;  %v2337_v11 = vld [vmem:[%s2428_s5 + $0xe0] ss:$8 sps:$4 sm:$0xff]  }
  0x2e   : > { %783 = vmatprep.subr.bf16.mxu0 %v2365_v1  ;;  %2201 = vmatprep.subr.bf16.mxu1 %v2365_v1 }
  0x31   : > { %784 = vmatpush2.bf16.msra.mxu0 %v2242_v12  ;;  %2217 = vmatpush2.bf16.msra.mxu1 %v2242_v12  ;;  %v2338_v12 = vld [vmem:[%s2428_s5 + $0x200] ss:$8 sps:$4 sm:$0xff]  }
  0x32   : > { %785 = vmatprep.subr.bf16.mxu0 %v2365_v1  ;;  %2202 = vmatprep.subr.bf16.mxu1 %v2365_v1 }
  0x35   : > { %786 = vmatpush2.bf16.msra.mxu0 %v2243_v13  ;;  %2218 = vmatpush2.bf16.msra.mxu1 %v2243_v13  ;;  %v2339_v13 = vld [vmem:[%s2428_s5 + $0xf4] ss:$8 sps:$4 sm:$0xff]  }
  0x36   : > { %787 = vmatprep.subr.bf16.mxu0 %v2365_v1  ;;  %2203 = vmatprep.subr.bf16.mxu1 %v2365_v1 }
  0x39   : > { %788 = vmatpush2.bf16.msra.mxu0 %v2244_v14  ;;  %2219 = vmatpush2.bf16.msra.mxu1 %v2244_v14  ;;  %v2341_v14 = vld [vmem:[%s2428_s5 + $0x214] ss:$8 sps:$4 sm:$0xff]  }
  0x3a   : > { %789 = vmatprep.subr.bf16.mxu0 %v2365_v1  ;;  %2204 = vmatprep.subr.bf16.mxu1 %v2365_v1 }
  0x3d   : > { %790 = vmatpush2.bf16.msra.mxu0 %v2245_v15  ;;  %2220 = vmatpush2.bf16.msra.mxu1 %v2245_v15  ;;  %v2343_v15 = vld [vmem:[%s2428_s5 + $0xf0] ss:$8 sps:$4 sm:$0xff]  }
  0x3e   : > { %791 = vmatprep.subr.bf16.mxu0 %v2365_v1  ;;  %2205 = vmatprep.subr.bf16.mxu1 %v2365_v1 }
  0x41   : > { %792 = vmatpush2.bf16.msra.mxu0 %v2246_v16  ;;  %2221 = vmatpush2.bf16.msra.mxu1 %v2246_v16  ;;  %v2344_v16 = vld [vmem:[%s2428_s5 + $0x210] ss:$8 sps:$4 sm:$0xff]  }
  0x42   : > { %793 = vmatprep.subr.bf16.mxu0 %v2365_v1  ;;  %2206 = vmatprep.subr.bf16.mxu1 %v2365_v1 }
  0x45   : > { %794 = vmatpush2.bf16.msra.mxu0 %v2247_v17  ;;  %2222 = vmatpush2.bf16.msra.mxu1 %v2247_v17  ;;  %v2345_v17 = vld [vmem:[%s2428_s5 + $0x104] ss:$8 sps:$4 sm:$0xff]  }
  0x46   : > { %795 = vmatprep.subr.bf16.mxu0 %v2365_v1  ;;  %2207 = vmatprep.subr.bf16.mxu1 %v2365_v1  ;;  %v2321_v1 = vld [vmem:[%s2428_s5 + $0xc4] ss:$8 sps:$4 sm:$0xff]  }
  0x49   : > { %796 = vmatpush2.bf16.msra.mxu0 %v2248_v18  ;;  %2223 = vmatpush2.bf16.msra.mxu1 %v2248_v18  ;;  %v2347_v18 = vld [vmem:[%s2428_s5 + $0x224] ss:$8 sps:$4 sm:$0xff]  }
  0x4c   : > { %798 = vmatmul.mubr.bf16.vlgmr.msra.gmra.mxu0 %v2249_v19  ;;  %942 = vmatmul.mubr.bf16.vlgmr.msra.gmra.mxu1 %v2252_v20  ;;  %v2349_v19 = vld [vmem:[%s2428_s5 + $0x100] ss:$8 sps:$4 sm:$0xff]  }
  0x4d   : > { %805 = vmatprep.mubr.bf16.mxu0 %v2255_v21  ;;  %949 = vmatprep.mubr.bf16.mxu1 %v2257_v22  ;;  %v2350_v20 = vld [vmem:[%s2428_s5 + $0x220] ss:$8 sps:$4 sm:$0xff]   ;;  %v2351_v21 = vld [vmem:[%s2428_s5 + $0x114] ss:$8 sps:$4 sm:$0xff]  }
  0x4e   : > { %v2353_v22 = vld [vmem:[%s2428_s5 + $0x234] ss:$8 sps:$4 sm:$0xff]  }
  0x54   : > { %806 = vmatmul.mubr.bf16.gmra.mxu0 %v2259_v23  ;;  %950 = vmatmul.mubr.bf16.gmra.mxu1 %v2260_v24  ;;  %v2355_v23 = vld [vmem:[%s2428_s5 + $0x110] ss:$8 sps:$4 sm:$0xff]  }
  0x55   : > { %813 = vmatprep.mubr.bf16.mxu0 %v2261_v25  ;;  %957 = vmatprep.mubr.bf16.mxu1 %v2263_v26  ;;  %v2356_v24 = vld [vmem:[%s2428_s5 + $0x230] ss:$8 sps:$4 sm:$0xff]   ;;  %v2562_v25 = vld [vmem:[%s2760_s2] ss:$0 sm:$0xff]  ;;  %s1739_s5 = sshll.u32 %s2764_s19, 2 }
  0x56   : > { %s2583_s11 = scalar_lea.vmem %s2762_s4, %s1739_s5 }
  0x5c   : > { %814 = vmatmul.mubr.bf16.gmra.mxu0 %v2265_v27  ;;  %958 = vmatmul.mubr.bf16.gmra.mxu1 %v2266_v28 }
  0x5d   : > { %821 = vmatprep.mubr.bf16.mxu0 %v2267_v29  ;;  %965 = vmatprep.mubr.bf16.mxu1 %v2269_v30  ;;  %v2568_v29 = vld [vmem:[%s2761_s3] ss:$0 sm:$0xff] }
  0x64   : > { %822 = vmatmul.mubr.bf16.gmra.mxu0 %v2271_v31  ;;  %966 = vmatmul.mubr.bf16.gmra.mxu1 %v2272_v32 }
  0x65   : > { %829 = vmatprep.mubr.bf16.mxu0 %v2273_v33  ;;  %973 = vmatprep.mubr.bf16.mxu1 %v2275_v34 }
  0x6c   : > { %830 = vmatmul.mubr.bf16.gmra.mxu0 %v2277_v35  ;;  %974 = vmatmul.mubr.bf16.gmra.mxu1 %v2278_v36 }
  0x6d   : > { %837 = vmatprep.mubr.bf16.mxu0 %v2279_v37  ;;  %981 = vmatprep.mubr.bf16.mxu1 %v2281_v38 }
  0x74   : > { %838 = vmatmul.mubr.bf16.gmra.mxu0 %v2283_v39  ;;  %982 = vmatmul.mubr.bf16.gmra.mxu1 %v2284_v40 }
  0x75   : > { %845 = vmatprep.mubr.bf16.mxu0 %v2285_v41  ;;  %989 = vmatprep.mubr.bf16.mxu1 %v2287_v42 }
  0x7c   : > { %846 = vmatmul.mubr.bf16.gmra.mxu0 %v2289_v43  ;;  %990 = vmatmul.mubr.bf16.gmra.mxu1 %v2290_v44 }
  0x7d   : > { %853 = vmatprep.mubr.bf16.mxu0 %v2291_v45  ;;  %997 = vmatprep.mubr.bf16.mxu1 %v2293_v46 }
  0x84   : > { %854 = vmatmul.mubr.bf16.gmra.mxu0 %v2295_v47  ;;  %998 = vmatmul.mubr.bf16.gmra.mxu1 %v2296_v48 }
  0x85   : > { %861 = vmatprep.mubr.bf16.mxu0 %v2297_v49  ;;  %1005 = vmatprep.mubr.bf16.mxu1 %v2299_v50 }
  0x8c   : > { %862 = vmatmul.mubr.bf16.gmra.mxu0 %v2301_v51  ;;  %1006 = vmatmul.mubr.bf16.gmra.mxu1 %v2302_v52 }
  0x8d   : > { %869 = vmatprep.mubr.bf16.mxu0 %v2303_v53  ;;  %1013 = vmatprep.mubr.bf16.mxu1 %v2305_v54 }
  0x94   : > { %870 = vmatmul.mubr.bf16.gmra.mxu0 %v2307_v55  ;;  %1014 = vmatmul.mubr.bf16.gmra.mxu1 %v2308_v56 }
  0x95   : > { %877 = vmatprep.mubr.bf16.mxu0 %v2309_v57  ;;  %1021 = vmatprep.mubr.bf16.mxu1 %v2311_v58 }
  0x9c   : > { %878 = vmatmul.mubr.bf16.gmra.mxu0 %v2313_v59  ;;  %1022 = vmatmul.mubr.bf16.gmra.mxu1 %v2314_v60 }
  0x9d   : > { %885 = vmatprep.mubr.bf16.mxu0 %v2315_v61  ;;  %1029 = vmatprep.mubr.bf16.mxu1 %v2317_v62 }
  0xa4   : > { %886 = vmatmul.mubr.bf16.gmra.mxu0 %v2319_v63  ;;  %1030 = vmatmul.mubr.bf16.gmra.mxu1 %v2320_v0 }
  0xa5   : > { %893 = vmatprep.mubr.bf16.mxu0 %v2321_v1  ;;  %1037 = vmatprep.mubr.bf16.mxu1 %v2323_v2 }
  0xac   : > { %894 = vmatmul.mubr.bf16.gmra.mxu0 %v2325_v3  ;;  %1038 = vmatmul.mubr.bf16.gmra.mxu1 %v2326_v4 }
  0xad   : > { %901 = vmatprep.mubr.bf16.mxu0 %v2327_v5  ;;  %1045 = vmatprep.mubr.bf16.mxu1 %v2329_v6 }
  0xb4   : > { %902 = vmatmul.mubr.bf16.gmra.mxu0 %v2331_v7  ;;  %1046 = vmatmul.mubr.bf16.gmra.mxu1 %v2332_v8 }
  0xb5   : > { %909 = vmatprep.mubr.bf16.mxu0 %v2333_v9  ;;  %1053 = vmatprep.mubr.bf16.mxu1 %v2335_v10 }
  0xbc   : > { %910 = vmatmul.mubr.bf16.gmra.mxu0 %v2337_v11  ;;  %1054 = vmatmul.mubr.bf16.gmra.mxu1 %v2338_v12 }
  0xbd   : > { %917 = vmatprep.mubr.bf16.mxu0 %v2339_v13  ;;  %1061 = vmatprep.mubr.bf16.mxu1 %v2341_v14 }
  0xc4   : > { %918 = vmatmul.mubr.bf16.gmra.mxu0 %v2343_v15  ;;  %1062 = vmatmul.mubr.bf16.gmra.mxu1 %v2344_v16 }
  0xc5   : > { %925 = vmatprep.mubr.bf16.mxu0 %v2345_v17  ;;  %1069 = vmatprep.mubr.bf16.mxu1 %v2347_v18 }
  0xcc   : > { %926 = vmatmul.mubr.bf16.gmra.mxu0 %v2349_v19  ;;  %1070 = vmatmul.mubr.bf16.gmra.mxu1 %v2350_v20 }
  0xcd   : > { %933 = vmatprep.mubr.bf16.mxu0 %v2351_v21  ;;  %1077 = vmatprep.mubr.bf16.mxu1 %v2353_v22 }
  0xd4   : > { %934 = vmatmul.mubr.bf16.gmra.mxu0 %v2355_v23  ;;  %1078 = vmatmul.mubr.bf16.gmra.mxu1 %v2356_v24 }
 0x10c   : > { %v799_v26 = vpop.f32.mrf.mxu0  ;;  %v943_v27 = vpop.f32.mrf.mxu1 }
 0x10d   : > { %v1093_v28 = vmul.f32 %v2562_v25, %v799_v26  ;;  %v1129_v30 = vmul.f32 %v2562_v25, %v943_v27 }
 0x10e   : > { %v801_v31 = vpop.f32.mrf.mxu0  ;;  %v945_v32 = vpop.f32.mrf.mxu1 }
 0x10f   : > { %v1172_v33 = vadd.f32 %v2568_v29, %v1093_v28  ;;  %v1208_v34 = vadd.f32 %v2568_v29, %v1129_v30 }
 0x110   : > { %v802_v35 = vpop.f32.mrf.mxu0  ;;  %v946_v36 = vpop.f32.mrf.mxu1 }
 0x111   : > { %v1094_v37 = vmul.f32 %v2562_v25, %v802_v35  ;;  %v1130_v38 = vmul.f32 %v2562_v25, %v946_v36  ;;  %v1244_v43 = vmax.f32 %v1172_v33, 0.0  ;;  %v1280_v44 = vmax.f32 %v1208_v34, 0.0 }
 0x112   : > { %v804_v39 = vpop.f32.mrf.mxu0  ;;  %v948_v40 = vpop.f32.mrf.mxu1 }
 0x113   : > { %v1173_v41 = vadd.f32 %v2568_v29, %v1094_v37  ;;  %v1209_v42 = vadd.f32 %v2568_v29, %v1130_v38 }
 0x114   : > { %v807_v45 = vpop.f32.mrf.mxu0  ;;  %v951_v46 = vpop.f32.mrf.mxu1 }
 0x115   : > { %v1245_v47 = vmax.f32 %v1173_v41, 0.0  ;;  %v1281_v48 = vmax.f32 %v1209_v42, 0.0  ;;  %v1095_v49 = vmul.f32 %v2562_v25, %v807_v45  ;;  %v1131_v50 = vmul.f32 %v2562_v25, %v951_v46 }
 0x116   : > { %v809_v51 = vpop.f32.mrf.mxu0  ;;  %v953_v52 = vpop.f32.mrf.mxu1 }
 0x117   : > { %v1980_v53 = vpack.c.bf16 %v1245_v47, %v1244_v43  ;;  %v2070_v54 = vpack.c.bf16 %v1281_v48, %v1280_v44  ;;  %v1174_v55 = vadd.f32 %v2568_v29, %v1095_v49  ;;  %v1210_v56 = vadd.f32 %v2568_v29, %v1131_v50 }
 0x118   : > { %v810_v57 = vpop.f32.mrf.mxu0  ;;  %v954_v58 = vpop.f32.mrf.mxu1 }
 0x119   : > { %1981 = vst [vmem:[%s2583_s11] sm:$0xff] %v1980_v53   ;;  %2174 = vst [vmem:[%s2583_s11 + $0x90] sm:$0xff] %v2070_v54   ;;  %v1096_v59 = vmul.f32 %v2562_v25, %v810_v57  ;;  %v1132_v60 = vmul.f32 %v2562_v25, %v954_v58  ;;  %v1246_v1 = vmax.f32 %v1174_v55, 0.0  ;;  %v1282_v2 = vmax.f32 %v1210_v56, 0.0 }
 0x11a   : > { %v812_v61 = vpop.f32.mrf.mxu0  ;;  %v956_v62 = vpop.f32.mrf.mxu1 }
 0x11b   : > { %v1175_v63 = vadd.f32 %v2568_v29, %v1096_v59  ;;  %v1211_v0 = vadd.f32 %v2568_v29, %v1132_v60 }
 0x11c   : > { %v815_v3 = vpop.f32.mrf.mxu0  ;;  %v959_v4 = vpop.f32.mrf.mxu1 }
 0x11d   : > { %v1247_v5 = vmax.f32 %v1175_v63, 0.0  ;;  %v1283_v6 = vmax.f32 %v1211_v0, 0.0  ;;  %v1097_v7 = vmul.f32 %v2562_v25, %v815_v3  ;;  %v1133_v8 = vmul.f32 %v2562_v25, %v959_v4 }
 0x11e   : > { %v817_v9 = vpop.f32.mrf.mxu0  ;;  %v961_v10 = vpop.f32.mrf.mxu1 }
 0x11f   : > { %v1985_v11 = vpack.c.bf16 %v1247_v5, %v1246_v1  ;;  %v2075_v12 = vpack.c.bf16 %v1283_v6, %v1282_v2  ;;  %v1176_v13 = vadd.f32 %v2568_v29, %v1097_v7  ;;  %v1212_v14 = vadd.f32 %v2568_v29, %v1133_v8 }
 0x120   : > { %v818_v15 = vpop.f32.mrf.mxu0  ;;  %v962_v16 = vpop.f32.mrf.mxu1 }
 0x121   : > { %2157 = vst [vmem:[%s2583_s11 + $0x8] sm:$0xff] %v1985_v11   ;;  %2175 = vst [vmem:[%s2583_s11 + $0x98] sm:$0xff] %v2075_v12   ;;  %v1098_v17 = vmul.f32 %v2562_v25, %v818_v15  ;;  %v1134_v18 = vmul.f32 %v2562_v25, %v962_v16  ;;  %v1248_v23 = vmax.f32 %v1176_v13, 0.0  ;;  %v1284_v24 = vmax.f32 %v1212_v14, 0.0 }
 0x122   : > { %v820_v19 = vpop.f32.mrf.mxu0  ;;  %v964_v20 = vpop.f32.mrf.mxu1 }
 0x123   : > { %v1177_v21 = vadd.f32 %v2568_v29, %v1098_v17  ;;  %v1213_v22 = vadd.f32 %v2568_v29, %v1134_v18 }
 0x124   : > { %v823_v26 = vpop.f32.mrf.mxu0  ;;  %v967_v27 = vpop.f32.mrf.mxu1 }
 0x125   : > { %v1249_v28 = vmax.f32 %v1177_v21, 0.0  ;;  %v1285_v30 = vmax.f32 %v1213_v22, 0.0  ;;  %v1099_v31 = vmul.f32 %v2562_v25, %v823_v26  ;;  %v1135_v32 = vmul.f32 %v2562_v25, %v967_v27 }
 0x126   : > { %v825_v33 = vpop.f32.mrf.mxu0  ;;  %v969_v34 = vpop.f32.mrf.mxu1 }
 0x127   : > { %v1990_v35 = vpack.c.bf16 %v1249_v28, %v1248_v23  ;;  %v2080_v36 = vpack.c.bf16 %v1285_v30, %v1284_v24  ;;  %v1178_v37 = vadd.f32 %v2568_v29, %v1099_v31  ;;  %v1214_v38 = vadd.f32 %v2568_v29, %v1135_v32 }
 0x128   : > { %v826_v39 = vpop.f32.mrf.mxu0  ;;  %v970_v40 = vpop.f32.mrf.mxu1 }
 0x129   : > { %2158 = vst [vmem:[%s2583_s11 + $0x10] sm:$0xff] %v1990_v35   ;;  %2176 = vst [vmem:[%s2583_s11 + $0xa0] sm:$0xff] %v2080_v36   ;;  %v1100_v41 = vmul.f32 %v2562_v25, %v826_v39  ;;  %v1136_v42 = vmul.f32 %v2562_v25, %v970_v40  ;;  %v1250_v47 = vmax.f32 %v1178_v37, 0.0  ;;  %v1286_v48 = vmax.f32 %v1214_v38, 0.0 }
 0x12a   : > { %v828_v43 = vpop.f32.mrf.mxu0  ;;  %v972_v44 = vpop.f32.mrf.mxu1 }
 0x12b   : > { %v1179_v45 = vadd.f32 %v2568_v29, %v1100_v41  ;;  %v1215_v46 = vadd.f32 %v2568_v29, %v1136_v42 }
 0x12c   : > { %v831_v49 = vpop.f32.mrf.mxu0  ;;  %v975_v50 = vpop.f32.mrf.mxu1 }
 0x12d   : > { %v1251_v51 = vmax.f32 %v1179_v45, 0.0  ;;  %v1287_v52 = vmax.f32 %v1215_v46, 0.0  ;;  %v1101_v53 = vmul.f32 %v2562_v25, %v831_v49  ;;  %v1137_v54 = vmul.f32 %v2562_v25, %v975_v50 }
 0x12e   : > { %v833_v55 = vpop.f32.mrf.mxu0  ;;  %v977_v56 = vpop.f32.mrf.mxu1 }
 0x12f   : > { %v1995_v57 = vpack.c.bf16 %v1251_v51, %v1250_v47  ;;  %v2085_v58 = vpack.c.bf16 %v1287_v52, %v1286_v48  ;;  %v1180_v59 = vadd.f32 %v2568_v29, %v1101_v53  ;;  %v1216_v60 = vadd.f32 %v2568_v29, %v1137_v54 }
 0x130   : > { %v834_v61 = vpop.f32.mrf.mxu0  ;;  %v978_v62 = vpop.f32.mrf.mxu1 }
 0x131   : > { %2159 = vst [vmem:[%s2583_s11 + $0x18] sm:$0xff] %v1995_v57   ;;  %2177 = vst [vmem:[%s2583_s11 + $0xa8] sm:$0xff] %v2085_v58   ;;  %v1102_v63 = vmul.f32 %v2562_v25, %v834_v61  ;;  %v1138_v0 = vmul.f32 %v2562_v25, %v978_v62  ;;  %v1252_v5 = vmax.f32 %v1180_v59, 0.0  ;;  %v1288_v6 = vmax.f32 %v1216_v60, 0.0 }
 0x132   : > { %v836_v1 = vpop.f32.mrf.mxu0  ;;  %v980_v2 = vpop.f32.mrf.mxu1 }
 0x133   : > { %v1181_v3 = vadd.f32 %v2568_v29, %v1102_v63  ;;  %v1217_v4 = vadd.f32 %v2568_v29, %v1138_v0 }
 0x134   : > { %v839_v7 = vpop.f32.mrf.mxu0  ;;  %v983_v8 = vpop.f32.mrf.mxu1 }
 0x135   : > { %v1253_v9 = vmax.f32 %v1181_v3, 0.0  ;;  %v1289_v10 = vmax.f32 %v1217_v4, 0.0  ;;  %v1103_v11 = vmul.f32 %v2562_v25, %v839_v7  ;;  %v1139_v12 = vmul.f32 %v2562_v25, %v983_v8 }
 0x136   : > { %v841_v13 = vpop.f32.mrf.mxu0  ;;  %v985_v14 = vpop.f32.mrf.mxu1 }
 0x137   : > { %v2000_v15 = vpack.c.bf16 %v1253_v9, %v1252_v5  ;;  %v2090_v16 = vpack.c.bf16 %v1289_v10, %v1288_v6  ;;  %v1182_v17 = vadd.f32 %v2568_v29, %v1103_v11  ;;  %v1218_v18 = vadd.f32 %v2568_v29, %v1139_v12 }
 0x138   : > { %v842_v19 = vpop.f32.mrf.mxu0  ;;  %v986_v20 = vpop.f32.mrf.mxu1 }
 0x139   : > { %2160 = vst [vmem:[%s2583_s11 + $0x20] sm:$0xff] %v2000_v15   ;;  %2178 = vst [vmem:[%s2583_s11 + $0xb0] sm:$0xff] %v2090_v16   ;;  %v1104_v21 = vmul.f32 %v2562_v25, %v842_v19  ;;  %v1140_v22 = vmul.f32 %v2562_v25, %v986_v20  ;;  %v1254_v28 = vmax.f32 %v1182_v17, 0.0  ;;  %v1290_v30 = vmax.f32 %v1218_v18, 0.0 }
 0x13a   : > { %v844_v23 = vpop.f32.mrf.mxu0  ;;  %v988_v24 = vpop.f32.mrf.mxu1 }
 0x13b   : > { %v1183_v26 = vadd.f32 %v2568_v29, %v1104_v21  ;;  %v1219_v27 = vadd.f32 %v2568_v29, %v1140_v22 }
 0x13c   : > { %v847_v31 = vpop.f32.mrf.mxu0  ;;  %v991_v32 = vpop.f32.mrf.mxu1 }
 0x13d   : > { %v1255_v33 = vmax.f32 %v1183_v26, 0.0  ;;  %v1291_v34 = vmax.f32 %v1219_v27, 0.0  ;;  %v1105_v35 = vmul.f32 %v2562_v25, %v847_v31  ;;  %v1141_v36 = vmul.f32 %v2562_v25, %v991_v32 }
 0x13e   : > { %v849_v37 = vpop.f32.mrf.mxu0  ;;  %v993_v38 = vpop.f32.mrf.mxu1 }
 0x13f   : > { %v2005_v39 = vpack.c.bf16 %v1255_v33, %v1254_v28  ;;  %v2095_v40 = vpack.c.bf16 %v1291_v34, %v1290_v30  ;;  %v1184_v41 = vadd.f32 %v2568_v29, %v1105_v35  ;;  %v1220_v42 = vadd.f32 %v2568_v29, %v1141_v36 }
 0x140   : > { %v850_v43 = vpop.f32.mrf.mxu0  ;;  %v994_v44 = vpop.f32.mrf.mxu1 }
 0x141   : > { %2161 = vst [vmem:[%s2583_s11 + $0x28] sm:$0xff] %v2005_v39   ;;  %2179 = vst [vmem:[%s2583_s11 + $0xb8] sm:$0xff] %v2095_v40   ;;  %v1106_v45 = vmul.f32 %v2562_v25, %v850_v43  ;;  %v1142_v46 = vmul.f32 %v2562_v25, %v994_v44  ;;  %v1256_v51 = vmax.f32 %v1184_v41, 0.0  ;;  %v1292_v52 = vmax.f32 %v1220_v42, 0.0 }
 0x142   : > { %v852_v47 = vpop.f32.mrf.mxu0  ;;  %v996_v48 = vpop.f32.mrf.mxu1 }
 0x143   : > { %v1185_v49 = vadd.f32 %v2568_v29, %v1106_v45  ;;  %v1221_v50 = vadd.f32 %v2568_v29, %v1142_v46 }
 0x144   : > { %v855_v53 = vpop.f32.mrf.mxu0  ;;  %v999_v54 = vpop.f32.mrf.mxu1 }
 0x145   : > { %v1257_v55 = vmax.f32 %v1185_v49, 0.0  ;;  %v1293_v56 = vmax.f32 %v1221_v50, 0.0  ;;  %v1107_v57 = vmul.f32 %v2562_v25, %v855_v53  ;;  %v1143_v58 = vmul.f32 %v2562_v25, %v999_v54 }
 0x146   : > { %v857_v59 = vpop.f32.mrf.mxu0  ;;  %v1001_v60 = vpop.f32.mrf.mxu1 }
 0x147   : > { %v2010_v61 = vpack.c.bf16 %v1257_v55, %v1256_v51  ;;  %v2100_v62 = vpack.c.bf16 %v1293_v56, %v1292_v52  ;;  %v1186_v63 = vadd.f32 %v2568_v29, %v1107_v57  ;;  %v1222_v0 = vadd.f32 %v2568_v29, %v1143_v58 }
 0x148   : > { %v858_v1 = vpop.f32.mrf.mxu0  ;;  %v1002_v2 = vpop.f32.mrf.mxu1 }
 0x149   : > { %2162 = vst [vmem:[%s2583_s11 + $0x30] sm:$0xff] %v2010_v61   ;;  %2180 = vst [vmem:[%s2583_s11 + $0xc0] sm:$0xff] %v2100_v62   ;;  %v1108_v3 = vmul.f32 %v2562_v25, %v858_v1  ;;  %v1144_v4 = vmul.f32 %v2562_v25, %v1002_v2  ;;  %v1258_v9 = vmax.f32 %v1186_v63, 0.0  ;;  %v1294_v10 = vmax.f32 %v1222_v0, 0.0 }
 0x14a   : > { %v860_v5 = vpop.f32.mrf.mxu0  ;;  %v1004_v6 = vpop.f32.mrf.mxu1 }
 0x14b   : > { %v1187_v7 = vadd.f32 %v2568_v29, %v1108_v3  ;;  %v1223_v8 = vadd.f32 %v2568_v29, %v1144_v4 }
 0x14c   : > { %v863_v11 = vpop.f32.mrf.mxu0  ;;  %v1007_v12 = vpop.f32.mrf.mxu1 }
 0x14d   : > { %v1259_v13 = vmax.f32 %v1187_v7, 0.0  ;;  %v1295_v14 = vmax.f32 %v1223_v8, 0.0  ;;  %v1109_v15 = vmul.f32 %v2562_v25, %v863_v11  ;;  %v1145_v16 = vmul.f32 %v2562_v25, %v1007_v12 }
 0x14e   : > { %v865_v17 = vpop.f32.mrf.mxu0  ;;  %v1009_v18 = vpop.f32.mrf.mxu1 }
 0x14f   : > { %v2015_v19 = vpack.c.bf16 %v1259_v13, %v1258_v9  ;;  %v2105_v20 = vpack.c.bf16 %v1295_v14, %v1294_v10  ;;  %v1188_v21 = vadd.f32 %v2568_v29, %v1109_v15  ;;  %v1224_v22 = vadd.f32 %v2568_v29, %v1145_v16 }
 0x150   : > { %v866_v23 = vpop.f32.mrf.mxu0  ;;  %v1010_v24 = vpop.f32.mrf.mxu1 }
 0x151   : > { %2163 = vst [vmem:[%s2583_s11 + $0x38] sm:$0xff] %v2015_v19   ;;  %2181 = vst [vmem:[%s2583_s11 + $0xc8] sm:$0xff] %v2105_v20   ;;  %v1110_v26 = vmul.f32 %v2562_v25, %v866_v23  ;;  %v1146_v27 = vmul.f32 %v2562_v25, %v1010_v24  ;;  %v1260_v33 = vmax.f32 %v1188_v21, 0.0  ;;  %v1296_v34 = vmax.f32 %v1224_v22, 0.0 }
 0x152   : > { %v868_v28 = vpop.f32.mrf.mxu0  ;;  %v1012_v30 = vpop.f32.mrf.mxu1 }
 0x153   : > { %v1189_v31 = vadd.f32 %v2568_v29, %v1110_v26  ;;  %v1225_v32 = vadd.f32 %v2568_v29, %v1146_v27 }
 0x154   : > { %v871_v35 = vpop.f32.mrf.mxu0  ;;  %v1015_v36 = vpop.f32.mrf.mxu1 }
 0x155   : > { %v1261_v37 = vmax.f32 %v1189_v31, 0.0  ;;  %v1297_v38 = vmax.f32 %v1225_v32, 0.0  ;;  %v1111_v39 = vmul.f32 %v2562_v25, %v871_v35  ;;  %v1147_v40 = vmul.f32 %v2562_v25, %v1015_v36 }
 0x156   : > { %v873_v41 = vpop.f32.mrf.mxu0  ;;  %v1017_v42 = vpop.f32.mrf.mxu1 }
 0x157   : > { %v2020_v43 = vpack.c.bf16 %v1261_v37, %v1260_v33  ;;  %v2110_v44 = vpack.c.bf16 %v1297_v38, %v1296_v34  ;;  %v1190_v45 = vadd.f32 %v2568_v29, %v1111_v39  ;;  %v1226_v46 = vadd.f32 %v2568_v29, %v1147_v40 }
 0x158   : > { %v874_v47 = vpop.f32.mrf.mxu0  ;;  %v1018_v48 = vpop.f32.mrf.mxu1 }
 0x159   : > { %2164 = vst [vmem:[%s2583_s11 + $0x40] sm:$0xff] %v2020_v43   ;;  %2182 = vst [vmem:[%s2583_s11 + $0xd0] sm:$0xff] %v2110_v44   ;;  %v1112_v49 = vmul.f32 %v2562_v25, %v874_v47  ;;  %v1148_v50 = vmul.f32 %v2562_v25, %v1018_v48  ;;  %v1262_v55 = vmax.f32 %v1190_v45, 0.0  ;;  %v1298_v56 = vmax.f32 %v1226_v46, 0.0 }
 0x15a   : > { %v876_v51 = vpop.f32.mrf.mxu0  ;;  %v1020_v52 = vpop.f32.mrf.mxu1 }
 0x15b   : > { %v1191_v53 = vadd.f32 %v2568_v29, %v1112_v49  ;;  %v1227_v54 = vadd.f32 %v2568_v29, %v1148_v50 }
 0x15c   : > { %v879_v57 = vpop.f32.mrf.mxu0  ;;  %v1023_v58 = vpop.f32.mrf.mxu1 }
 0x15d   : > { %v1263_v59 = vmax.f32 %v1191_v53, 0.0  ;;  %v1299_v60 = vmax.f32 %v1227_v54, 0.0  ;;  %v1113_v61 = vmul.f32 %v2562_v25, %v879_v57  ;;  %v1149_v62 = vmul.f32 %v2562_v25, %v1023_v58 }
 0x15e   : > { %v881_v63 = vpop.f32.mrf.mxu0  ;;  %v1025_v0 = vpop.f32.mrf.mxu1 }
 0x15f   : > { %v2025_v1 = vpack.c.bf16 %v1263_v59, %v1262_v55  ;;  %v2115_v2 = vpack.c.bf16 %v1299_v60, %v1298_v56  ;;  %v1192_v3 = vadd.f32 %v2568_v29, %v1113_v61  ;;  %v1228_v4 = vadd.f32 %v2568_v29, %v1149_v62 }
 0x160   : > { %v882_v5 = vpop.f32.mrf.mxu0  ;;  %v1026_v6 = vpop.f32.mrf.mxu1 }
 0x161   : > { %2165 = vst [vmem:[%s2583_s11 + $0x48] sm:$0xff] %v2025_v1   ;;  %2183 = vst [vmem:[%s2583_s11 + $0xd8] sm:$0xff] %v2115_v2   ;;  %v1114_v7 = vmul.f32 %v2562_v25, %v882_v5  ;;  %v1150_v8 = vmul.f32 %v2562_v25, %v1026_v6  ;;  %v1264_v13 = vmax.f32 %v1192_v3, 0.0  ;;  %v1300_v14 = vmax.f32 %v1228_v4, 0.0 }
 0x162   : > { %v884_v9 = vpop.f32.mrf.mxu0  ;;  %v1028_v10 = vpop.f32.mrf.mxu1 }
 0x163   : > { %v1193_v11 = vadd.f32 %v2568_v29, %v1114_v7  ;;  %v1229_v12 = vadd.f32 %v2568_v29, %v1150_v8 }
 0x164   : > { %v887_v15 = vpop.f32.mrf.mxu0  ;;  %v1031_v16 = vpop.f32.mrf.mxu1 }
 0x165   : > { %v1265_v17 = vmax.f32 %v1193_v11, 0.0  ;;  %v1301_v18 = vmax.f32 %v1229_v12, 0.0  ;;  %v1115_v19 = vmul.f32 %v2562_v25, %v887_v15  ;;  %v1151_v20 = vmul.f32 %v2562_v25, %v1031_v16 }
 0x166   : > { %v889_v21 = vpop.f32.mrf.mxu0  ;;  %v1033_v22 = vpop.f32.mrf.mxu1 }
 0x167   : > { %v2030_v23 = vpack.c.bf16 %v1265_v17, %v1264_v13  ;;  %v2120_v24 = vpack.c.bf16 %v1301_v18, %v1300_v14  ;;  %v1194_v26 = vadd.f32 %v2568_v29, %v1115_v19  ;;  %v1230_v27 = vadd.f32 %v2568_v29, %v1151_v20 }
 0x168   : > { %v890_v28 = vpop.f32.mrf.mxu0  ;;  %v1034_v30 = vpop.f32.mrf.mxu1 }
 0x169   : > { %2166 = vst [vmem:[%s2583_s11 + $0x50] sm:$0xff] %v2030_v23   ;;  %2184 = vst [vmem:[%s2583_s11 + $0xe0] sm:$0xff] %v2120_v24   ;;  %v1116_v31 = vmul.f32 %v2562_v25, %v890_v28  ;;  %v1152_v32 = vmul.f32 %v2562_v25, %v1034_v30  ;;  %v1266_v37 = vmax.f32 %v1194_v26, 0.0  ;;  %v1302_v38 = vmax.f32 %v1230_v27, 0.0 }
 0x16a   : > { %v892_v33 = vpop.f32.mrf.mxu0  ;;  %v1036_v34 = vpop.f32.mrf.mxu1 }
 0x16b   : > { %v1195_v35 = vadd.f32 %v2568_v29, %v1116_v31  ;;  %v1231_v36 = vadd.f32 %v2568_v29, %v1152_v32 }
 0x16c   : > { %v895_v39 = vpop.f32.mrf.mxu0  ;;  %v1039_v40 = vpop.f32.mrf.mxu1 }
 0x16d   : > { %v1267_v41 = vmax.f32 %v1195_v35, 0.0  ;;  %v1303_v42 = vmax.f32 %v1231_v36, 0.0  ;;  %v1117_v43 = vmul.f32 %v2562_v25, %v895_v39  ;;  %v1153_v44 = vmul.f32 %v2562_v25, %v1039_v40 }
 0x16e   : > { %v897_v45 = vpop.f32.mrf.mxu0  ;;  %v1041_v46 = vpop.f32.mrf.mxu1 }
 0x16f   : > { %v2035_v47 = vpack.c.bf16 %v1267_v41, %v1266_v37  ;;  %v2125_v48 = vpack.c.bf16 %v1303_v42, %v1302_v38  ;;  %v1196_v49 = vadd.f32 %v2568_v29, %v1117_v43  ;;  %v1232_v50 = vadd.f32 %v2568_v29, %v1153_v44 }
 0x170   : > { %v898_v51 = vpop.f32.mrf.mxu0  ;;  %v1042_v52 = vpop.f32.mrf.mxu1 }
 0x171   : > { %2167 = vst [vmem:[%s2583_s11 + $0x58] sm:$0xff] %v2035_v47   ;;  %2185 = vst [vmem:[%s2583_s11 + $0xe8] sm:$0xff] %v2125_v48   ;;  %v1118_v53 = vmul.f32 %v2562_v25, %v898_v51  ;;  %v1154_v54 = vmul.f32 %v2562_v25, %v1042_v52  ;;  %v1268_v59 = vmax.f32 %v1196_v49, 0.0  ;;  %v1304_v60 = vmax.f32 %v1232_v50, 0.0 }
 0x172   : > { %v900_v55 = vpop.f32.mrf.mxu0  ;;  %v1044_v56 = vpop.f32.mrf.mxu1 }
 0x173   : > { %v1197_v57 = vadd.f32 %v2568_v29, %v1118_v53  ;;  %v1233_v58 = vadd.f32 %v2568_v29, %v1154_v54 }
 0x174   : > { %v903_v61 = vpop.f32.mrf.mxu0  ;;  %v1047_v62 = vpop.f32.mrf.mxu1 }
 0x175   : > { %v1269_v63 = vmax.f32 %v1197_v57, 0.0  ;;  %v1305_v0 = vmax.f32 %v1233_v58, 0.0  ;;  %v1119_v1 = vmul.f32 %v2562_v25, %v903_v61  ;;  %v1155_v2 = vmul.f32 %v2562_v25, %v1047_v62 }
 0x176   : > { %v905_v3 = vpop.f32.mrf.mxu0  ;;  %v1049_v4 = vpop.f32.mrf.mxu1 }
 0x177   : > { %v2040_v5 = vpack.c.bf16 %v1269_v63, %v1268_v59  ;;  %v2130_v6 = vpack.c.bf16 %v1305_v0, %v1304_v60  ;;  %v1198_v7 = vadd.f32 %v2568_v29, %v1119_v1  ;;  %v1234_v8 = vadd.f32 %v2568_v29, %v1155_v2 }
 0x178   : > { %v906_v9 = vpop.f32.mrf.mxu0  ;;  %v1050_v10 = vpop.f32.mrf.mxu1 }
 0x179   : > { %2168 = vst [vmem:[%s2583_s11 + $0x60] sm:$0xff] %v2040_v5   ;;  %2186 = vst [vmem:[%s2583_s11 + $0xf0] sm:$0xff] %v2130_v6   ;;  %v1120_v11 = vmul.f32 %v2562_v25, %v906_v9  ;;  %v1156_v12 = vmul.f32 %v2562_v25, %v1050_v10  ;;  %v1270_v17 = vmax.f32 %v1198_v7, 0.0  ;;  %v1306_v18 = vmax.f32 %v1234_v8, 0.0 }
 0x17a   : > { %v908_v13 = vpop.f32.mrf.mxu0  ;;  %v1052_v14 = vpop.f32.mrf.mxu1 }
 0x17b   : > { %v1199_v15 = vadd.f32 %v2568_v29, %v1120_v11  ;;  %v1235_v16 = vadd.f32 %v2568_v29, %v1156_v12 }
 0x17c   : > { %v911_v19 = vpop.f32.mrf.mxu0  ;;  %v1055_v20 = vpop.f32.mrf.mxu1 }
 0x17d   : > { %v1271_v21 = vmax.f32 %v1199_v15, 0.0  ;;  %v1307_v22 = vmax.f32 %v1235_v16, 0.0  ;;  %v1121_v23 = vmul.f32 %v2562_v25, %v911_v19  ;;  %v1157_v24 = vmul.f32 %v2562_v25, %v1055_v20 }
 0x17e   : > { %v913_v26 = vpop.f32.mrf.mxu0  ;;  %v1057_v27 = vpop.f32.mrf.mxu1 }
 0x17f   : > { %v2045_v28 = vpack.c.bf16 %v1271_v21, %v1270_v17  ;;  %v2135_v30 = vpack.c.bf16 %v1307_v22, %v1306_v18  ;;  %v1200_v31 = vadd.f32 %v2568_v29, %v1121_v23  ;;  %v1236_v32 = vadd.f32 %v2568_v29, %v1157_v24 }
 0x180   : > { %v914_v33 = vpop.f32.mrf.mxu0  ;;  %v1058_v34 = vpop.f32.mrf.mxu1 }
 0x181   : > { %2169 = vst [vmem:[%s2583_s11 + $0x68] sm:$0xff] %v2045_v28   ;;  %2187 = vst [vmem:[%s2583_s11 + $0xf8] sm:$0xff] %v2135_v30   ;;  %v1122_v35 = vmul.f32 %v2562_v25, %v914_v33  ;;  %v1158_v36 = vmul.f32 %v2562_v25, %v1058_v34  ;;  %v1272_v41 = vmax.f32 %v1200_v31, 0.0  ;;  %v1308_v42 = vmax.f32 %v1236_v32, 0.0 }
 0x182   : > { %v916_v37 = vpop.f32.mrf.mxu0  ;;  %v1060_v38 = vpop.f32.mrf.mxu1 }
 0x183   : > { %v1201_v39 = vadd.f32 %v2568_v29, %v1122_v35  ;;  %v1237_v40 = vadd.f32 %v2568_v29, %v1158_v36 }
 0x184   : > { %v919_v43 = vpop.f32.mrf.mxu0  ;;  %v1063_v44 = vpop.f32.mrf.mxu1 }
 0x185   : > { %v1273_v45 = vmax.f32 %v1201_v39, 0.0  ;;  %v1309_v46 = vmax.f32 %v1237_v40, 0.0  ;;  %v1123_v47 = vmul.f32 %v2562_v25, %v919_v43  ;;  %v1159_v48 = vmul.f32 %v2562_v25, %v1063_v44 }
 0x186   : > { %v921_v49 = vpop.f32.mrf.mxu0  ;;  %v1065_v50 = vpop.f32.mrf.mxu1 }
 0x187   : > { %v2050_v51 = vpack.c.bf16 %v1273_v45, %v1272_v41  ;;  %v2140_v52 = vpack.c.bf16 %v1309_v46, %v1308_v42  ;;  %v1202_v53 = vadd.f32 %v2568_v29, %v1123_v47  ;;  %v1238_v54 = vadd.f32 %v2568_v29, %v1159_v48 }
 0x188   : > { %v922_v55 = vpop.f32.mrf.mxu0  ;;  %v1066_v56 = vpop.f32.mrf.mxu1 }
 0x189   : > { %2170 = vst [vmem:[%s2583_s11 + $0x70] sm:$0xff] %v2050_v51   ;;  %2188 = vst [vmem:[%s2583_s11 + $0x100] sm:$0xff] %v2140_v52   ;;  %v1124_v57 = vmul.f32 %v2562_v25, %v922_v55  ;;  %v1160_v58 = vmul.f32 %v2562_v25, %v1066_v56  ;;  %v1274_v63 = vmax.f32 %v1202_v53, 0.0  ;;  %v1310_v0 = vmax.f32 %v1238_v54, 0.0 }
 0x18a   : > { %v924_v59 = vpop.f32.mrf.mxu0  ;;  %v1068_v60 = vpop.f32.mrf.mxu1 }
 0x18b   : > { %v1203_v61 = vadd.f32 %v2568_v29, %v1124_v57  ;;  %v1239_v62 = vadd.f32 %v2568_v29, %v1160_v58 }
 0x18c   : > { %v927_v1 = vpop.f32.mrf.mxu0  ;;  %v1071_v2 = vpop.f32.mrf.mxu1 }
 0x18d   : > { %v1275_v3 = vmax.f32 %v1203_v61, 0.0  ;;  %v1311_v4 = vmax.f32 %v1239_v62, 0.0  ;;  %v1125_v5 = vmul.f32 %v2562_v25, %v927_v1  ;;  %v1161_v6 = vmul.f32 %v2562_v25, %v1071_v2 }
 0x18e   : > { %v929_v7 = vpop.f32.mrf.mxu0  ;;  %v1073_v8 = vpop.f32.mrf.mxu1 }
 0x18f   : > { %v2055_v9 = vpack.c.bf16 %v1275_v3, %v1274_v63  ;;  %v2145_v10 = vpack.c.bf16 %v1311_v4, %v1310_v0  ;;  %v1204_v11 = vadd.f32 %v2568_v29, %v1125_v5  ;;  %v1240_v12 = vadd.f32 %v2568_v29, %v1161_v6 }
 0x190   : > { %v930_v13 = vpop.f32.mrf.mxu0  ;;  %v1074_v14 = vpop.f32.mrf.mxu1 }
 0x191   : > { %2171 = vst [vmem:[%s2583_s11 + $0x78] sm:$0xff] %v2055_v9   ;;  %2189 = vst [vmem:[%s2583_s11 + $0x108] sm:$0xff] %v2145_v10   ;;  %v1126_v15 = vmul.f32 %v2562_v25, %v930_v13  ;;  %v1162_v16 = vmul.f32 %v2562_v25, %v1074_v14  ;;  %v1276_v21 = vmax.f32 %v1204_v11, 0.0  ;;  %v1312_v22 = vmax.f32 %v1240_v12, 0.0 }
 0x192   : > { %v932_v17 = vpop.f32.mrf.mxu0  ;;  %v1076_v18 = vpop.f32.mrf.mxu1 }
 0x193   : > { %v1205_v19 = vadd.f32 %v2568_v29, %v1126_v15  ;;  %v1241_v20 = vadd.f32 %v2568_v29, %v1162_v16 }
 0x194   : > { %v935_v23 = vpop.f32.mrf.mxu0  ;;  %v1079_v24 = vpop.f32.mrf.mxu1 }
 0x195   : > { %v1277_v26 = vmax.f32 %v1205_v19, 0.0  ;;  %v1313_v27 = vmax.f32 %v1241_v20, 0.0  ;;  %v1127_v28 = vmul.f32 %v2562_v25, %v935_v23  ;;  %v1163_v30 = vmul.f32 %v2562_v25, %v1079_v24 }
 0x196   : > { %v937_v31 = vpop.f32.mrf.mxu0  ;;  %v1081_v32 = vpop.f32.mrf.mxu1 }
 0x197   : > { %v2060_v33 = vpack.c.bf16 %v1277_v26, %v1276_v21  ;;  %v2150_v34 = vpack.c.bf16 %v1313_v27, %v1312_v22  ;;  %v1206_v37 = vadd.f32 %v2568_v29, %v1127_v28  ;;  %v1242_v38 = vadd.f32 %v2568_v29, %v1163_v30 }
 0x198   : > { %v938_v35 = vpop.f32.mrf.mxu0  ;;  %v1082_v36 = vpop.f32.mrf.mxu1 }
 0x199   : > { %2172 = vst [vmem:[%s2583_s11 + $0x80] sm:$0xff] %v2060_v33   ;;  %2190 = vst [vmem:[%s2583_s11 + $0x110] sm:$0xff] %v2150_v34   ;;  %v1128_v39 = vmul.f32 %v2562_v25, %v938_v35  ;;  %v1164_v40 = vmul.f32 %v2562_v25, %v1082_v36  ;;  %v1278_v45 = vmax.f32 %v1206_v37, 0.0  ;;  %v1314_v46 = vmax.f32 %v1242_v38, 0.0 }
 0x19a   : > { %v940_v41 = vpop.f32.mrf.mxu0  ;;  %v1084_v42 = vpop.f32.mrf.mxu1 }
 0x19b   : > { %v1207_v43 = vadd.f32 %v2568_v29, %v1128_v39  ;;  %v1243_v44 = vadd.f32 %v2568_v29, %v1164_v40 }
 0x19d   : > { %v1279_v47 = vmax.f32 %v1207_v43, 0.0  ;;  %v1315_v48 = vmax.f32 %v1243_v44, 0.0 }
 0x19f   : > { %v2065_v49 = vpack.c.bf16 %v1279_v47, %v1278_v45  ;;  %v2155_v50 = vpack.c.bf16 %v1315_v48, %v1314_v46 }
 0x1a1   : > { %2173 = vst [vmem:[%s2583_s11 + $0x88] sm:$0xff] %v2065_v49   ;;  %2191 = vst [vmem:[%s2583_s11 + $0x118] sm:$0xff] %v2155_v50  }
 0x1a2 PF: > { %s14_s15 = sadd.s32 1, %s2363_s15  }
 0x1a3   : > { %p11_p4 = scmp.ge.s32.totalorder %s14_s15, 6  }
 0x1a5   :  { %13 = sbr.rel (!%p11_p4) target bundleno = 1 (0x1), region = 66 }

// kernel: _lambda_.15
= control target key start
LH: loop header
LB: loop body
LE: loop exit
PB: predicated region body
PF: predicated region fallthrough
CT: control target
= control target key end

     0   :  { %s799_s9 = smov 0   ;;  %s981_s0 = inlined_call_operand.vmem [shape: f32[1440,128], index: 0, kind: input, shape index: {}]   ;;  %s982_s1 = inlined_call_operand.vmem [shape: f32[1440,128], index: 1, kind: input, shape index: {}]   ;;  %s983_s2 = inlined_call_operand.vmem [shape: bf16[1408,128], index: 2, kind: output, shape index: {}]  }
   0x1 LB: > { %s561_s10 = sadd.s32 4294967295, %s782_s9   ;;  %p564_p0 = scmp.ge.s32.totalorder %s782_s9, 1  ;;  %s782_s9 = sphi %s799_s9, %s12_s9  }
   0x2   : > { %p102_p1 = scmp.lt.s32.totalorder %s782_s9, 12 }
   0x4   : > { %p103_p2 = pnand %p564_p0, %p102_p1 }
   0x5   : > { %s567_s11 = sshll.u32 (!%p103_p2), %s561_s10, 7  ;;  %s565_s18 = sshll.u32 (!%p103_p2), %s561_s10, 4 }
   0x6   : > { %106 = sbr.rel (%p103_p2) target bundleno = 74 (0x4a), region = 28  ;;  %s810_s14 = scalar_lea.vmem (!%p103_p2), %s981_s0, %s567_s11 }
   0x7   : > { %s817_s17 = scalar_lea.vmem (!%p103_p2), %s982_s1, %s567_s11  ;;  %p120_p3 = scmp.lt.s32.totalorder (!%p103_p2), %s565_s18, 175 }
   0xb   : > { %v127_v0 = vld [vmem:[%s810_s14] sm:$0xff]  ;;  %v128_v1 = vld [vmem:[%s810_s14 + $0x8] sm:$0xff]  ;;  %v587_v9 = vld [vmem:[%s810_s14 + $0x15] sm:$0xff]  ;;  %s985_s18 = smov (!%p120_p3, %s565_s18), 175 }
   0xc   : > { %v569_v2 = vld [vmem:[%s810_s14 + $0x1] sm:$0xff]  ;;  %v570_v5 = vld [vmem:[%s810_s14 + $0x9] sm:$0xff]  ;;  %v604_v13 = vld [vmem:[%s817_s17 + $0x15] sm:$0xff]  ;;  %s566_s19 = sshll.u32 %s985_s18, 2 }
   0xd   : > { %v144_v3 = vld [vmem:[%s817_s17] sm:$0xff]  ;;  %v145_v4 = vld [vmem:[%s817_s17 + $0x8] sm:$0xff]  ;;  %v621_v15 = vld [vmem:[%s810_s14 + $0x16] sm:$0xff]  ;;  %s868_s22 = scalar_lea.vmem %s983_s2, %s566_s19 }
   0xe   : > { %v160_v6 = vmax.f32 %v127_v0, %v144_v3  ;;  %v161_v7 = vmax.f32 %v128_v1, %v145_v4  ;;  %v586_v8 = vld [vmem:[%s810_s14 + $0xd] sm:$0xff]  ;;  %v130_v19 = vld [vmem:[%s810_s14 + $0x18] sm:$0xff]  ;;  %v638_v30 = vld [vmem:[%s810_s14 + $0x22] sm:$0xff] }
   0xf   : > { %v603_v12 = vld [vmem:[%s817_s17 + $0xd] sm:$0xff]  ;;  %v147_v21 = vld [vmem:[%s817_s17 + $0x18] sm:$0xff]  ;;  %v589_v32 = vld [vmem:[%s810_s14 + $0x25] sm:$0xff] }
  0x10   : > { %v194_v10 = vmax.f32 %v160_v6, %v569_v2  ;;  %v195_v11 = vmax.f32 %v161_v7, %v570_v5  ;;  %v620_v14 = vld [vmem:[%s810_s14 + $0xe] sm:$0xff]  ;;  %v572_v24 = vld [vmem:[%s810_s14 + $0x19] sm:$0xff]  ;;  %v163_v27 = vmax.f32 %v130_v19, %v147_v21  ;;  %v655_v36 = vld [vmem:[%s817_s17 + $0x22] sm:$0xff] }
  0x11   : > { %v129_v18 = vld [vmem:[%s810_s14 + $0x10] sm:$0xff]  ;;  %v588_v28 = vld [vmem:[%s810_s14 + $0x1d] sm:$0xff]  ;;  %v606_v42 = vld [vmem:[%s817_s17 + $0x25] sm:$0xff] }
  0x12   : > { %v228_v16 = vmax.f32 %v194_v10, %v586_v8  ;;  %v229_v17 = vmax.f32 %v195_v11, %v587_v9  ;;  %v146_v20 = vld [vmem:[%s817_s17 + $0x10] sm:$0xff]  ;;  %v637_v29 = vld [vmem:[%s810_s14 + $0x1a] sm:$0xff]  ;;  %v197_v37 = vmax.f32 %v163_v27, %v572_v24  ;;  %v672_v40 = vld [vmem:[%s810_s14 + $0x23] sm:$0xff] }
  0x13   : > { %v162_v22 = vmax.f32 %v129_v18, %v146_v20  ;;  %v571_v23 = vld [vmem:[%s810_s14 + $0x11] sm:$0xff]  ;;  %v654_v35 = vld [vmem:[%s817_s17 + $0x1a] sm:$0xff]  ;;  %v623_v44 = vld [vmem:[%s810_s14 + $0x26] sm:$0xff] }
  0x14   : > { %v261_v25 = vmax.f32 %v228_v16, %v603_v12  ;;  %v262_v26 = vmax.f32 %v229_v17, %v604_v13  ;;  %v605_v38 = vld [vmem:[%s817_s17 + $0x1d] sm:$0xff]  ;;  %v231_v47 = vmax.f32 %v197_v37, %v589_v32  ;;  %v132_v49 = vld [vmem:[%s810_s14 + $0x28] sm:$0xff]  ;;  %v640_v63 = vld [vmem:[%s810_s14 + $0x32] sm:$0xff] }
  0x15   : > { %v196_v31 = vmax.f32 %v162_v22, %v571_v23  ;;  %v671_v39 = vld [vmem:[%s810_s14 + $0x1b] sm:$0xff]  ;;  %v149_v52 = vld [vmem:[%s817_s17 + $0x28] sm:$0xff]  ;;  %v657_v6 = vld [vmem:[%s817_s17 + $0x32] sm:$0xff] }
  0x16   : > { %v295_v33 = vmax.f32 %v261_v25, %v620_v14  ;;  %v296_v34 = vmax.f32 %v262_v26, %v621_v15  ;;  %v622_v43 = vld [vmem:[%s810_s14 + $0x1e] sm:$0xff]  ;;  %v574_v55 = vld [vmem:[%s810_s14 + $0x29] sm:$0xff]  ;;  %v264_v58 = vmax.f32 %v231_v47, %v606_v42  ;;  %v165_v60 = vmax.f32 %v132_v49, %v149_v52  ;;  %v591_v2 = vld [vmem:[%s810_s14 + $0x35] sm:$0xff] }
  0x17   : > { %v230_v41 = vmax.f32 %v196_v31, %v588_v28  ;;  %v131_v48 = vld [vmem:[%s810_s14 + $0x20] sm:$0xff]  ;;  %v639_v59 = vld [vmem:[%s810_s14 + $0x2a] sm:$0xff]  ;;  %v674_v11 = vld [vmem:[%s810_s14 + $0x33] sm:$0xff] }
  0x18   : > { %v329_v45 = vmax.f32 %v295_v33, %v637_v29  ;;  %v330_v46 = vmax.f32 %v296_v34, %v638_v30  ;;  %v148_v50 = vld [vmem:[%s817_s17 + $0x20] sm:$0xff]  ;;  %v590_v61 = vld [vmem:[%s810_s14 + $0x2d] sm:$0xff]  ;;  %v298_v5 = vmax.f32 %v264_v58, %v623_v44  ;;  %v199_v8 = vmax.f32 %v165_v60, %v574_v55  ;;  %v608_v13 = vld [vmem:[%s817_s17 + $0x35] sm:$0xff] }
  0x19   : > { %v263_v51 = vmax.f32 %v230_v41, %v605_v38  ;;  %v164_v53 = vmax.f32 %v131_v48, %v148_v50  ;;  %v573_v54 = vld [vmem:[%s810_s14 + $0x21] sm:$0xff]  ;;  %v656_v0 = vld [vmem:[%s817_s17 + $0x2a] sm:$0xff]  ;;  %v625_v15 = vld [vmem:[%s810_s14 + $0x36] sm:$0xff] }
  0x1a   : > { %v362_v56 = vmax.f32 %v329_v45, %v654_v35  ;;  %v363_v57 = vmax.f32 %v330_v46, %v655_v36  ;;  %v673_v7 = vld [vmem:[%s810_s14 + $0x2b] sm:$0xff]  ;;  %v332_v17 = vmax.f32 %v298_v5, %v640_v63  ;;  %v233_v18 = vmax.f32 %v199_v8, %v591_v2  ;;  %v134_v20 = vld [vmem:[%s810_s14 + $0x38] sm:$0xff]  ;;  %v642_v35 = vld [vmem:[%s810_s14 + $0x42] sm:$0xff] }
  0x1b   : > { %v297_v62 = vmax.f32 %v263_v51, %v622_v43  ;;  %v198_v1 = vmax.f32 %v164_v53, %v573_v54  ;;  %v607_v9 = vld [vmem:[%s817_s17 + $0x2d] sm:$0xff]  ;;  %v151_v24 = vld [vmem:[%s817_s17 + $0x38] sm:$0xff]  ;;  %v593_v38 = vld [vmem:[%s810_s14 + $0x45] sm:$0xff] }
  0x1c   : > { %v396_v3 = vmax.f32 %v362_v56, %v671_v39  ;;  %v397_v4 = vmax.f32 %v363_v57, %v672_v40  ;;  %v624_v14 = vld [vmem:[%s810_s14 + $0x2e] sm:$0xff]  ;;  %v576_v27 = vld [vmem:[%s810_s14 + $0x39] sm:$0xff]  ;;  %v365_v28 = vmax.f32 %v332_v17, %v657_v6  ;;  %v266_v29 = vmax.f32 %v233_v18, %v608_v13  ;;  %v659_v41 = vld [vmem:[%s817_s17 + $0x42] sm:$0xff] }
  0x1d   : > { %v331_v10 = vmax.f32 %v297_v62, %v639_v59  ;;  %v232_v12 = vmax.f32 %v198_v1, %v590_v61  ;;  %v133_v19 = vld [vmem:[%s810_s14 + $0x30] sm:$0xff]  ;;  %v641_v30 = vld [vmem:[%s810_s14 + $0x3a] sm:$0xff]  ;;  %v167_v31 = vmax.f32 %v134_v20, %v151_v24  ;;  %v676_v46 = vld [vmem:[%s810_s14 + $0x43] sm:$0xff] }
  0x1e   : > { %v724_v16 = vpack.c.bf16 %v397_v4, %v396_v3  ;;  %v150_v21 = vld [vmem:[%s817_s17 + $0x30] sm:$0xff]  ;;  %v592_v32 = vld [vmem:[%s810_s14 + $0x3d] sm:$0xff]  ;;  %v399_v39 = vmax.f32 %v365_v28, %v674_v11  ;;  %v300_v40 = vmax.f32 %v266_v29, %v625_v15  ;;  %v610_v48 = vld [vmem:[%s817_s17 + $0x45] sm:$0xff] }
  0x1f   : > { %v364_v22 = vmax.f32 %v331_v10, %v656_v0  ;;  %v265_v23 = vmax.f32 %v232_v12, %v607_v9  ;;  %v166_v25 = vmax.f32 %v133_v19, %v150_v21  ;;  %v575_v26 = vld [vmem:[%s810_s14 + $0x31] sm:$0xff]  ;;  %v658_v36 = vld [vmem:[%s817_s17 + $0x3a] sm:$0xff]  ;;  %v201_v43 = vmax.f32 %v167_v31, %v576_v27  ;;  %v627_v50 = vld [vmem:[%s810_s14 + $0x46] sm:$0xff] }
  0x20   : > { %725 = vst [vmem:[%s868_s22] sm:$0xff] %v724_v16   ;;  %v675_v42 = vld [vmem:[%s810_s14 + $0x3b] sm:$0xff]  ;;  %v334_v52 = vmax.f32 %v300_v40, %v642_v35  ;;  %v136_v55 = vld [vmem:[%s810_s14 + $0x48] sm:$0xff]  ;;  %v644_v6 = vld [vmem:[%s810_s14 + $0x52] sm:$0xff] }
  0x21   : > { %v398_v33 = vmax.f32 %v364_v22, %v673_v7  ;;  %v299_v34 = vmax.f32 %v265_v23, %v624_v14  ;;  %v200_v37 = vmax.f32 %v166_v25, %v575_v26  ;;  %v609_v44 = vld [vmem:[%s817_s17 + $0x3d] sm:$0xff]  ;;  %v235_v53 = vmax.f32 %v201_v43, %v593_v38  ;;  %v153_v59 = vld [vmem:[%s817_s17 + $0x48] sm:$0xff]  ;;  %v595_v9 = vld [vmem:[%s810_s14 + $0x55] sm:$0xff] }
  0x22   : > { %v626_v49 = vld [vmem:[%s810_s14 + $0x3e] sm:$0xff]  ;;  %v578_v62 = vld [vmem:[%s810_s14 + $0x49] sm:$0xff]  ;;  %v367_v63 = vmax.f32 %v334_v52, %v659_v41  ;;  %v169_v2 = vmax.f32 %v136_v55, %v153_v59  ;;  %v661_v12 = vld [vmem:[%s817_s17 + $0x52] sm:$0xff] }
  0x23   : > { %v333_v45 = vmax.f32 %v299_v34, %v641_v30  ;;  %v234_v47 = vmax.f32 %v200_v37, %v592_v32  ;;  %v729_v51 = vpack.c.bf16 %v399_v39, %v398_v33  ;;  %v135_v54 = vld [vmem:[%s810_s14 + $0x40] sm:$0xff]  ;;  %v268_v0 = vmax.f32 %v235_v53, %v610_v48  ;;  %v643_v1 = vld [vmem:[%s810_s14 + $0x4a] sm:$0xff]  ;;  %v678_v17 = vld [vmem:[%s810_s14 + $0x53] sm:$0xff] }
  0x24   : > { %v152_v56 = vld [vmem:[%s817_s17 + $0x40] sm:$0xff]  ;;  %v594_v3 = vld [vmem:[%s810_s14 + $0x4d] sm:$0xff]  ;;  %v401_v10 = vmax.f32 %v367_v63, %v676_v46  ;;  %v203_v14 = vmax.f32 %v169_v2, %v578_v62  ;;  %v612_v19 = vld [vmem:[%s817_s17 + $0x55] sm:$0xff] }
  0x25   : > { %v366_v57 = vmax.f32 %v333_v45, %v658_v36  ;;  %v267_v58 = vmax.f32 %v234_v47, %v609_v44  ;;  %v168_v60 = vmax.f32 %v135_v54, %v152_v56  ;;  %v577_v61 = vld [vmem:[%s810_s14 + $0x41] sm:$0xff]  ;;  %761 = vst [vmem:[%s868_s22 + $0x8] sm:$0xff] %v729_v51   ;;  %v660_v7 = vld [vmem:[%s817_s17 + $0x4a] sm:$0xff]  ;;  %v302_v11 = vmax.f32 %v268_v0, %v627_v50  ;;  %v629_v21 = vld [vmem:[%s810_s14 + $0x56] sm:$0xff] }
  0x26   : > { %v677_v13 = vld [vmem:[%s810_s14 + $0x4b] sm:$0xff]  ;;  %v237_v24 = vmax.f32 %v203_v14, %v595_v9  ;;  %v138_v26 = vld [vmem:[%s810_s14 + $0x58] sm:$0xff]  ;;  %v646_v41 = vld [vmem:[%s810_s14 + $0x62] sm:$0xff] }
  0x27   : > { %v400_v4 = vmax.f32 %v366_v57, %v675_v42  ;;  %v301_v5 = vmax.f32 %v267_v58, %v626_v49  ;;  %v202_v8 = vmax.f32 %v168_v60, %v577_v61  ;;  %v611_v15 = vld [vmem:[%s817_s17 + $0x4d] sm:$0xff]  ;;  %v336_v23 = vmax.f32 %v302_v11, %v644_v6  ;;  %v155_v30 = vld [vmem:[%s817_s17 + $0x58] sm:$0xff]  ;;  %v597_v44 = vld [vmem:[%s810_s14 + $0x65] sm:$0xff] }
  0x28   : > { %v628_v20 = vld [vmem:[%s810_s14 + $0x4e] sm:$0xff]  ;;  %v580_v33 = vld [vmem:[%s810_s14 + $0x59] sm:$0xff]  ;;  %v270_v35 = vmax.f32 %v237_v24, %v612_v19  ;;  %v171_v37 = vmax.f32 %v138_v26, %v155_v30  ;;  %v663_v47 = vld [vmem:[%s817_s17 + $0x62] sm:$0xff] }
  0x29   : > { %v335_v16 = vmax.f32 %v301_v5, %v643_v1  ;;  %v236_v18 = vmax.f32 %v202_v8, %v594_v3  ;;  %v734_v22 = vpack.c.bf16 %v401_v10, %v400_v4  ;;  %v137_v25 = vld [vmem:[%s810_s14 + $0x50] sm:$0xff]  ;;  %v369_v34 = vmax.f32 %v336_v23, %v661_v12  ;;  %v645_v36 = vld [vmem:[%s810_s14 + $0x5a] sm:$0xff]  ;;  %v680_v52 = vld [vmem:[%s810_s14 + $0x63] sm:$0xff] }
  0x2a   : > { %v154_v27 = vld [vmem:[%s817_s17 + $0x50] sm:$0xff]  ;;  %v596_v38 = vld [vmem:[%s810_s14 + $0x5d] sm:$0xff]  ;;  %v304_v46 = vmax.f32 %v270_v35, %v629_v21  ;;  %v205_v49 = vmax.f32 %v171_v37, %v580_v33  ;;  %v614_v54 = vld [vmem:[%s817_s17 + $0x65] sm:$0xff] }
  0x2b   : > { %v368_v28 = vmax.f32 %v335_v16, %v660_v7  ;;  %v269_v29 = vmax.f32 %v236_v18, %v611_v15  ;;  %v170_v31 = vmax.f32 %v137_v25, %v154_v27  ;;  %v579_v32 = vld [vmem:[%s810_s14 + $0x51] sm:$0xff]  ;;  %762 = vst [vmem:[%s868_s22 + $0x10] sm:$0xff] %v734_v22   ;;  %v662_v42 = vld [vmem:[%s817_s17 + $0x5a] sm:$0xff]  ;;  %v403_v45 = vmax.f32 %v369_v34, %v678_v17  ;;  %v631_v56 = vld [vmem:[%s810_s14 + $0x66] sm:$0xff] }
  0x2c   : > { %v679_v48 = vld [vmem:[%s810_s14 + $0x5b] sm:$0xff]  ;;  %v338_v58 = vmax.f32 %v304_v46, %v646_v41  ;;  %v239_v59 = vmax.f32 %v205_v49, %v597_v44  ;;  %v140_v61 = vld [vmem:[%s810_s14 + $0x68] sm:$0xff]  ;;  %v648_v12 = vld [vmem:[%s810_s14 + $0x72] sm:$0xff] }
  0x2d   : > { %v402_v39 = vmax.f32 %v368_v28, %v677_v13  ;;  %v303_v40 = vmax.f32 %v269_v29, %v628_v20  ;;  %v204_v43 = vmax.f32 %v170_v31, %v579_v32  ;;  %v613_v50 = vld [vmem:[%s817_s17 + $0x5d] sm:$0xff]  ;;  %v157_v1 = vld [vmem:[%s817_s17 + $0x68] sm:$0xff]  ;;  %v599_v15 = vld [vmem:[%s810_s14 + $0x75] sm:$0xff] }
  0x2e   : > { %v630_v55 = vld [vmem:[%s810_s14 + $0x5e] sm:$0xff]  ;;  %v582_v4 = vld [vmem:[%s810_s14 + $0x69] sm:$0xff]  ;;  %v371_v5 = vmax.f32 %v338_v58, %v663_v47  ;;  %v272_v6 = vmax.f32 %v239_v59, %v614_v54  ;;  %v173_v8 = vmax.f32 %v140_v61, %v157_v1  ;;  %v665_v18 = vld [vmem:[%s817_s17 + $0x72] sm:$0xff] }
  0x2f   : > { %v337_v51 = vmax.f32 %v303_v40, %v645_v36  ;;  %v238_v53 = vmax.f32 %v204_v43, %v596_v38  ;;  %v739_v57 = vpack.c.bf16 %v403_v45, %v402_v39  ;;  %v139_v60 = vld [vmem:[%s810_s14 + $0x60] sm:$0xff]  ;;  %v647_v7 = vld [vmem:[%s810_s14 + $0x6a] sm:$0xff]  ;;  %v682_v23 = vld [vmem:[%s810_s14 + $0x73] sm:$0xff] }
  0x30   : > { %v156_v62 = vld [vmem:[%s817_s17 + $0x60] sm:$0xff]  ;;  %v598_v9 = vld [vmem:[%s810_s14 + $0x6d] sm:$0xff]  ;;  %v405_v16 = vmax.f32 %v371_v5, %v680_v52  ;;  %v306_v17 = vmax.f32 %v272_v6, %v631_v56  ;;  %v207_v20 = vmax.f32 %v173_v8, %v582_v4  ;;  %v616_v25 = vld [vmem:[%s817_s17 + $0x75] sm:$0xff] }
  0x31   : > { %v370_v63 = vmax.f32 %v337_v51, %v662_v42  ;;  %v271_v0 = vmax.f32 %v238_v53, %v613_v50  ;;  %v172_v2 = vmax.f32 %v139_v60, %v156_v62  ;;  %v581_v3 = vld [vmem:[%s810_s14 + $0x61] sm:$0xff]  ;;  %763 = vst [vmem:[%s868_s22 + $0x18] sm:$0xff] %v739_v57   ;;  %v664_v13 = vld [vmem:[%s817_s17 + $0x6a] sm:$0xff]  ;;  %v633_v27 = vld [vmem:[%s810_s14 + $0x76] sm:$0xff] }
  0x32   : > { %v681_v19 = vld [vmem:[%s810_s14 + $0x6b] sm:$0xff]  ;;  %v340_v29 = vmax.f32 %v306_v17, %v648_v12  ;;  %v241_v30 = vmax.f32 %v207_v20, %v599_v15  ;;  %v142_v32 = vld [vmem:[%s810_s14 + $0x78] sm:$0xff]  ;;  %v650_v47 = vld [vmem:[%s810_s14 + $0x82] sm:$0xff] }
  0x33   : > { %v404_v10 = vmax.f32 %v370_v63, %v679_v48  ;;  %v305_v11 = vmax.f32 %v271_v0, %v630_v55  ;;  %v206_v14 = vmax.f32 %v172_v2, %v581_v3  ;;  %v615_v21 = vld [vmem:[%s817_s17 + $0x6d] sm:$0xff]  ;;  %v159_v36 = vld [vmem:[%s817_s17 + $0x78] sm:$0xff]  ;;  %v601_v49 = vld [vmem:[%s810_s14 + $0x85] sm:$0xff] }
  0x34   : > { %v632_v26 = vld [vmem:[%s810_s14 + $0x6e] sm:$0xff]  ;;  %v584_v39 = vld [vmem:[%s810_s14 + $0x79] sm:$0xff]  ;;  %v373_v40 = vmax.f32 %v340_v29, %v665_v18  ;;  %v274_v41 = vmax.f32 %v241_v30, %v616_v25  ;;  %v175_v43 = vmax.f32 %v142_v32, %v159_v36  ;;  %v667_v56 = vld [vmem:[%s817_s17 + $0x82] sm:$0xff] }
  0x35   : > { %v339_v22 = vmax.f32 %v305_v11, %v647_v7  ;;  %v240_v24 = vmax.f32 %v206_v14, %v598_v9  ;;  %v744_v28 = vpack.c.bf16 %v405_v16, %v404_v10  ;;  %v141_v31 = vld [vmem:[%s810_s14 + $0x70] sm:$0xff]  ;;  %v649_v42 = vld [vmem:[%s810_s14 + $0x7a] sm:$0xff]  ;;  %v618_v58 = vld [vmem:[%s817_s17 + $0x85] sm:$0xff] }
  0x36   : > { %v158_v33 = vld [vmem:[%s817_s17 + $0x70] sm:$0xff]  ;;  %v600_v44 = vld [vmem:[%s810_s14 + $0x7d] sm:$0xff]  ;;  %v407_v50 = vmax.f32 %v373_v40, %v682_v23  ;;  %v308_v51 = vmax.f32 %v274_v41, %v633_v27  ;;  %v209_v53 = vmax.f32 %v175_v43, %v584_v39  ;;  %v635_v3 = vld [vmem:[%s810_s14 + $0x86] sm:$0xff] }
  0x37   : > { %v372_v34 = vmax.f32 %v339_v22, %v664_v13  ;;  %v273_v35 = vmax.f32 %v240_v24, %v615_v21  ;;  %v174_v37 = vmax.f32 %v141_v31, %v158_v33  ;;  %v583_v38 = vld [vmem:[%s810_s14 + $0x71] sm:$0xff]  ;;  %764 = vst [vmem:[%s868_s22 + $0x20] sm:$0xff] %v744_v28   ;;  %v666_v52 = vld [vmem:[%s817_s17 + $0x7a] sm:$0xff]  ;;  %v684_v1 = vld [vmem:[%s810_s14 + $0x83] sm:$0xff] }
  0x38   : > { %v617_v54 = vld [vmem:[%s817_s17 + $0x7d] sm:$0xff]  ;;  %v342_v60 = vmax.f32 %v308_v51, %v650_v47  ;;  %v243_v62 = vmax.f32 %v209_v53, %v601_v49  ;;  %v651_v6 = vld [vmem:[%s810_s14 + $0x8a] sm:$0xff]  ;;  %v652_v9 = vld [vmem:[%s810_s14 + $0x92] sm:$0xff] }
  0x39   : > { %v406_v45 = vmax.f32 %v372_v34, %v681_v19  ;;  %v307_v46 = vmax.f32 %v273_v35, %v632_v26  ;;  %v208_v48 = vmax.f32 %v174_v37, %v583_v38  ;;  %v683_v61 = vld [vmem:[%s810_s14 + $0x7b] sm:$0xff]  ;;  %v668_v12 = vld [vmem:[%s817_s17 + $0x8a] sm:$0xff]  ;;  %v669_v14 = vld [vmem:[%s817_s17 + $0x92] sm:$0xff] }
  0x3a   : > { %v634_v63 = vld [vmem:[%s810_s14 + $0x7e] sm:$0xff]  ;;  %v375_v4 = vmax.f32 %v342_v60, %v667_v56  ;;  %v276_v5 = vmax.f32 %v243_v62, %v618_v58  ;;  %v685_v17 = vld [vmem:[%s810_s14 + $0x8b] sm:$0xff]  ;;  %v686_v19 = vld [vmem:[%s810_s14 + $0x93] sm:$0xff] }
  0x3b   : > { %v341_v55 = vmax.f32 %v307_v46, %v649_v42  ;;  %v242_v57 = vmax.f32 %v208_v48, %v600_v44  ;;  %v749_v59 = vpack.c.bf16 %v407_v50, %v406_v45 }
  0x3c   : > { %v409_v10 = vmax.f32 %v375_v4, %v684_v1  ;;  %v310_v11 = vmax.f32 %v276_v5, %v635_v3 }
  0x3d   : > { %v374_v0 = vmax.f32 %v341_v55, %v666_v52  ;;  %v275_v2 = vmax.f32 %v242_v57, %v617_v54  ;;  %765 = vst [vmem:[%s868_s22 + $0x28] sm:$0xff] %v749_v59  }
  0x3e   : > { %v344_v16 = vmax.f32 %v310_v11, %v652_v9 }
  0x3f   : > { %v408_v7 = vmax.f32 %v374_v0, %v683_v61  ;;  %v309_v8 = vmax.f32 %v275_v2, %v634_v63 }
  0x40   : > { %v377_v20 = vmax.f32 %v344_v16, %v669_v14 }
  0x41   : > { %v343_v13 = vmax.f32 %v309_v8, %v651_v6  ;;  %v754_v15 = vpack.c.bf16 %v409_v10, %v408_v7 }
  0x42   : > { %v411_v22 = vmax.f32 %v377_v20, %v686_v19 }
  0x43   : > { %v376_v18 = vmax.f32 %v343_v13, %v668_v12  ;;  %766 = vst [vmem:[%s868_s22 + $0x30] sm:$0xff] %v754_v15  }
  0x45   : > { %v410_v21 = vmax.f32 %v376_v18, %v685_v17 }
  0x47   : > { %v759_v23 = vpack.c.bf16 %v411_v22, %v410_v21 }
  0x49   : > { %767 = vst [vmem:[%s868_s22 + $0x38] sm:$0xff] %v759_v23  }
  0x4a PF: > { %s12_s9 = sadd.s32 1, %s782_s9  }
  0x4b   : > { %p9_p4 = scmp.ge.s32.totalorder %s12_s9, 13  }
  0x4d   :  { %11 = sbr.rel (!%p9_p4) target bundleno = 1 (0x1), region = 64 }

// kernel: _lambda_.16
= control target key start
LH: loop header
LB: loop body
LE: loop exit
PB: predicated region body
PF: predicated region fallthrough
CT: control target
= control target key end

     0   :  { %s1762_s1 = inlined_call_operand.vmem [shape: bf16[128,128], index: 1, kind: input, shape index: {}]   ;;  %s1763_s0 = inlined_call_operand.vmem [shape: bf16[576,128], index: 0, kind: input, shape index: {}]   ;;  %s1764_s2 = inlined_call_operand.vmem [shape: f32[1,128], index: 2, kind: input, shape index: {}]   ;;  %s1765_s3 = inlined_call_operand.vmem [shape: f32[1,128], index: 3, kind: input, shape index: {}]   ;;  %s1766_s4 = inlined_call_operand.vmem [shape: f32[576,128], index: 4, kind: output, shape index: {}]  }
   0x1   :  { %v1191_v0 = vld [vmem:[%s1762_s1 + $0x38] sm:$0xff]   ;;  %v1192_v1 = vld [vmem:[%s1762_s1 + $0x30] sm:$0xff]   ;;  %v1193_v2 = vld [vmem:[%s1762_s1 + $0x28] sm:$0xff]  }
   0x2   :  { %1087 = vmatprep.subr.bf16.mxu0 %v1191_v0  ;;  %1175 = vmatprep.subr.bf16.mxu1 %v1191_v0  ;;  %v1194_v3 = vld [vmem:[%s1762_s1 + $0x20] sm:$0xff]   ;;  %v1200_v5 = vld [vmem:[%s1763_s0 + $0x90] sm:$0xff]   ;;  %v1195_v6 = vld [vmem:[%s1762_s1 + $0x18] sm:$0xff]  }
   0x3   :  { %1088 = vmatpush3.bf16.msra.mxu0 %v1191_v0  ;;  %1183 = vmatpush3.bf16.msra.mxu1 %v1191_v0  ;;  %v1199_v4 = vld [vmem:[%s1763_s0] sm:$0xff]   ;;  %v1196_v7 = vld [vmem:[%s1762_s1 + $0x10] sm:$0xff]   ;;  %v1197_v8 = vld [vmem:[%s1762_s1 + $0x8] sm:$0xff]  }
   0x4   :  { %1089 = vmatprep.subr.bf16.mxu0 %v1192_v1  ;;  %1176 = vmatprep.subr.bf16.mxu1 %v1192_v1  ;;  %v1198_v9 = vld [vmem:[%s1762_s1] sm:$0xff]   ;;  %v1201_v10 = vld [vmem:[%s1763_s0 + $0x8] sm:$0xff]   ;;  %v1202_v11 = vld [vmem:[%s1763_s0 + $0x98] sm:$0xff]  }
   0x5   :  { %1103 = vmatprep.mubr.bf16.mxu0 %v1199_v4  ;;  %1139 = vmatprep.mubr.bf16.mxu1 %v1200_v5  ;;  %v1203_v12 = vld [vmem:[%s1763_s0 + $0x10] sm:$0xff]   ;;  %v1204_v13 = vld [vmem:[%s1763_s0 + $0xa0] sm:$0xff]   ;;  %v1205_v14 = vld [vmem:[%s1763_s0 + $0x18] sm:$0xff]  }
   0x6   :  { %v1206_v15 = vld [vmem:[%s1763_s0 + $0xa8] sm:$0xff]   ;;  %v1207_v16 = vld [vmem:[%s1763_s0 + $0x20] sm:$0xff]   ;;  %v1208_v17 = vld [vmem:[%s1763_s0 + $0xb0] sm:$0xff]  }
   0x7   :  { %1090 = vmatpush3.bf16.msra.mxu0 %v1192_v1  ;;  %1184 = vmatpush3.bf16.msra.mxu1 %v1192_v1  ;;  %v1209_v18 = vld [vmem:[%s1763_s0 + $0x28] sm:$0xff]   ;;  %v1210_v19 = vld [vmem:[%s1763_s0 + $0xb8] sm:$0xff]   ;;  %v1211_v20 = vld [vmem:[%s1763_s0 + $0x30] sm:$0xff]  }
   0x8   :  { %1091 = vmatprep.subr.bf16.mxu0 %v1193_v2  ;;  %1177 = vmatprep.subr.bf16.mxu1 %v1193_v2  ;;  %v1212_v21 = vld [vmem:[%s1763_s0 + $0xc0] sm:$0xff]   ;;  %v1213_v22 = vld [vmem:[%s1763_s0 + $0x38] sm:$0xff]   ;;  %v1214_v23 = vld [vmem:[%s1763_s0 + $0xc8] sm:$0xff]  }
   0x9   :  { %v1215_v24 = vld [vmem:[%s1763_s0 + $0x40] sm:$0xff]   ;;  %v1216_v25 = vld [vmem:[%s1763_s0 + $0xd0] sm:$0xff]   ;;  %v1217_v26 = vld [vmem:[%s1763_s0 + $0x48] sm:$0xff]  }
   0xa   :  { %v1218_v27 = vld [vmem:[%s1763_s0 + $0xd8] sm:$0xff]   ;;  %v1219_v28 = vld [vmem:[%s1763_s0 + $0x50] sm:$0xff]   ;;  %v1220_v29 = vld [vmem:[%s1763_s0 + $0xe0] sm:$0xff]  }
   0xb   :  { %1092 = vmatpush3.bf16.msra.mxu0 %v1193_v2  ;;  %1185 = vmatpush3.bf16.msra.mxu1 %v1193_v2  ;;  %v1221_v30 = vld [vmem:[%s1763_s0 + $0x58] sm:$0xff]   ;;  %v1222_v31 = vld [vmem:[%s1763_s0 + $0xe8] sm:$0xff]   ;;  %v1223_v32 = vld [vmem:[%s1763_s0 + $0x60] sm:$0xff]  }
   0xc   :  { %1093 = vmatprep.subr.bf16.mxu0 %v1194_v3  ;;  %1178 = vmatprep.subr.bf16.mxu1 %v1194_v3  ;;  %v1224_v33 = vld [vmem:[%s1763_s0 + $0xf0] sm:$0xff]   ;;  %v1225_v34 = vld [vmem:[%s1763_s0 + $0x68] sm:$0xff]   ;;  %v1226_v35 = vld [vmem:[%s1763_s0 + $0xf8] sm:$0xff]  }
   0xd   :  { %v1227_v36 = vld [vmem:[%s1763_s0 + $0x70] sm:$0xff]   ;;  %v1228_v37 = vld [vmem:[%s1763_s0 + $0x100] sm:$0xff]   ;;  %v1229_v38 = vld [vmem:[%s1763_s0 + $0x78] sm:$0xff]  }
   0xe   :  { %v1230_v39 = vld [vmem:[%s1763_s0 + $0x108] sm:$0xff]   ;;  %v1231_v40 = vld [vmem:[%s1763_s0 + $0x80] sm:$0xff]   ;;  %v1232_v41 = vld [vmem:[%s1763_s0 + $0x110] sm:$0xff]  }
   0xf   :  { %1094 = vmatpush3.bf16.msra.mxu0 %v1194_v3  ;;  %1186 = vmatpush3.bf16.msra.mxu1 %v1194_v3  ;;  %v1233_v42 = vld [vmem:[%s1763_s0 + $0x88] sm:$0xff]   ;;  %v1234_v43 = vld [vmem:[%s1763_s0 + $0x118] sm:$0xff]   ;;  %v1395_v44 = vld [vmem:[%s1764_s2] ss:$0 sm:$0xff] }
  0x10   :  { %1095 = vmatprep.subr.bf16.mxu0 %v1195_v6  ;;  %1179 = vmatprep.subr.bf16.mxu1 %v1195_v6  ;;  %v1400_v46 = vld [vmem:[%s1765_s3] ss:$0 sm:$0xff] }
  0x13   :  { %1096 = vmatpush3.bf16.msra.mxu0 %v1195_v6  ;;  %1187 = vmatpush3.bf16.msra.mxu1 %v1195_v6 }
  0x14   :  { %1097 = vmatprep.subr.bf16.mxu0 %v1196_v7  ;;  %1180 = vmatprep.subr.bf16.mxu1 %v1196_v7 }
  0x17   :  { %1098 = vmatpush3.bf16.msra.mxu0 %v1196_v7  ;;  %1188 = vmatpush3.bf16.msra.mxu1 %v1196_v7 }
  0x18   :  { %1099 = vmatprep.subr.bf16.mxu0 %v1197_v8  ;;  %1181 = vmatprep.subr.bf16.mxu1 %v1197_v8 }
  0x1b   :  { %1100 = vmatpush3.bf16.msra.mxu0 %v1197_v8  ;;  %1189 = vmatpush3.bf16.msra.mxu1 %v1197_v8 }
  0x1c   :  { %1101 = vmatprep.subr.bf16.mxu0 %v1198_v9  ;;  %1182 = vmatprep.subr.bf16.mxu1 %v1198_v9 }
  0x1f   :  { %1102 = vmatpush3.bf16.msra.mxu0 %v1198_v9  ;;  %1190 = vmatpush3.bf16.msra.mxu1 %v1198_v9 }
  0x22   :  { %1104 = vmatmul.mubr.bf16.vlgmr.msra.gmra.mxu0 %v1201_v10  ;;  %1140 = vmatmul.mubr.bf16.vlgmr.msra.gmra.mxu1 %v1202_v11 }
  0x23   :  { %1107 = vmatprep.mubr.bf16.mxu0 %v1203_v12  ;;  %1143 = vmatprep.mubr.bf16.mxu1 %v1204_v13 }
  0x2a   :  { %1108 = vmatmul.mubr.bf16.gmra.mxu0 %v1205_v14  ;;  %1144 = vmatmul.mubr.bf16.gmra.mxu1 %v1206_v15 }
  0x2b   :  { %1111 = vmatprep.mubr.bf16.mxu0 %v1207_v16  ;;  %1147 = vmatprep.mubr.bf16.mxu1 %v1208_v17 }
  0x32   :  { %1112 = vmatmul.mubr.bf16.gmra.mxu0 %v1209_v18  ;;  %1148 = vmatmul.mubr.bf16.gmra.mxu1 %v1210_v19 }
  0x33   :  { %1115 = vmatprep.mubr.bf16.mxu0 %v1211_v20  ;;  %1151 = vmatprep.mubr.bf16.mxu1 %v1212_v21 }
  0x3a   :  { %1116 = vmatmul.mubr.bf16.gmra.mxu0 %v1213_v22  ;;  %1152 = vmatmul.mubr.bf16.gmra.mxu1 %v1214_v23 }
  0x3b   :  { %1119 = vmatprep.mubr.bf16.mxu0 %v1215_v24  ;;  %1155 = vmatprep.mubr.bf16.mxu1 %v1216_v25 }
  0x42   :  { %1120 = vmatmul.mubr.bf16.gmra.mxu0 %v1217_v26  ;;  %1156 = vmatmul.mubr.bf16.gmra.mxu1 %v1218_v27 }
  0x43   :  { %1123 = vmatprep.mubr.bf16.mxu0 %v1219_v28  ;;  %1159 = vmatprep.mubr.bf16.mxu1 %v1220_v29 }
  0x4a   :  { %1124 = vmatmul.mubr.bf16.gmra.mxu0 %v1221_v30  ;;  %1160 = vmatmul.mubr.bf16.gmra.mxu1 %v1222_v31 }
  0x4b   :  { %1127 = vmatprep.mubr.bf16.mxu0 %v1223_v32  ;;  %1163 = vmatprep.mubr.bf16.mxu1 %v1224_v33 }
  0x52   :  { %1128 = vmatmul.mubr.bf16.gmra.mxu0 %v1225_v34  ;;  %1164 = vmatmul.mubr.bf16.gmra.mxu1 %v1226_v35 }
  0x53   :  { %1131 = vmatprep.mubr.bf16.mxu0 %v1227_v36  ;;  %1167 = vmatprep.mubr.bf16.mxu1 %v1228_v37 }
  0x5a   :  { %1132 = vmatmul.mubr.bf16.gmra.mxu0 %v1229_v38  ;;  %1168 = vmatmul.mubr.bf16.gmra.mxu1 %v1230_v39 }
  0x5b   :  { %1135 = vmatprep.mubr.bf16.mxu0 %v1231_v40  ;;  %1171 = vmatprep.mubr.bf16.mxu1 %v1232_v41 }
  0x62   :  { %1136 = vmatmul.mubr.bf16.gmra.mxu0 %v1233_v42  ;;  %1172 = vmatmul.mubr.bf16.gmra.mxu1 %v1234_v43 }
  0xe2   :  { %v1105_v45 = vpop.f32.mrf.mxu0  ;;  %v1141_v47 = vpop.f32.mrf.mxu1 }
  0xe3   :  { %v700_v48 = vmul.f32 %v1105_v45, %v1395_v44  ;;  %v736_v49 = vmul.f32 %v1141_v47, %v1395_v44 }
  0xe4   :  { %v404_v50 = vpop.f32.mrf.mxu0  ;;  %v548_v51 = vpop.f32.mrf.mxu1 }
  0xe5   :  { %v779_v52 = vadd.f32 %v1400_v46, %v700_v48  ;;  %v815_v53 = vadd.f32 %v1400_v46, %v736_v49  ;;  %v698_v54 = vmul.f32 %v1395_v44, %v404_v50  ;;  %v734_v55 = vmul.f32 %v1395_v44, %v548_v51 }
  0xe6   :  { %v1106_v56 = vpop.f32.mrf.mxu0  ;;  %v1142_v57 = vpop.f32.mrf.mxu1 }
  0xe7   :  { %v851_v58 = vmax.f32 %v779_v52, 0.0  ;;  %v887_v59 = vmax.f32 %v815_v53, 0.0  ;;  %v777_v60 = vadd.f32 %v1400_v46, %v698_v54  ;;  %v813_v61 = vadd.f32 %v1400_v46, %v734_v55 }
  0xe8   :  { %v701_v62 = vmul.f32 %v1106_v56, %v1395_v44  ;;  %v737_v63 = vmul.f32 %v1142_v57, %v1395_v44  ;;  %v407_v0 = vpop.f32.mrf.mxu0  ;;  %v551_v1 = vpop.f32.mrf.mxu1 }
  0xe9   :  { %923 = vst [vmem:[%s1766_s4 + $0x10] sm:$0xff] %v851_v58  ;;  %959 = vst [vmem:[%s1766_s4 + $0x130] sm:$0xff] %v887_v59  ;;  %v849_v2 = vmax.f32 %v777_v60, 0.0  ;;  %v885_v3 = vmax.f32 %v813_v61, 0.0  ;;  %v699_v4 = vmul.f32 %v1395_v44, %v407_v0  ;;  %v735_v5 = vmul.f32 %v1395_v44, %v551_v1 }
  0xea   :  { %v780_v6 = vadd.f32 %v1400_v46, %v701_v62  ;;  %v816_v7 = vadd.f32 %v1400_v46, %v737_v63  ;;  %v1109_v8 = vpop.f32.mrf.mxu0  ;;  %v1145_v9 = vpop.f32.mrf.mxu1 }
  0xeb   :  { %921 = vst [vmem:[%s1766_s4] sm:$0xff] %v849_v2  ;;  %957 = vst [vmem:[%s1766_s4 + $0x120] sm:$0xff] %v885_v3  ;;  %v778_v10 = vadd.f32 %v1400_v46, %v699_v4  ;;  %v814_v11 = vadd.f32 %v1400_v46, %v735_v5  ;;  %v704_v12 = vmul.f32 %v1109_v8, %v1395_v44 }
  0xec   :  { %v740_v13 = vmul.f32 %v1145_v9, %v1395_v44  ;;  %v852_v14 = vmax.f32 %v780_v6, 0.0  ;;  %v888_v15 = vmax.f32 %v816_v7, 0.0  ;;  %v420_v16 = vpop.f32.mrf.mxu0  ;;  %v564_v17 = vpop.f32.mrf.mxu1 }
  0xed   :  { %v850_v18 = vmax.f32 %v778_v10, 0.0  ;;  %v886_v19 = vmax.f32 %v814_v11, 0.0  ;;  %v783_v20 = vadd.f32 %v1400_v46, %v704_v12  ;;  %v702_v22 = vmul.f32 %v1395_v44, %v420_v16 }
  0xee   :  { %v819_v21 = vadd.f32 %v1400_v46, %v740_v13  ;;  %924 = vst [vmem:[%s1766_s4 + $0x18] sm:$0xff] %v852_v14  ;;  %960 = vst [vmem:[%s1766_s4 + $0x138] sm:$0xff] %v888_v15  ;;  %v738_v23 = vmul.f32 %v1395_v44, %v564_v17  ;;  %v1110_v24 = vpop.f32.mrf.mxu0  ;;  %v1146_v25 = vpop.f32.mrf.mxu1 }
  0xef   :  { %922 = vst [vmem:[%s1766_s4 + $0x8] sm:$0xff] %v850_v18  ;;  %958 = vst [vmem:[%s1766_s4 + $0x128] sm:$0xff] %v886_v19  ;;  %v855_v26 = vmax.f32 %v783_v20, 0.0  ;;  %v705_v28 = vmul.f32 %v1110_v24, %v1395_v44  ;;  %v741_v29 = vmul.f32 %v1146_v25, %v1395_v44  ;;  %v781_v30 = vadd.f32 %v1400_v46, %v702_v22 }
  0xf0   :  { %v891_v27 = vmax.f32 %v819_v21, 0.0  ;;  %v817_v31 = vadd.f32 %v1400_v46, %v738_v23  ;;  %v423_v32 = vpop.f32.mrf.mxu0  ;;  %v567_v33 = vpop.f32.mrf.mxu1 }
  0xf1   :  { %927 = vst [vmem:[%s1766_s4 + $0x30] sm:$0xff] %v855_v26  ;;  %v784_v34 = vadd.f32 %v1400_v46, %v705_v28  ;;  %v820_v35 = vadd.f32 %v1400_v46, %v741_v29  ;;  %v703_v36 = vmul.f32 %v1395_v44, %v423_v32  ;;  %v739_v37 = vmul.f32 %v1395_v44, %v567_v33 }
  0xf2   :  { %963 = vst [vmem:[%s1766_s4 + $0x150] sm:$0xff] %v891_v27  ;;  %v853_v38 = vmax.f32 %v781_v30, 0.0  ;;  %v889_v39 = vmax.f32 %v817_v31, 0.0  ;;  %v1113_v40 = vpop.f32.mrf.mxu0  ;;  %v1149_v41 = vpop.f32.mrf.mxu1 }
  0xf3   :  { %v856_v42 = vmax.f32 %v784_v34, 0.0  ;;  %v892_v43 = vmax.f32 %v820_v35, 0.0  ;;  %v782_v45 = vadd.f32 %v1400_v46, %v703_v36  ;;  %v818_v47 = vadd.f32 %v1400_v46, %v739_v37 }
  0xf4   :  { %925 = vst [vmem:[%s1766_s4 + $0x20] sm:$0xff] %v853_v38  ;;  %961 = vst [vmem:[%s1766_s4 + $0x140] sm:$0xff] %v889_v39  ;;  %v708_v48 = vmul.f32 %v1113_v40, %v1395_v44  ;;  %v744_v49 = vmul.f32 %v1149_v41, %v1395_v44  ;;  %v436_v50 = vpop.f32.mrf.mxu0  ;;  %v580_v51 = vpop.f32.mrf.mxu1 }
  0xf5   :  { %928 = vst [vmem:[%s1766_s4 + $0x38] sm:$0xff] %v856_v42  ;;  %964 = vst [vmem:[%s1766_s4 + $0x158] sm:$0xff] %v892_v43  ;;  %v854_v52 = vmax.f32 %v782_v45, 0.0  ;;  %v890_v53 = vmax.f32 %v818_v47, 0.0  ;;  %v706_v54 = vmul.f32 %v1395_v44, %v436_v50  ;;  %v742_v55 = vmul.f32 %v1395_v44, %v580_v51 }
  0xf6   :  { %v787_v56 = vadd.f32 %v1400_v46, %v708_v48  ;;  %v823_v57 = vadd.f32 %v1400_v46, %v744_v49  ;;  %v1114_v58 = vpop.f32.mrf.mxu0  ;;  %v1150_v59 = vpop.f32.mrf.mxu1 }
  0xf7   :  { %926 = vst [vmem:[%s1766_s4 + $0x28] sm:$0xff] %v854_v52  ;;  %962 = vst [vmem:[%s1766_s4 + $0x148] sm:$0xff] %v890_v53  ;;  %v785_v60 = vadd.f32 %v1400_v46, %v706_v54  ;;  %v821_v61 = vadd.f32 %v1400_v46, %v742_v55  ;;  %v709_v62 = vmul.f32 %v1114_v58, %v1395_v44 }
  0xf8   :  { %v745_v63 = vmul.f32 %v1150_v59, %v1395_v44  ;;  %v859_v0 = vmax.f32 %v787_v56, 0.0  ;;  %v895_v1 = vmax.f32 %v823_v57, 0.0  ;;  %v439_v2 = vpop.f32.mrf.mxu0  ;;  %v583_v3 = vpop.f32.mrf.mxu1 }
  0xf9   :  { %v857_v4 = vmax.f32 %v785_v60, 0.0  ;;  %v893_v5 = vmax.f32 %v821_v61, 0.0  ;;  %v788_v6 = vadd.f32 %v1400_v46, %v709_v62  ;;  %v707_v8 = vmul.f32 %v1395_v44, %v439_v2 }
  0xfa   :  { %v824_v7 = vadd.f32 %v1400_v46, %v745_v63  ;;  %931 = vst [vmem:[%s1766_s4 + $0x50] sm:$0xff] %v859_v0  ;;  %967 = vst [vmem:[%s1766_s4 + $0x170] sm:$0xff] %v895_v1  ;;  %v743_v9 = vmul.f32 %v1395_v44, %v583_v3  ;;  %v1117_v10 = vpop.f32.mrf.mxu0  ;;  %v1153_v11 = vpop.f32.mrf.mxu1 }
  0xfb   :  { %929 = vst [vmem:[%s1766_s4 + $0x40] sm:$0xff] %v857_v4  ;;  %965 = vst [vmem:[%s1766_s4 + $0x160] sm:$0xff] %v893_v5  ;;  %v860_v12 = vmax.f32 %v788_v6, 0.0  ;;  %v712_v14 = vmul.f32 %v1117_v10, %v1395_v44  ;;  %v748_v15 = vmul.f32 %v1153_v11, %v1395_v44  ;;  %v786_v16 = vadd.f32 %v1400_v46, %v707_v8 }
  0xfc   :  { %v896_v13 = vmax.f32 %v824_v7, 0.0  ;;  %v822_v17 = vadd.f32 %v1400_v46, %v743_v9  ;;  %v452_v18 = vpop.f32.mrf.mxu0  ;;  %v596_v19 = vpop.f32.mrf.mxu1 }
  0xfd   :  { %932 = vst [vmem:[%s1766_s4 + $0x58] sm:$0xff] %v860_v12  ;;  %v791_v20 = vadd.f32 %v1400_v46, %v712_v14  ;;  %v827_v21 = vadd.f32 %v1400_v46, %v748_v15  ;;  %v710_v22 = vmul.f32 %v1395_v44, %v452_v18  ;;  %v746_v23 = vmul.f32 %v1395_v44, %v596_v19 }
  0xfe   :  { %968 = vst [vmem:[%s1766_s4 + $0x178] sm:$0xff] %v896_v13  ;;  %v858_v24 = vmax.f32 %v786_v16, 0.0  ;;  %v894_v25 = vmax.f32 %v822_v17, 0.0  ;;  %v1118_v26 = vpop.f32.mrf.mxu0  ;;  %v1154_v27 = vpop.f32.mrf.mxu1 }
  0xff   :  { %v863_v28 = vmax.f32 %v791_v20, 0.0  ;;  %v899_v29 = vmax.f32 %v827_v21, 0.0  ;;  %v789_v30 = vadd.f32 %v1400_v46, %v710_v22  ;;  %v825_v31 = vadd.f32 %v1400_v46, %v746_v23 }
 0x100   :  { %930 = vst [vmem:[%s1766_s4 + $0x48] sm:$0xff] %v858_v24  ;;  %966 = vst [vmem:[%s1766_s4 + $0x168] sm:$0xff] %v894_v25  ;;  %v713_v32 = vmul.f32 %v1118_v26, %v1395_v44  ;;  %v749_v33 = vmul.f32 %v1154_v27, %v1395_v44  ;;  %v455_v34 = vpop.f32.mrf.mxu0  ;;  %v599_v35 = vpop.f32.mrf.mxu1 }
 0x101   :  { %935 = vst [vmem:[%s1766_s4 + $0x70] sm:$0xff] %v863_v28  ;;  %971 = vst [vmem:[%s1766_s4 + $0x190] sm:$0xff] %v899_v29  ;;  %v861_v36 = vmax.f32 %v789_v30, 0.0  ;;  %v897_v37 = vmax.f32 %v825_v31, 0.0  ;;  %v711_v38 = vmul.f32 %v1395_v44, %v455_v34  ;;  %v747_v39 = vmul.f32 %v1395_v44, %v599_v35 }
 0x102   :  { %v792_v40 = vadd.f32 %v1400_v46, %v713_v32  ;;  %v828_v41 = vadd.f32 %v1400_v46, %v749_v33  ;;  %v1121_v42 = vpop.f32.mrf.mxu0  ;;  %v1157_v43 = vpop.f32.mrf.mxu1 }
 0x103   :  { %933 = vst [vmem:[%s1766_s4 + $0x60] sm:$0xff] %v861_v36  ;;  %969 = vst [vmem:[%s1766_s4 + $0x180] sm:$0xff] %v897_v37  ;;  %v790_v45 = vadd.f32 %v1400_v46, %v711_v38  ;;  %v826_v47 = vadd.f32 %v1400_v46, %v747_v39  ;;  %v716_v48 = vmul.f32 %v1121_v42, %v1395_v44 }
 0x104   :  { %v752_v49 = vmul.f32 %v1157_v43, %v1395_v44  ;;  %v864_v50 = vmax.f32 %v792_v40, 0.0  ;;  %v900_v51 = vmax.f32 %v828_v41, 0.0  ;;  %v468_v52 = vpop.f32.mrf.mxu0  ;;  %v612_v53 = vpop.f32.mrf.mxu1 }
 0x105   :  { %v862_v54 = vmax.f32 %v790_v45, 0.0  ;;  %v898_v55 = vmax.f32 %v826_v47, 0.0  ;;  %v795_v56 = vadd.f32 %v1400_v46, %v716_v48  ;;  %v714_v58 = vmul.f32 %v1395_v44, %v468_v52 }
 0x106   :  { %v831_v57 = vadd.f32 %v1400_v46, %v752_v49  ;;  %936 = vst [vmem:[%s1766_s4 + $0x78] sm:$0xff] %v864_v50  ;;  %972 = vst [vmem:[%s1766_s4 + $0x198] sm:$0xff] %v900_v51  ;;  %v750_v59 = vmul.f32 %v1395_v44, %v612_v53  ;;  %v1122_v60 = vpop.f32.mrf.mxu0  ;;  %v1158_v61 = vpop.f32.mrf.mxu1 }
 0x107   :  { %934 = vst [vmem:[%s1766_s4 + $0x68] sm:$0xff] %v862_v54  ;;  %970 = vst [vmem:[%s1766_s4 + $0x188] sm:$0xff] %v898_v55  ;;  %v867_v62 = vmax.f32 %v795_v56, 0.0  ;;  %v717_v0 = vmul.f32 %v1122_v60, %v1395_v44  ;;  %v753_v1 = vmul.f32 %v1158_v61, %v1395_v44  ;;  %v793_v2 = vadd.f32 %v1400_v46, %v714_v58 }
 0x108   :  { %v903_v63 = vmax.f32 %v831_v57, 0.0  ;;  %v829_v3 = vadd.f32 %v1400_v46, %v750_v59  ;;  %v471_v4 = vpop.f32.mrf.mxu0  ;;  %v615_v5 = vpop.f32.mrf.mxu1 }
 0x109   :  { %939 = vst [vmem:[%s1766_s4 + $0x90] sm:$0xff] %v867_v62  ;;  %v796_v6 = vadd.f32 %v1400_v46, %v717_v0  ;;  %v832_v7 = vadd.f32 %v1400_v46, %v753_v1  ;;  %v715_v8 = vmul.f32 %v1395_v44, %v471_v4  ;;  %v751_v9 = vmul.f32 %v1395_v44, %v615_v5 }
 0x10a   :  { %975 = vst [vmem:[%s1766_s4 + $0x1b0] sm:$0xff] %v903_v63  ;;  %v865_v10 = vmax.f32 %v793_v2, 0.0  ;;  %v901_v11 = vmax.f32 %v829_v3, 0.0  ;;  %v1125_v12 = vpop.f32.mrf.mxu0  ;;  %v1161_v13 = vpop.f32.mrf.mxu1 }
 0x10b   :  { %v868_v14 = vmax.f32 %v796_v6, 0.0  ;;  %v904_v15 = vmax.f32 %v832_v7, 0.0  ;;  %v794_v16 = vadd.f32 %v1400_v46, %v715_v8  ;;  %v830_v17 = vadd.f32 %v1400_v46, %v751_v9 }
 0x10c   :  { %937 = vst [vmem:[%s1766_s4 + $0x80] sm:$0xff] %v865_v10  ;;  %973 = vst [vmem:[%s1766_s4 + $0x1a0] sm:$0xff] %v901_v11  ;;  %v720_v18 = vmul.f32 %v1125_v12, %v1395_v44  ;;  %v756_v19 = vmul.f32 %v1161_v13, %v1395_v44  ;;  %v484_v20 = vpop.f32.mrf.mxu0  ;;  %v628_v21 = vpop.f32.mrf.mxu1 }
 0x10d   :  { %940 = vst [vmem:[%s1766_s4 + $0x98] sm:$0xff] %v868_v14  ;;  %976 = vst [vmem:[%s1766_s4 + $0x1b8] sm:$0xff] %v904_v15  ;;  %v866_v22 = vmax.f32 %v794_v16, 0.0  ;;  %v902_v23 = vmax.f32 %v830_v17, 0.0  ;;  %v718_v24 = vmul.f32 %v1395_v44, %v484_v20  ;;  %v754_v25 = vmul.f32 %v1395_v44, %v628_v21 }
 0x10e   :  { %v799_v26 = vadd.f32 %v1400_v46, %v720_v18  ;;  %v835_v27 = vadd.f32 %v1400_v46, %v756_v19  ;;  %v1126_v28 = vpop.f32.mrf.mxu0  ;;  %v1162_v29 = vpop.f32.mrf.mxu1 }
 0x10f   :  { %938 = vst [vmem:[%s1766_s4 + $0x88] sm:$0xff] %v866_v22  ;;  %974 = vst [vmem:[%s1766_s4 + $0x1a8] sm:$0xff] %v902_v23  ;;  %v797_v30 = vadd.f32 %v1400_v46, %v718_v24  ;;  %v833_v31 = vadd.f32 %v1400_v46, %v754_v25  ;;  %v721_v32 = vmul.f32 %v1126_v28, %v1395_v44 }
 0x110   :  { %v757_v33 = vmul.f32 %v1162_v29, %v1395_v44  ;;  %v871_v34 = vmax.f32 %v799_v26, 0.0  ;;  %v907_v35 = vmax.f32 %v835_v27, 0.0  ;;  %v487_v36 = vpop.f32.mrf.mxu0  ;;  %v631_v37 = vpop.f32.mrf.mxu1 }
 0x111   :  { %v869_v38 = vmax.f32 %v797_v30, 0.0  ;;  %v905_v39 = vmax.f32 %v833_v31, 0.0  ;;  %v800_v40 = vadd.f32 %v1400_v46, %v721_v32  ;;  %v719_v42 = vmul.f32 %v1395_v44, %v487_v36 }
 0x112   :  { %v836_v41 = vadd.f32 %v1400_v46, %v757_v33  ;;  %943 = vst [vmem:[%s1766_s4 + $0xb0] sm:$0xff] %v871_v34  ;;  %979 = vst [vmem:[%s1766_s4 + $0x1d0] sm:$0xff] %v907_v35  ;;  %v755_v43 = vmul.f32 %v1395_v44, %v631_v37  ;;  %v1129_v45 = vpop.f32.mrf.mxu0  ;;  %v1165_v47 = vpop.f32.mrf.mxu1 }
 0x113   :  { %941 = vst [vmem:[%s1766_s4 + $0xa0] sm:$0xff] %v869_v38  ;;  %977 = vst [vmem:[%s1766_s4 + $0x1c0] sm:$0xff] %v905_v39  ;;  %v872_v48 = vmax.f32 %v800_v40, 0.0  ;;  %v724_v50 = vmul.f32 %v1129_v45, %v1395_v44  ;;  %v760_v51 = vmul.f32 %v1165_v47, %v1395_v44  ;;  %v798_v52 = vadd.f32 %v1400_v46, %v719_v42 }
 0x114   :  { %v908_v49 = vmax.f32 %v836_v41, 0.0  ;;  %v834_v53 = vadd.f32 %v1400_v46, %v755_v43  ;;  %v500_v54 = vpop.f32.mrf.mxu0  ;;  %v644_v55 = vpop.f32.mrf.mxu1 }
 0x115   :  { %944 = vst [vmem:[%s1766_s4 + $0xb8] sm:$0xff] %v872_v48  ;;  %v803_v56 = vadd.f32 %v1400_v46, %v724_v50  ;;  %v839_v57 = vadd.f32 %v1400_v46, %v760_v51  ;;  %v722_v58 = vmul.f32 %v1395_v44, %v500_v54  ;;  %v758_v59 = vmul.f32 %v1395_v44, %v644_v55 }
 0x116   :  { %980 = vst [vmem:[%s1766_s4 + $0x1d8] sm:$0xff] %v908_v49  ;;  %v870_v60 = vmax.f32 %v798_v52, 0.0  ;;  %v906_v61 = vmax.f32 %v834_v53, 0.0  ;;  %v1130_v62 = vpop.f32.mrf.mxu0  ;;  %v1166_v63 = vpop.f32.mrf.mxu1 }
 0x117   :  { %v875_v0 = vmax.f32 %v803_v56, 0.0  ;;  %v911_v1 = vmax.f32 %v839_v57, 0.0  ;;  %v801_v2 = vadd.f32 %v1400_v46, %v722_v58  ;;  %v837_v3 = vadd.f32 %v1400_v46, %v758_v59 }
 0x118   :  { %942 = vst [vmem:[%s1766_s4 + $0xa8] sm:$0xff] %v870_v60  ;;  %978 = vst [vmem:[%s1766_s4 + $0x1c8] sm:$0xff] %v906_v61  ;;  %v725_v4 = vmul.f32 %v1130_v62, %v1395_v44  ;;  %v761_v5 = vmul.f32 %v1166_v63, %v1395_v44  ;;  %v503_v6 = vpop.f32.mrf.mxu0  ;;  %v647_v7 = vpop.f32.mrf.mxu1 }
 0x119   :  { %947 = vst [vmem:[%s1766_s4 + $0xd0] sm:$0xff] %v875_v0  ;;  %983 = vst [vmem:[%s1766_s4 + $0x1f0] sm:$0xff] %v911_v1  ;;  %v873_v8 = vmax.f32 %v801_v2, 0.0  ;;  %v909_v9 = vmax.f32 %v837_v3, 0.0  ;;  %v723_v10 = vmul.f32 %v1395_v44, %v503_v6  ;;  %v759_v11 = vmul.f32 %v1395_v44, %v647_v7 }
 0x11a   :  { %v804_v12 = vadd.f32 %v1400_v46, %v725_v4  ;;  %v840_v13 = vadd.f32 %v1400_v46, %v761_v5  ;;  %v1133_v14 = vpop.f32.mrf.mxu0  ;;  %v1169_v15 = vpop.f32.mrf.mxu1 }
 0x11b   :  { %945 = vst [vmem:[%s1766_s4 + $0xc0] sm:$0xff] %v873_v8  ;;  %981 = vst [vmem:[%s1766_s4 + $0x1e0] sm:$0xff] %v909_v9  ;;  %v802_v16 = vadd.f32 %v1400_v46, %v723_v10  ;;  %v838_v17 = vadd.f32 %v1400_v46, %v759_v11  ;;  %v728_v18 = vmul.f32 %v1133_v14, %v1395_v44 }
 0x11c   :  { %v764_v19 = vmul.f32 %v1169_v15, %v1395_v44  ;;  %v876_v20 = vmax.f32 %v804_v12, 0.0  ;;  %v912_v21 = vmax.f32 %v840_v13, 0.0  ;;  %v516_v22 = vpop.f32.mrf.mxu0  ;;  %v660_v23 = vpop.f32.mrf.mxu1 }
 0x11d   :  { %v874_v24 = vmax.f32 %v802_v16, 0.0  ;;  %v910_v25 = vmax.f32 %v838_v17, 0.0  ;;  %v807_v26 = vadd.f32 %v1400_v46, %v728_v18  ;;  %v726_v28 = vmul.f32 %v1395_v44, %v516_v22 }
 0x11e   :  { %v843_v27 = vadd.f32 %v1400_v46, %v764_v19  ;;  %948 = vst [vmem:[%s1766_s4 + $0xd8] sm:$0xff] %v876_v20  ;;  %984 = vst [vmem:[%s1766_s4 + $0x1f8] sm:$0xff] %v912_v21  ;;  %v762_v29 = vmul.f32 %v1395_v44, %v660_v23  ;;  %v1134_v30 = vpop.f32.mrf.mxu0  ;;  %v1170_v31 = vpop.f32.mrf.mxu1 }
 0x11f   :  { %946 = vst [vmem:[%s1766_s4 + $0xc8] sm:$0xff] %v874_v24  ;;  %982 = vst [vmem:[%s1766_s4 + $0x1e8] sm:$0xff] %v910_v25  ;;  %v879_v32 = vmax.f32 %v807_v26, 0.0  ;;  %v729_v34 = vmul.f32 %v1134_v30, %v1395_v44  ;;  %v765_v35 = vmul.f32 %v1170_v31, %v1395_v44  ;;  %v805_v36 = vadd.f32 %v1400_v46, %v726_v28 }
 0x120   :  { %v915_v33 = vmax.f32 %v843_v27, 0.0  ;;  %v841_v37 = vadd.f32 %v1400_v46, %v762_v29  ;;  %v519_v38 = vpop.f32.mrf.mxu0  ;;  %v663_v39 = vpop.f32.mrf.mxu1 }
 0x121   :  { %951 = vst [vmem:[%s1766_s4 + $0xf0] sm:$0xff] %v879_v32  ;;  %v808_v40 = vadd.f32 %v1400_v46, %v729_v34  ;;  %v844_v41 = vadd.f32 %v1400_v46, %v765_v35  ;;  %v727_v42 = vmul.f32 %v1395_v44, %v519_v38  ;;  %v763_v43 = vmul.f32 %v1395_v44, %v663_v39 }
 0x122   :  { %987 = vst [vmem:[%s1766_s4 + $0x210] sm:$0xff] %v915_v33  ;;  %v877_v45 = vmax.f32 %v805_v36, 0.0  ;;  %v913_v47 = vmax.f32 %v841_v37, 0.0  ;;  %v1137_v48 = vpop.f32.mrf.mxu0  ;;  %v1173_v49 = vpop.f32.mrf.mxu1 }
 0x123   :  { %v880_v50 = vmax.f32 %v808_v40, 0.0  ;;  %v916_v51 = vmax.f32 %v844_v41, 0.0  ;;  %v806_v52 = vadd.f32 %v1400_v46, %v727_v42  ;;  %v842_v53 = vadd.f32 %v1400_v46, %v763_v43 }
 0x124   :  { %949 = vst [vmem:[%s1766_s4 + $0xe0] sm:$0xff] %v877_v45  ;;  %985 = vst [vmem:[%s1766_s4 + $0x200] sm:$0xff] %v913_v47  ;;  %v732_v54 = vmul.f32 %v1137_v48, %v1395_v44  ;;  %v768_v55 = vmul.f32 %v1173_v49, %v1395_v44  ;;  %v532_v56 = vpop.f32.mrf.mxu0  ;;  %v676_v57 = vpop.f32.mrf.mxu1 }
 0x125   :  { %952 = vst [vmem:[%s1766_s4 + $0xf8] sm:$0xff] %v880_v50  ;;  %988 = vst [vmem:[%s1766_s4 + $0x218] sm:$0xff] %v916_v51  ;;  %v878_v58 = vmax.f32 %v806_v52, 0.0  ;;  %v914_v59 = vmax.f32 %v842_v53, 0.0  ;;  %v730_v60 = vmul.f32 %v1395_v44, %v532_v56  ;;  %v766_v61 = vmul.f32 %v1395_v44, %v676_v57 }
 0x126   :  { %v811_v62 = vadd.f32 %v1400_v46, %v732_v54  ;;  %v847_v63 = vadd.f32 %v1400_v46, %v768_v55  ;;  %v1138_v0 = vpop.f32.mrf.mxu0  ;;  %v1174_v1 = vpop.f32.mrf.mxu1 }
 0x127   :  { %950 = vst [vmem:[%s1766_s4 + $0xe8] sm:$0xff] %v878_v58  ;;  %986 = vst [vmem:[%s1766_s4 + $0x208] sm:$0xff] %v914_v59  ;;  %v809_v2 = vadd.f32 %v1400_v46, %v730_v60  ;;  %v845_v3 = vadd.f32 %v1400_v46, %v766_v61  ;;  %v733_v4 = vmul.f32 %v1138_v0, %v1395_v44 }
 0x128   :  { %v769_v5 = vmul.f32 %v1174_v1, %v1395_v44  ;;  %v883_v6 = vmax.f32 %v811_v62, 0.0  ;;  %v919_v7 = vmax.f32 %v847_v63, 0.0  ;;  %v535_v8 = vpop.f32.mrf.mxu0  ;;  %v679_v9 = vpop.f32.mrf.mxu1 }
 0x129   :  { %v881_v10 = vmax.f32 %v809_v2, 0.0  ;;  %v917_v11 = vmax.f32 %v845_v3, 0.0  ;;  %v812_v12 = vadd.f32 %v1400_v46, %v733_v4  ;;  %v731_v14 = vmul.f32 %v1395_v44, %v535_v8 }
 0x12a   :  { %v848_v13 = vadd.f32 %v1400_v46, %v769_v5  ;;  %955 = vst [vmem:[%s1766_s4 + $0x110] sm:$0xff] %v883_v6  ;;  %991 = vst [vmem:[%s1766_s4 + $0x230] sm:$0xff] %v919_v7  ;;  %v767_v15 = vmul.f32 %v1395_v44, %v679_v9 }
 0x12b   :  { %953 = vst [vmem:[%s1766_s4 + $0x100] sm:$0xff] %v881_v10  ;;  %989 = vst [vmem:[%s1766_s4 + $0x220] sm:$0xff] %v917_v11  ;;  %v884_v16 = vmax.f32 %v812_v12, 0.0  ;;  %v810_v18 = vadd.f32 %v1400_v46, %v731_v14 }
 0x12c   :  { %v920_v17 = vmax.f32 %v848_v13, 0.0  ;;  %v846_v19 = vadd.f32 %v1400_v46, %v767_v15 }
 0x12d   :  { %956 = vst [vmem:[%s1766_s4 + $0x118] sm:$0xff] %v884_v16  ;;  %v882_v44 = vmax.f32 %v810_v18, 0.0 }
 0x12e   :  { %992 = vst [vmem:[%s1766_s4 + $0x238] sm:$0xff] %v920_v17  ;;  %v918_v20 = vmax.f32 %v846_v19, 0.0 }
 0x12f   :  { %954 = vst [vmem:[%s1766_s4 + $0x108] sm:$0xff] %v882_v44 }
 0x130   :  { %990 = vst [vmem:[%s1766_s4 + $0x228] sm:$0xff] %v918_v20 }

// kernel: _lambda_.17
= control target key start
LH: loop header
LB: loop body
LE: loop exit
PB: predicated region body
PF: predicated region fallthrough
CT: control target
= control target key end

     0   :  { %s2466_s15 = smov 0   ;;  %s3025_s0 = inlined_call_operand.vmem [shape: f32[800,128], index: 0, kind: input, shape index: {}]   ;;  %s3026_s1 = inlined_call_operand.vmem [shape: bf16[1152,128], index: 1, kind: input, shape index: {}]   ;;  %s3027_s2 = inlined_call_operand.vmem [shape: f32[1,128], index: 2, kind: input, shape index: {}]   ;;  %s3028_s3 = inlined_call_operand.vmem [shape: f32[1,128], index: 3, kind: input, shape index: {}]   ;;  %s3029_s4 = inlined_call_operand.vmem [shape: bf16[768,128], index: 4, kind: output, shape index: {}]  }
   0x1 LB: > { %s1735_s16 = sadd.s32 4294967295, %s2439_s15   ;;  %p1738_p0 = scmp.ge.s32.totalorder %s2439_s15, 1  ;;  %s2439_s15 = sphi %s2466_s15, %s14_s15  }
   0x2   : > { %p152_p1 = scmp.lt.s32.totalorder %s2439_s15, 7 }
   0x4   : > { %p153_p2 = pnand %p1738_p0, %p152_p1 }
   0x6   : > { %156 = sbr.rel (%p153_p2) target bundleno = 392 (0x188), region = 36 }
   0xb   : > { %v2361_v0 = vld [vmem:[%s3026_s1 + $0xf8] sm:$0xff]   ;;  %v2365_v4 = vld [vmem:[%s3026_s1 + $0xf0] sm:$0xff]   ;;  %v2369_v8 = vld [vmem:[%s3026_s1 + $0xe8] sm:$0xff]   ;;  %s1741_s23 = sshll.u32 %s1735_s16, 7 }
   0xc   : > { %v2362_v1 = vld [vmem:[%s3026_s1 + $0x78] sm:$0xff]   ;;  %2033 = vmatprep.subr.bf16.mxu0 %v2361_v0  ;;  %v2366_v5 = vld [vmem:[%s3026_s1 + $0x70] sm:$0xff]   ;;  %v2370_v9 = vld [vmem:[%s3026_s1 + $0x68] sm:$0xff]   ;;  %s2569_s6 = scalar_lea.vmem %s3025_s0, %s1741_s23 }
   0xd   : > { %v2363_v2 = vld [vmem:[%s3026_s1 + $0xb8] sm:$0xff]   ;;  %2097 = vmatprep.subr.bf16.mxu1 %v2362_v1  ;;  %v2367_v6 = vld [vmem:[%s3026_s1 + $0xb0] sm:$0xff]   ;;  %v2371_v10 = vld [vmem:[%s3026_s1 + $0xa8] sm:$0xff]  }
   0xe   : > { %v2364_v3 = vld [vmem:[%s3026_s1 + $0x38] sm:$0xff]   ;;  %2034 = vmatpush3.bf16.msra.mxu0 %v2363_v2  ;;  %v2368_v7 = vld [vmem:[%s3026_s1 + $0x30] sm:$0xff]   ;;  %v2372_v11 = vld [vmem:[%s3026_s1 + $0x28] sm:$0xff]  }
   0xf   : > { %2098 = vmatpush3.bf16.msra.mxu1 %v2364_v3  ;;  %2035 = vmatprep.subr.bf16.mxu0 %v2365_v4  ;;  %v2373_v12 = vld [vmem:[%s3026_s1 + $0xe0] sm:$0xff]   ;;  %v2377_v16 = vld [vmem:[%s3026_s1 + $0xd8] sm:$0xff]   ;;  %v2381_v20 = vld [vmem:[%s3026_s1 + $0xd0] sm:$0xff]  }
  0x10   : > { %2099 = vmatprep.subr.bf16.mxu1 %v2366_v5  ;;  %v2374_v13 = vld [vmem:[%s3026_s1 + $0x60] sm:$0xff]   ;;  %v2378_v17 = vld [vmem:[%s3026_s1 + $0x58] sm:$0xff]   ;;  %v2382_v21 = vld [vmem:[%s3026_s1 + $0x50] sm:$0xff]  }
  0x11   : > { %v2375_v14 = vld [vmem:[%s3026_s1 + $0xa0] sm:$0xff]   ;;  %v2379_v18 = vld [vmem:[%s3026_s1 + $0x98] sm:$0xff]   ;;  %v2383_v22 = vld [vmem:[%s3026_s1 + $0x90] sm:$0xff]  }
  0x12   : > { %2036 = vmatpush3.bf16.msra.mxu0 %v2367_v6  ;;  %v2376_v15 = vld [vmem:[%s3026_s1 + $0x20] sm:$0xff]   ;;  %v2380_v19 = vld [vmem:[%s3026_s1 + $0x18] sm:$0xff]   ;;  %v2384_v23 = vld [vmem:[%s3026_s1 + $0x10] sm:$0xff]  }
  0x13   : > { %2100 = vmatpush3.bf16.msra.mxu1 %v2368_v7  ;;  %2037 = vmatprep.subr.bf16.mxu0 %v2369_v8  ;;  %v2385_v24 = vld [vmem:[%s3026_s1 + $0xc8] sm:$0xff]   ;;  %v2389_v28 = vld [vmem:[%s3026_s1 + $0xc0] sm:$0xff]   ;;  %v1778_v33 = vld [vmem:[%s2569_s6 + $0x16] sm:$0xff] }
  0x14   : > { %2101 = vmatprep.subr.bf16.mxu1 %v2370_v9  ;;  %v2386_v25 = vld [vmem:[%s3026_s1 + $0x48] sm:$0xff]   ;;  %v2390_v29 = vld [vmem:[%s3026_s1 + $0x40] sm:$0xff]   ;;  %v2393_v44 = vld [vmem:[%s3026_s1 + $0x178] sm:$0xff]  }
  0x15   : > { %v2387_v26 = vld [vmem:[%s3026_s1 + $0x88] sm:$0xff]   ;;  %v2391_v30 = vld [vmem:[%s3026_s1 + $0x80] sm:$0xff]   ;;  %v2394_v45 = vld [vmem:[%s3026_s1 + $0x1f8] sm:$0xff]  }
  0x16   : > { %2038 = vmatpush3.bf16.msra.mxu0 %v2371_v10  ;;  %v2388_v27 = vld [vmem:[%s3026_s1 + $0x8] sm:$0xff]   ;;  %v2392_v31 = vld [vmem:[%s3026_s1] sm:$0xff]   ;;  %v2395_v46 = vld [vmem:[%s3026_s1 + $0x138] sm:$0xff]  }
  0x17   : > { %2102 = vmatpush3.bf16.msra.mxu1 %v2372_v11  ;;  %2039 = vmatprep.subr.bf16.mxu0 %v2373_v12  ;;  %v1777_v32 = vld [vmem:[%s2569_s6 + $0xe] sm:$0xff]  ;;  %v1743_v34 = vld [vmem:[%s2569_s6 + $0x1] sm:$0xff]  ;;  %v2396_v47 = vld [vmem:[%s3026_s1 + $0x1b8] sm:$0xff]  }
  0x18   : > { %2103 = vmatprep.subr.bf16.mxu1 %v2374_v13  ;;  %v308_v35 = vpack.c.bf16 %v1778_v33, %v1777_v32  ;;  %v1744_v36 = vld [vmem:[%s2569_s6 + $0x9] sm:$0xff]  ;;  %v182_v41 = vld [vmem:[%s2569_s6] sm:$0xff]  ;;  %v1745_v50 = vld [vmem:[%s2569_s6 + $0x11] sm:$0xff] }
  0x19   : > { %v1760_v37 = vld [vmem:[%s2569_s6 + $0x2] sm:$0xff]  ;;  %v1761_v38 = vld [vmem:[%s2569_s6 + $0xa] sm:$0xff]  ;;  %v224_v39 = vpack.c.bf16 %v1744_v36, %v1743_v34  ;;  %v1746_v51 = vld [vmem:[%s2569_s6 + $0x19] sm:$0xff] }
  0x1a   : > { %2040 = vmatpush3.bf16.msra.mxu0 %v2375_v14  ;;  %v282_v40 = vpack.c.bf16 %v1761_v38, %v1760_v37  ;;  %v183_v42 = vld [vmem:[%s2569_s6 + $0x8] sm:$0xff]  ;;  %476 = vmatprep.mubr.bf16.mxu0 %v308_v35  ;;  %v1779_v48 = vld [vmem:[%s2569_s6 + $0x1e] sm:$0xff]  ;;  %v225_v53 = vpack.c.bf16 %v1746_v51, %v1745_v50  ;;  %v1762_v54 = vld [vmem:[%s2569_s6 + $0x12] sm:$0xff] }
  0x1b   : > { %2104 = vmatpush3.bf16.msra.mxu1 %v2376_v15  ;;  %2041 = vmatprep.subr.bf16.mxu0 %v2377_v16  ;;  %v198_v43 = vpack.c.bf16 %v183_v42, %v182_v41  ;;  %v1780_v49 = vld [vmem:[%s2569_s6 + $0x26] sm:$0xff]  ;;  %v1763_v55 = vld [vmem:[%s2569_s6 + $0x1a] sm:$0xff]  ;;  %v184_v56 = vld [vmem:[%s2569_s6 + $0x10] sm:$0xff] }
  0x1c   : > { %2105 = vmatprep.subr.bf16.mxu1 %v2378_v17  ;;  %669 = vmatprep.mubr.bf16.mxu1 %v224_v39  ;;  %v2601_v52 = vpack.c.bf16 %v1780_v49, %v1779_v48  ;;  %v283_v57 = vpack.c.bf16 %v1763_v55, %v1762_v54  ;;  %v185_v58 = vld [vmem:[%s2569_s6 + $0x18] sm:$0xff]  ;;  %v2397_v60 = vld [vmem:[%s3026_s1 + $0x170] sm:$0xff]   ;;  %v1747_v3 = vld [vmem:[%s2569_s6 + $0x21] sm:$0xff] }
  0x1d   : > { %v2608_v59 = vpack.c.bf16 %v185_v58, %v184_v56  ;;  %v2398_v61 = vld [vmem:[%s3026_s1 + $0x1f0] sm:$0xff]   ;;  %v1764_v5 = vld [vmem:[%s2569_s6 + $0x22] sm:$0xff]  ;;  %v2409_v42 = vld [vmem:[%s3026_s1 + $0x158] sm:$0xff]  }
  0x1e   : > { %2042 = vmatpush3.bf16.msra.mxu0 %v2379_v18  ;;  %v2399_v62 = vld [vmem:[%s3026_s1 + $0x130] sm:$0xff]   ;;  %v186_v8 = vld [vmem:[%s2569_s6 + $0x20] sm:$0xff]  ;;  %v187_v9 = vld [vmem:[%s2569_s6 + $0x28] sm:$0xff] }
  0x1f   : > { %2106 = vmatpush3.bf16.msra.mxu1 %v2380_v19  ;;  %2043 = vmatprep.subr.bf16.mxu0 %v2381_v20  ;;  %v2400_v63 = vld [vmem:[%s3026_s1 + $0x1b0] sm:$0xff]   ;;  %v2401_v11 = vld [vmem:[%s3026_s1 + $0x168] sm:$0xff]   ;;  %v2637_v12 = vpack.c.bf16 %v187_v9, %v186_v8  ;;  %v1783_v16 = vld [vmem:[%s2569_s6 + $0x3e] sm:$0xff] }
  0x20   : > { %2107 = vmatprep.subr.bf16.mxu1 %v2382_v21  ;;  %v1781_v0 = vld [vmem:[%s2569_s6 + $0x2e] sm:$0xff]  ;;  %v1782_v1 = vld [vmem:[%s2569_s6 + $0x36] sm:$0xff]  ;;  %v1784_v17 = vld [vmem:[%s2569_s6 + $0x46] sm:$0xff] }
  0x21   : > { %v2625_v2 = vpack.c.bf16 %v1782_v1, %v1781_v0  ;;  %v1748_v4 = vld [vmem:[%s2569_s6 + $0x29] sm:$0xff]  ;;  %v1749_v18 = vld [vmem:[%s2569_s6 + $0x31] sm:$0xff]  ;;  %v2652_v19 = vpack.c.bf16 %v1784_v17, %v1783_v16  ;;  %v1750_v20 = vld [vmem:[%s2569_s6 + $0x39] sm:$0xff] }
  0x22   : > { %2044 = vmatpush3.bf16.msra.mxu0 %v2383_v22  ;;  %v226_v6 = vpack.c.bf16 %v1748_v4, %v1747_v3  ;;  %v1765_v7 = vld [vmem:[%s2569_s6 + $0x2a] sm:$0xff]  ;;  %v1766_v21 = vld [vmem:[%s2569_s6 + $0x32] sm:$0xff]  ;;  %v1767_v22 = vld [vmem:[%s2569_s6 + $0x3a] sm:$0xff] }
  0x23   : > { %2108 = vmatpush3.bf16.msra.mxu1 %v2384_v23  ;;  %2045 = vmatprep.subr.bf16.mxu0 %v2385_v24  ;;  %v284_v10 = vpack.c.bf16 %v1765_v7, %v1764_v5  ;;  %v2402_v13 = vld [vmem:[%s3026_s1 + $0x1e8] sm:$0xff]   ;;  %v227_v23 = vpack.c.bf16 %v1750_v20, %v1749_v18  ;;  %v188_v24 = vld [vmem:[%s2569_s6 + $0x30] sm:$0xff]  ;;  %v1787_v48 = vld [vmem:[%s2569_s6 + $0x5e] sm:$0xff] }
  0x24   : > { %2109 = vmatprep.subr.bf16.mxu1 %v2386_v25  ;;  %v2403_v14 = vld [vmem:[%s3026_s1 + $0x128] sm:$0xff]   ;;  %v189_v25 = vld [vmem:[%s2569_s6 + $0x38] sm:$0xff] }
  0x25   : > { %v2404_v15 = vld [vmem:[%s3026_s1 + $0x1a8] sm:$0xff]   ;;  %v1786_v33 = vld [vmem:[%s2569_s6 + $0x56] sm:$0xff]  ;;  %v1791_v18 = vld [vmem:[%s2569_s6 + $0x7e] sm:$0xff] }
  0x26   : > { %2046 = vmatpush3.bf16.msra.mxu0 %v2387_v26  ;;  %v2405_v26 = vld [vmem:[%s3026_s1 + $0x160] sm:$0xff]   ;;  %v1785_v32 = vld [vmem:[%s2569_s6 + $0x4e] sm:$0xff]  ;;  %v193_v58 = vld [vmem:[%s2569_s6 + $0x58] sm:$0xff] }
  0x27   : > { %2110 = vmatpush3.bf16.msra.mxu1 %v2388_v27  ;;  %2047 = vmatprep.subr.bf16.mxu0 %v2389_v28  ;;  %v285_v27 = vpack.c.bf16 %v1767_v22, %v1766_v21  ;;  %v2406_v28 = vld [vmem:[%s3026_s1 + $0x1e0] sm:$0xff]   ;;  %v1752_v35 = vld [vmem:[%s2569_s6 + $0x49] sm:$0xff]  ;;  %v2678_v36 = vpack.c.bf16 %v1786_v33, %v1785_v32  ;;  %v1753_v51 = vld [vmem:[%s2569_s6 + $0x51] sm:$0xff] }
  0x28   : > { %2111 = vmatprep.subr.bf16.mxu1 %v2390_v29  ;;  %v2666_v29 = vpack.c.bf16 %v189_v25, %v188_v24  ;;  %v1751_v34 = vld [vmem:[%s2569_s6 + $0x41] sm:$0xff]  ;;  %v1769_v39 = vld [vmem:[%s2569_s6 + $0x4a] sm:$0xff]  ;;  %v1770_v55 = vld [vmem:[%s2569_s6 + $0x52] sm:$0xff] }
  0x29   : > { %v228_v37 = vpack.c.bf16 %v1752_v35, %v1751_v34  ;;  %v1768_v38 = vld [vmem:[%s2569_s6 + $0x42] sm:$0xff]  ;;  %v1771_v56 = vld [vmem:[%s2569_s6 + $0x5a] sm:$0xff]  ;;  %v1789_v1 = vld [vmem:[%s2569_s6 + $0x6e] sm:$0xff] }
  0x2a   : > { %2048 = vmatpush3.bf16.msra.mxu0 %v2391_v30  ;;  %v2407_v30 = vld [vmem:[%s3026_s1 + $0x120] sm:$0xff]   ;;  %v191_v41 = vld [vmem:[%s2569_s6 + $0x48] sm:$0xff]  ;;  %v287_v0 = vpack.c.bf16 %v1771_v56, %v1770_v55  ;;  %v1790_v3 = vld [vmem:[%s2569_s6 + $0x76] sm:$0xff] }
  0x2b   : > { %2112 = vmatpush3.bf16.msra.mxu1 %v2392_v31  ;;  %2161 = vmatprep.subr.bf16.mxu0 %v2393_v44  ;;  %v2408_v31 = vld [vmem:[%s3026_s1 + $0x1a0] sm:$0xff]   ;;  %v286_v44 = vpack.c.bf16 %v1769_v39, %v1768_v38  ;;  %v1756_v7 = vld [vmem:[%s2569_s6 + $0x69] sm:$0xff]  ;;  %v1757_v21 = vld [vmem:[%s2569_s6 + $0x71] sm:$0xff] }
  0x2c   : > { %2225 = vmatprep.subr.bf16.mxu1 %v2394_v45  ;;  %v2411_v45 = vld [vmem:[%s3026_s1 + $0x118] sm:$0xff]   ;;  %v1788_v49 = vld [vmem:[%s2569_s6 + $0x66] sm:$0xff]  ;;  %v196_v34 = vld [vmem:[%s2569_s6 + $0x70] sm:$0xff] }
  0x2d   : > { %477 = vmatmul.mubr.bf16.vlgmr.msra.gmra.mxu0 %v282_v40  ;;  %v190_v40 = vld [vmem:[%s2569_s6 + $0x40] sm:$0xff]  ;;  %v2702_v50 = vpack.c.bf16 %v1788_v49, %v1787_v48  ;;  %v2419_v16 = vld [vmem:[%s3026_s1 + $0x108] sm:$0xff]   ;;  %v197_v35 = vld [vmem:[%s2569_s6 + $0x78] sm:$0xff] }
  0x2e   : > { %670 = vmatmul.mubr.bf16.vlgmr.msra.gmra.mxu1 %v198_v43  ;;  %2162 = vmatpush3.bf16.msra.mxu0 %v2395_v46  ;;  %v2410_v43 = vld [vmem:[%s3026_s1 + $0x1d8] sm:$0xff]   ;;  %v2695_v46 = vpack.c.bf16 %v191_v41, %v190_v40  ;;  %v1755_v4 = vld [vmem:[%s2569_s6 + $0x61] sm:$0xff]  ;;  %v2781_v41 = vpack.c.bf16 %v197_v35, %v196_v34  ;;  %v1895_v48 = vld [vmem:[%s2569_s6 + $0x2d] sm:$0xff] }
  0x2f   : > { %2226 = vmatpush3.bf16.msra.mxu1 %v2396_v47  ;;  %484 = vmatprep.mubr.bf16.mxu0 %v2601_v52  ;;  %v2412_v47 = vld [vmem:[%s3026_s1 + $0x198] sm:$0xff]   ;;  %v230_v8 = vpack.c.bf16 %v1756_v7, %v1755_v4  ;;  %v1772_v9 = vld [vmem:[%s2569_s6 + $0x62] sm:$0xff]  ;;  %v2426_v55 = vld [vmem:[%s3026_s1 + $0x230] sm:$0xff]  }
  0x30   : > { %677 = vmatprep.mubr.bf16.mxu1 %v225_v53  ;;  %2163 = vmatprep.subr.bf16.mxu0 %v2397_v60  ;;  %v1754_v53 = vld [vmem:[%s2569_s6 + $0x59] sm:$0xff]  ;;  %v2413_v60 = vld [vmem:[%s3026_s1 + $0x150] sm:$0xff]   ;;  %v2420_v17 = vld [vmem:[%s3026_s1 + $0x188] sm:$0xff]  }
  0x31   : > { %2227 = vmatprep.subr.bf16.mxu1 %v2398_v61  ;;  %v229_v54 = vpack.c.bf16 %v1754_v53, %v1753_v51  ;;  %v2414_v61 = vld [vmem:[%s3026_s1 + $0x1d0] sm:$0xff]   ;;  %v1792_v20 = vld [vmem:[%s2569_s6 + $0x86] sm:$0xff]  ;;  %v1758_v22 = vld [vmem:[%s2569_s6 + $0x79] sm:$0xff] }
  0x32   : > { %2164 = vmatpush3.bf16.msra.mxu0 %v2399_v62  ;;  %v2415_v62 = vld [vmem:[%s3026_s1 + $0x110] sm:$0xff]   ;;  %v2756_v25 = vpack.c.bf16 %v1792_v20, %v1791_v18  ;;  %v1775_v32 = vld [vmem:[%s2569_s6 + $0x7a] sm:$0xff]  ;;  %v1894_v38 = vld [vmem:[%s2569_s6 + $0x25] sm:$0xff] }
  0x33   : > { %2228 = vmatpush3.bf16.msra.mxu1 %v2400_v63  ;;  %2165 = vmatprep.subr.bf16.mxu0 %v2401_v11  ;;  %v2416_v63 = vld [vmem:[%s3026_s1 + $0x190] sm:$0xff]   ;;  %v2417_v11 = vld [vmem:[%s3026_s1 + $0x148] sm:$0xff]   ;;  %v2424_v33 = vld [vmem:[%s3026_s1 + $0x180] sm:$0xff]  }
  0x34   : > { %2229 = vmatprep.subr.bf16.mxu1 %v2402_v13  ;;  %v194_v13 = vld [vmem:[%s2569_s6 + $0x60] sm:$0xff]  ;;  %v2425_v40 = vld [vmem:[%s3026_s1 + $0x238] sm:$0xff]   ;;  %v1882_v18 = vld [vmem:[%s2569_s6 + $0x4c] sm:$0xff] }
  0x35   : > { %485 = vmatmul.mubr.bf16.gmra.mxu0 %v283_v57  ;;  %v192_v57 = vld [vmem:[%s2569_s6 + $0x50] sm:$0xff]  ;;  %v1828_v56 = vld [vmem:[%s2569_s6 + $0x1f] sm:$0xff] }
  0x36   : > { %678 = vmatmul.mubr.bf16.gmra.mxu1 %v2608_v59  ;;  %492 = vmatprep.mubr.bf16.mxu0 %v2625_v2  ;;  %v2727_v5 = vpack.c.bf16 %v193_v58, %v192_v57  ;;  %v1896_v51 = vld [vmem:[%s2569_s6 + $0x35] sm:$0xff]  ;;  %v1878_v57 = vld [vmem:[%s2569_s6 + $0x2c] sm:$0xff] }
  0x37   : > { %685 = vmatprep.mubr.bf16.mxu1 %v226_v6  ;;  %2166 = vmatpush3.bf16.msra.mxu0 %v2403_v14  ;;  %v2729_v6 = vpack.c.bf16 %v1790_v3, %v1789_v1  ;;  %v195_v14 = vld [vmem:[%s2569_s6 + $0x68] sm:$0xff]  ;;  %v1879_v58 = vld [vmem:[%s2569_s6 + $0x34] sm:$0xff]  ;;  %v2428_v1 = vld [vmem:[%s3026_s1 + $0x220] sm:$0xff]  }
  0x38   : > { %2230 = vmatpush3.bf16.msra.mxu1 %v2404_v15  ;;  %2167 = vmatprep.subr.bf16.mxu0 %v2405_v26  ;;  %v2418_v15 = vld [vmem:[%s3026_s1 + $0x1c8] sm:$0xff]   ;;  %v2754_v24 = vpack.c.bf16 %v195_v14, %v194_v13  ;;  %v231_v26 = vpack.c.bf16 %v1758_v22, %v1757_v21  ;;  %v1831_v4 = vld [vmem:[%s2569_s6 + $0x37] sm:$0xff] }
  0x39   : > { %2231 = vmatprep.subr.bf16.mxu1 %v2406_v28  ;;  %v2422_v28 = vld [vmem:[%s3026_s1 + $0x1c0] sm:$0xff]   ;;  %v1830_v3 = vld [vmem:[%s2569_s6 + $0x2f] sm:$0xff] }
  0x3a   : > { %v1880_v7 = vld [vmem:[%s2569_s6 + $0x3c] sm:$0xff]  ;;  %v754_v13 = vpack.c.bf16 %v1831_v4, %v1830_v3  ;;  %v1883_v20 = vld [vmem:[%s2569_s6 + $0x54] sm:$0xff]  ;;  %v1902_v22 = vld [vmem:[%s2569_s6 + $0x65] sm:$0xff] }
  0x3b   : > { %2168 = vmatpush3.bf16.msra.mxu0 %v2407_v30  ;;  %v2423_v30 = vld [vmem:[%s3026_s1 + $0x100] sm:$0xff]   ;;  %v1903_v34 = vld [vmem:[%s2569_s6 + $0x6d] sm:$0xff]  ;;  %v1904_v35 = vld [vmem:[%s2569_s6 + $0x75] sm:$0xff] }
  0x3c   : > { %2232 = vmatpush3.bf16.msra.mxu1 %v2408_v31  ;;  %2169 = vmatprep.subr.bf16.mxu0 %v2409_v42  ;;  %v1774_v31 = vld [vmem:[%s2569_s6 + $0x72] sm:$0xff]  ;;  %v1901_v21 = vld [vmem:[%s2569_s6 + $0x5d] sm:$0xff] }
  0x3d   : > { %493 = vmatmul.mubr.bf16.gmra.mxu0 %v284_v10  ;;  %2233 = vmatprep.subr.bf16.mxu1 %v2410_v43  ;;  %v1773_v10 = vld [vmem:[%s2569_s6 + $0x6a] sm:$0xff]  ;;  %v289_v39 = vpack.c.bf16 %v1775_v32, %v1774_v31  ;;  %v1835_v31 = vld [vmem:[%s2569_s6 + $0x57] sm:$0xff] }
  0x3e   : > { %686 = vmatmul.mubr.bf16.gmra.mxu1 %v2637_v12  ;;  %500 = vmatprep.mubr.bf16.mxu0 %v2652_v19  ;;  %v1826_v43 = vld [vmem:[%s2569_s6 + $0xf] sm:$0xff]  ;;  %v1884_v32 = vld [vmem:[%s2569_s6 + $0x5c] sm:$0xff] }
  0x3f   : > { %693 = vmatprep.mubr.bf16.mxu1 %v227_v23  ;;  %2170 = vmatpush3.bf16.msra.mxu0 %v2411_v45  ;;  %v288_v23 = vpack.c.bf16 %v1773_v10, %v1772_v9  ;;  %v1876_v45 = vld [vmem:[%s2569_s6 + $0x1c] sm:$0xff]  ;;  %v1899_v9 = vld [vmem:[%s2569_s6 + $0x4d] sm:$0xff] }
  0x40   : > { %2234 = vmatpush3.bf16.msra.mxu1 %v2412_v47  ;;  %2171 = vmatprep.subr.bf16.mxu0 %v2413_v60  ;;  %v1877_v47 = vld [vmem:[%s2569_s6 + $0x24] sm:$0xff]  ;;  %v1900_v10 = vld [vmem:[%s2569_s6 + $0x55] sm:$0xff] }
  0x41   : > { %2235 = vmatprep.subr.bf16.mxu1 %v2414_v61  ;;  %v1045_v53 = vpack.c.bf16 %v1877_v47, %v1876_v45  ;;  %v2427_v60 = vld [vmem:[%s3026_s1 + $0x228] sm:$0xff]   ;;  %v1897_v61 = vld [vmem:[%s2569_s6 + $0x3d] sm:$0xff]  ;;  %v1074_v14 = vpack.c.bf16 %v1900_v10, %v1899_v9 }
  0x42   : > { %v1906_v45 = vld [vmem:[%s2569_s6 + $0x85] sm:$0xff]  ;;  %v1940_v4 = vld [vmem:[%s2569_s6 + $0x8e] sm:$0xff] }
  0x43   : > { %2172 = vmatpush3.bf16.msra.mxu0 %v2415_v62  ;;  %v1898_v62 = vld [vmem:[%s2569_s6 + $0x45] sm:$0xff] }
  0x44   : > { %2236 = vmatpush3.bf16.msra.mxu1 %v2416_v63  ;;  %2173 = vmatprep.subr.bf16.mxu0 %v2417_v11  ;;  %v2429_v11 = vld [vmem:[%s3026_s1 + $0x218] sm:$0xff]  }
  0x45   : > { %501 = vmatmul.mubr.bf16.gmra.mxu0 %v285_v27  ;;  %2237 = vmatprep.subr.bf16.mxu1 %v2418_v15  ;;  %v2421_v27 = vld [vmem:[%s3026_s1 + $0x140] sm:$0xff]   ;;  %v2430_v15 = vld [vmem:[%s3026_s1 + $0x210] sm:$0xff]  }
  0x46   : > { %694 = vmatmul.mubr.bf16.gmra.mxu1 %v2666_v29  ;;  %508 = vmatprep.mubr.bf16.mxu0 %v2678_v36 }
  0x47   : > { %701 = vmatprep.mubr.bf16.mxu1 %v228_v37  ;;  %2174 = vmatpush3.bf16.msra.mxu0 %v2419_v16  ;;  %v1893_v37 = vld [vmem:[%s2569_s6 + $0x1d] sm:$0xff] }
  0x48   : > { %2238 = vmatpush3.bf16.msra.mxu1 %v2420_v17  ;;  %2175 = vmatprep.subr.bf16.mxu0 %v2421_v27  ;;  %v1071_v42 = vpack.c.bf16 %v1894_v38, %v1893_v37  ;;  %v1832_v16 = vld [vmem:[%s2569_s6 + $0x3f] sm:$0xff]  ;;  %v1833_v17 = vld [vmem:[%s2569_s6 + $0x47] sm:$0xff]  ;;  %v1075_v27 = vpack.c.bf16 %v1902_v22, %v1901_v21 }
  0x49   : > { %2239 = vmatprep.subr.bf16.mxu1 %v2422_v28  ;;  %v2432_v28 = vld [vmem:[%s3026_s1 + $0x200] sm:$0xff]  }
  0x4b   : > { %2176 = vmatpush3.bf16.msra.mxu0 %v2423_v30  ;;  %v1834_v30 = vld [vmem:[%s2569_s6 + $0x4f] sm:$0xff] }
  0x4c   : > { %2240 = vmatpush3.bf16.msra.mxu1 %v2424_v33  ;;  %2305 = vmatprep.subr.bf16.mxu0 %v2425_v40  ;;  %v1885_v33 = vld [vmem:[%s2569_s6 + $0x64] sm:$0xff]  ;;  %v756_v37 = vpack.c.bf16 %v1835_v31, %v1834_v30 }
  0x4d   : > { %509 = vmatmul.mubr.bf16.gmra.mxu0 %v286_v44  ;;  %2337 = vmatprep.subr.bf16.mxu1 %v2425_v40  ;;  %v1827_v44 = vld [vmem:[%s2569_s6 + $0x17] sm:$0xff]  ;;  %v1049_v38 = vpack.c.bf16 %v1885_v33, %v1884_v32 }
  0x4e   : > { %702 = vmatmul.mubr.bf16.gmra.mxu1 %v2695_v46  ;;  %516 = vmatprep.mubr.bf16.mxu0 %v2702_v50  ;;  %v752_v49 = vpack.c.bf16 %v1827_v44, %v1826_v43  ;;  %v1887_v43 = vld [vmem:[%s2569_s6 + $0x74] sm:$0xff]  ;;  %v1905_v44 = vld [vmem:[%s2569_s6 + $0x7d] sm:$0xff] }
  0x4f   : > { %709 = vmatprep.mubr.bf16.mxu1 %v229_v54  ;;  %v1072_v54 = vpack.c.bf16 %v1896_v51, %v1895_v48  ;;  %v1839_v51 = vld [vmem:[%s2569_s6 + $0x77] sm:$0xff] }
  0x55   : > { %517 = vmatmul.mubr.bf16.gmra.mxu0 %v287_v0  ;;  %v1046_v0 = vpack.c.bf16 %v1879_v58, %v1878_v57  ;;  %v1908_v57 = vld [vmem:[%s2569_s6 + $0x95] sm:$0xff] }
  0x56   : > { %710 = vmatmul.mubr.bf16.gmra.mxu1 %v2727_v5  ;;  %524 = vmatprep.mubr.bf16.mxu0 %v2729_v6 }
  0x57   : > { %717 = vmatprep.mubr.bf16.mxu1 %v230_v8  ;;  %v1881_v8 = vld [vmem:[%s2569_s6 + $0x44] sm:$0xff] }
  0x5d   : > { %525 = vmatmul.mubr.bf16.gmra.mxu0 %v288_v23  ;;  %v2431_v23 = vld [vmem:[%s3026_s1 + $0x208] sm:$0xff]  }
  0x5e   : > { %718 = vmatmul.mubr.bf16.gmra.mxu1 %v2754_v24  ;;  %532 = vmatprep.mubr.bf16.mxu0 %v2756_v25 }
  0x5f   : > { %725 = vmatprep.mubr.bf16.mxu1 %v231_v26  ;;  %v755_v26 = vpack.c.bf16 %v1833_v17, %v1832_v16 }
  0x65   : > { %533 = vmatmul.mubr.bf16.gmra.mxu0 %v289_v39  ;;  %v1836_v39 = vld [vmem:[%s2569_s6 + $0x5f] sm:$0xff] }
  0x66   : > { %726 = vmatmul.mubr.bf16.gmra.mxu1 %v2781_v41  ;;  %946 = vmatprep.mubr.bf16.mxu0 %v2608_v59  ;;  %v1829_v59 = vld [vmem:[%s2569_s6 + $0x27] sm:$0xff] }
  0x67   : > { %1239 = vmatprep.mubr.bf16.mxu1 %v1071_v42  ;;  %v753_v63 = vpack.c.bf16 %v1829_v59, %v1828_v56  ;;  %v1886_v42 = vld [vmem:[%s2569_s6 + $0x6c] sm:$0xff] }
  0x68   : > { %v1050_v48 = vpack.c.bf16 %v1887_v43, %v1886_v42  ;;  %v1858_v56 = vld [vmem:[%s2569_s6 + $0x88] sm:$0xff] }
  0x69   : > { %v1907_v59 = vld [vmem:[%s2569_s6 + $0x8d] sm:$0xff] }
  0x6d   : > { %947 = vmatmul.mubr.bf16.vlgmr.msra.gmra.mxu0 %v752_v49  ;;  %v1077_v49 = vpack.c.bf16 %v1906_v45, %v1905_v44 }
  0x6e   : > { %1240 = vmatmul.mubr.bf16.vlgmr.msra.gmra.mxu1 %v1045_v53  ;;  %2306 = vmatpush3.bf16.msra.mxu0 %v2425_v40  ;;  %v1888_v53 = vld [vmem:[%s2569_s6 + $0x7c] sm:$0xff] }
  0x6f   : > { %2345 = vmatpush3.bf16.msra.mxu1 %v2425_v40  ;;  %954 = vmatprep.mubr.bf16.mxu0 %v2637_v12  ;;  %v1073_v12 = vpack.c.bf16 %v1898_v62, %v1897_v61  ;;  %v1837_v40 = vld [vmem:[%s2569_s6 + $0x67] sm:$0xff]  ;;  %v1078_v62 = vpack.c.bf16 %v1908_v57, %v1907_v59 }
  0x70   : > { %1247 = vmatprep.mubr.bf16.mxu1 %v1072_v54  ;;  %2307 = vmatprep.subr.bf16.mxu0 %v2426_v55  ;;  %v757_v47 = vpack.c.bf16 %v1837_v40, %v1836_v39  ;;  %v1889_v54 = vld [vmem:[%s2569_s6 + $0x84] sm:$0xff] }
  0x71   : > { %2338 = vmatprep.subr.bf16.mxu1 %v2426_v55 }
  0x72   : > { %2308 = vmatpush3.bf16.msra.mxu0 %v2426_v55 }
  0x73   : > { %2346 = vmatpush3.bf16.msra.mxu1 %v2426_v55  ;;  %2309 = vmatprep.subr.bf16.mxu0 %v2427_v60  ;;  %v1857_v55 = vld [vmem:[%s2569_s6 + $0x80] sm:$0xff] }
  0x74   : > { %2339 = vmatprep.subr.bf16.mxu1 %v2427_v60  ;;  %v785_v61 = vpack.c.bf16 %v1858_v56, %v1857_v55 }
  0x75   : > { %955 = vmatmul.mubr.bf16.gmra.mxu0 %v753_v63  ;;  %v1841_v63 = vld [vmem:[%s2569_s6 + $0x87] sm:$0xff] }
  0x76   : > { %1248 = vmatmul.mubr.bf16.gmra.mxu1 %v1046_v0  ;;  %962 = vmatprep.mubr.bf16.mxu0 %v2666_v29  ;;  %v1047_v29 = vpack.c.bf16 %v1881_v8, %v1880_v7  ;;  %v1890_v0 = vld [vmem:[%s2569_s6 + $0x8c] sm:$0xff]  ;;  %v1941_v7 = vld [vmem:[%s2569_s6 + $0x96] sm:$0xff] }
  0x77   : > { %1255 = vmatprep.mubr.bf16.mxu1 %v1073_v12  ;;  %2310 = vmatpush3.bf16.msra.mxu0 %v2427_v60  ;;  %v1891_v12 = vld [vmem:[%s2569_s6 + $0x94] sm:$0xff]  ;;  %v1345_v8 = vpack.c.bf16 %v1941_v7, %v1940_v4 }
  0x78   : > { %2347 = vmatpush3.bf16.msra.mxu1 %v2427_v60  ;;  %2311 = vmatprep.subr.bf16.mxu0 %v2428_v1  ;;  %v1051_v60 = vpack.c.bf16 %v1889_v54, %v1888_v53  ;;  %v1052_v3 = vpack.c.bf16 %v1891_v12, %v1890_v0 }
  0x79   : > { %2340 = vmatprep.subr.bf16.mxu1 %v2428_v1 }
  0x7b   : > { %2312 = vmatpush3.bf16.msra.mxu0 %v2428_v1 }
  0x7c   : > { %2348 = vmatpush3.bf16.msra.mxu1 %v2428_v1  ;;  %2313 = vmatprep.subr.bf16.mxu0 %v2429_v11 }
  0x7d   : > { %963 = vmatmul.mubr.bf16.gmra.mxu0 %v754_v13  ;;  %2341 = vmatprep.subr.bf16.mxu1 %v2429_v11 }
  0x7e   : > { %1256 = vmatmul.mubr.bf16.gmra.mxu1 %v1047_v29  ;;  %970 = vmatprep.mubr.bf16.mxu0 %v2695_v46  ;;  %v1048_v46 = vpack.c.bf16 %v1883_v20, %v1882_v18 }
  0x7f   : > { %1263 = vmatprep.mubr.bf16.mxu1 %v1074_v14  ;;  %2314 = vmatpush3.bf16.msra.mxu0 %v2429_v11 }
  0x80   : > { %2349 = vmatpush3.bf16.msra.mxu1 %v2429_v11  ;;  %2315 = vmatprep.subr.bf16.mxu0 %v2430_v15 }
  0x81   : > { %2342 = vmatprep.subr.bf16.mxu1 %v2430_v15 }
  0x83   : > { %2316 = vmatpush3.bf16.msra.mxu0 %v2430_v15 }
  0x84   : > { %2350 = vmatpush3.bf16.msra.mxu1 %v2430_v15  ;;  %2317 = vmatprep.subr.bf16.mxu0 %v2431_v23 }
  0x85   : > { %971 = vmatmul.mubr.bf16.gmra.mxu0 %v755_v26  ;;  %2343 = vmatprep.subr.bf16.mxu1 %v2431_v23 }
  0x86   : > { %1264 = vmatmul.mubr.bf16.gmra.mxu1 %v1048_v46  ;;  %978 = vmatprep.mubr.bf16.mxu0 %v2727_v5  ;;  %v1076_v5 = vpack.c.bf16 %v1904_v35, %v1903_v34 }
  0x87   : > { %1271 = vmatprep.mubr.bf16.mxu1 %v1075_v27  ;;  %2318 = vmatpush3.bf16.msra.mxu0 %v2431_v23 }
  0x88   : > { %2351 = vmatpush3.bf16.msra.mxu1 %v2431_v23  ;;  %2319 = vmatprep.subr.bf16.mxu0 %v2432_v28 }
  0x89   : > { %2344 = vmatprep.subr.bf16.mxu1 %v2432_v28 }
  0x8b   : > { %2320 = vmatpush3.bf16.msra.mxu0 %v2432_v28 }
  0x8c   : > { %2352 = vmatpush3.bf16.msra.mxu1 %v2432_v28 }
  0x8d   : > { %979 = vmatmul.mubr.bf16.gmra.mxu0 %v756_v37 }
  0x8e   : > { %1272 = vmatmul.mubr.bf16.gmra.mxu1 %v1049_v38  ;;  %986 = vmatprep.mubr.bf16.mxu0 %v2754_v24  ;;  %v1838_v24 = vld [vmem:[%s2569_s6 + $0x6f] sm:$0xff] }
  0x8f   : > { %1279 = vmatprep.mubr.bf16.mxu1 %v1076_v5  ;;  %v758_v58 = vpack.c.bf16 %v1839_v51, %v1838_v24 }
  0x95   : > { %987 = vmatmul.mubr.bf16.gmra.mxu0 %v757_v47 }
  0x96   : > { %1280 = vmatmul.mubr.bf16.gmra.mxu1 %v1050_v48  ;;  %994 = vmatprep.mubr.bf16.mxu0 %v2781_v41  ;;  %v1840_v41 = vld [vmem:[%s2569_s6 + $0x7f] sm:$0xff]  ;;  %s2939_s6 = sshll.u32 %s1735_s16, 4 }
  0x97   : > { %1287 = vmatprep.mubr.bf16.mxu1 %v1077_v49  ;;  %v759_v1 = vpack.c.bf16 %v1841_v63, %v1840_v41  ;;  %p174_p3 = scmp.lt.s32.totalorder %s2939_s6, 95 }
  0x99   : > { %s3059_s6 = smov (!%p174_p3, %s2939_s6), 95 }
  0x9a   : > { %s1740_s27 = sshll.u32 %s3059_s6, 2 }
  0x9b   : > { %s2993_s30 = scalar_lea.vmem %s3029_s4, %s1740_s27 }
  0x9d   : > { %995 = vmatmul.mubr.bf16.gmra.mxu0 %v758_v58 }
  0x9e   : > { %1288 = vmatmul.mubr.bf16.gmra.mxu1 %v1051_v60  ;;  %1002 = vmatprep.mubr.bf16.mxu0 %v785_v61 }
  0x9f   : > { %1295 = vmatprep.mubr.bf16.mxu1 %v1078_v62 }
  0xa5   : > { %1003 = vmatmul.mubr.bf16.gmra.mxu0 %v759_v1 }
  0xa6   : > { %1296 = vmatmul.mubr.bf16.gmra.mxu1 %v1052_v3  ;;  %2321 = vmatprep.mubr.bf16.mxu0 %v2601_v52 }
  0xa7   : > { %2329 = vmatprep.mubr.bf16.mxu1 %v2702_v50 }
  0xad   : > { %2322 = vmatmul.mubr.bf16.vlgmr.msra.gmra.mxu0 %v2625_v2 }
  0xae   : > { %2330 = vmatmul.mubr.bf16.vlgmr.msra.gmra.mxu1 %v2729_v6  ;;  %2325 = vmatprep.mubr.bf16.mxu0 %v2652_v19 }
  0xaf   : > { %2333 = vmatprep.mubr.bf16.mxu1 %v2756_v25 }
  0xb5   : > { %2326 = vmatmul.mubr.bf16.gmra.mxu0 %v2678_v36 }
  0xb6   : > { %2334 = vmatmul.mubr.bf16.gmra.mxu1 %v1345_v8 }
  0xed   : > { %v2049_v9 = vpop.f32.mrf.mxu0 }
  0xee   : > { %v2113_v10 = vpop.f32.mrf.mxu1 }
  0xef   : > { %v2050_v11 = vpop.f32.mrf.mxu0 }
  0xf0   : > { %v2051_v52 = vadd.f32 %v2050_v11, %v2049_v9  ;;  %v2114_v13 = vpop.f32.mrf.mxu1 }
  0xf1   : > { %v2115_v50 = vadd.f32 %v2114_v13, %v2113_v10  ;;  %v2052_v29 = vpop.f32.mrf.mxu0 }
  0xf2   : > { %v2116_v2 = vpop.f32.mrf.mxu1 }
  0xf3   : > { %v2869_v14 = vadd.f32 %v2115_v50, %v2051_v52  ;;  %v2053_v6 = vpop.f32.mrf.mxu0 }
  0xf4   : > { %v2054_v19 = vadd.f32 %v2053_v6, %v2052_v29  ;;  %v2117_v15 = vpop.f32.mrf.mxu1 }
  0xf5   : > { %v2118_v25 = vadd.f32 %v2117_v15, %v2116_v2  ;;  %v2055_v16 = vpop.f32.mrf.mxu0 }
  0xf6   : > { %v2119_v17 = vpop.f32.mrf.mxu1 }
  0xf7   : > { %v2871_v18 = vadd.f32 %v2118_v25, %v2054_v19  ;;  %v2056_v36 = vpop.f32.mrf.mxu0 }
  0xf8   : > { %v2057_v20 = vadd.f32 %v2056_v36, %v2055_v16  ;;  %v2120_v21 = vpop.f32.mrf.mxu1 }
  0xf9   : > { %v2121_v22 = vadd.f32 %v2120_v21, %v2119_v17  ;;  %v2058_v23 = vpop.f32.mrf.mxu0 }
  0xfa   : > { %v2122_v26 = vpop.f32.mrf.mxu1 }
  0xfb   : > { %v2873_v46 = vadd.f32 %v2121_v22, %v2057_v20  ;;  %v2059_v27 = vpop.f32.mrf.mxu0 }
  0xfc   : > { %v2060_v28 = vadd.f32 %v2059_v27, %v2058_v23  ;;  %v2123_v30 = vpop.f32.mrf.mxu1 }
  0xfd   : > { %v2124_v31 = vadd.f32 %v2123_v30, %v2122_v26  ;;  %v2061_v32 = vpop.f32.mrf.mxu0 }
  0xfe   : > { %v2125_v33 = vpop.f32.mrf.mxu1 }
  0xff   : > { %v2875_v34 = vadd.f32 %v2124_v31, %v2060_v28  ;;  %v2062_v35 = vpop.f32.mrf.mxu0 }
 0x100   : > { %v2063_v37 = vadd.f32 %v2062_v35, %v2061_v32  ;;  %v2126_v38 = vpop.f32.mrf.mxu1 }
 0x101   : > { %v2127_v5 = vadd.f32 %v2126_v38, %v2125_v33  ;;  %v2064_v39 = vpop.f32.mrf.mxu0 }
 0x102   : > { %v2128_v40 = vpop.f32.mrf.mxu1 }
 0x103   : > { %v2877_v42 = vadd.f32 %v2127_v5, %v2063_v37  ;;  %v2065_v43 = vpop.f32.mrf.mxu0 }
 0x104   : > { %v2066_v44 = vadd.f32 %v2065_v43, %v2064_v39  ;;  %v2129_v45 = vpop.f32.mrf.mxu1 }
 0x105   : > { %v2130_v47 = vadd.f32 %v2129_v45, %v2128_v40  ;;  %v2067_v48 = vpop.f32.mrf.mxu0 }
 0x106   : > { %v2131_v49 = vpop.f32.mrf.mxu1 }
 0x107   : > { %v2879_v24 = vadd.f32 %v2130_v47, %v2066_v44  ;;  %v2068_v51 = vpop.f32.mrf.mxu0 }
 0x108   : > { %v2069_v53 = vadd.f32 %v2068_v51, %v2067_v48  ;;  %v2132_v54 = vpop.f32.mrf.mxu1 }
 0x109   : > { %v2133_v55 = vadd.f32 %v2132_v54, %v2131_v49  ;;  %v2070_v56 = vpop.f32.mrf.mxu0 }
 0x10a   : > { %v2134_v59 = vpop.f32.mrf.mxu1 }
 0x10b   : > { %v2881_v57 = vadd.f32 %v2133_v55, %v2069_v53  ;;  %v2071_v58 = vpop.f32.mrf.mxu0 }
 0x10c   : > { %v2072_v60 = vadd.f32 %v2071_v58, %v2070_v56  ;;  %v2135_v61 = vpop.f32.mrf.mxu1 }
 0x10d   : > { %v2136_v62 = vadd.f32 %v2135_v61, %v2134_v59  ;;  %v2073_v41 = vpop.f32.mrf.mxu0 }
 0x10e   : > { %v2137_v63 = vpop.f32.mrf.mxu1 }
 0x10f   : > { %v2883_v0 = vadd.f32 %v2136_v62, %v2072_v60  ;;  %v2074_v12 = vpop.f32.mrf.mxu0 }
 0x110   : > { %v2075_v1 = vadd.f32 %v2074_v12, %v2073_v41  ;;  %v2138_v3 = vpop.f32.mrf.mxu1 }
 0x111   : > { %v2139_v4 = vadd.f32 %v2138_v3, %v2137_v63  ;;  %v2076_v7 = vpop.f32.mrf.mxu0 }
 0x112   : > { %v2140_v8 = vpop.f32.mrf.mxu1 }
 0x113   : > { %v2885_v9 = vadd.f32 %v2139_v4, %v2075_v1  ;;  %v2077_v10 = vpop.f32.mrf.mxu0 }
 0x114   : > { %v2078_v11 = vadd.f32 %v2077_v10, %v2076_v7  ;;  %v2141_v52 = vpop.f32.mrf.mxu1 }
 0x115   : > { %3030 = vst [vmem:[#allocation2_spill] sm:$0xff] %v2885_v9  ;;  %v2142_v13 = vadd.f32 %v2141_v52, %v2140_v8  ;;  %v2079_v50 = vpop.f32.mrf.mxu0 }
 0x116   : > { %v2143_v29 = vpop.f32.mrf.mxu1 }
 0x117   : > { %v2887_v2 = vadd.f32 %v2142_v13, %v2078_v11  ;;  %v2080_v6 = vpop.f32.mrf.mxu0 }
 0x118   : > { %v2081_v19 = vadd.f32 %v2080_v6, %v2079_v50  ;;  %v2144_v15 = vpop.f32.mrf.mxu1 }
 0x119   : > { %3031 = vst [vmem:[#allocation3_spill] sm:$0xff] %v2887_v2  ;;  %v2145_v25 = vadd.f32 %v2144_v15, %v2143_v29  ;;  %v2082_v16 = vpop.f32.mrf.mxu0 }
 0x11a   : > { %v2146_v17 = vpop.f32.mrf.mxu1 }
 0x11b   : > { %v2889_v36 = vadd.f32 %v2145_v25, %v2081_v19  ;;  %v2083_v20 = vpop.f32.mrf.mxu0 }
 0x11c   : > { %v2084_v21 = vadd.f32 %v2083_v20, %v2082_v16  ;;  %v2147_v22 = vpop.f32.mrf.mxu1 }
 0x11d   : > { %v2148_v23 = vadd.f32 %v2147_v22, %v2146_v17  ;;  %v2085_v26 = vpop.f32.mrf.mxu0 }
 0x11e   : > { %v2149_v27 = vpop.f32.mrf.mxu1 }
 0x11f   : > { %v2891_v28 = vadd.f32 %v2148_v23, %v2084_v21  ;;  %v2086_v30 = vpop.f32.mrf.mxu0 }
 0x120   : > { %v2087_v31 = vadd.f32 %v2086_v30, %v2085_v26  ;;  %v2150_v32 = vpop.f32.mrf.mxu1 }
 0x121   : > { %3032 = vst [vmem:[#allocation4_spill] sm:$0xff] %v2891_v28  ;;  %v2151_v33 = vadd.f32 %v2150_v32, %v2149_v27  ;;  %v2088_v35 = vpop.f32.mrf.mxu0 }
 0x122   : > { %v2152_v37 = vpop.f32.mrf.mxu1 }
 0x123   : > { %v2893_v38 = vadd.f32 %v2151_v33, %v2087_v31  ;;  %v2089_v5 = vpop.f32.mrf.mxu0 }
 0x124   : > { %v2090_v39 = vadd.f32 %v2089_v5, %v2088_v35  ;;  %v2153_v40 = vpop.f32.mrf.mxu1 }
 0x125   : > { %3033 = vst [vmem:[#allocation5_spill] sm:$0xff] %v2893_v38  ;;  %v2154_v43 = vadd.f32 %v2153_v40, %v2152_v37  ;;  %v2091_v44 = vpop.f32.mrf.mxu0 }
 0x126   : > { %v2155_v45 = vpop.f32.mrf.mxu1 }
 0x127   : > { %v2895_v47 = vadd.f32 %v2154_v43, %v2090_v39  ;;  %v2092_v48 = vpop.f32.mrf.mxu0 }
 0x128   : > { %v2093_v49 = vadd.f32 %v2092_v48, %v2091_v44  ;;  %v2156_v51 = vpop.f32.mrf.mxu1 }
 0x129   : > { %3034 = vst [vmem:[#allocation6_spill] sm:$0xff] %v2895_v47  ;;  %v2157_v53 = vadd.f32 %v2156_v51, %v2155_v45  ;;  %v2094_v54 = vpop.f32.mrf.mxu0 }
 0x12a   : > { %v2158_v55 = vpop.f32.mrf.mxu1 }
 0x12b   : > { %v2897_v56 = vadd.f32 %v2157_v53, %v2093_v49  ;;  %v2095_v59 = vpop.f32.mrf.mxu0 }
 0x12c   : > { %v2096_v58 = vadd.f32 %v2095_v59, %v2094_v54  ;;  %v2159_v60 = vpop.f32.mrf.mxu1 }
 0x12d   : > { %3035 = vst [vmem:[#allocation7_spill] sm:$0xff] %v2897_v56  ;;  %v2160_v61 = vadd.f32 %v2159_v60, %v2158_v55  ;;  %v2177_v62 = vpop.f32.mrf.mxu0 }
 0x12e   : > { %v2241_v41 = vpop.f32.mrf.mxu1 }
 0x12f   : > { %v2899_v63 = vadd.f32 %v2160_v61, %v2096_v58  ;;  %v2178_v12 = vpop.f32.mrf.mxu0 }
 0x130   : > { %v2179_v1 = vadd.f32 %v2178_v12, %v2177_v62  ;;  %v2242_v3 = vpop.f32.mrf.mxu1 }
 0x131   : > { %3036 = vst [vmem:[#allocation8_spill] sm:$0xff] %v2899_v63  ;;  %v2180_v4 = vpop.f32.mrf.mxu0  ;;  %v2243_v8 = vadd.f32 %v2242_v3, %v2241_v41 }
 0x132   : > { %v1011_v7 = vadd.f32 %v2179_v1, %v2869_v14  ;;  %v2244_v10 = vpop.f32.mrf.mxu1 }
 0x133   : > { %v2181_v11 = vpop.f32.mrf.mxu0 }
 0x134   : > { %v2245_v52 = vpop.f32.mrf.mxu1  ;;  %v2902_v13 = vadd.f32 %v2243_v8, %v1011_v7  ;;  %v2182_v8 = vadd.f32 %v2181_v11, %v2180_v4 }
 0x135   : > { %v2183_v50 = vpop.f32.mrf.mxu0 }
 0x136   : > { %3037 = vst [vmem:[#allocation9_spill] sm:$0xff] %v2902_v13  ;;  %v2247_v29 = vpop.f32.mrf.mxu1 }
 0x137   : > { %v2184_v6 = vpop.f32.mrf.mxu0 }
 0x138   : > { %v2248_v19 = vpop.f32.mrf.mxu1  ;;  %v2185_v63 = vadd.f32 %v2184_v6, %v2183_v50 }
 0x139   : > { %v2186_v15 = vpop.f32.mrf.mxu0  ;;  %v2249_v9 = vadd.f32 %v2248_v19, %v2247_v29 }
 0x13a   : > { %v2250_v25 = vpop.f32.mrf.mxu1  ;;  %v1013_v2 = vadd.f32 %v2185_v63, %v2873_v46 }
 0x13b   : > { %v2187_v16 = vpop.f32.mrf.mxu0 }
 0x13c   : > { %v2251_v17 = vpop.f32.mrf.mxu1  ;;  %v2188_v13 = vadd.f32 %v2187_v16, %v2186_v15  ;;  %v1306_v19 = vadd.f32 %v2249_v9, %v1013_v2 }
 0x13d   : > { %v2189_v20 = vpop.f32.mrf.mxu0 }
 0x13e   : > { %v2253_v21 = vpop.f32.mrf.mxu1  ;;  %v1014_v4 = vadd.f32 %v2188_v13, %v2875_v34 }
 0x13f   : > { %v2190_v22 = vpop.f32.mrf.mxu0 }
 0x140   : > { %v2254_v23 = vpop.f32.mrf.mxu1 }
 0x141   : > { %v2192_v26 = vpop.f32.mrf.mxu0 }
 0x142   : > { %v2256_v14 = vpop.f32.mrf.mxu1 }
 0x143   : > { %v2193_v27 = vpop.f32.mrf.mxu0 }
 0x144   : > { %v2257_v30 = vpop.f32.mrf.mxu1  ;;  %v2194_v38 = vadd.f32 %v2193_v27, %v2192_v26  ;;  %v2252_v26 = vadd.f32 %v2251_v17, %v2250_v25 }
 0x145   : > { %v2195_v31 = vpop.f32.mrf.mxu0  ;;  %v2258_v46 = vadd.f32 %v2257_v30, %v2256_v14  ;;  %v3045_v14 = vld [vmem:[#allocation3_spill] sm:$0xff] }
 0x146   : > { %v2259_v32 = vpop.f32.mrf.mxu1  ;;  %v1016_v15 = vadd.f32 %v2194_v38, %v2879_v24  ;;  %v1307_v24 = vadd.f32 %v2252_v26, %v1014_v4 }
 0x147   : > { %v2196_v33 = vpop.f32.mrf.mxu0 }
 0x148   : > { %v2260_v35 = vpop.f32.mrf.mxu1 }
 0x149   : > { %v2198_v37 = vpop.f32.mrf.mxu0  ;;  %v2261_v63 = vadd.f32 %v2260_v35, %v2259_v32  ;;  %v3046_v35 = vld [vmem:[#allocation4_spill] sm:$0xff] }
 0x14a   : > { %v2904_v5 = vpop.f32.mrf.mxu1 }
 0x14b   : > { %3038 = vst [vmem:[#allocation10_spill] sm:$0xff] %v2904_v5  ;;  %v2199_v39 = vpop.f32.mrf.mxu0  ;;  %v2246_v5 = vadd.f32 %v2245_v52, %v2244_v10 }
 0x14c   : > { %v2906_v40 = vpop.f32.mrf.mxu1 }
 0x14d   : > { %3039 = vst [vmem:[#allocation11_spill] sm:$0xff] %v2906_v40  ;;  %v2201_v43 = vpop.f32.mrf.mxu0  ;;  %v1012_v40 = vadd.f32 %v2182_v8, %v2871_v18 }
 0x14e   : > { %v2908_v44 = vpop.f32.mrf.mxu1 }
 0x14f   : > { %3040 = vst [vmem:[#allocation12_spill] sm:$0xff] %v2908_v44  ;;  %v2202_v45 = vpop.f32.mrf.mxu0  ;;  %v1305_v38 = vadd.f32 %v2246_v5, %v1012_v40 }
 0x150   : > { %v2910_v48 = vpop.f32.mrf.mxu1  ;;  %v2203_v18 = vadd.f32 %v2202_v45, %v2201_v43  ;;  %v3051_v45 = vld [vmem:[#allocation5_spill] sm:$0xff] }
 0x151   : > { %3041 = vst [vmem:[#allocation13_spill] sm:$0xff] %v2910_v48  ;;  %v2204_v49 = vpop.f32.mrf.mxu0  ;;  %v2197_v48 = vadd.f32 %v2196_v33, %v2195_v31  ;;  %v2255_v31 = vadd.f32 %v2254_v23, %v2253_v21  ;;  %v3044_v21 = vld [vmem:[#allocation2_spill] sm:$0xff] }
 0x152   : > { %v2912_v51 = vpop.f32.mrf.mxu1  ;;  %v1019_v23 = vadd.f32 %v2203_v18, %v3044_v21  ;;  %v3047_v9 = vld [vmem:[#allocation10_spill] sm:$0xff] }
 0x153   : > { %3042 = vst [vmem:[#allocation14_spill] sm:$0xff] %v2912_v51  ;;  %v2205_v53 = vpop.f32.mrf.mxu0  ;;  %v2191_v51 = vadd.f32 %v2190_v22, %v2189_v20  ;;  %v1017_v16 = vadd.f32 %v2197_v48, %v2881_v57  ;;  %v2200_v20 = vadd.f32 %v2199_v39, %v2198_v37  ;;  %v2932_v37 = vadd.f32 %v2258_v46, %v1016_v15 }
 0x154   : > { %v2914_v54 = vpop.f32.mrf.mxu1  ;;  %v2206_v10 = vadd.f32 %v2205_v53, %v2204_v49 }
 0x155   : > { %3043 = vst [vmem:[#allocation15_spill] sm:$0xff] %v2914_v54  ;;  %v2207_v55 = vpop.f32.mrf.mxu0  ;;  %v1015_v6 = vadd.f32 %v2191_v51, %v2877_v42  ;;  %v1018_v57 = vadd.f32 %v2200_v20, %v2883_v0  ;;  %v2928_v25 = vadd.f32 %v2261_v63, %v1017_v16  ;;  %v3048_v0 = vld [vmem:[#allocation11_spill] sm:$0xff] }
 0x156   : > { %v2271_v59 = vpop.f32.mrf.mxu1  ;;  %v1020_v30 = vadd.f32 %v2206_v10, %v3045_v14  ;;  %v2264_v2 = vadd.f32 %v3048_v0, %v3047_v9  ;;  %v3049_v5 = vld [vmem:[#allocation12_spill] sm:$0xff] }
 0x157   : > { %v2208_v58 = vpop.f32.mrf.mxu0  ;;  %v2930_v17 = vadd.f32 %v2255_v31, %v1015_v6 }
 0x158   : > { %v2272_v60 = vpop.f32.mrf.mxu1  ;;  %v2209_v11 = vadd.f32 %v2208_v58, %v2207_v55  ;;  %v3050_v40 = vld [vmem:[#allocation13_spill] sm:$0xff]  ;;  %v2954_v6 = vadd.f32 %v2264_v2, %v1018_v57 }
 0x159   : > { %v2210_v61 = vpop.f32.mrf.mxu0  ;;  %v2273_v32 = vadd.f32 %v2272_v60, %v2271_v59  ;;  %v2267_v43 = vadd.f32 %v3050_v40, %v3049_v5 }
 0x15a   : > { %v2274_v62 = vpop.f32.mrf.mxu1  ;;  %v1021_v13 = vadd.f32 %v2209_v11, %v2889_v36  ;;  %v3052_v53 = vld [vmem:[#allocation14_spill] sm:$0xff] }
 0x15b   : > { %v2211_v41 = vpop.f32.mrf.mxu0  ;;  %v1312_v16 = vadd.f32 %v2267_v43, %v1019_v23 }
 0x15c   : > { %v2275_v12 = vpop.f32.mrf.mxu1  ;;  %v2212_v52 = vadd.f32 %v2211_v41, %v2210_v61  ;;  %v3053_v55 = vld [vmem:[#allocation15_spill] sm:$0xff]  ;;  %v2951_v41 = vld [vmem:[%s3027_s2] ss:$0 sm:$0xff] }
 0x15d   : > { %v2213_v1 = vpop.f32.mrf.mxu0  ;;  %v2270_v59 = vadd.f32 %v3053_v55, %v3052_v53  ;;  %v2276_v58 = vadd.f32 %v2275_v12, %v2274_v62  ;;  %v3054_v12 = vld [vmem:[#allocation7_spill] sm:$0xff] }
 0x15e   : > { %v2277_v3 = vpop.f32.mrf.mxu1  ;;  %v1022_v36 = vadd.f32 %v2212_v52, %v3046_v35 }
 0x15f   : > { %v2214_v7 = vpop.f32.mrf.mxu0  ;;  %v1313_v62 = vadd.f32 %v2270_v59, %v1020_v30 }
 0x160   : > { %v2278_v47 = vpop.f32.mrf.mxu1  ;;  %v2215_v29 = vadd.f32 %v2214_v7, %v2213_v1  ;;  %v1314_v1 = vadd.f32 %v2273_v32, %v1021_v13  ;;  %v1315_v20 = vadd.f32 %v2276_v58, %v1022_v36  ;;  %v3057_v13 = vld [vmem:[#allocation6_spill] sm:$0xff] }
 0x161   : > { %v2216_v56 = vpop.f32.mrf.mxu0  ;;  %v2279_v7 = vadd.f32 %v2278_v47, %v2277_v3  ;;  %v2961_v47 = vld [vmem:[%s3028_s3] ss:$0 sm:$0xff] }
 0x162   : > { %v2916_v54 = vpop.f32.mrf.mxu1  ;;  %v1023_v48 = vadd.f32 %v2215_v29, %v3051_v45 }
 0x163   : > { %v2217_v44 = vpop.f32.mrf.mxu0 }
 0x164   : > { %v2919_v28 = vpop.f32.mrf.mxu1  ;;  %v2218_v8 = vadd.f32 %v2217_v44, %v2216_v56  ;;  %v3055_v56 = vld [vmem:[#allocation9_spill] sm:$0xff]  ;;  %v1316_v10 = vadd.f32 %v2279_v7, %v1023_v48 }
 0x165   : > { %v2219_v50 = vpop.f32.mrf.mxu0  ;;  %v2282_v52 = vadd.f32 %v2919_v28, %v2916_v54 }
 0x166   : > { %v2283_v22 = vpop.f32.mrf.mxu1 }
 0x167   : > { %v2220_v27 = vpop.f32.mrf.mxu0 }
 0x168   : > { %v2284_v34 = vpop.f32.mrf.mxu1  ;;  %v2221_v49 = vadd.f32 %v2220_v27, %v2219_v50  ;;  %v3056_v27 = vld [vmem:[#allocation8_spill] sm:$0xff] }
 0x169   : > { %v2222_v42 = vpop.f32.mrf.mxu0 }
 0x16a   : > { %v2286_v33 = vpop.f32.mrf.mxu1  ;;  %v1025_v26 = vadd.f32 %v2221_v49, %v3054_v12 }
 0x16b   : > { %v2223_v39 = vpop.f32.mrf.mxu0 }
 0x16c   : > { %v2287_v51 = vpop.f32.mrf.mxu1  ;;  %v2224_v60 = vadd.f32 %v2223_v39, %v2222_v42  ;;  %v1024_v42 = vadd.f32 %v2218_v8, %v3057_v13 }
 0x16d   : > { %v2323_v61 = vpop.f32.mrf.mxu0  ;;  %v2288_v14 = vadd.f32 %v2287_v51, %v2286_v33 }
 0x16e   : > { %v1509_v4 = vadd.f32 %v2323_v61, %v1306_v19  ;;  %v2331_v11 = vpop.f32.mrf.mxu1  ;;  %v1026_v31 = vadd.f32 %v2224_v60, %v3056_v27  ;;  %v2285_v19 = vadd.f32 %v2284_v34, %v2283_v22  ;;  %v1317_v27 = vadd.f32 %v2282_v52, %v1024_v42 }
 0x16f   : > { %v1517_v50 = vadd.f32 %v2331_v11, %v1314_v1  ;;  %v1444_v15 = vpop.f32.mrf.mxu0 }
 0x170   : > { %v1532_v18 = vmul.f32 %v2951_v41, %v1509_v4  ;;  %v1507_v44 = vadd.f32 %v1444_v15, %v3055_v56  ;;  %v1476_v3 = vpop.f32.mrf.mxu1  ;;  %v1318_v39 = vadd.f32 %v2285_v19, %v1025_v26  ;;  %v1319_v2 = vadd.f32 %v2288_v14, %v1026_v31 }
 0x171   : > { %v1540_v46 = vmul.f32 %v2951_v41, %v1517_v50  ;;  %v1515_v63 = vadd.f32 %v1476_v3, %v1312_v16  ;;  %v2324_v29 = vpop.f32.mrf.mxu0 }
 0x172   : > { %v1530_v57 = vmul.f32 %v2951_v41, %v1507_v44  ;;  %v1510_v21 = vadd.f32 %v2324_v29, %v1307_v24  ;;  %v2332_v23 = vpop.f32.mrf.mxu1  ;;  %v1555_v28 = vadd.f32 %v2961_v47, %v1532_v18 }
 0x173   : > { %v1538_v54 = vmul.f32 %v2951_v41, %v1515_v63  ;;  %v1518_v30 = vadd.f32 %v2332_v23, %v1315_v20  ;;  %v1447_v32 = vpop.f32.mrf.mxu0  ;;  %v1563_v35 = vadd.f32 %v2961_v47, %v1540_v46 }
 0x174   : > { %v1533_v36 = vmul.f32 %v2951_v41, %v1510_v21  ;;  %v1508_v22 = vadd.f32 %v1447_v32, %v1305_v38  ;;  %v1479_v34 = vpop.f32.mrf.mxu1  ;;  %v1553_v9 = vadd.f32 %v2961_v47, %v1530_v57  ;;  %v1571_v38 = vmax.f32 %v1555_v28, 0.0 }
 0x175   : > { %v1541_v24 = vmul.f32 %v2951_v41, %v1518_v30  ;;  %v1516_v0 = vadd.f32 %v1479_v34, %v1313_v62  ;;  %v2327_v33 = vpop.f32.mrf.mxu0  ;;  %v1561_v5 = vadd.f32 %v2961_v47, %v1538_v54  ;;  %v1579_v59 = vmax.f32 %v1563_v35, 0.0 }
 0x176   : > { %v1556_v40 = vadd.f32 %v2961_v47, %v1533_v36  ;;  %v1531_v43 = vmul.f32 %v2951_v41, %v1508_v22  ;;  %v1513_v45 = vadd.f32 %v2327_v33, %v2928_v25  ;;  %v2335_v48 = vpop.f32.mrf.mxu1  ;;  %v1569_v7 = vmax.f32 %v1553_v9, 0.0 }
 0x177   : > { %v1564_v49 = vadd.f32 %v2961_v47, %v1541_v24  ;;  %v1539_v51 = vmul.f32 %v2951_v41, %v1516_v0  ;;  %v1521_v53 = vadd.f32 %v2335_v48, %v1318_v39  ;;  %v1460_v55 = vpop.f32.mrf.mxu0  ;;  %v1577_v50 = vmax.f32 %v1561_v5, 0.0 }
 0x178   : > { %v1572_v58 = vmax.f32 %v1556_v40, 0.0  ;;  %v1554_v60 = vadd.f32 %v2961_v47, %v1531_v43  ;;  %v1511_v61 = vadd.f32 %v1460_v55, %v2930_v17  ;;  %v1492_v1 = vpop.f32.mrf.mxu1  ;;  %v1536_v20 = vmul.f32 %v2951_v41, %v1513_v45 }
 0x179   : > { %v1580_v25 = vmax.f32 %v1564_v49, 0.0  ;;  %v1562_v8 = vadd.f32 %v2961_v47, %v1539_v51  ;;  %v1519_v4 = vadd.f32 %v1492_v1, %v1316_v10  ;;  %v2328_v11 = vpop.f32.mrf.mxu0  ;;  %v1544_v26 = vmul.f32 %v2951_v41, %v1521_v53 }
 0x17a   : > { %v1994_v15 = vpack.c.bf16 %v1572_v58, %v1571_v38  ;;  %v1570_v16 = vmax.f32 %v1554_v60, 0.0  ;;  %v2336_v17 = vpop.f32.mrf.mxu1  ;;  %v1534_v18 = vmul.f32 %v2951_v41, %v1511_v61  ;;  %v1514_v10 = vadd.f32 %v2328_v11, %v2954_v6 }
 0x17b   : > { %v2014_v62 = vpack.c.bf16 %v1580_v25, %v1579_v59  ;;  %v1578_v12 = vmax.f32 %v1562_v8, 0.0  ;;  %v1463_v56 = vpop.f32.mrf.mxu0  ;;  %v1542_v3 = vmul.f32 %v2951_v41, %v1519_v4  ;;  %v1522_v63 = vadd.f32 %v2336_v17, %v1319_v2 }
 0x17c   : > { %2026 = vst [vmem:[%s2993_s30 + $0x8] sm:$0xff] %v1994_v15   ;;  %v1989_v44 = vpack.c.bf16 %v1570_v16, %v1569_v7  ;;  %v1495_v31 = vpop.f32.mrf.mxu1  ;;  %v1559_v29 = vadd.f32 %v2961_v47, %v1536_v20  ;;  %v1537_v13 = vmul.f32 %v2951_v41, %v1514_v10  ;;  %v1512_v19 = vadd.f32 %v1463_v56, %v2932_v37 }
 0x17d   : > { %2030 = vst [vmem:[%s2993_s30 + $0x28] sm:$0xff] %v2014_v62   ;;  %v2009_v46 = vpack.c.bf16 %v1578_v12, %v1577_v50  ;;  %v1520_v57 = vadd.f32 %v1495_v31, %v1317_v27  ;;  %v1567_v21 = vadd.f32 %v2961_v47, %v1544_v26  ;;  %v1557_v23 = vadd.f32 %v2961_v47, %v1534_v18 }
 0x17e   : > { %1990 = vst [vmem:[%s2993_s30] sm:$0xff] %v1989_v44   ;;  %v1545_v6 = vmul.f32 %v2951_v41, %v1522_v63  ;;  %v1565_v52 = vadd.f32 %v2961_v47, %v1542_v3  ;;  %v1560_v42 = vadd.f32 %v2961_v47, %v1537_v13  ;;  %v1535_v14 = vmul.f32 %v2951_v41, %v1512_v19 }
 0x17f   : > { %2029 = vst [vmem:[%s2993_s30 + $0x20] sm:$0xff] %v2009_v46   ;;  %v1543_v28 = vmul.f32 %v2951_v41, %v1520_v57  ;;  %v1575_v37 = vmax.f32 %v1559_v29, 0.0  ;;  %v1583_v36 = vmax.f32 %v1567_v21, 0.0  ;;  %v1573_v22 = vmax.f32 %v1557_v23, 0.0 }
 0x180   : > { %v1568_v54 = vadd.f32 %v2961_v47, %v1545_v6  ;;  %v1576_v30 = vmax.f32 %v1560_v42, 0.0  ;;  %v1558_v32 = vadd.f32 %v2961_v47, %v1535_v14  ;;  %v1581_v39 = vmax.f32 %v1565_v52, 0.0 }
 0x181   : > { %v1566_v35 = vadd.f32 %v2961_v47, %v1543_v28 }
 0x182   : > { %v1584_v34 = vmax.f32 %v1568_v54, 0.0  ;;  %v2004_v9 = vpack.c.bf16 %v1576_v30, %v1575_v37  ;;  %v1574_v24 = vmax.f32 %v1558_v32, 0.0 }
 0x183   : > { %v1582_v0 = vmax.f32 %v1566_v35, 0.0 }
 0x184   : > { %v2024_v33 = vpack.c.bf16 %v1584_v34, %v1583_v36  ;;  %2028 = vst [vmem:[%s2993_s30 + $0x18] sm:$0xff] %v2004_v9   ;;  %v1999_v41 = vpack.c.bf16 %v1574_v24, %v1573_v22 }
 0x185   : > { %v2019_v2 = vpack.c.bf16 %v1582_v0, %v1581_v39 }
 0x186   : > { %2032 = vst [vmem:[%s2993_s30 + $0x38] sm:$0xff] %v2024_v33   ;;  %2027 = vst [vmem:[%s2993_s30 + $0x10] sm:$0xff] %v1999_v41  }
 0x187   : > { %2031 = vst [vmem:[%s2993_s30 + $0x30] sm:$0xff] %v2019_v2  }
 0x188 PF: > { %s14_s15 = sadd.s32 1, %s2439_s15  }
 0x189   : > { %p11_p4 = scmp.ge.s32.totalorder %s14_s15, 8  }
 0x18b   :  { %13 = sbr.rel (!%p11_p4) target bundleno = 1 (0x1), region = 72 }

// kernel: _lambda_.18
= control target key start
LH: loop header
LB: loop body
LE: loop exit
PB: predicated region body
PF: predicated region fallthrough
CT: control target
= control target key end

     0   :  { %s3752_s1 = inlined_call_operand.vmem [shape: bf16[128,128], index: 1, kind: input, shape index: {}]   ;;  %s3753_s3 = inlined_call_operand.vmem [shape: bf16[128,128], index: 3, kind: input, shape index: {}]   ;;  %s3754_s0 = inlined_call_operand.vmem [shape: bf16[576,128], index: 0, kind: input, shape index: {}]   ;;  %s3755_s2 = inlined_call_operand.vmem [shape: bf16[576,128], index: 2, kind: input, shape index: {}]   ;;  %s3756_s6 = inlined_call_operand.vmem [shape: f32[1,128], index: 6, kind: input, shape index: {}]   ;;  %s3757_s4 = inlined_call_operand.vmem [shape: f32[1,128], index: 4, kind: input, shape index: {}]   ;;  %s3758_s7 = inlined_call_operand.vmem [shape: f32[1,128], index: 7, kind: input, shape index: {}]   ;;  %s3759_s5 = inlined_call_operand.vmem [shape: f32[1,128], index: 5, kind: input, shape index: {}]   ;;  %s3760_s8 = inlined_call_operand.vmem [shape: bf16[576,128], index: 8, kind: output, shape index: {}]  }
   0x1   :  { %v2915_v0 = vld [vmem:[%s3752_s1 + $0x38] sm:$0xff]   ;;  %v2917_v2 = vld [vmem:[%s3752_s1 + $0x30] sm:$0xff]   ;;  %v2919_v4 = vld [vmem:[%s3752_s1 + $0x28] sm:$0xff]  }
   0x2   :  { %v2916_v1 = vld [vmem:[%s3753_s3 + $0x38] sm:$0xff]   ;;  %2739 = vmatprep.subr.bf16.mxu0 %v2915_v0  ;;  %v2918_v3 = vld [vmem:[%s3753_s3 + $0x30] sm:$0xff]   ;;  %v2920_v5 = vld [vmem:[%s3753_s3 + $0x28] sm:$0xff]  }
   0x3   :  { %2827 = vmatprep.subr.bf16.mxu1 %v2916_v1  ;;  %2740 = vmatpush3.bf16.msra.mxu0 %v2915_v0  ;;  %v2921_v6 = vld [vmem:[%s3752_s1 + $0x20] sm:$0xff]   ;;  %v2923_v8 = vld [vmem:[%s3752_s1 + $0x18] sm:$0xff]   ;;  %v2925_v10 = vld [vmem:[%s3752_s1 + $0x10] sm:$0xff]  }
   0x4   :  { %2828 = vmatpush3.bf16.msra.mxu1 %v2916_v1  ;;  %2741 = vmatprep.subr.bf16.mxu0 %v2917_v2  ;;  %v2922_v7 = vld [vmem:[%s3753_s3 + $0x20] sm:$0xff]   ;;  %v2924_v9 = vld [vmem:[%s3753_s3 + $0x18] sm:$0xff]   ;;  %v2926_v11 = vld [vmem:[%s3753_s3 + $0x10] sm:$0xff]  }
   0x5   :  { %2829 = vmatprep.subr.bf16.mxu1 %v2918_v3  ;;  %v2931_v12 = vld [vmem:[%s3754_s0] sm:$0xff]   ;;  %v2927_v14 = vld [vmem:[%s3752_s1 + $0x8] sm:$0xff]   ;;  %v2935_v20 = vld [vmem:[%s3754_s0 + $0x10] sm:$0xff]  }
   0x6   :  { %v2932_v13 = vld [vmem:[%s3755_s2] sm:$0xff]   ;;  %2755 = vmatprep.mubr.bf16.mxu0 %v2931_v12  ;;  %v2928_v15 = vld [vmem:[%s3753_s3 + $0x8] sm:$0xff]   ;;  %v2936_v21 = vld [vmem:[%s3755_s2 + $0x10] sm:$0xff]  }
   0x7   :  { %2742 = vmatpush3.bf16.msra.mxu0 %v2917_v2  ;;  %2843 = vmatprep.mubr.bf16.mxu1 %v2932_v13  ;;  %v2929_v16 = vld [vmem:[%s3752_s1] sm:$0xff]   ;;  %v2933_v18 = vld [vmem:[%s3754_s0 + $0x8] sm:$0xff]   ;;  %v2937_v22 = vld [vmem:[%s3754_s0 + $0x18] sm:$0xff]  }
   0x8   :  { %2830 = vmatpush3.bf16.msra.mxu1 %v2918_v3  ;;  %2743 = vmatprep.subr.bf16.mxu0 %v2919_v4  ;;  %v2930_v17 = vld [vmem:[%s3753_s3] sm:$0xff]   ;;  %v2934_v19 = vld [vmem:[%s3755_s2 + $0x8] sm:$0xff]   ;;  %v2938_v23 = vld [vmem:[%s3755_s2 + $0x18] sm:$0xff]  }
   0x9   :  { %2831 = vmatprep.subr.bf16.mxu1 %v2920_v5  ;;  %v2939_v24 = vld [vmem:[%s3754_s0 + $0x20] sm:$0xff]   ;;  %v2941_v26 = vld [vmem:[%s3754_s0 + $0x28] sm:$0xff]   ;;  %v2943_v28 = vld [vmem:[%s3754_s0 + $0x30] sm:$0xff]  }
   0xa   :  { %v2940_v25 = vld [vmem:[%s3755_s2 + $0x20] sm:$0xff]   ;;  %v2942_v27 = vld [vmem:[%s3755_s2 + $0x28] sm:$0xff]   ;;  %v2944_v29 = vld [vmem:[%s3755_s2 + $0x30] sm:$0xff]  }
   0xb   :  { %2744 = vmatpush3.bf16.msra.mxu0 %v2919_v4  ;;  %v2945_v30 = vld [vmem:[%s3754_s0 + $0x38] sm:$0xff]   ;;  %v2947_v32 = vld [vmem:[%s3754_s0 + $0x40] sm:$0xff]   ;;  %v2949_v34 = vld [vmem:[%s3754_s0 + $0x48] sm:$0xff]  }
   0xc   :  { %2832 = vmatpush3.bf16.msra.mxu1 %v2920_v5  ;;  %2745 = vmatprep.subr.bf16.mxu0 %v2921_v6  ;;  %v2946_v31 = vld [vmem:[%s3755_s2 + $0x38] sm:$0xff]   ;;  %v2948_v33 = vld [vmem:[%s3755_s2 + $0x40] sm:$0xff]   ;;  %v2950_v35 = vld [vmem:[%s3755_s2 + $0x48] sm:$0xff]  }
   0xd   :  { %2833 = vmatprep.subr.bf16.mxu1 %v2922_v7  ;;  %v2951_v36 = vld [vmem:[%s3754_s0 + $0x50] sm:$0xff]   ;;  %v2953_v38 = vld [vmem:[%s3754_s0 + $0x58] sm:$0xff]   ;;  %v2955_v40 = vld [vmem:[%s3754_s0 + $0x60] sm:$0xff]  }
   0xe   :  { %v2952_v37 = vld [vmem:[%s3755_s2 + $0x50] sm:$0xff]   ;;  %v2954_v39 = vld [vmem:[%s3755_s2 + $0x58] sm:$0xff]   ;;  %v2956_v41 = vld [vmem:[%s3755_s2 + $0x60] sm:$0xff]  }
   0xf   :  { %2746 = vmatpush3.bf16.msra.mxu0 %v2921_v6  ;;  %v2957_v42 = vld [vmem:[%s3754_s0 + $0x68] sm:$0xff]   ;;  %v2959_v44 = vld [vmem:[%s3754_s0 + $0x70] sm:$0xff]   ;;  %v2961_v46 = vld [vmem:[%s3754_s0 + $0x78] sm:$0xff]  }
  0x10   :  { %2834 = vmatpush3.bf16.msra.mxu1 %v2922_v7  ;;  %2747 = vmatprep.subr.bf16.mxu0 %v2923_v8  ;;  %v2958_v43 = vld [vmem:[%s3755_s2 + $0x68] sm:$0xff]   ;;  %v2960_v45 = vld [vmem:[%s3755_s2 + $0x70] sm:$0xff]   ;;  %v2962_v47 = vld [vmem:[%s3755_s2 + $0x78] sm:$0xff]  }
  0x11   :  { %2835 = vmatprep.subr.bf16.mxu1 %v2924_v9  ;;  %v2963_v48 = vld [vmem:[%s3754_s0 + $0x80] sm:$0xff]   ;;  %v2965_v50 = vld [vmem:[%s3754_s0 + $0x88] sm:$0xff]   ;;  %v2967_v52 = vld [vmem:[%s3754_s0 + $0x90] sm:$0xff]  }
  0x12   :  { %v2964_v49 = vld [vmem:[%s3755_s2 + $0x80] sm:$0xff]   ;;  %v2966_v51 = vld [vmem:[%s3755_s2 + $0x88] sm:$0xff]   ;;  %v2968_v53 = vld [vmem:[%s3755_s2 + $0x90] sm:$0xff]  }
  0x13   :  { %2748 = vmatpush3.bf16.msra.mxu0 %v2923_v8  ;;  %v2969_v54 = vld [vmem:[%s3754_s0 + $0x98] sm:$0xff]   ;;  %v2971_v56 = vld [vmem:[%s3754_s0 + $0xa0] sm:$0xff]   ;;  %v2973_v58 = vld [vmem:[%s3754_s0 + $0xa8] sm:$0xff]  }
  0x14   :  { %2836 = vmatpush3.bf16.msra.mxu1 %v2924_v9  ;;  %2749 = vmatprep.subr.bf16.mxu0 %v2925_v10  ;;  %v2970_v55 = vld [vmem:[%s3755_s2 + $0x98] sm:$0xff]   ;;  %v2972_v57 = vld [vmem:[%s3755_s2 + $0xa0] sm:$0xff]   ;;  %v2974_v59 = vld [vmem:[%s3755_s2 + $0xa8] sm:$0xff]  }
  0x15   :  { %2837 = vmatprep.subr.bf16.mxu1 %v2926_v11  ;;  %v2975_v60 = vld [vmem:[%s3754_s0 + $0xb0] sm:$0xff]   ;;  %v2977_v62 = vld [vmem:[%s3754_s0 + $0xb8] sm:$0xff]   ;;  %v2979_v0 = vld [vmem:[%s3754_s0 + $0xc0] sm:$0xff]  }
  0x16   :  { %v2976_v61 = vld [vmem:[%s3755_s2 + $0xb0] sm:$0xff]   ;;  %v2978_v63 = vld [vmem:[%s3755_s2 + $0xb8] sm:$0xff]   ;;  %v2980_v1 = vld [vmem:[%s3755_s2 + $0xc0] sm:$0xff]  }
  0x17   :  { %2750 = vmatpush3.bf16.msra.mxu0 %v2925_v10  ;;  %v2981_v2 = vld [vmem:[%s3754_s0 + $0xc8] sm:$0xff]   ;;  %v2983_v4 = vld [vmem:[%s3754_s0 + $0xd0] sm:$0xff]   ;;  %v2985_v6 = vld [vmem:[%s3754_s0 + $0xd8] sm:$0xff]  }
  0x18   :  { %2838 = vmatpush3.bf16.msra.mxu1 %v2926_v11  ;;  %2751 = vmatprep.subr.bf16.mxu0 %v2927_v14  ;;  %v2982_v3 = vld [vmem:[%s3755_s2 + $0xc8] sm:$0xff]   ;;  %v2984_v5 = vld [vmem:[%s3755_s2 + $0xd0] sm:$0xff]   ;;  %v2986_v7 = vld [vmem:[%s3755_s2 + $0xd8] sm:$0xff]  }
  0x19   :  { %2839 = vmatprep.subr.bf16.mxu1 %v2928_v15  ;;  %v2987_v8 = vld [vmem:[%s3754_s0 + $0xe0] sm:$0xff]   ;;  %v2989_v10 = vld [vmem:[%s3754_s0 + $0xe8] sm:$0xff]   ;;  %v2991_v12 = vld [vmem:[%s3754_s0 + $0xf0] sm:$0xff]  }
  0x1a   :  { %v2988_v9 = vld [vmem:[%s3755_s2 + $0xe0] sm:$0xff]   ;;  %v2990_v11 = vld [vmem:[%s3755_s2 + $0xe8] sm:$0xff]   ;;  %v2992_v13 = vld [vmem:[%s3755_s2 + $0xf0] sm:$0xff]  }
  0x1b   :  { %2752 = vmatpush3.bf16.msra.mxu0 %v2927_v14  ;;  %v2993_v14 = vld [vmem:[%s3754_s0 + $0xf8] sm:$0xff]  }
  0x1c   :  { %2840 = vmatpush3.bf16.msra.mxu1 %v2928_v15  ;;  %2753 = vmatprep.subr.bf16.mxu0 %v2929_v16  ;;  %v2994_v15 = vld [vmem:[%s3755_s2 + $0xf8] sm:$0xff]  }
  0x1d   :  { %2841 = vmatprep.subr.bf16.mxu1 %v2930_v17 }
  0x1f   :  { %2754 = vmatpush3.bf16.msra.mxu0 %v2929_v16  ;;  %v2995_v16 = vld [vmem:[%s3754_s0 + $0x100] sm:$0xff]  }
  0x20   :  { %2842 = vmatpush3.bf16.msra.mxu1 %v2930_v17  ;;  %v2996_v17 = vld [vmem:[%s3755_s2 + $0x100] sm:$0xff]  }
  0x22   :  { %2756 = vmatmul.mubr.bf16.vlgmr.msra.gmra.mxu0 %v2933_v18  ;;  %v2997_v18 = vld [vmem:[%s3754_s0 + $0x108] sm:$0xff]  }
  0x23   :  { %2844 = vmatmul.mubr.bf16.vlgmr.msra.gmra.mxu1 %v2934_v19  ;;  %2759 = vmatprep.mubr.bf16.mxu0 %v2935_v20  ;;  %v2998_v19 = vld [vmem:[%s3755_s2 + $0x108] sm:$0xff]   ;;  %v2999_v20 = vld [vmem:[%s3754_s0 + $0x110] sm:$0xff]  }
  0x24   :  { %2847 = vmatprep.mubr.bf16.mxu1 %v2936_v21  ;;  %v3000_v21 = vld [vmem:[%s3755_s2 + $0x110] sm:$0xff]  }
  0x2a   :  { %2760 = vmatmul.mubr.bf16.gmra.mxu0 %v2937_v22  ;;  %v3001_v22 = vld [vmem:[%s3754_s0 + $0x118] sm:$0xff]  }
  0x2b   :  { %2848 = vmatmul.mubr.bf16.gmra.mxu1 %v2938_v23  ;;  %2763 = vmatprep.mubr.bf16.mxu0 %v2939_v24  ;;  %v3002_v23 = vld [vmem:[%s3755_s2 + $0x118] sm:$0xff]   ;;  %v3319_v24 = vld [vmem:[%s3756_s6] ss:$0 sm:$0xff] }
  0x2c   :  { %2851 = vmatprep.mubr.bf16.mxu1 %v2940_v25  ;;  %v3324_v25 = vld [vmem:[%s3757_s4] ss:$0 sm:$0xff] }
  0x32   :  { %2764 = vmatmul.mubr.bf16.gmra.mxu0 %v2941_v26 }
  0x33   :  { %2852 = vmatmul.mubr.bf16.gmra.mxu1 %v2942_v27  ;;  %2767 = vmatprep.mubr.bf16.mxu0 %v2943_v28  ;;  %v3329_v27 = vld [vmem:[%s3758_s7] ss:$0 sm:$0xff] }
  0x34   :  { %2855 = vmatprep.mubr.bf16.mxu1 %v2944_v29 }
  0x3a   :  { %2768 = vmatmul.mubr.bf16.gmra.mxu0 %v2945_v30  ;;  %v3335_v30 = vld [vmem:[%s3759_s5] ss:$0 sm:$0xff] }
  0x3b   :  { %2856 = vmatmul.mubr.bf16.gmra.mxu1 %v2946_v31  ;;  %2771 = vmatprep.mubr.bf16.mxu0 %v2947_v32 }
  0x3c   :  { %2859 = vmatprep.mubr.bf16.mxu1 %v2948_v33 }
  0x42   :  { %2772 = vmatmul.mubr.bf16.gmra.mxu0 %v2949_v34 }
  0x43   :  { %2860 = vmatmul.mubr.bf16.gmra.mxu1 %v2950_v35  ;;  %2775 = vmatprep.mubr.bf16.mxu0 %v2951_v36 }
  0x44   :  { %2863 = vmatprep.mubr.bf16.mxu1 %v2952_v37 }
  0x4a   :  { %2776 = vmatmul.mubr.bf16.gmra.mxu0 %v2953_v38 }
  0x4b   :  { %2864 = vmatmul.mubr.bf16.gmra.mxu1 %v2954_v39  ;;  %2779 = vmatprep.mubr.bf16.mxu0 %v2955_v40 }
  0x4c   :  { %2867 = vmatprep.mubr.bf16.mxu1 %v2956_v41 }
  0x52   :  { %2780 = vmatmul.mubr.bf16.gmra.mxu0 %v2957_v42 }
  0x53   :  { %2868 = vmatmul.mubr.bf16.gmra.mxu1 %v2958_v43  ;;  %2783 = vmatprep.mubr.bf16.mxu0 %v2959_v44 }
  0x54   :  { %2871 = vmatprep.mubr.bf16.mxu1 %v2960_v45 }
  0x5a   :  { %2784 = vmatmul.mubr.bf16.gmra.mxu0 %v2961_v46 }
  0x5b   :  { %2872 = vmatmul.mubr.bf16.gmra.mxu1 %v2962_v47  ;;  %2787 = vmatprep.mubr.bf16.mxu0 %v2963_v48 }
  0x5c   :  { %2875 = vmatprep.mubr.bf16.mxu1 %v2964_v49 }
  0x62   :  { %2788 = vmatmul.mubr.bf16.gmra.mxu0 %v2965_v50 }
  0x63   :  { %2876 = vmatmul.mubr.bf16.gmra.mxu1 %v2966_v51  ;;  %2791 = vmatprep.mubr.bf16.mxu0 %v2967_v52 }
  0x64   :  { %2879 = vmatprep.mubr.bf16.mxu1 %v2968_v53 }
  0x6a   :  { %2792 = vmatmul.mubr.bf16.gmra.mxu0 %v2969_v54 }
  0x6b   :  { %2880 = vmatmul.mubr.bf16.gmra.mxu1 %v2970_v55  ;;  %2795 = vmatprep.mubr.bf16.mxu0 %v2971_v56 }
  0x6c   :  { %2883 = vmatprep.mubr.bf16.mxu1 %v2972_v57 }
  0x72   :  { %2796 = vmatmul.mubr.bf16.gmra.mxu0 %v2973_v58 }
  0x73   :  { %2884 = vmatmul.mubr.bf16.gmra.mxu1 %v2974_v59  ;;  %2799 = vmatprep.mubr.bf16.mxu0 %v2975_v60 }
  0x74   :  { %2887 = vmatprep.mubr.bf16.mxu1 %v2976_v61 }
  0x7a   :  { %2800 = vmatmul.mubr.bf16.gmra.mxu0 %v2977_v62 }
  0x7b   :  { %2888 = vmatmul.mubr.bf16.gmra.mxu1 %v2978_v63  ;;  %2803 = vmatprep.mubr.bf16.mxu0 %v2979_v0 }
  0x7c   :  { %2891 = vmatprep.mubr.bf16.mxu1 %v2980_v1 }
  0x82   :  { %2804 = vmatmul.mubr.bf16.gmra.mxu0 %v2981_v2 }
  0x83   :  { %2892 = vmatmul.mubr.bf16.gmra.mxu1 %v2982_v3  ;;  %2807 = vmatprep.mubr.bf16.mxu0 %v2983_v4 }
  0x84   :  { %2895 = vmatprep.mubr.bf16.mxu1 %v2984_v5 }
  0x8a   :  { %2808 = vmatmul.mubr.bf16.gmra.mxu0 %v2985_v6 }
  0x8b   :  { %2896 = vmatmul.mubr.bf16.gmra.mxu1 %v2986_v7  ;;  %2811 = vmatprep.mubr.bf16.mxu0 %v2987_v8 }
  0x8c   :  { %2899 = vmatprep.mubr.bf16.mxu1 %v2988_v9 }
  0x92   :  { %2812 = vmatmul.mubr.bf16.gmra.mxu0 %v2989_v10 }
  0x93   :  { %2900 = vmatmul.mubr.bf16.gmra.mxu1 %v2990_v11  ;;  %2815 = vmatprep.mubr.bf16.mxu0 %v2991_v12 }
  0x94   :  { %2903 = vmatprep.mubr.bf16.mxu1 %v2992_v13 }
  0x9a   :  { %2816 = vmatmul.mubr.bf16.gmra.mxu0 %v2993_v14 }
  0x9b   :  { %2904 = vmatmul.mubr.bf16.gmra.mxu1 %v2994_v15  ;;  %2819 = vmatprep.mubr.bf16.mxu0 %v2995_v16 }
  0x9c   :  { %2907 = vmatprep.mubr.bf16.mxu1 %v2996_v17 }
  0xa2   :  { %2820 = vmatmul.mubr.bf16.gmra.mxu0 %v2997_v18 }
  0xa3   :  { %2908 = vmatmul.mubr.bf16.gmra.mxu1 %v2998_v19  ;;  %2823 = vmatprep.mubr.bf16.mxu0 %v2999_v20 }
  0xa4   :  { %2911 = vmatprep.mubr.bf16.mxu1 %v3000_v21 }
  0xaa   :  { %2824 = vmatmul.mubr.bf16.gmra.mxu0 %v3001_v22 }
  0xab   :  { %2912 = vmatmul.mubr.bf16.gmra.mxu1 %v3002_v23 }
  0xe2   :  { %v2757_v26 = vpop.f32.mrf.mxu0 }
  0xe3   :  { %v712_v28 = vmul.f32 %v2757_v26, %v3319_v24  ;;  %v2845_v29 = vpop.f32.mrf.mxu1 }
  0xe4   :  { %v1543_v31 = vmul.f32 %v2845_v29, %v3324_v25  ;;  %v416_v32 = vpop.f32.mrf.mxu0 }
  0xe5   :  { %v791_v33 = vadd.f32 %v3329_v27, %v712_v28  ;;  %v710_v34 = vmul.f32 %v3319_v24, %v416_v32  ;;  %v1247_v35 = vpop.f32.mrf.mxu1 }
  0xe6   :  { %v1622_v36 = vadd.f32 %v3335_v30, %v1543_v31  ;;  %v1541_v37 = vmul.f32 %v3324_v25, %v1247_v35  ;;  %v2758_v38 = vpop.f32.mrf.mxu0 }
  0xe7   :  { %v713_v39 = vmul.f32 %v2758_v38, %v3319_v24  ;;  %v2846_v40 = vpop.f32.mrf.mxu1  ;;  %v789_v41 = vadd.f32 %v3329_v27, %v710_v34 }
  0xe8   :  { %v1620_v42 = vadd.f32 %v3335_v30, %v1541_v37  ;;  %v1544_v43 = vmul.f32 %v2846_v40, %v3324_v25  ;;  %v419_v44 = vpop.f32.mrf.mxu0  ;;  %v1694_v45 = vadd.f32 %v1622_v36, %v791_v33 }
  0xe9   :  { %v792_v46 = vadd.f32 %v3329_v27, %v713_v39  ;;  %v711_v47 = vmul.f32 %v3319_v24, %v419_v44  ;;  %v1250_v48 = vpop.f32.mrf.mxu1 }
  0xea   :  { %v1623_v49 = vadd.f32 %v3335_v30, %v1544_v43  ;;  %v1542_v50 = vmul.f32 %v3324_v25, %v1250_v48  ;;  %v2761_v51 = vpop.f32.mrf.mxu0  ;;  %v1692_v55 = vadd.f32 %v1620_v42, %v789_v41  ;;  %v1766_v60 = vmax.f32 %v1694_v45, 0.0 }
  0xeb   :  { %v790_v52 = vadd.f32 %v3329_v27, %v711_v47  ;;  %v716_v53 = vmul.f32 %v2761_v51, %v3319_v24  ;;  %v2849_v54 = vpop.f32.mrf.mxu1 }
  0xec   :  { %v1695_v56 = vadd.f32 %v1623_v49, %v792_v46  ;;  %v1621_v57 = vadd.f32 %v3335_v30, %v1542_v50  ;;  %v1547_v58 = vmul.f32 %v2849_v54, %v3324_v25  ;;  %v432_v59 = vpop.f32.mrf.mxu0  ;;  %v1764_v8 = vmax.f32 %v1692_v55, 0.0 }
  0xed   :  { %v795_v61 = vadd.f32 %v3329_v27, %v716_v53  ;;  %v714_v62 = vmul.f32 %v3319_v24, %v432_v59  ;;  %v1263_v63 = vpop.f32.mrf.mxu1 }
  0xee   :  { %v1767_v0 = vmax.f32 %v1695_v56, 0.0  ;;  %v1693_v1 = vadd.f32 %v1621_v57, %v790_v52  ;;  %v1626_v2 = vadd.f32 %v3335_v30, %v1547_v58  ;;  %v1545_v3 = vmul.f32 %v3324_v25, %v1263_v63  ;;  %v2762_v4 = vpop.f32.mrf.mxu0 }
  0xef   :  { %v793_v5 = vadd.f32 %v3329_v27, %v714_v62  ;;  %v717_v6 = vmul.f32 %v2762_v4, %v3319_v24  ;;  %v2850_v7 = vpop.f32.mrf.mxu1 }
  0xf0   :  { %v2444_v9 = vpack.c.bf16 %v1767_v0, %v1766_v60  ;;  %v1765_v10 = vmax.f32 %v1693_v1, 0.0  ;;  %v1624_v11 = vadd.f32 %v3335_v30, %v1545_v3  ;;  %v435_v12 = vpop.f32.mrf.mxu0  ;;  %v1548_v14 = vmul.f32 %v2850_v7, %v3324_v25 }
  0xf1   :  { %v796_v13 = vadd.f32 %v3329_v27, %v717_v6  ;;  %v715_v15 = vmul.f32 %v3319_v24, %v435_v12  ;;  %v1266_v16 = vpop.f32.mrf.mxu1  ;;  %v1698_v18 = vadd.f32 %v1626_v2, %v795_v61 }
  0xf2   :  { %2616 = vst [vmem:[%s3760_s8 + $0x8] sm:$0xff] %v2444_v9   ;;  %v2439_v17 = vpack.c.bf16 %v1765_v10, %v1764_v8  ;;  %v1546_v19 = vmul.f32 %v3324_v25, %v1266_v16  ;;  %v2765_v20 = vpop.f32.mrf.mxu0  ;;  %v1696_v21 = vadd.f32 %v1624_v11, %v793_v5  ;;  %v1627_v22 = vadd.f32 %v3335_v30, %v1548_v14 }
  0xf3   :  { %v794_v23 = vadd.f32 %v3329_v27, %v715_v15  ;;  %v720_v26 = vmul.f32 %v2765_v20, %v3319_v24  ;;  %v2853_v28 = vpop.f32.mrf.mxu1  ;;  %v1770_v41 = vmax.f32 %v1698_v18, 0.0 }
  0xf4   :  { %2440 = vst [vmem:[%s3760_s8] sm:$0xff] %v2439_v17   ;;  %v1625_v29 = vadd.f32 %v3335_v30, %v1546_v19  ;;  %v1551_v31 = vmul.f32 %v2853_v28, %v3324_v25  ;;  %v448_v32 = vpop.f32.mrf.mxu0  ;;  %v1699_v33 = vadd.f32 %v1627_v22, %v796_v13  ;;  %v1768_v42 = vmax.f32 %v1696_v21, 0.0 }
  0xf5   :  { %v799_v34 = vadd.f32 %v3329_v27, %v720_v26  ;;  %v718_v35 = vmul.f32 %v3319_v24, %v448_v32  ;;  %v1279_v36 = vpop.f32.mrf.mxu1 }
  0xf6   :  { %v1697_v37 = vadd.f32 %v1625_v29, %v794_v23  ;;  %v1630_v38 = vadd.f32 %v3335_v30, %v1551_v31  ;;  %v1549_v39 = vmul.f32 %v3324_v25, %v1279_v36  ;;  %v2766_v40 = vpop.f32.mrf.mxu0  ;;  %v1771_v43 = vmax.f32 %v1699_v33, 0.0 }
  0xf7   :  { %v721_v44 = vmul.f32 %v2766_v40, %v3319_v24  ;;  %v2854_v45 = vpop.f32.mrf.mxu1  ;;  %v797_v48 = vadd.f32 %v3329_v27, %v718_v35 }
  0xf8   :  { %v1769_v46 = vmax.f32 %v1697_v37, 0.0  ;;  %v1702_v47 = vadd.f32 %v1630_v38, %v799_v34  ;;  %v1552_v49 = vmul.f32 %v2854_v45, %v3324_v25  ;;  %v451_v50 = vpop.f32.mrf.mxu0  ;;  %v2454_v51 = vpack.c.bf16 %v1771_v43, %v1770_v41 }
  0xf9   :  { %v1628_v52 = vadd.f32 %v3335_v30, %v1549_v39  ;;  %v800_v53 = vadd.f32 %v3329_v27, %v721_v44  ;;  %v719_v54 = vmul.f32 %v3319_v24, %v451_v50  ;;  %v1282_v55 = vpop.f32.mrf.mxu1 }
  0xfa   :  { %v2449_v56 = vpack.c.bf16 %v1769_v46, %v1768_v42  ;;  %v1631_v57 = vadd.f32 %v3335_v30, %v1552_v49  ;;  %v2769_v58 = vpop.f32.mrf.mxu0  ;;  %2618 = vst [vmem:[%s3760_s8 + $0x18] sm:$0xff] %v2454_v51   ;;  %v1550_v60 = vmul.f32 %v3324_v25, %v1282_v55  ;;  %v1774_v2 = vmax.f32 %v1702_v47, 0.0 }
  0xfb   :  { %v798_v59 = vadd.f32 %v3329_v27, %v719_v54  ;;  %v724_v61 = vmul.f32 %v2769_v58, %v3319_v24  ;;  %v2857_v62 = vpop.f32.mrf.mxu1  ;;  %v1700_v3 = vadd.f32 %v1628_v52, %v797_v48 }
  0xfc   :  { %2617 = vst [vmem:[%s3760_s8 + $0x10] sm:$0xff] %v2449_v56   ;;  %v1703_v63 = vadd.f32 %v1631_v57, %v800_v53  ;;  %v1555_v0 = vmul.f32 %v2857_v62, %v3324_v25  ;;  %v464_v1 = vpop.f32.mrf.mxu0  ;;  %v1629_v4 = vadd.f32 %v3335_v30, %v1550_v60 }
  0xfd   :  { %v722_v5 = vmul.f32 %v3319_v24, %v464_v1  ;;  %v1295_v6 = vpop.f32.mrf.mxu1  ;;  %v803_v8 = vadd.f32 %v3329_v27, %v724_v61  ;;  %v1772_v20 = vmax.f32 %v1700_v3, 0.0 }
  0xfe   :  { %v1775_v7 = vmax.f32 %v1703_v63, 0.0  ;;  %v1634_v9 = vadd.f32 %v3335_v30, %v1555_v0  ;;  %v1553_v10 = vmul.f32 %v3324_v25, %v1295_v6  ;;  %v2770_v11 = vpop.f32.mrf.mxu0  ;;  %v1701_v12 = vadd.f32 %v1629_v4, %v798_v59 }
  0xff   :  { %v801_v13 = vadd.f32 %v3329_v27, %v722_v5  ;;  %v725_v14 = vmul.f32 %v2770_v11, %v3319_v24  ;;  %v2858_v15 = vpop.f32.mrf.mxu1 }
 0x100   :  { %v2464_v16 = vpack.c.bf16 %v1775_v7, %v1774_v2  ;;  %v1632_v17 = vadd.f32 %v3335_v30, %v1553_v10  ;;  %v1556_v18 = vmul.f32 %v2858_v15, %v3324_v25  ;;  %v467_v19 = vpop.f32.mrf.mxu0  ;;  %v1773_v21 = vmax.f32 %v1701_v12, 0.0 }
 0x101   :  { %v804_v22 = vadd.f32 %v3329_v27, %v725_v14  ;;  %v723_v23 = vmul.f32 %v3319_v24, %v467_v19  ;;  %v1298_v26 = vpop.f32.mrf.mxu1  ;;  %v1706_v28 = vadd.f32 %v1634_v9, %v803_v8 }
 0x102   :  { %2620 = vst [vmem:[%s3760_s8 + $0x28] sm:$0xff] %v2464_v16   ;;  %v1635_v29 = vadd.f32 %v3335_v30, %v1556_v18  ;;  %v1554_v31 = vmul.f32 %v3324_v25, %v1298_v26  ;;  %v2773_v32 = vpop.f32.mrf.mxu0  ;;  %v2459_v33 = vpack.c.bf16 %v1773_v21, %v1772_v20  ;;  %v1704_v34 = vadd.f32 %v1632_v17, %v801_v13 }
 0x103   :  { %v802_v35 = vadd.f32 %v3329_v27, %v723_v23  ;;  %v728_v36 = vmul.f32 %v2773_v32, %v3319_v24  ;;  %v2861_v37 = vpop.f32.mrf.mxu1  ;;  %v1778_v44 = vmax.f32 %v1706_v28, 0.0 }
 0x104   :  { %v1707_v38 = vadd.f32 %v1635_v29, %v804_v22  ;;  %v1633_v39 = vadd.f32 %v3335_v30, %v1554_v31  ;;  %v1559_v40 = vmul.f32 %v2861_v37, %v3324_v25  ;;  %v480_v41 = vpop.f32.mrf.mxu0  ;;  %2619 = vst [vmem:[%s3760_s8 + $0x20] sm:$0xff] %v2459_v33   ;;  %v1776_v49 = vmax.f32 %v1704_v34, 0.0 }
 0x105   :  { %v726_v42 = vmul.f32 %v3319_v24, %v480_v41  ;;  %v1311_v43 = vpop.f32.mrf.mxu1  ;;  %v807_v50 = vadd.f32 %v3329_v27, %v728_v36 }
 0x106   :  { %v1779_v45 = vmax.f32 %v1707_v38, 0.0  ;;  %v1705_v46 = vadd.f32 %v1633_v39, %v802_v35  ;;  %v1557_v47 = vmul.f32 %v3324_v25, %v1311_v43  ;;  %v2774_v48 = vpop.f32.mrf.mxu0  ;;  %v1638_v51 = vadd.f32 %v3335_v30, %v1559_v40 }
 0x107   :  { %v729_v52 = vmul.f32 %v2774_v48, %v3319_v24  ;;  %v2862_v53 = vpop.f32.mrf.mxu1  ;;  %v805_v56 = vadd.f32 %v3329_v27, %v726_v42 }
 0x108   :  { %v2474_v54 = vpack.c.bf16 %v1779_v45, %v1778_v44  ;;  %v1777_v55 = vmax.f32 %v1705_v46, 0.0  ;;  %v1636_v57 = vadd.f32 %v3335_v30, %v1557_v47  ;;  %v483_v58 = vpop.f32.mrf.mxu0  ;;  %v1560_v60 = vmul.f32 %v2862_v53, %v3324_v25 }
 0x109   :  { %v808_v59 = vadd.f32 %v3329_v27, %v729_v52  ;;  %v727_v61 = vmul.f32 %v3319_v24, %v483_v58  ;;  %v1314_v62 = vpop.f32.mrf.mxu1  ;;  %v1710_v2 = vadd.f32 %v1638_v51, %v807_v50 }
 0x10a   :  { %2622 = vst [vmem:[%s3760_s8 + $0x38] sm:$0xff] %v2474_v54   ;;  %v2469_v63 = vpack.c.bf16 %v1777_v55, %v1776_v49  ;;  %v1558_v0 = vmul.f32 %v3324_v25, %v1314_v62  ;;  %v2777_v1 = vpop.f32.mrf.mxu0  ;;  %v1639_v3 = vadd.f32 %v3335_v30, %v1560_v60  ;;  %v1708_v7 = vadd.f32 %v1636_v57, %v805_v56 }
 0x10b   :  { %v806_v4 = vadd.f32 %v3329_v27, %v727_v61  ;;  %v732_v5 = vmul.f32 %v2777_v1, %v3319_v24  ;;  %v2865_v6 = vpop.f32.mrf.mxu1  ;;  %v1782_v19 = vmax.f32 %v1710_v2, 0.0 }
 0x10c   :  { %2621 = vst [vmem:[%s3760_s8 + $0x30] sm:$0xff] %v2469_v63   ;;  %v1637_v8 = vadd.f32 %v3335_v30, %v1558_v0  ;;  %v1563_v9 = vmul.f32 %v2865_v6, %v3324_v25  ;;  %v496_v10 = vpop.f32.mrf.mxu0  ;;  %v1711_v11 = vadd.f32 %v1639_v3, %v808_v59  ;;  %v1780_v26 = vmax.f32 %v1708_v7, 0.0 }
 0x10d   :  { %v730_v12 = vmul.f32 %v3319_v24, %v496_v10  ;;  %v1327_v13 = vpop.f32.mrf.mxu1  ;;  %v811_v15 = vadd.f32 %v3329_v27, %v732_v5 }
 0x10e   :  { %v1709_v14 = vadd.f32 %v1637_v8, %v806_v4  ;;  %v1642_v16 = vadd.f32 %v3335_v30, %v1563_v9  ;;  %v1561_v17 = vmul.f32 %v3324_v25, %v1327_v13  ;;  %v2778_v18 = vpop.f32.mrf.mxu0  ;;  %v1783_v20 = vmax.f32 %v1711_v11, 0.0 }
 0x10f   :  { %v809_v21 = vadd.f32 %v3329_v27, %v730_v12  ;;  %v733_v22 = vmul.f32 %v2778_v18, %v3319_v24  ;;  %v2866_v23 = vpop.f32.mrf.mxu1 }
 0x110   :  { %v1781_v28 = vmax.f32 %v1709_v14, 0.0  ;;  %v1640_v29 = vadd.f32 %v3335_v30, %v1561_v17  ;;  %v1564_v31 = vmul.f32 %v2866_v23, %v3324_v25  ;;  %v499_v32 = vpop.f32.mrf.mxu0  ;;  %v2484_v33 = vpack.c.bf16 %v1783_v20, %v1782_v19 }
 0x111   :  { %v812_v34 = vadd.f32 %v3329_v27, %v733_v22  ;;  %v731_v35 = vmul.f32 %v3319_v24, %v499_v32  ;;  %v1330_v36 = vpop.f32.mrf.mxu1  ;;  %v1714_v38 = vadd.f32 %v1642_v16, %v811_v15 }
 0x112   :  { %v2479_v37 = vpack.c.bf16 %v1781_v28, %v1780_v26  ;;  %v1643_v39 = vadd.f32 %v3335_v30, %v1564_v31  ;;  %v2781_v40 = vpop.f32.mrf.mxu0  ;;  %2624 = vst [vmem:[%s3760_s8 + $0x48] sm:$0xff] %v2484_v33   ;;  %v1712_v41 = vadd.f32 %v1640_v29, %v809_v21  ;;  %v1562_v43 = vmul.f32 %v3324_v25, %v1330_v36 }
 0x113   :  { %v810_v42 = vadd.f32 %v3329_v27, %v731_v35  ;;  %v736_v44 = vmul.f32 %v2781_v40, %v3319_v24  ;;  %v2869_v45 = vpop.f32.mrf.mxu1  ;;  %v1786_v53 = vmax.f32 %v1714_v38, 0.0 }
 0x114   :  { %2623 = vst [vmem:[%s3760_s8 + $0x40] sm:$0xff] %v2479_v37   ;;  %v1715_v46 = vadd.f32 %v1643_v39, %v812_v34  ;;  %v1567_v47 = vmul.f32 %v2869_v45, %v3324_v25  ;;  %v512_v48 = vpop.f32.mrf.mxu0  ;;  %v1641_v49 = vadd.f32 %v3335_v30, %v1562_v43  ;;  %v1784_v58 = vmax.f32 %v1712_v41, 0.0 }
 0x115   :  { %v815_v50 = vadd.f32 %v3329_v27, %v736_v44  ;;  %v734_v51 = vmul.f32 %v3319_v24, %v512_v48  ;;  %v1343_v52 = vpop.f32.mrf.mxu1 }
 0x116   :  { %v1787_v54 = vmax.f32 %v1715_v46, 0.0  ;;  %v1646_v55 = vadd.f32 %v3335_v30, %v1567_v47  ;;  %v1565_v56 = vmul.f32 %v3324_v25, %v1343_v52  ;;  %v2782_v57 = vpop.f32.mrf.mxu0  ;;  %v1713_v59 = vadd.f32 %v1641_v49, %v810_v42 }
 0x117   :  { %v737_v60 = vmul.f32 %v2782_v57, %v3319_v24  ;;  %v2870_v61 = vpop.f32.mrf.mxu1  ;;  %v813_v63 = vadd.f32 %v3329_v27, %v734_v51 }
 0x118   :  { %v2494_v62 = vpack.c.bf16 %v1787_v54, %v1786_v53  ;;  %v1644_v0 = vadd.f32 %v3335_v30, %v1565_v56  ;;  %v1568_v1 = vmul.f32 %v2870_v61, %v3324_v25  ;;  %v515_v2 = vpop.f32.mrf.mxu0  ;;  %v1785_v3 = vmax.f32 %v1713_v59, 0.0 }
 0x119   :  { %v1718_v4 = vadd.f32 %v1646_v55, %v815_v50  ;;  %v816_v5 = vadd.f32 %v3329_v27, %v737_v60  ;;  %v735_v6 = vmul.f32 %v3319_v24, %v515_v2  ;;  %v1346_v7 = vpop.f32.mrf.mxu1 }
 0x11a   :  { %2626 = vst [vmem:[%s3760_s8 + $0x58] sm:$0xff] %v2494_v62   ;;  %v1647_v8 = vadd.f32 %v3335_v30, %v1568_v1  ;;  %v1566_v9 = vmul.f32 %v3324_v25, %v1346_v7  ;;  %v2785_v10 = vpop.f32.mrf.mxu0  ;;  %v2489_v11 = vpack.c.bf16 %v1785_v3, %v1784_v58  ;;  %v1716_v15 = vadd.f32 %v1644_v0, %v813_v63 }
 0x11b   :  { %v814_v12 = vadd.f32 %v3329_v27, %v735_v6  ;;  %v740_v13 = vmul.f32 %v2785_v10, %v3319_v24  ;;  %v2873_v14 = vpop.f32.mrf.mxu1  ;;  %v1790_v20 = vmax.f32 %v1718_v4, 0.0 }
 0x11c   :  { %v1719_v16 = vadd.f32 %v1647_v8, %v816_v5  ;;  %v1645_v17 = vadd.f32 %v3335_v30, %v1566_v9  ;;  %v1571_v18 = vmul.f32 %v2873_v14, %v3324_v25  ;;  %v528_v19 = vpop.f32.mrf.mxu0  ;;  %2625 = vst [vmem:[%s3760_s8 + $0x50] sm:$0xff] %v2489_v11   ;;  %v1788_v36 = vmax.f32 %v1716_v15, 0.0 }
 0x11d   :  { %v819_v21 = vadd.f32 %v3329_v27, %v740_v13  ;;  %v738_v22 = vmul.f32 %v3319_v24, %v528_v19  ;;  %v1359_v23 = vpop.f32.mrf.mxu1 }
 0x11e   :  { %v1791_v26 = vmax.f32 %v1719_v16, 0.0  ;;  %v1717_v28 = vadd.f32 %v1645_v17, %v814_v12  ;;  %v1650_v29 = vadd.f32 %v3335_v30, %v1571_v18  ;;  %v1569_v31 = vmul.f32 %v3324_v25, %v1359_v23  ;;  %v2786_v32 = vpop.f32.mrf.mxu0 }
 0x11f   :  { %v817_v33 = vadd.f32 %v3329_v27, %v738_v22  ;;  %v741_v34 = vmul.f32 %v2786_v32, %v3319_v24  ;;  %v2874_v35 = vpop.f32.mrf.mxu1 }
 0x120   :  { %v2504_v37 = vpack.c.bf16 %v1791_v26, %v1790_v20  ;;  %v1789_v38 = vmax.f32 %v1717_v28, 0.0  ;;  %v1648_v39 = vadd.f32 %v3335_v30, %v1569_v31  ;;  %v531_v40 = vpop.f32.mrf.mxu0  ;;  %v1572_v42 = vmul.f32 %v2874_v35, %v3324_v25 }
 0x121   :  { %v820_v41 = vadd.f32 %v3329_v27, %v741_v34  ;;  %v739_v43 = vmul.f32 %v3319_v24, %v531_v40  ;;  %v1362_v44 = vpop.f32.mrf.mxu1  ;;  %v1722_v46 = vadd.f32 %v1650_v29, %v819_v21 }
 0x122   :  { %2628 = vst [vmem:[%s3760_s8 + $0x68] sm:$0xff] %v2504_v37   ;;  %v2499_v45 = vpack.c.bf16 %v1789_v38, %v1788_v36  ;;  %v1570_v47 = vmul.f32 %v3324_v25, %v1362_v44  ;;  %v2789_v48 = vpop.f32.mrf.mxu0  ;;  %v1720_v49 = vadd.f32 %v1648_v39, %v817_v33  ;;  %v1651_v50 = vadd.f32 %v3335_v30, %v1572_v42 }
 0x123   :  { %v818_v51 = vadd.f32 %v3329_v27, %v739_v43  ;;  %v744_v52 = vmul.f32 %v2789_v48, %v3319_v24  ;;  %v2877_v53 = vpop.f32.mrf.mxu1  ;;  %v1794_v1 = vmax.f32 %v1722_v46, 0.0 }
 0x124   :  { %2627 = vst [vmem:[%s3760_s8 + $0x60] sm:$0xff] %v2499_v45   ;;  %v1649_v54 = vadd.f32 %v3335_v30, %v1570_v47  ;;  %v1575_v55 = vmul.f32 %v2877_v53, %v3324_v25  ;;  %v544_v56 = vpop.f32.mrf.mxu0  ;;  %v1723_v57 = vadd.f32 %v1651_v50, %v820_v41  ;;  %v1792_v2 = vmax.f32 %v1720_v49, 0.0 }
 0x125   :  { %v823_v58 = vadd.f32 %v3329_v27, %v744_v52  ;;  %v742_v59 = vmul.f32 %v3319_v24, %v544_v56  ;;  %v1375_v60 = vpop.f32.mrf.mxu1 }
 0x126   :  { %v1721_v61 = vadd.f32 %v1649_v54, %v818_v51  ;;  %v1654_v62 = vadd.f32 %v3335_v30, %v1575_v55  ;;  %v1573_v63 = vmul.f32 %v3324_v25, %v1375_v60  ;;  %v2790_v0 = vpop.f32.mrf.mxu0  ;;  %v1795_v3 = vmax.f32 %v1723_v57, 0.0 }
 0x127   :  { %v745_v4 = vmul.f32 %v2790_v0, %v3319_v24  ;;  %v2878_v5 = vpop.f32.mrf.mxu1  ;;  %v821_v8 = vadd.f32 %v3329_v27, %v742_v59 }
 0x128   :  { %v1793_v6 = vmax.f32 %v1721_v61, 0.0  ;;  %v1726_v7 = vadd.f32 %v1654_v62, %v823_v58  ;;  %v1576_v9 = vmul.f32 %v2878_v5, %v3324_v25  ;;  %v547_v10 = vpop.f32.mrf.mxu0  ;;  %v2514_v11 = vpack.c.bf16 %v1795_v3, %v1794_v1 }
 0x129   :  { %v1652_v12 = vadd.f32 %v3335_v30, %v1573_v63  ;;  %v824_v13 = vadd.f32 %v3329_v27, %v745_v4  ;;  %v743_v14 = vmul.f32 %v3319_v24, %v547_v10  ;;  %v1378_v15 = vpop.f32.mrf.mxu1 }
 0x12a   :  { %v2509_v16 = vpack.c.bf16 %v1793_v6, %v1792_v2  ;;  %v1655_v17 = vadd.f32 %v3335_v30, %v1576_v9  ;;  %v2793_v18 = vpop.f32.mrf.mxu0  ;;  %2630 = vst [vmem:[%s3760_s8 + $0x78] sm:$0xff] %v2514_v11   ;;  %v1574_v20 = vmul.f32 %v3324_v25, %v1378_v15  ;;  %v1798_v29 = vmax.f32 %v1726_v7, 0.0 }
 0x12b   :  { %v822_v19 = vadd.f32 %v3329_v27, %v743_v14  ;;  %v748_v21 = vmul.f32 %v2793_v18, %v3319_v24  ;;  %v2881_v22 = vpop.f32.mrf.mxu1  ;;  %v1724_v31 = vadd.f32 %v1652_v12, %v821_v8 }
 0x12c   :  { %2629 = vst [vmem:[%s3760_s8 + $0x70] sm:$0xff] %v2509_v16   ;;  %v1727_v23 = vadd.f32 %v1655_v17, %v824_v13  ;;  %v1579_v26 = vmul.f32 %v2881_v22, %v3324_v25  ;;  %v560_v28 = vpop.f32.mrf.mxu0  ;;  %v1653_v32 = vadd.f32 %v3335_v30, %v1574_v20 }
 0x12d   :  { %v746_v33 = vmul.f32 %v3319_v24, %v560_v28  ;;  %v1391_v34 = vpop.f32.mrf.mxu1  ;;  %v827_v36 = vadd.f32 %v3329_v27, %v748_v21  ;;  %v1796_v48 = vmax.f32 %v1724_v31, 0.0 }
 0x12e   :  { %v1799_v35 = vmax.f32 %v1727_v23, 0.0  ;;  %v1658_v37 = vadd.f32 %v3335_v30, %v1579_v26  ;;  %v1577_v38 = vmul.f32 %v3324_v25, %v1391_v34  ;;  %v2794_v39 = vpop.f32.mrf.mxu0  ;;  %v1725_v40 = vadd.f32 %v1653_v32, %v822_v19 }
 0x12f   :  { %v825_v41 = vadd.f32 %v3329_v27, %v746_v33  ;;  %v749_v42 = vmul.f32 %v2794_v39, %v3319_v24  ;;  %v2882_v43 = vpop.f32.mrf.mxu1 }
 0x130   :  { %v2524_v44 = vpack.c.bf16 %v1799_v35, %v1798_v29  ;;  %v1656_v45 = vadd.f32 %v3335_v30, %v1577_v38  ;;  %v1580_v46 = vmul.f32 %v2882_v43, %v3324_v25  ;;  %v563_v47 = vpop.f32.mrf.mxu0  ;;  %v1797_v49 = vmax.f32 %v1725_v40, 0.0 }
 0x131   :  { %v828_v50 = vadd.f32 %v3329_v27, %v749_v42  ;;  %v747_v51 = vmul.f32 %v3319_v24, %v563_v47  ;;  %v1394_v52 = vpop.f32.mrf.mxu1  ;;  %v1730_v53 = vadd.f32 %v1658_v37, %v827_v36 }
 0x132   :  { %2632 = vst [vmem:[%s3760_s8 + $0x88] sm:$0xff] %v2524_v44   ;;  %v1659_v54 = vadd.f32 %v3335_v30, %v1580_v46  ;;  %v1578_v55 = vmul.f32 %v3324_v25, %v1394_v52  ;;  %v2797_v56 = vpop.f32.mrf.mxu0  ;;  %v2519_v57 = vpack.c.bf16 %v1797_v49, %v1796_v48  ;;  %v1728_v58 = vadd.f32 %v1656_v45, %v825_v41 }
 0x133   :  { %v826_v59 = vadd.f32 %v3329_v27, %v747_v51  ;;  %v752_v60 = vmul.f32 %v2797_v56, %v3319_v24  ;;  %v2885_v61 = vpop.f32.mrf.mxu1  ;;  %v1802_v4 = vmax.f32 %v1730_v53, 0.0 }
 0x134   :  { %v1731_v62 = vadd.f32 %v1659_v54, %v828_v50  ;;  %v1657_v63 = vadd.f32 %v3335_v30, %v1578_v55  ;;  %v1583_v0 = vmul.f32 %v2885_v61, %v3324_v25  ;;  %v576_v1 = vpop.f32.mrf.mxu0  ;;  %2631 = vst [vmem:[%s3760_s8 + $0x80] sm:$0xff] %v2519_v57   ;;  %v1800_v9 = vmax.f32 %v1728_v58, 0.0 }
 0x135   :  { %v750_v2 = vmul.f32 %v3319_v24, %v576_v1  ;;  %v1407_v3 = vpop.f32.mrf.mxu1  ;;  %v831_v10 = vadd.f32 %v3329_v27, %v752_v60 }
 0x136   :  { %v1803_v5 = vmax.f32 %v1731_v62, 0.0  ;;  %v1729_v6 = vadd.f32 %v1657_v63, %v826_v59  ;;  %v1581_v7 = vmul.f32 %v3324_v25, %v1407_v3  ;;  %v2798_v8 = vpop.f32.mrf.mxu0  ;;  %v1662_v11 = vadd.f32 %v3335_v30, %v1583_v0 }
 0x137   :  { %v753_v12 = vmul.f32 %v2798_v8, %v3319_v24  ;;  %v2886_v13 = vpop.f32.mrf.mxu1  ;;  %v829_v16 = vadd.f32 %v3329_v27, %v750_v2 }
 0x138   :  { %v2534_v14 = vpack.c.bf16 %v1803_v5, %v1802_v4  ;;  %v1801_v15 = vmax.f32 %v1729_v6, 0.0  ;;  %v1660_v17 = vadd.f32 %v3335_v30, %v1581_v7  ;;  %v579_v18 = vpop.f32.mrf.mxu0  ;;  %v1584_v20 = vmul.f32 %v2886_v13, %v3324_v25 }
 0x139   :  { %v832_v19 = vadd.f32 %v3329_v27, %v753_v12  ;;  %v751_v21 = vmul.f32 %v3319_v24, %v579_v18  ;;  %v1410_v22 = vpop.f32.mrf.mxu1  ;;  %v1734_v29 = vadd.f32 %v1662_v11, %v831_v10 }
 0x13a   :  { %2634 = vst [vmem:[%s3760_s8 + $0x98] sm:$0xff] %v2534_v14   ;;  %v2529_v23 = vpack.c.bf16 %v1801_v15, %v1800_v9  ;;  %v1582_v26 = vmul.f32 %v3324_v25, %v1410_v22  ;;  %v2801_v28 = vpop.f32.mrf.mxu0  ;;  %v1663_v31 = vadd.f32 %v3335_v30, %v1584_v20  ;;  %v1732_v35 = vadd.f32 %v1660_v17, %v829_v16 }
 0x13b   :  { %v830_v32 = vadd.f32 %v3329_v27, %v751_v21  ;;  %v756_v33 = vmul.f32 %v2801_v28, %v3319_v24  ;;  %v2889_v34 = vpop.f32.mrf.mxu1  ;;  %v1806_v47 = vmax.f32 %v1734_v29, 0.0 }
 0x13c   :  { %2633 = vst [vmem:[%s3760_s8 + $0x90] sm:$0xff] %v2529_v23   ;;  %v1661_v36 = vadd.f32 %v3335_v30, %v1582_v26  ;;  %v1587_v37 = vmul.f32 %v2889_v34, %v3324_v25  ;;  %v592_v38 = vpop.f32.mrf.mxu0  ;;  %v1735_v39 = vadd.f32 %v1663_v31, %v832_v19  ;;  %v1804_v52 = vmax.f32 %v1732_v35, 0.0 }
 0x13d   :  { %v754_v40 = vmul.f32 %v3319_v24, %v592_v38  ;;  %v1423_v41 = vpop.f32.mrf.mxu1  ;;  %v835_v43 = vadd.f32 %v3329_v27, %v756_v33 }
 0x13e   :  { %v1733_v42 = vadd.f32 %v1661_v36, %v830_v32  ;;  %v1666_v44 = vadd.f32 %v3335_v30, %v1587_v37  ;;  %v1585_v45 = vmul.f32 %v3324_v25, %v1423_v41  ;;  %v2802_v46 = vpop.f32.mrf.mxu0  ;;  %v1807_v48 = vmax.f32 %v1735_v39, 0.0 }
 0x13f   :  { %v833_v49 = vadd.f32 %v3329_v27, %v754_v40  ;;  %v757_v50 = vmul.f32 %v2802_v46, %v3319_v24  ;;  %v2890_v51 = vpop.f32.mrf.mxu1 }
 0x140   :  { %v1805_v53 = vmax.f32 %v1733_v42, 0.0  ;;  %v1664_v54 = vadd.f32 %v3335_v30, %v1585_v45  ;;  %v1588_v55 = vmul.f32 %v2890_v51, %v3324_v25  ;;  %v595_v56 = vpop.f32.mrf.mxu0  ;;  %v2544_v57 = vpack.c.bf16 %v1807_v48, %v1806_v47 }
 0x141   :  { %v836_v58 = vadd.f32 %v3329_v27, %v757_v50  ;;  %v755_v59 = vmul.f32 %v3319_v24, %v595_v56  ;;  %v1426_v60 = vpop.f32.mrf.mxu1  ;;  %v1738_v62 = vadd.f32 %v1666_v44, %v835_v43 }
 0x142   :  { %v2539_v61 = vpack.c.bf16 %v1805_v53, %v1804_v52  ;;  %v1667_v63 = vadd.f32 %v3335_v30, %v1588_v55  ;;  %v2805_v0 = vpop.f32.mrf.mxu0  ;;  %2636 = vst [vmem:[%s3760_s8 + $0xa8] sm:$0xff] %v2544_v57   ;;  %v1736_v1 = vadd.f32 %v1664_v54, %v833_v49  ;;  %v1586_v3 = vmul.f32 %v3324_v25, %v1426_v60 }
 0x143   :  { %v834_v2 = vadd.f32 %v3329_v27, %v755_v59  ;;  %v760_v4 = vmul.f32 %v2805_v0, %v3319_v24  ;;  %v2893_v5 = vpop.f32.mrf.mxu1  ;;  %v1810_v13 = vmax.f32 %v1738_v62, 0.0 }
 0x144   :  { %2635 = vst [vmem:[%s3760_s8 + $0xa0] sm:$0xff] %v2539_v61   ;;  %v1739_v6 = vadd.f32 %v1667_v63, %v836_v58  ;;  %v1591_v7 = vmul.f32 %v2893_v5, %v3324_v25  ;;  %v608_v8 = vpop.f32.mrf.mxu0  ;;  %v1665_v9 = vadd.f32 %v3335_v30, %v1586_v3  ;;  %v1808_v18 = vmax.f32 %v1736_v1, 0.0 }
 0x145   :  { %v839_v10 = vadd.f32 %v3329_v27, %v760_v4  ;;  %v758_v11 = vmul.f32 %v3319_v24, %v608_v8  ;;  %v1439_v12 = vpop.f32.mrf.mxu1 }
 0x146   :  { %v1811_v14 = vmax.f32 %v1739_v6, 0.0  ;;  %v1670_v15 = vadd.f32 %v3335_v30, %v1591_v7  ;;  %v1589_v16 = vmul.f32 %v3324_v25, %v1439_v12  ;;  %v2806_v17 = vpop.f32.mrf.mxu0  ;;  %v1737_v19 = vadd.f32 %v1665_v9, %v834_v2 }
 0x147   :  { %v761_v20 = vmul.f32 %v2806_v17, %v3319_v24  ;;  %v2894_v21 = vpop.f32.mrf.mxu1  ;;  %v837_v23 = vadd.f32 %v3329_v27, %v758_v11 }
 0x148   :  { %v2554_v22 = vpack.c.bf16 %v1811_v14, %v1810_v13  ;;  %v1668_v26 = vadd.f32 %v3335_v30, %v1589_v16  ;;  %v1592_v28 = vmul.f32 %v2894_v21, %v3324_v25  ;;  %v611_v29 = vpop.f32.mrf.mxu0  ;;  %v1809_v31 = vmax.f32 %v1737_v19, 0.0 }
 0x149   :  { %v1742_v32 = vadd.f32 %v1670_v15, %v839_v10  ;;  %v840_v33 = vadd.f32 %v3329_v27, %v761_v20  ;;  %v759_v34 = vmul.f32 %v3319_v24, %v611_v29  ;;  %v1442_v35 = vpop.f32.mrf.mxu1 }
 0x14a   :  { %2638 = vst [vmem:[%s3760_s8 + $0xb8] sm:$0xff] %v2554_v22   ;;  %v1671_v36 = vadd.f32 %v3335_v30, %v1592_v28  ;;  %v1590_v37 = vmul.f32 %v3324_v25, %v1442_v35  ;;  %v2809_v38 = vpop.f32.mrf.mxu0  ;;  %v2549_v39 = vpack.c.bf16 %v1809_v31, %v1808_v18  ;;  %v1740_v43 = vadd.f32 %v1668_v26, %v837_v23  ;;  %v3659_v35 = vld [vmem:[%s3757_s4] ss:$0 sm:$0xff] }
 0x14b   :  { %v838_v40 = vadd.f32 %v3329_v27, %v759_v34  ;;  %v764_v41 = vmul.f32 %v2809_v38, %v3319_v24  ;;  %v2897_v42 = vpop.f32.mrf.mxu1  ;;  %v1814_v48 = vmax.f32 %v1742_v32, 0.0  ;;  %v3647_v32 = vld [vmem:[%s3756_s6] ss:$0 sm:$0xff] }
 0x14c   :  { %v1743_v44 = vadd.f32 %v1671_v36, %v840_v33  ;;  %v1669_v45 = vadd.f32 %v3335_v30, %v1590_v37  ;;  %v1595_v46 = vmul.f32 %v2897_v42, %v3324_v25  ;;  %v624_v47 = vpop.f32.mrf.mxu0  ;;  %2637 = vst [vmem:[%s3760_s8 + $0xb0] sm:$0xff] %v2549_v39   ;;  %v1812_v60 = vmax.f32 %v1740_v43, 0.0  ;;  %v3665_v39 = vld [vmem:[%s3759_s5] ss:$0 sm:$0xff] }
 0x14d   :  { %v843_v49 = vadd.f32 %v3329_v27, %v764_v41  ;;  %v762_v50 = vmul.f32 %v3319_v24, %v624_v47  ;;  %v1455_v51 = vpop.f32.mrf.mxu1 }
 0x14e   :  { %v1815_v52 = vmax.f32 %v1743_v44, 0.0  ;;  %v1741_v53 = vadd.f32 %v1669_v45, %v838_v40  ;;  %v1674_v54 = vadd.f32 %v3335_v30, %v1595_v46  ;;  %v1593_v55 = vmul.f32 %v3324_v25, %v1455_v51  ;;  %v2810_v56 = vpop.f32.mrf.mxu0 }
 0x14f   :  { %v841_v57 = vadd.f32 %v3329_v27, %v762_v50  ;;  %v765_v58 = vmul.f32 %v2810_v56, %v3319_v24  ;;  %v2898_v59 = vpop.f32.mrf.mxu1 }
 0x150   :  { %v2564_v61 = vpack.c.bf16 %v1815_v52, %v1814_v48  ;;  %v1813_v62 = vmax.f32 %v1741_v53, 0.0  ;;  %v1672_v63 = vadd.f32 %v3335_v30, %v1593_v55  ;;  %v627_v0 = vpop.f32.mrf.mxu0  ;;  %v1596_v2 = vmul.f32 %v2898_v59, %v3324_v25 }
 0x151   :  { %v844_v1 = vadd.f32 %v3329_v27, %v765_v58  ;;  %v763_v3 = vmul.f32 %v3319_v24, %v627_v0  ;;  %v1458_v4 = vpop.f32.mrf.mxu1  ;;  %v1746_v6 = vadd.f32 %v1674_v54, %v843_v49 }
 0x152   :  { %2640 = vst [vmem:[%s3760_s8 + $0xc8] sm:$0xff] %v2564_v61   ;;  %v2559_v5 = vpack.c.bf16 %v1813_v62, %v1812_v60  ;;  %v1594_v7 = vmul.f32 %v3324_v25, %v1458_v4  ;;  %v2813_v8 = vpop.f32.mrf.mxu0  ;;  %v1744_v9 = vadd.f32 %v1672_v63, %v841_v57  ;;  %v1675_v10 = vadd.f32 %v3335_v30, %v1596_v2 }
 0x153   :  { %v842_v11 = vadd.f32 %v3329_v27, %v763_v3  ;;  %v768_v12 = vmul.f32 %v2813_v8, %v3319_v24  ;;  %v2901_v13 = vpop.f32.mrf.mxu1  ;;  %v1818_v28 = vmax.f32 %v1746_v6, 0.0 }
 0x154   :  { %2639 = vst [vmem:[%s3760_s8 + $0xc0] sm:$0xff] %v2559_v5   ;;  %v1673_v14 = vadd.f32 %v3335_v30, %v1594_v7  ;;  %v1599_v15 = vmul.f32 %v2901_v13, %v3324_v25  ;;  %v640_v16 = vpop.f32.mrf.mxu0  ;;  %v1747_v17 = vadd.f32 %v1675_v10, %v844_v1  ;;  %v1816_v29 = vmax.f32 %v1744_v9, 0.0 }
 0x155   :  { %v847_v18 = vadd.f32 %v3329_v27, %v768_v12  ;;  %v766_v19 = vmul.f32 %v3319_v24, %v640_v16  ;;  %v1471_v20 = vpop.f32.mrf.mxu1 }
 0x156   :  { %v1745_v21 = vadd.f32 %v1673_v14, %v842_v11  ;;  %v1678_v22 = vadd.f32 %v3335_v30, %v1599_v15  ;;  %v1597_v23 = vmul.f32 %v3324_v25, %v1471_v20  ;;  %v2814_v26 = vpop.f32.mrf.mxu0  ;;  %v1819_v31 = vmax.f32 %v1747_v17, 0.0  ;;  %v3653_v30 = vld [vmem:[%s3758_s7] ss:$0 sm:$0xff] }
 0x157   :  { %v769_v33 = vmul.f32 %v3647_v32, %v2814_v26  ;;  %v2902_v27 = vpop.f32.mrf.mxu1  ;;  %v845_v25 = vadd.f32 %v3653_v30, %v766_v19 }
 0x158   :  { %v1817_v34 = vmax.f32 %v1745_v21, 0.0  ;;  %v1750_v24 = vadd.f32 %v1678_v22, %v847_v18  ;;  %v1600_v36 = vmul.f32 %v3659_v35, %v2902_v27  ;;  %v643_v37 = vpop.f32.mrf.mxu0  ;;  %v2574_v38 = vpack.c.bf16 %v1819_v31, %v1818_v28 }
 0x159   :  { %v1676_v40 = vadd.f32 %v3665_v39, %v1597_v23  ;;  %v848_v41 = vadd.f32 %v3653_v30, %v769_v33  ;;  %v767_v42 = vmul.f32 %v3647_v32, %v643_v37  ;;  %v1474_v43 = vpop.f32.mrf.mxu1 }
 0x15a   :  { %v2569_v44 = vpack.c.bf16 %v1817_v34, %v1816_v29  ;;  %v1679_v45 = vadd.f32 %v3665_v39, %v1600_v36  ;;  %v2817_v46 = vpop.f32.mrf.mxu0  ;;  %2642 = vst [vmem:[%s3760_s8 + $0xd8] sm:$0xff] %v2574_v38   ;;  %v1598_v48 = vmul.f32 %v3659_v35, %v1474_v43  ;;  %v1822_v54 = vmax.f32 %v1750_v24, 0.0 }
 0x15b   :  { %v846_v47 = vadd.f32 %v3653_v30, %v767_v42  ;;  %v772_v49 = vmul.f32 %v3647_v32, %v2817_v46  ;;  %v2905_v50 = vpop.f32.mrf.mxu1  ;;  %v1748_v55 = vadd.f32 %v1676_v40, %v845_v25 }
 0x15c   :  { %2641 = vst [vmem:[%s3760_s8 + $0xd0] sm:$0xff] %v2569_v44   ;;  %v1751_v51 = vadd.f32 %v1679_v45, %v848_v41  ;;  %v1603_v52 = vmul.f32 %v3659_v35, %v2905_v50  ;;  %v656_v53 = vpop.f32.mrf.mxu0  ;;  %v1677_v56 = vadd.f32 %v3665_v39, %v1598_v48 }
 0x15d   :  { %v770_v57 = vmul.f32 %v3647_v32, %v656_v53  ;;  %v1487_v58 = vpop.f32.mrf.mxu1  ;;  %v851_v60 = vadd.f32 %v3653_v30, %v772_v49  ;;  %v1820_v8 = vmax.f32 %v1748_v55, 0.0 }
 0x15e   :  { %v1823_v59 = vmax.f32 %v1751_v51, 0.0  ;;  %v1682_v61 = vadd.f32 %v3665_v39, %v1603_v52  ;;  %v1601_v62 = vmul.f32 %v3659_v35, %v1487_v58  ;;  %v2818_v63 = vpop.f32.mrf.mxu0  ;;  %v1749_v0 = vadd.f32 %v1677_v56, %v846_v47 }
 0x15f   :  { %v849_v1 = vadd.f32 %v3653_v30, %v770_v57  ;;  %v773_v2 = vmul.f32 %v3647_v32, %v2818_v63  ;;  %v2906_v3 = vpop.f32.mrf.mxu1 }
 0x160   :  { %v2584_v4 = vpack.c.bf16 %v1823_v59, %v1822_v54  ;;  %v1680_v5 = vadd.f32 %v3665_v39, %v1601_v62  ;;  %v1604_v6 = vmul.f32 %v3659_v35, %v2906_v3  ;;  %v659_v7 = vpop.f32.mrf.mxu0  ;;  %v1821_v9 = vmax.f32 %v1749_v0, 0.0 }
 0x161   :  { %v852_v10 = vadd.f32 %v3653_v30, %v773_v2  ;;  %v771_v11 = vmul.f32 %v3647_v32, %v659_v7  ;;  %v1490_v12 = vpop.f32.mrf.mxu1  ;;  %v1754_v13 = vadd.f32 %v1682_v61, %v851_v60 }
 0x162   :  { %2644 = vst [vmem:[%s3760_s8 + $0xe8] sm:$0xff] %v2584_v4   ;;  %v1683_v14 = vadd.f32 %v3665_v39, %v1604_v6  ;;  %v1602_v15 = vmul.f32 %v3659_v35, %v1490_v12  ;;  %v2821_v16 = vpop.f32.mrf.mxu0  ;;  %v2579_v17 = vpack.c.bf16 %v1821_v9, %v1820_v8  ;;  %v1752_v18 = vadd.f32 %v1680_v5, %v849_v1 }
 0x163   :  { %v850_v19 = vadd.f32 %v3653_v30, %v771_v11  ;;  %v776_v20 = vmul.f32 %v3647_v32, %v2821_v16  ;;  %v2909_v21 = vpop.f32.mrf.mxu1  ;;  %v1826_v33 = vmax.f32 %v1754_v13, 0.0 }
 0x164   :  { %v1755_v22 = vadd.f32 %v1683_v14, %v852_v10  ;;  %v1681_v23 = vadd.f32 %v3665_v39, %v1602_v15  ;;  %v1607_v26 = vmul.f32 %v3659_v35, %v2909_v21  ;;  %v672_v28 = vpop.f32.mrf.mxu0  ;;  %2643 = vst [vmem:[%s3760_s8 + $0xe0] sm:$0xff] %v2579_v17   ;;  %v1824_v36 = vmax.f32 %v1752_v18, 0.0 }
 0x165   :  { %v774_v29 = vmul.f32 %v3647_v32, %v672_v28  ;;  %v1503_v31 = vpop.f32.mrf.mxu1  ;;  %v855_v37 = vadd.f32 %v3653_v30, %v776_v20 }
 0x166   :  { %v1827_v27 = vmax.f32 %v1755_v22, 0.0  ;;  %v1753_v34 = vadd.f32 %v1681_v23, %v850_v19  ;;  %v1605_v24 = vmul.f32 %v3659_v35, %v1503_v31  ;;  %v2822_v25 = vpop.f32.mrf.mxu0  ;;  %v1686_v38 = vadd.f32 %v3665_v39, %v1607_v26 }
 0x167   :  { %v777_v40 = vmul.f32 %v3647_v32, %v2822_v25  ;;  %v2910_v41 = vpop.f32.mrf.mxu1  ;;  %v853_v44 = vadd.f32 %v3653_v30, %v774_v29 }
 0x168   :  { %v2594_v42 = vpack.c.bf16 %v1827_v27, %v1826_v33  ;;  %v1825_v43 = vmax.f32 %v1753_v34, 0.0  ;;  %v1684_v45 = vadd.f32 %v3665_v39, %v1605_v24  ;;  %v675_v46 = vpop.f32.mrf.mxu0  ;;  %v1608_v48 = vmul.f32 %v3659_v35, %v2910_v41 }
 0x169   :  { %v856_v47 = vadd.f32 %v3653_v30, %v777_v40  ;;  %v775_v49 = vmul.f32 %v3647_v32, %v675_v46  ;;  %v1506_v50 = vpop.f32.mrf.mxu1  ;;  %v1758_v54 = vadd.f32 %v1686_v38, %v855_v37 }
 0x16a   :  { %2646 = vst [vmem:[%s3760_s8 + $0xf8] sm:$0xff] %v2594_v42   ;;  %v2589_v51 = vpack.c.bf16 %v1825_v43, %v1824_v36  ;;  %v1606_v52 = vmul.f32 %v3659_v35, %v1506_v50  ;;  %v2825_v53 = vpop.f32.mrf.mxu0  ;;  %v1687_v55 = vadd.f32 %v3665_v39, %v1608_v48  ;;  %v1756_v59 = vadd.f32 %v1684_v45, %v853_v44 }
 0x16b   :  { %v854_v56 = vadd.f32 %v3653_v30, %v775_v49  ;;  %v780_v57 = vmul.f32 %v3647_v32, %v2825_v53  ;;  %v2913_v58 = vpop.f32.mrf.mxu1  ;;  %v1830_v7 = vmax.f32 %v1758_v54, 0.0 }
 0x16c   :  { %2645 = vst [vmem:[%s3760_s8 + $0xf0] sm:$0xff] %v2589_v51   ;;  %v1685_v60 = vadd.f32 %v3665_v39, %v1606_v52  ;;  %v1611_v61 = vmul.f32 %v3659_v35, %v2913_v58  ;;  %v688_v62 = vpop.f32.mrf.mxu0  ;;  %v1759_v63 = vadd.f32 %v1687_v55, %v856_v47  ;;  %v1828_v11 = vmax.f32 %v1756_v59, 0.0 }
 0x16d   :  { %v778_v0 = vmul.f32 %v3647_v32, %v688_v62  ;;  %v1519_v1 = vpop.f32.mrf.mxu1  ;;  %v859_v3 = vadd.f32 %v3653_v30, %v780_v57 }
 0x16e   :  { %v1757_v2 = vadd.f32 %v1685_v60, %v854_v56  ;;  %v1690_v4 = vadd.f32 %v3665_v39, %v1611_v61  ;;  %v1609_v5 = vmul.f32 %v3659_v35, %v1519_v1  ;;  %v2826_v6 = vpop.f32.mrf.mxu0  ;;  %v1831_v8 = vmax.f32 %v1759_v63, 0.0 }
 0x16f   :  { %v781_v9 = vmul.f32 %v3647_v32, %v2826_v6  ;;  %v2914_v10 = vpop.f32.mrf.mxu1  ;;  %v857_v13 = vadd.f32 %v3653_v30, %v778_v0 }
 0x170   :  { %v1829_v12 = vmax.f32 %v1757_v2, 0.0  ;;  %v1612_v14 = vmul.f32 %v3659_v35, %v2914_v10  ;;  %v691_v15 = vpop.f32.mrf.mxu0  ;;  %v2604_v16 = vpack.c.bf16 %v1831_v8, %v1830_v7  ;;  %v1688_v17 = vadd.f32 %v3665_v39, %v1609_v5 }
 0x171   :  { %v860_v18 = vadd.f32 %v3653_v30, %v781_v9  ;;  %v779_v19 = vmul.f32 %v3647_v32, %v691_v15  ;;  %v1522_v20 = vpop.f32.mrf.mxu1  ;;  %v1762_v22 = vadd.f32 %v1690_v4, %v859_v3 }
 0x172   :  { %v2599_v21 = vpack.c.bf16 %v1829_v12, %v1828_v11  ;;  %v1691_v23 = vadd.f32 %v3665_v39, %v1612_v14  ;;  %2648 = vst [vmem:[%s3760_s8 + $0x108] sm:$0xff] %v2604_v16   ;;  %v1610_v28 = vmul.f32 %v3659_v35, %v1522_v20  ;;  %v1760_v31 = vadd.f32 %v1688_v17, %v857_v13 }
 0x173   :  { %v858_v26 = vadd.f32 %v3653_v30, %v779_v19  ;;  %v1834_v33 = vmax.f32 %v1762_v22, 0.0 }
 0x174   :  { %2647 = vst [vmem:[%s3760_s8 + $0x100] sm:$0xff] %v2599_v21   ;;  %v1763_v29 = vadd.f32 %v1691_v23, %v860_v18  ;;  %v1689_v32 = vadd.f32 %v3665_v39, %v1610_v28  ;;  %v1832_v25 = vmax.f32 %v1760_v31, 0.0 }
 0x176   :  { %v1835_v27 = vmax.f32 %v1763_v29, 0.0  ;;  %v1761_v34 = vadd.f32 %v1689_v32, %v858_v26 }
 0x178   :  { %v2614_v24 = vpack.c.bf16 %v1835_v27, %v1834_v33  ;;  %v1833_v36 = vmax.f32 %v1761_v34, 0.0 }
 0x17a   :  { %2650 = vst [vmem:[%s3760_s8 + $0x118] sm:$0xff] %v2614_v24   ;;  %v2609_v30 = vpack.c.bf16 %v1833_v36, %v1832_v25 }
 0x17c   :  { %2649 = vst [vmem:[%s3760_s8 + $0x110] sm:$0xff] %v2609_v30  }

// kernel: _lambda_.20
= control target key start
LH: loop header
LB: loop body
LE: loop exit
PB: predicated region body
PF: predicated region fallthrough
CT: control target
= control target key end

     0   :  { %s2477_s18 = smov 0   ;;  %s3124_s0 = inlined_call_operand.vmem [shape: f32[400,128], index: 0, kind: input, shape index: {}]   ;;  %s3125_s1 = inlined_call_operand.vmem [shape: f32[400,128], index: 1, kind: input, shape index: {}]   ;;  %s3126_s2 = inlined_call_operand.vmem [shape: bf16[1152,128], index: 2, kind: input, shape index: {}]   ;;  %s3127_s3 = inlined_call_operand.vmem [shape: f32[1,128], index: 3, kind: input, shape index: {}]   ;;  %s3128_s4 = inlined_call_operand.vmem [shape: f32[1,128], index: 4, kind: input, shape index: {}]   ;;  %s3129_s5 = inlined_call_operand.vmem [shape: bf16[384,128], index: 5, kind: output, shape index: {}]  }
   0x1 LB: > { %s1758_s19 = sadd.s32 4294967295, %s2445_s18   ;;  %p1761_p0 = scmp.ge.s32.totalorder %s2445_s18, 1  ;;  %s2445_s18 = sphi %s2477_s18, %s15_s18  }
   0x2   : > { %p177_p1 = scmp.lt.s32.totalorder %s2445_s18, 4 }
   0x4   : > { %p178_p2 = pnand %p1761_p0, %p177_p1 }
   0x6   : > { %181 = sbr.rel (%p178_p2) target bundleno = 392 (0x188), region = 40 }
   0xb   : > { %v2367_v0 = vld [vmem:[%s3126_s2 + $0xf8] sm:$0xff]   ;;  %v2371_v4 = vld [vmem:[%s3126_s2 + $0xf0] sm:$0xff]   ;;  %v2375_v8 = vld [vmem:[%s3126_s2 + $0xe8] sm:$0xff]   ;;  %s1764_s28 = sshll.u32 %s1758_s19, 7 }
   0xc   : > { %v2368_v1 = vld [vmem:[%s3126_s2 + $0x78] sm:$0xff]   ;;  %2039 = vmatprep.subr.bf16.mxu0 %v2367_v0  ;;  %v2372_v5 = vld [vmem:[%s3126_s2 + $0x70] sm:$0xff]   ;;  %v2376_v9 = vld [vmem:[%s3126_s2 + $0x68] sm:$0xff]   ;;  %s2580_s12 = scalar_lea.vmem %s3124_s0, %s1764_s28  ;;  %s2585_s15 = scalar_lea.vmem %s3125_s1, %s1764_s28 }
   0xd   : > { %v2369_v2 = vld [vmem:[%s3126_s2 + $0xb8] sm:$0xff]   ;;  %2103 = vmatprep.subr.bf16.mxu1 %v2368_v1  ;;  %v2373_v6 = vld [vmem:[%s3126_s2 + $0xb0] sm:$0xff]   ;;  %v2377_v10 = vld [vmem:[%s3126_s2 + $0xa8] sm:$0xff]  }
   0xe   : > { %v2370_v3 = vld [vmem:[%s3126_s2 + $0x38] sm:$0xff]   ;;  %2040 = vmatpush3.bf16.msra.mxu0 %v2369_v2  ;;  %v2374_v7 = vld [vmem:[%s3126_s2 + $0x30] sm:$0xff]   ;;  %v2378_v11 = vld [vmem:[%s3126_s2 + $0x28] sm:$0xff]  }
   0xf   : > { %2104 = vmatpush3.bf16.msra.mxu1 %v2370_v3  ;;  %2041 = vmatprep.subr.bf16.mxu0 %v2371_v4  ;;  %v2379_v12 = vld [vmem:[%s3126_s2 + $0xe0] sm:$0xff]   ;;  %v2383_v16 = vld [vmem:[%s3126_s2 + $0xd8] sm:$0xff]   ;;  %v2387_v20 = vld [vmem:[%s3126_s2 + $0xd0] sm:$0xff]  }
  0x10   : > { %2105 = vmatprep.subr.bf16.mxu1 %v2372_v5  ;;  %v2380_v13 = vld [vmem:[%s3126_s2 + $0x60] sm:$0xff]   ;;  %v2384_v17 = vld [vmem:[%s3126_s2 + $0x58] sm:$0xff]   ;;  %v2388_v21 = vld [vmem:[%s3126_s2 + $0x50] sm:$0xff]  }
  0x11   : > { %v2381_v14 = vld [vmem:[%s3126_s2 + $0xa0] sm:$0xff]   ;;  %v2385_v18 = vld [vmem:[%s3126_s2 + $0x98] sm:$0xff]   ;;  %v2389_v22 = vld [vmem:[%s3126_s2 + $0x90] sm:$0xff]  }
  0x12   : > { %2042 = vmatpush3.bf16.msra.mxu0 %v2373_v6  ;;  %v2382_v15 = vld [vmem:[%s3126_s2 + $0x20] sm:$0xff]   ;;  %v2386_v19 = vld [vmem:[%s3126_s2 + $0x18] sm:$0xff]   ;;  %v2390_v23 = vld [vmem:[%s3126_s2 + $0x10] sm:$0xff]  }
  0x13   : > { %2106 = vmatpush3.bf16.msra.mxu1 %v2374_v7  ;;  %2043 = vmatprep.subr.bf16.mxu0 %v2375_v8  ;;  %v2391_v24 = vld [vmem:[%s3126_s2 + $0xc8] sm:$0xff]   ;;  %v2395_v28 = vld [vmem:[%s3126_s2 + $0xc0] sm:$0xff]   ;;  %v2399_v44 = vld [vmem:[%s3126_s2 + $0x178] sm:$0xff]  }
  0x14   : > { %2107 = vmatprep.subr.bf16.mxu1 %v2376_v9  ;;  %v2392_v25 = vld [vmem:[%s3126_s2 + $0x48] sm:$0xff]   ;;  %v2396_v29 = vld [vmem:[%s3126_s2 + $0x40] sm:$0xff]   ;;  %v2400_v45 = vld [vmem:[%s3126_s2 + $0x1f8] sm:$0xff]  }
  0x15   : > { %v2393_v26 = vld [vmem:[%s3126_s2 + $0x88] sm:$0xff]   ;;  %v2397_v30 = vld [vmem:[%s3126_s2 + $0x80] sm:$0xff]   ;;  %v2401_v46 = vld [vmem:[%s3126_s2 + $0x138] sm:$0xff]  }
  0x16   : > { %2044 = vmatpush3.bf16.msra.mxu0 %v2377_v10  ;;  %v2394_v27 = vld [vmem:[%s3126_s2 + $0x8] sm:$0xff]   ;;  %v2398_v31 = vld [vmem:[%s3126_s2] sm:$0xff]   ;;  %v2402_v47 = vld [vmem:[%s3126_s2 + $0x1b8] sm:$0xff]  }
  0x17   : > { %2108 = vmatpush3.bf16.msra.mxu1 %v2378_v11  ;;  %2045 = vmatprep.subr.bf16.mxu0 %v2379_v12  ;;  %v1783_v32 = vld [vmem:[%s2580_s12 + $0x7] sm:$0xff]  ;;  %v2595_v33 = vld [vmem:[%s2580_s12 + $0xf] sm:$0xff]  ;;  %v2620_v48 = vld [vmem:[%s2580_s12 + $0x17] sm:$0xff] }
  0x18   : > { %2109 = vmatprep.subr.bf16.mxu1 %v2380_v13  ;;  %v234_v34 = vld [vmem:[%s2585_s15] sm:$0xff]  ;;  %v334_v35 = vpack.c.bf16 %v2595_v33, %v1783_v32  ;;  %v235_v36 = vld [vmem:[%s2585_s15 + $0x8] sm:$0xff]  ;;  %v236_v50 = vld [vmem:[%s2585_s15 + $0x10] sm:$0xff]  ;;  %v1362_v52 = vpack.c.bf16 %v2620_v48, %v2595_v33 }
  0x19   : > { %v1766_v37 = vld [vmem:[%s2580_s12 + $0x1] sm:$0xff]  ;;  %v1767_v38 = vld [vmem:[%s2580_s12 + $0x9] sm:$0xff]  ;;  %v250_v39 = vpack.c.bf16 %v235_v36, %v234_v34  ;;  %v237_v51 = vld [vmem:[%s2585_s15 + $0x18] sm:$0xff] }
  0x1a   : > { %2046 = vmatpush3.bf16.msra.mxu0 %v2381_v14  ;;  %v308_v40 = vpack.c.bf16 %v1767_v38, %v1766_v37  ;;  %v209_v41 = vld [vmem:[%s2580_s12] sm:$0xff]  ;;  %v2604_v42 = vld [vmem:[%s2580_s12 + $0x8] sm:$0xff]  ;;  %502 = vmatprep.mubr.bf16.mxu0 %v334_v35  ;;  %v251_v54 = vpack.c.bf16 %v237_v51, %v236_v50  ;;  %v1768_v55 = vld [vmem:[%s2580_s12 + $0x11] sm:$0xff] }
  0x1b   : > { %2110 = vmatpush3.bf16.msra.mxu1 %v2382_v15  ;;  %2047 = vmatprep.subr.bf16.mxu0 %v2383_v16  ;;  %v225_v43 = vpack.c.bf16 %v2604_v42, %v209_v41  ;;  %v2623_v49 = vld [vmem:[%s2580_s12 + $0x1f] sm:$0xff]  ;;  %v2634_v57 = vld [vmem:[%s2580_s12 + $0x10] sm:$0xff]  ;;  %v2654_v1 = vld [vmem:[%s2580_s12 + $0x27] sm:$0xff] }
  0x1c   : > { %2111 = vmatprep.subr.bf16.mxu1 %v2384_v17  ;;  %695 = vmatprep.mubr.bf16.mxu1 %v250_v39  ;;  %v335_v53 = vpack.c.bf16 %v2623_v49, %v2620_v48  ;;  %v1769_v56 = vld [vmem:[%s2580_s12 + $0x19] sm:$0xff]  ;;  %v2403_v61 = vld [vmem:[%s3126_s2 + $0x170] sm:$0xff]   ;;  %v239_v5 = vld [vmem:[%s2585_s15 + $0x28] sm:$0xff]  ;;  %v1363_v7 = vpack.c.bf16 %v2654_v1, %v2623_v49 }
  0x1d   : > { %v309_v58 = vpack.c.bf16 %v1769_v56, %v1768_v55  ;;  %v2637_v59 = vld [vmem:[%s2580_s12 + $0x18] sm:$0xff]  ;;  %v2404_v62 = vld [vmem:[%s3126_s2 + $0x1f0] sm:$0xff]   ;;  %v238_v4 = vld [vmem:[%s2585_s15 + $0x20] sm:$0xff] }
  0x1e   : > { %2048 = vmatpush3.bf16.msra.mxu0 %v2385_v18  ;;  %v226_v60 = vpack.c.bf16 %v2637_v59, %v2634_v57  ;;  %v2405_v63 = vld [vmem:[%s3126_s2 + $0x130] sm:$0xff]   ;;  %v1770_v6 = vld [vmem:[%s2580_s12 + $0x21] sm:$0xff]  ;;  %v252_v8 = vpack.c.bf16 %v239_v5, %v238_v4  ;;  %v2415_v50 = vld [vmem:[%s3126_s2 + $0x158] sm:$0xff]  }
  0x1f   : > { %2112 = vmatpush3.bf16.msra.mxu1 %v2386_v19  ;;  %2049 = vmatprep.subr.bf16.mxu0 %v2387_v20  ;;  %v2406_v0 = vld [vmem:[%s3126_s2 + $0x1b0] sm:$0xff]   ;;  %v2668_v10 = vld [vmem:[%s2580_s12 + $0x20] sm:$0xff]  ;;  %v2671_v11 = vld [vmem:[%s2580_s12 + $0x28] sm:$0xff] }
  0x20   : > { %2113 = vmatprep.subr.bf16.mxu1 %v2388_v21  ;;  %v2657_v2 = vld [vmem:[%s2580_s12 + $0x2f] sm:$0xff]  ;;  %v227_v14 = vpack.c.bf16 %v2671_v11, %v2668_v10  ;;  %v2688_v18 = vld [vmem:[%s2580_s12 + $0x37] sm:$0xff]  ;;  %v2691_v19 = vld [vmem:[%s2580_s12 + $0x3f] sm:$0xff] }
  0x21   : > { %v336_v3 = vpack.c.bf16 %v2657_v2, %v2654_v1  ;;  %v1771_v9 = vld [vmem:[%s2580_s12 + $0x29] sm:$0xff]  ;;  %v337_v21 = vpack.c.bf16 %v2691_v19, %v2688_v18  ;;  %v2413_v34 = vld [vmem:[%s3126_s2 + $0x120] sm:$0xff]   ;;  %v2416_v51 = vld [vmem:[%s3126_s2 + $0x1d8] sm:$0xff]  }
  0x22   : > { %2050 = vmatpush3.bf16.msra.mxu0 %v2389_v22  ;;  %v310_v12 = vpack.c.bf16 %v1771_v9, %v1770_v6  ;;  %v2407_v13 = vld [vmem:[%s3126_s2 + $0x168] sm:$0xff]   ;;  %v240_v20 = vld [vmem:[%s2585_s15 + $0x30] sm:$0xff]  ;;  %v241_v22 = vld [vmem:[%s2585_s15 + $0x38] sm:$0xff] }
  0x23   : > { %2114 = vmatpush3.bf16.msra.mxu1 %v2390_v23  ;;  %2051 = vmatprep.subr.bf16.mxu0 %v2391_v24  ;;  %v2408_v15 = vld [vmem:[%s3126_s2 + $0x1e8] sm:$0xff]   ;;  %v1772_v23 = vld [vmem:[%s2580_s12 + $0x31] sm:$0xff]  ;;  %v1773_v24 = vld [vmem:[%s2580_s12 + $0x39] sm:$0xff] }
  0x24   : > { %2115 = vmatprep.subr.bf16.mxu1 %v2392_v25  ;;  %v2409_v16 = vld [vmem:[%s3126_s2 + $0x128] sm:$0xff]   ;;  %v1364_v25 = vpack.c.bf16 %v2688_v18, %v2657_v2  ;;  %v2414_v35 = vld [vmem:[%s3126_s2 + $0x1a0] sm:$0xff]   ;;  %v2418_v56 = vld [vmem:[%s3126_s2 + $0x198] sm:$0xff]  }
  0x25   : > { %v2410_v17 = vld [vmem:[%s3126_s2 + $0x1a8] sm:$0xff]   ;;  %v242_v38 = vld [vmem:[%s2585_s15 + $0x40] sm:$0xff]  ;;  %v1776_v4 = vld [vmem:[%s2580_s12 + $0x51] sm:$0xff] }
  0x26   : > { %2052 = vmatpush3.bf16.msra.mxu0 %v2393_v26  ;;  %v253_v26 = vpack.c.bf16 %v241_v22, %v240_v20  ;;  %v2722_v36 = vld [vmem:[%s2580_s12 + $0x47] sm:$0xff]  ;;  %v2725_v37 = vld [vmem:[%s2580_s12 + $0x4f] sm:$0xff]  ;;  %v1777_v5 = vld [vmem:[%s2580_s12 + $0x59] sm:$0xff] }
  0x27   : > { %2116 = vmatpush3.bf16.msra.mxu1 %v2394_v27  ;;  %2053 = vmatprep.subr.bf16.mxu0 %v2395_v28  ;;  %v2702_v27 = vld [vmem:[%s2580_s12 + $0x30] sm:$0xff]  ;;  %v2705_v28 = vld [vmem:[%s2580_s12 + $0x38] sm:$0xff]  ;;  %v243_v39 = vld [vmem:[%s2585_s15 + $0x48] sm:$0xff]  ;;  %v338_v41 = vpack.c.bf16 %v2725_v37, %v2722_v36 }
  0x28   : > { %2117 = vmatprep.subr.bf16.mxu1 %v2396_v29  ;;  %v2411_v29 = vld [vmem:[%s3126_s2 + $0x160] sm:$0xff]   ;;  %v228_v32 = vpack.c.bf16 %v2705_v28, %v2702_v27  ;;  %v2770_v6 = vld [vmem:[%s2580_s12 + $0x50] sm:$0xff] }
  0x29   : > { %v2419_v9 = vld [vmem:[%s3126_s2 + $0x150] sm:$0xff]   ;;  %v246_v20 = vld [vmem:[%s2585_s15 + $0x60] sm:$0xff] }
  0x2a   : > { %2054 = vmatpush3.bf16.msra.mxu0 %v2397_v30  ;;  %v311_v30 = vpack.c.bf16 %v1773_v24, %v1772_v23  ;;  %v247_v23 = vld [vmem:[%s2585_s15 + $0x68] sm:$0xff] }
  0x2b   : > { %2118 = vmatpush3.bf16.msra.mxu1 %v2398_v31  ;;  %2167 = vmatprep.subr.bf16.mxu0 %v2399_v44  ;;  %v2412_v31 = vld [vmem:[%s3126_s2 + $0x1e0] sm:$0xff]  }
  0x2c   : > { %2231 = vmatprep.subr.bf16.mxu1 %v2400_v45  ;;  %v1774_v44 = vld [vmem:[%s2580_s12 + $0x41] sm:$0xff]  ;;  %v1775_v45 = vld [vmem:[%s2580_s12 + $0x49] sm:$0xff] }
  0x2d   : > { %503 = vmatmul.mubr.bf16.vlgmr.msra.gmra.mxu0 %v308_v40  ;;  %v1365_v40 = vpack.c.bf16 %v2722_v36, %v2691_v19  ;;  %v1947_v33 = vld [vmem:[%s2580_s12 + $0x87] sm:$0xff] }
  0x2e   : > { %696 = vmatmul.mubr.bf16.vlgmr.msra.gmra.mxu1 %v225_v43  ;;  %2168 = vmatpush3.bf16.msra.mxu0 %v2401_v46  ;;  %v254_v43 = vpack.c.bf16 %v243_v39, %v242_v38  ;;  %v2736_v46 = vld [vmem:[%s2580_s12 + $0x40] sm:$0xff]  ;;  %v2425_v38 = vld [vmem:[%s3126_s2 + $0x108] sm:$0xff]  }
  0x2f   : > { %2232 = vmatpush3.bf16.msra.mxu1 %v2402_v47  ;;  %510 = vmatprep.mubr.bf16.mxu0 %v335_v53  ;;  %v2739_v47 = vld [vmem:[%s2580_s12 + $0x48] sm:$0xff]  ;;  %v312_v53 = vpack.c.bf16 %v1775_v45, %v1774_v44  ;;  %v248_v44 = vld [vmem:[%s2585_s15 + $0x70] sm:$0xff]  ;;  %v249_v45 = vld [vmem:[%s2585_s15 + $0x78] sm:$0xff] }
  0x30   : > { %703 = vmatprep.mubr.bf16.mxu1 %v251_v54  ;;  %2169 = vmatprep.subr.bf16.mxu0 %v2403_v61  ;;  %v2417_v54 = vld [vmem:[%s3126_s2 + $0x118] sm:$0xff]   ;;  %v229_v55 = vpack.c.bf16 %v2739_v47, %v2736_v46  ;;  %v2426_v39 = vld [vmem:[%s3126_s2 + $0x188] sm:$0xff]  }
  0x31   : > { %2233 = vmatprep.subr.bf16.mxu1 %v2404_v62  ;;  %v244_v62 = vld [vmem:[%s2585_s15 + $0x50] sm:$0xff] }
  0x32   : > { %2170 = vmatpush3.bf16.msra.mxu0 %v2405_v63  ;;  %v245_v63 = vld [vmem:[%s2585_s15 + $0x58] sm:$0xff] }
  0x33   : > { %2234 = vmatpush3.bf16.msra.mxu1 %v2406_v0  ;;  %2171 = vmatprep.subr.bf16.mxu0 %v2407_v13  ;;  %v2421_v13 = vld [vmem:[%s3126_s2 + $0x110] sm:$0xff]  }
  0x34   : > { %2235 = vmatprep.subr.bf16.mxu1 %v2408_v15  ;;  %v313_v15 = vpack.c.bf16 %v1777_v5, %v1776_v4  ;;  %v2430_v4 = vld [vmem:[%s3126_s2 + $0x180] sm:$0xff]   ;;  %v2850_v5 = vld [vmem:[%s2580_s12 + $0x70] sm:$0xff] }
  0x35   : > { %511 = vmatmul.mubr.bf16.gmra.mxu0 %v309_v58  ;;  %v2756_v58 = vld [vmem:[%s2580_s12 + $0x57] sm:$0xff] }
  0x36   : > { %704 = vmatmul.mubr.bf16.gmra.mxu1 %v226_v60  ;;  %518 = vmatprep.mubr.bf16.mxu0 %v336_v3  ;;  %v2759_v60 = vld [vmem:[%s2580_s12 + $0x5f] sm:$0xff]  ;;  %v1366_v0 = vpack.c.bf16 %v2756_v58, %v2725_v37  ;;  %v255_v3 = vpack.c.bf16 %v245_v63, %v244_v62  ;;  %v1780_v63 = vld [vmem:[%s2580_s12 + $0x71] sm:$0xff] }
  0x37   : > { %711 = vmatprep.mubr.bf16.mxu1 %v252_v8  ;;  %2172 = vmatpush3.bf16.msra.mxu0 %v2409_v16  ;;  %v339_v61 = vpack.c.bf16 %v2759_v60, %v2756_v58  ;;  %v2773_v8 = vld [vmem:[%s2580_s12 + $0x58] sm:$0xff]  ;;  %v2788_v16 = vld [vmem:[%s2580_s12 + $0x67] sm:$0xff] }
  0x38   : > { %2236 = vmatpush3.bf16.msra.mxu1 %v2410_v17  ;;  %2173 = vmatprep.subr.bf16.mxu0 %v2411_v29  ;;  %v2791_v17 = vld [vmem:[%s2580_s12 + $0x6f] sm:$0xff]  ;;  %v1367_v24 = vpack.c.bf16 %v2788_v16, %v2759_v60  ;;  %v1778_v29 = vld [vmem:[%s2580_s12 + $0x61] sm:$0xff] }
  0x39   : > { %2237 = vmatprep.subr.bf16.mxu1 %v2412_v31  ;;  %v340_v22 = vpack.c.bf16 %v2791_v17, %v2788_v16  ;;  %v2423_v31 = vld [vmem:[%s3126_s2 + $0x148] sm:$0xff]   ;;  %v2429_v62 = vld [vmem:[%s3126_s2 + $0x100] sm:$0xff]  }
  0x3b   : > { %2174 = vmatpush3.bf16.msra.mxu0 %v2413_v34  ;;  %v2810_v34 = vld [vmem:[%s2580_s12 + $0x68] sm:$0xff] }
  0x3c   : > { %2238 = vmatpush3.bf16.msra.mxu1 %v2414_v35  ;;  %2175 = vmatprep.subr.bf16.mxu0 %v2415_v50  ;;  %v2424_v35 = vld [vmem:[%s3126_s2 + $0x1c8] sm:$0xff]  }
  0x3d   : > { %519 = vmatmul.mubr.bf16.gmra.mxu0 %v310_v12  ;;  %2239 = vmatprep.subr.bf16.mxu1 %v2416_v51  ;;  %v2420_v12 = vld [vmem:[%s3126_s2 + $0x1d0] sm:$0xff]  }
  0x3e   : > { %712 = vmatmul.mubr.bf16.gmra.mxu1 %v227_v14  ;;  %526 = vmatprep.mubr.bf16.mxu0 %v337_v21  ;;  %v2422_v14 = vld [vmem:[%s3126_s2 + $0x190] sm:$0xff]   ;;  %v230_v21 = vpack.c.bf16 %v2773_v8, %v2770_v6 }
  0x3f   : > { %719 = vmatprep.mubr.bf16.mxu1 %v253_v26  ;;  %2176 = vmatpush3.bf16.msra.mxu0 %v2417_v54  ;;  %v256_v26 = vpack.c.bf16 %v247_v23, %v246_v20  ;;  %v1832_v23 = vld [vmem:[%s2585_s15 + $0x7] sm:$0xff] }
  0x40   : > { %2240 = vmatpush3.bf16.msra.mxu1 %v2418_v56  ;;  %2177 = vmatprep.subr.bf16.mxu0 %v2419_v9  ;;  %v2427_v56 = vld [vmem:[%s3126_s2 + $0x140] sm:$0xff]   ;;  %v2853_v9 = vld [vmem:[%s2580_s12 + $0x78] sm:$0xff] }
  0x41   : > { %2241 = vmatprep.subr.bf16.mxu1 %v2420_v12  ;;  %v1899_v12 = vld [vmem:[%s2585_s15 + $0xe] sm:$0xff]  ;;  %v232_v20 = vpack.c.bf16 %v2853_v9, %v2850_v5 }
  0x43   : > { %2178 = vmatpush3.bf16.msra.mxu0 %v2421_v13  ;;  %v1900_v13 = vld [vmem:[%s2585_s15 + $0x16] sm:$0xff] }
  0x44   : > { %2242 = vmatpush3.bf16.msra.mxu1 %v2422_v14  ;;  %2179 = vmatprep.subr.bf16.mxu0 %v2423_v31  ;;  %v1901_v31 = vld [vmem:[%s2585_s15 + $0x1e] sm:$0xff] }
  0x45   : > { %527 = vmatmul.mubr.bf16.gmra.mxu0 %v311_v30  ;;  %v1779_v30 = vld [vmem:[%s2580_s12 + $0x69] sm:$0xff]  ;;  %2243 = vmatprep.subr.bf16.mxu1 %v2424_v35 }
  0x46   : > { %720 = vmatmul.mubr.bf16.gmra.mxu1 %v228_v32  ;;  %534 = vmatprep.mubr.bf16.mxu0 %v338_v41  ;;  %v2807_v32 = vld [vmem:[%s2580_s12 + $0x60] sm:$0xff]  ;;  %v2822_v41 = vld [vmem:[%s2580_s12 + $0x77] sm:$0xff]  ;;  %v314_v51 = vpack.c.bf16 %v1779_v30, %v1778_v29  ;;  %v1882_v29 = vld [vmem:[%s2580_s12 + $0xe] sm:$0xff] }
  0x47   : > { %727 = vmatprep.mubr.bf16.mxu1 %v254_v43  ;;  %2180 = vmatpush3.bf16.msra.mxu0 %v2425_v38  ;;  %v2825_v43 = vld [vmem:[%s2580_s12 + $0x7f] sm:$0xff]  ;;  %v1368_v50 = vpack.c.bf16 %v2822_v41, %v2791_v17  ;;  %v1883_v30 = vld [vmem:[%s2580_s12 + $0x16] sm:$0xff] }
  0x48   : > { %2244 = vmatpush3.bf16.msra.mxu1 %v2426_v39  ;;  %v341_v54 = vpack.c.bf16 %v2825_v43, %v2822_v41  ;;  %2181 = vmatprep.subr.bf16.mxu0 %v2427_v56  ;;  %v1902_v38 = vld [vmem:[%s2585_s15 + $0x26] sm:$0xff]  ;;  %v1070_v39 = vpack.c.bf16 %v1883_v30, %v1882_v29  ;;  %v1838_v29 = vld [vmem:[%s2585_s15 + $0x37] sm:$0xff]  ;;  %v1369_v48 = vpack.c.bf16 %v1947_v33, %v2825_v43 }
  0x49   : > { %v1839_v30 = vld [vmem:[%s2585_s15 + $0x3f] sm:$0xff] }
  0x4b   : > { %2182 = vmatpush3.bf16.msra.mxu0 %v2429_v62  ;;  %v805_v62 = vpack.c.bf16 %v2702_v27, %v2671_v11  ;;  %v1905_v11 = vld [vmem:[%s2585_s15 + $0x3e] sm:$0xff]  ;;  %v1906_v27 = vld [vmem:[%s2585_s15 + $0x46] sm:$0xff] }
  0x4d   : > { %535 = vmatmul.mubr.bf16.gmra.mxu0 %v312_v53  ;;  %v231_v53 = vpack.c.bf16 %v2810_v34, %v2807_v32 }
  0x4e   : > { %728 = vmatmul.mubr.bf16.gmra.mxu1 %v229_v55  ;;  %542 = vmatprep.mubr.bf16.mxu0 %v339_v61  ;;  %v257_v55 = vpack.c.bf16 %v249_v45, %v248_v44  ;;  %v2428_v61 = vld [vmem:[%s3126_s2 + $0x1c0] sm:$0xff]   ;;  %v2432_v44 = vld [vmem:[%s3126_s2 + $0x230] sm:$0xff]  }
  0x4f   : > { %735 = vmatprep.mubr.bf16.mxu1 %v255_v3  ;;  %v1781_v3 = vld [vmem:[%s2580_s12 + $0x79] sm:$0xff]  ;;  %2245 = vmatprep.subr.bf16.mxu1 %v2428_v61 }
  0x50   : > { %2246 = vmatpush3.bf16.msra.mxu1 %v2430_v4  ;;  %v315_v14 = vpack.c.bf16 %v1781_v3, %v1780_v63  ;;  %v1834_v45 = vld [vmem:[%s2585_s15 + $0x17] sm:$0xff]  ;;  %v2434_v3 = vld [vmem:[%s3126_s2 + $0x220] sm:$0xff]  }
  0x51   : > { %v1836_v4 = vld [vmem:[%s2585_s15 + $0x27] sm:$0xff] }
  0x55   : > { %543 = vmatmul.mubr.bf16.gmra.mxu0 %v313_v15  ;;  %v2431_v15 = vld [vmem:[%s3126_s2 + $0x238] sm:$0xff]  }
  0x56   : > { %736 = vmatmul.mubr.bf16.gmra.mxu1 %v230_v21  ;;  %550 = vmatprep.mubr.bf16.mxu0 %v340_v22  ;;  %v803_v21 = vpack.c.bf16 %v2634_v57, %v2604_v42  ;;  %v1095_v22 = vpack.c.bf16 %v1900_v13, %v1899_v12  ;;  %v804_v42 = vpack.c.bf16 %v2668_v10, %v2637_v59  ;;  %v1903_v59 = vld [vmem:[%s2585_s15 + $0x2e] sm:$0xff]  ;;  %v1904_v10 = vld [vmem:[%s2585_s15 + $0x36] sm:$0xff] }
  0x57   : > { %743 = vmatprep.mubr.bf16.mxu1 %v256_v26  ;;  %2311 = vmatprep.subr.bf16.mxu0 %v2431_v15  ;;  %v1833_v26 = vld [vmem:[%s2585_s15 + $0xf] sm:$0xff]  ;;  %v1096_v57 = vpack.c.bf16 %v1902_v38, %v1901_v31  ;;  %v1097_v63 = vpack.c.bf16 %v1904_v10, %v1903_v59  ;;  %v1888_v31 = vld [vmem:[%s2580_s12 + $0x3e] sm:$0xff] }
  0x58   : > { %2343 = vmatprep.subr.bf16.mxu1 %v2431_v15  ;;  %v777_v35 = vpack.c.bf16 %v1833_v26, %v1832_v23  ;;  %v1837_v12 = vld [vmem:[%s2585_s15 + $0x2f] sm:$0xff]  ;;  %v1098_v23 = vpack.c.bf16 %v1906_v27, %v1905_v11  ;;  %v1844_v27 = vld [vmem:[%s2585_s15 + $0x67] sm:$0xff] }
  0x59   : > { %v1886_v13 = vld [vmem:[%s2580_s12 + $0x2e] sm:$0xff] }
  0x5a   : > { %v2436_v26 = vld [vmem:[%s3126_s2 + $0x210] sm:$0xff]   ;;  %v2437_v38 = vld [vmem:[%s3126_s2 + $0x208] sm:$0xff]  }
  0x5d   : > { %551 = vmatmul.mubr.bf16.gmra.mxu0 %v314_v51  ;;  %v1835_v51 = vld [vmem:[%s2585_s15 + $0x1f] sm:$0xff] }
  0x5e   : > { %744 = vmatmul.mubr.bf16.gmra.mxu1 %v231_v53  ;;  %558 = vmatprep.mubr.bf16.mxu0 %v341_v54  ;;  %v1884_v53 = vld [vmem:[%s2580_s12 + $0x1e] sm:$0xff]  ;;  %v1885_v54 = vld [vmem:[%s2580_s12 + $0x26] sm:$0xff]  ;;  %v778_v56 = vpack.c.bf16 %v1835_v51, %v1834_v45 }
  0x5f   : > { %751 = vmatprep.mubr.bf16.mxu1 %v257_v55  ;;  %v2433_v55 = vld [vmem:[%s3126_s2 + $0x228] sm:$0xff]   ;;  %v1071_v61 = vpack.c.bf16 %v1885_v54, %v1884_v53  ;;  %v2438_v45 = vld [vmem:[%s3126_s2 + $0x200] sm:$0xff]  }
  0x60   : > { %v1840_v51 = vld [vmem:[%s2585_s15 + $0x47] sm:$0xff]  ;;  %v1841_v53 = vld [vmem:[%s2585_s15 + $0x4f] sm:$0xff] }
  0x61   : > { %v1890_v54 = vld [vmem:[%s2580_s12 + $0x4e] sm:$0xff]  ;;  %v781_v59 = vpack.c.bf16 %v1841_v53, %v1840_v51 }
  0x65   : > { %559 = vmatmul.mubr.bf16.gmra.mxu0 %v315_v14  ;;  %v1887_v14 = vld [vmem:[%s2580_s12 + $0x36] sm:$0xff] }
  0x66   : > { %752 = vmatmul.mubr.bf16.gmra.mxu1 %v232_v20  ;;  %971 = vmatprep.mubr.bf16.mxu0 %v803_v21  ;;  %v779_v20 = vpack.c.bf16 %v1837_v12, %v1836_v4  ;;  %v1072_v21 = vpack.c.bf16 %v1887_v14, %v1886_v13  ;;  %v1893_v4 = vld [vmem:[%s2580_s12 + $0x66] sm:$0xff]  ;;  %v1911_v12 = vld [vmem:[%s2585_s15 + $0x6e] sm:$0xff]  ;;  %v809_v14 = vpack.c.bf16 %v2850_v5, %v2810_v34 }
  0x67   : > { %1263 = vmatprep.mubr.bf16.mxu1 %v1095_v22  ;;  %v806_v22 = vpack.c.bf16 %v2736_v46, %v2705_v28  ;;  %v1907_v28 = vld [vmem:[%s2585_s15 + $0x4e] sm:$0xff]  ;;  %v1908_v46 = vld [vmem:[%s2585_s15 + $0x56] sm:$0xff] }
  0x6d   : > { %972 = vmatmul.mubr.bf16.vlgmr.msra.gmra.mxu0 %v777_v35  ;;  %v1889_v35 = vld [vmem:[%s2580_s12 + $0x46] sm:$0xff] }
  0x6e   : > { %1264 = vmatmul.mubr.bf16.vlgmr.msra.gmra.mxu1 %v1070_v39  ;;  %2312 = vmatpush3.bf16.msra.mxu0 %v2431_v15  ;;  %v780_v39 = vpack.c.bf16 %v1839_v30, %v1838_v29 }
  0x6f   : > { %2351 = vmatpush3.bf16.msra.mxu1 %v2431_v15  ;;  %979 = vmatprep.mubr.bf16.mxu0 %v804_v42  ;;  %v2435_v15 = vld [vmem:[%s3126_s2 + $0x218] sm:$0xff]   ;;  %v1073_v42 = vpack.c.bf16 %v1889_v35, %v1888_v31 }
  0x70   : > { %1271 = vmatprep.mubr.bf16.mxu1 %v1096_v57  ;;  %2313 = vmatprep.subr.bf16.mxu0 %v2432_v44  ;;  %v807_v57 = vpack.c.bf16 %v2770_v6, %v2739_v47  ;;  %v1909_v47 = vld [vmem:[%s2585_s15 + $0x5e] sm:$0xff]  ;;  %v1910_v6 = vld [vmem:[%s2585_s15 + $0x66] sm:$0xff] }
  0x71   : > { %2344 = vmatprep.subr.bf16.mxu1 %v2432_v44  ;;  %v1846_v31 = vld [vmem:[%s2585_s15 + $0x77] sm:$0xff]  ;;  %v1847_v35 = vld [vmem:[%s2585_s15 + $0x7f] sm:$0xff] }
  0x72   : > { %2314 = vmatpush3.bf16.msra.mxu0 %v2432_v44 }
  0x73   : > { %2352 = vmatpush3.bf16.msra.mxu1 %v2432_v44  ;;  %2315 = vmatprep.subr.bf16.mxu0 %v2433_v55  ;;  %v1099_v44 = vpack.c.bf16 %v1908_v46, %v1907_v28  ;;  %v1896_v28 = vld [vmem:[%s2580_s12 + $0x7e] sm:$0xff]  ;;  %v1897_v46 = vld [vmem:[%s2580_s12 + $0x86] sm:$0xff] }
  0x74   : > { %2345 = vmatprep.subr.bf16.mxu1 %v2433_v55 }
  0x75   : > { %980 = vmatmul.mubr.bf16.gmra.mxu0 %v778_v56  ;;  %v808_v56 = vpack.c.bf16 %v2807_v32, %v2773_v8  ;;  %v1912_v8 = vld [vmem:[%s2585_s15 + $0x76] sm:$0xff] }
  0x76   : > { %1272 = vmatmul.mubr.bf16.gmra.mxu1 %v1071_v61  ;;  %987 = vmatprep.mubr.bf16.mxu0 %v805_v62  ;;  %v1100_v61 = vpack.c.bf16 %v1910_v6, %v1909_v47  ;;  %v1842_v62 = vld [vmem:[%s2585_s15 + $0x57] sm:$0xff]  ;;  %v1101_v11 = vpack.c.bf16 %v1912_v8, %v1911_v12 }
  0x77   : > { %1279 = vmatprep.mubr.bf16.mxu1 %v1097_v63  ;;  %2316 = vmatpush3.bf16.msra.mxu0 %v2433_v55  ;;  %v1843_v63 = vld [vmem:[%s2585_s15 + $0x5f] sm:$0xff] }
  0x78   : > { %2353 = vmatpush3.bf16.msra.mxu1 %v2433_v55  ;;  %2317 = vmatprep.subr.bf16.mxu0 %v2434_v3  ;;  %v1891_v55 = vld [vmem:[%s2580_s12 + $0x56] sm:$0xff]  ;;  %v782_v32 = vpack.c.bf16 %v1843_v63, %v1842_v62 }
  0x79   : > { %2346 = vmatprep.subr.bf16.mxu1 %v2434_v3  ;;  %v1074_v10 = vpack.c.bf16 %v1891_v55, %v1890_v54 }
  0x7b   : > { %2318 = vmatpush3.bf16.msra.mxu0 %v2434_v3 }
  0x7c   : > { %2354 = vmatpush3.bf16.msra.mxu1 %v2434_v3  ;;  %2319 = vmatprep.subr.bf16.mxu0 %v2435_v15  ;;  %v1892_v3 = vld [vmem:[%s2580_s12 + $0x5e] sm:$0xff] }
  0x7d   : > { %988 = vmatmul.mubr.bf16.gmra.mxu0 %v779_v20  ;;  %2347 = vmatprep.subr.bf16.mxu1 %v2435_v15  ;;  %v1075_v13 = vpack.c.bf16 %v1893_v4, %v1892_v3  ;;  %v1894_v20 = vld [vmem:[%s2580_s12 + $0x6e] sm:$0xff] }
  0x7e   : > { %1280 = vmatmul.mubr.bf16.gmra.mxu1 %v1072_v21  ;;  %995 = vmatprep.mubr.bf16.mxu0 %v806_v22  ;;  %v1895_v21 = vld [vmem:[%s2580_s12 + $0x76] sm:$0xff]  ;;  %v1864_v22 = vld [vmem:[%s2580_s12 + $0x80] sm:$0xff]  ;;  %s3038_s12 = sshll.u32 %s1758_s19, 4 }
  0x7f   : > { %1287 = vmatprep.mubr.bf16.mxu1 %v1098_v23  ;;  %2320 = vmatpush3.bf16.msra.mxu0 %v2435_v15  ;;  %v1913_v23 = vld [vmem:[%s2585_s15 + $0x7e] sm:$0xff]  ;;  %v1076_v30 = vpack.c.bf16 %v1895_v21, %v1894_v20  ;;  %v810_v34 = vpack.c.bf16 %v1864_v22, %v2853_v9  ;;  %p201_p3 = scmp.lt.s32.totalorder %s3038_s12, 47 }
  0x80   : > { %2355 = vmatpush3.bf16.msra.mxu1 %v2435_v15  ;;  %2321 = vmatprep.subr.bf16.mxu0 %v2436_v26  ;;  %v1845_v15 = vld [vmem:[%s2585_s15 + $0x6f] sm:$0xff] }
  0x81   : > { %2348 = vmatprep.subr.bf16.mxu1 %v2436_v26  ;;  %v783_v29 = vpack.c.bf16 %v1845_v15, %v1844_v27  ;;  %s3159_s12 = smov (!%p201_p3, %s3038_s12), 47 }
  0x82   : > { %s1763_s20 = sshll.u32 %s3159_s12, 2 }
  0x83   : > { %2322 = vmatpush3.bf16.msra.mxu0 %v2436_v26  ;;  %s3092_s23 = scalar_lea.vmem %s3129_s5, %s1763_s20 }
  0x84   : > { %2356 = vmatpush3.bf16.msra.mxu1 %v2436_v26  ;;  %2323 = vmatprep.subr.bf16.mxu0 %v2437_v38  ;;  %v1914_v26 = vld [vmem:[%s2585_s15 + $0x86] sm:$0xff] }
  0x85   : > { %996 = vmatmul.mubr.bf16.gmra.mxu0 %v780_v39  ;;  %2349 = vmatprep.subr.bf16.mxu1 %v2437_v38  ;;  %v1102_v5 = vpack.c.bf16 %v1914_v26, %v1913_v23  ;;  %v1077_v39 = vpack.c.bf16 %v1897_v46, %v1896_v28 }
  0x86   : > { %1288 = vmatmul.mubr.bf16.gmra.mxu1 %v1073_v42  ;;  %1003 = vmatprep.mubr.bf16.mxu0 %v807_v57 }
  0x87   : > { %1295 = vmatprep.mubr.bf16.mxu1 %v1099_v44  ;;  %2324 = vmatpush3.bf16.msra.mxu0 %v2437_v38 }
  0x88   : > { %2357 = vmatpush3.bf16.msra.mxu1 %v2437_v38  ;;  %2325 = vmatprep.subr.bf16.mxu0 %v2438_v45  ;;  %v784_v38 = vpack.c.bf16 %v1847_v35, %v1846_v31 }
  0x89   : > { %2350 = vmatprep.subr.bf16.mxu1 %v2438_v45 }
  0x8b   : > { %2326 = vmatpush3.bf16.msra.mxu0 %v2438_v45 }
  0x8c   : > { %2358 = vmatpush3.bf16.msra.mxu1 %v2438_v45 }
  0x8d   : > { %1004 = vmatmul.mubr.bf16.gmra.mxu0 %v781_v59 }
  0x8e   : > { %1296 = vmatmul.mubr.bf16.gmra.mxu1 %v1074_v10  ;;  %1011 = vmatprep.mubr.bf16.mxu0 %v808_v56 }
  0x8f   : > { %1303 = vmatprep.mubr.bf16.mxu1 %v1100_v61 }
  0x95   : > { %1012 = vmatmul.mubr.bf16.gmra.mxu0 %v782_v32 }
  0x96   : > { %1304 = vmatmul.mubr.bf16.gmra.mxu1 %v1075_v13  ;;  %1019 = vmatprep.mubr.bf16.mxu0 %v809_v14 }
  0x97   : > { %1311 = vmatprep.mubr.bf16.mxu1 %v1101_v11 }
  0x9d   : > { %1020 = vmatmul.mubr.bf16.gmra.mxu0 %v783_v29 }
  0x9e   : > { %1312 = vmatmul.mubr.bf16.gmra.mxu1 %v1076_v30  ;;  %1027 = vmatprep.mubr.bf16.mxu0 %v810_v34 }
  0x9f   : > { %1319 = vmatprep.mubr.bf16.mxu1 %v1102_v5 }
  0xa5   : > { %1028 = vmatmul.mubr.bf16.gmra.mxu0 %v784_v38 }
  0xa6   : > { %1320 = vmatmul.mubr.bf16.gmra.mxu1 %v1077_v39  ;;  %2327 = vmatprep.mubr.bf16.mxu0 %v1362_v52 }
  0xa7   : > { %2335 = vmatprep.mubr.bf16.mxu1 %v1366_v0 }
  0xad   : > { %2328 = vmatmul.mubr.bf16.vlgmr.msra.gmra.mxu0 %v1363_v7 }
  0xae   : > { %2336 = vmatmul.mubr.bf16.vlgmr.msra.gmra.mxu1 %v1367_v24  ;;  %2331 = vmatprep.mubr.bf16.mxu0 %v1364_v25 }
  0xaf   : > { %2339 = vmatprep.mubr.bf16.mxu1 %v1368_v50 }
  0xb5   : > { %2332 = vmatmul.mubr.bf16.gmra.mxu0 %v1365_v40 }
  0xb6   : > { %2340 = vmatmul.mubr.bf16.gmra.mxu1 %v1369_v48 }
  0xed   : > { %v2055_v49 = vpop.f32.mrf.mxu0 }
  0xee   : > { %v2119_v52 = vpop.f32.mrf.mxu1 }
  0xef   : > { %v2056_v1 = vpop.f32.mrf.mxu0 }
  0xf0   : > { %v2057_v7 = vadd.f32 %v2056_v1, %v2055_v49  ;;  %v2120_v37 = vpop.f32.mrf.mxu1 }
  0xf1   : > { %v2121_v58 = vadd.f32 %v2120_v37, %v2119_v52  ;;  %v2058_v2 = vpop.f32.mrf.mxu0 }
  0xf2   : > { %v2122_v18 = vpop.f32.mrf.mxu1 }
  0xf3   : > { %v2968_v25 = vadd.f32 %v2121_v58, %v2057_v7  ;;  %v2059_v60 = vpop.f32.mrf.mxu0 }
  0xf4   : > { %v2060_v0 = vadd.f32 %v2059_v60, %v2058_v2  ;;  %v2123_v16 = vpop.f32.mrf.mxu1 }
  0xf5   : > { %v2124_v17 = vadd.f32 %v2123_v16, %v2122_v18  ;;  %v2061_v24 = vpop.f32.mrf.mxu0 }
  0xf6   : > { %v2125_v41 = vpop.f32.mrf.mxu1 }
  0xf7   : > { %v2970_v43 = vadd.f32 %v2124_v17, %v2060_v0  ;;  %v2062_v19 = vpop.f32.mrf.mxu0 }
  0xf8   : > { %v2063_v36 = vadd.f32 %v2062_v19, %v2061_v24  ;;  %v2126_v40 = vpop.f32.mrf.mxu1 }
  0xf9   : > { %v2127_v50 = vadd.f32 %v2126_v40, %v2125_v41  ;;  %v2064_v9 = vpop.f32.mrf.mxu0 }
  0xfa   : > { %v2128_v42 = vpop.f32.mrf.mxu1 }
  0xfb   : > { %v2972_v57 = vadd.f32 %v2127_v50, %v2063_v36  ;;  %v2065_v44 = vpop.f32.mrf.mxu0 }
  0xfc   : > { %v2066_v45 = vadd.f32 %v2065_v44, %v2064_v9  ;;  %v2129_v51 = vpop.f32.mrf.mxu1 }
  0xfd   : > { %v2130_v53 = vadd.f32 %v2129_v51, %v2128_v42  ;;  %v2067_v54 = vpop.f32.mrf.mxu0 }
  0xfe   : > { %v2131_v55 = vpop.f32.mrf.mxu1 }
  0xff   : > { %v2974_v47 = vadd.f32 %v2130_v53, %v2066_v45  ;;  %v2068_v6 = vpop.f32.mrf.mxu0 }
 0x100   : > { %v2069_v59 = vadd.f32 %v2068_v6, %v2067_v54  ;;  %v2132_v10 = vpop.f32.mrf.mxu1 }
 0x101   : > { %v2133_v56 = vadd.f32 %v2132_v10, %v2131_v55  ;;  %v2070_v61 = vpop.f32.mrf.mxu0 }
 0x102   : > { %v2134_v62 = vpop.f32.mrf.mxu1 }
 0x103   : > { %v2976_v63 = vadd.f32 %v2133_v56, %v2069_v59  ;;  %v2071_v3 = vpop.f32.mrf.mxu0 }
 0x104   : > { %v2072_v4 = vadd.f32 %v2071_v3, %v2070_v61  ;;  %v2135_v12 = vpop.f32.mrf.mxu1 }
 0x105   : > { %v2136_v8 = vadd.f32 %v2135_v12, %v2134_v62  ;;  %v2073_v32 = vpop.f32.mrf.mxu0 }
 0x106   : > { %v2137_v13 = vpop.f32.mrf.mxu1 }
 0x107   : > { %v2978_v14 = vadd.f32 %v2136_v8, %v2072_v4  ;;  %v2074_v11 = vpop.f32.mrf.mxu0 }
 0x108   : > { %v2075_v27 = vadd.f32 %v2074_v11, %v2073_v32  ;;  %v2138_v15 = vpop.f32.mrf.mxu1 }
 0x109   : > { %v2139_v20 = vadd.f32 %v2138_v15, %v2137_v13  ;;  %v2076_v21 = vpop.f32.mrf.mxu0 }
 0x10a   : > { %v2140_v22 = vpop.f32.mrf.mxu1 }
 0x10b   : > { %v2980_v23 = vadd.f32 %v2139_v20, %v2075_v27  ;;  %v2077_v26 = vpop.f32.mrf.mxu0 }
 0x10c   : > { %v2078_v29 = vadd.f32 %v2077_v26, %v2076_v21  ;;  %v2141_v30 = vpop.f32.mrf.mxu1 }
 0x10d   : > { %v2142_v34 = vadd.f32 %v2141_v30, %v2140_v22  ;;  %v2079_v5 = vpop.f32.mrf.mxu0 }
 0x10e   : > { %v2143_v31 = vpop.f32.mrf.mxu1 }
 0x10f   : > { %v2982_v35 = vadd.f32 %v2142_v34, %v2078_v29  ;;  %v2080_v28 = vpop.f32.mrf.mxu0 }
 0x110   : > { %v2081_v46 = vadd.f32 %v2080_v28, %v2079_v5  ;;  %v2144_v38 = vpop.f32.mrf.mxu1 }
 0x111   : > { %v2145_v39 = vadd.f32 %v2144_v38, %v2143_v31  ;;  %v2082_v33 = vpop.f32.mrf.mxu0 }
 0x112   : > { %v2146_v48 = vpop.f32.mrf.mxu1 }
 0x113   : > { %v2984_v49 = vadd.f32 %v2145_v39, %v2081_v46  ;;  %v2083_v52 = vpop.f32.mrf.mxu0 }
 0x114   : > { %v2084_v1 = vadd.f32 %v2083_v52, %v2082_v33  ;;  %v2147_v7 = vpop.f32.mrf.mxu1 }
 0x115   : > { %3130 = vst [vmem:[#allocation2_spill] sm:$0xff] %v2984_v49  ;;  %v2148_v37 = vadd.f32 %v2147_v7, %v2146_v48  ;;  %v2085_v58 = vpop.f32.mrf.mxu0 }
 0x116   : > { %v2149_v2 = vpop.f32.mrf.mxu1 }
 0x117   : > { %v2986_v18 = vadd.f32 %v2148_v37, %v2084_v1  ;;  %v2086_v60 = vpop.f32.mrf.mxu0 }
 0x118   : > { %v2087_v0 = vadd.f32 %v2086_v60, %v2085_v58  ;;  %v2150_v16 = vpop.f32.mrf.mxu1 }
 0x119   : > { %3131 = vst [vmem:[#allocation3_spill] sm:$0xff] %v2986_v18  ;;  %v2151_v17 = vadd.f32 %v2150_v16, %v2149_v2  ;;  %v2088_v24 = vpop.f32.mrf.mxu0 }
 0x11a   : > { %v2152_v41 = vpop.f32.mrf.mxu1 }
 0x11b   : > { %v2988_v19 = vadd.f32 %v2151_v17, %v2087_v0  ;;  %v2089_v36 = vpop.f32.mrf.mxu0 }
 0x11c   : > { %v2090_v40 = vadd.f32 %v2089_v36, %v2088_v24  ;;  %v2153_v50 = vpop.f32.mrf.mxu1 }
 0x11d   : > { %v2154_v9 = vadd.f32 %v2153_v50, %v2152_v41  ;;  %v2091_v42 = vpop.f32.mrf.mxu0 }
 0x11e   : > { %v2155_v44 = vpop.f32.mrf.mxu1 }
 0x11f   : > { %v2990_v45 = vadd.f32 %v2154_v9, %v2090_v40  ;;  %v2092_v51 = vpop.f32.mrf.mxu0 }
 0x120   : > { %v2093_v53 = vadd.f32 %v2092_v51, %v2091_v42  ;;  %v2156_v54 = vpop.f32.mrf.mxu1 }
 0x121   : > { %3132 = vst [vmem:[#allocation4_spill] sm:$0xff] %v2990_v45  ;;  %v2157_v55 = vadd.f32 %v2156_v54, %v2155_v44  ;;  %v2094_v6 = vpop.f32.mrf.mxu0 }
 0x122   : > { %v2158_v59 = vpop.f32.mrf.mxu1 }
 0x123   : > { %v2992_v10 = vadd.f32 %v2157_v55, %v2093_v53  ;;  %v2095_v56 = vpop.f32.mrf.mxu0 }
 0x124   : > { %v2096_v61 = vadd.f32 %v2095_v56, %v2094_v6  ;;  %v2159_v62 = vpop.f32.mrf.mxu1 }
 0x125   : > { %3133 = vst [vmem:[#allocation5_spill] sm:$0xff] %v2992_v10  ;;  %v2160_v3 = vadd.f32 %v2159_v62, %v2158_v59  ;;  %v2097_v4 = vpop.f32.mrf.mxu0 }
 0x126   : > { %v2161_v12 = vpop.f32.mrf.mxu1 }
 0x127   : > { %v2994_v8 = vadd.f32 %v2160_v3, %v2096_v61  ;;  %v2098_v32 = vpop.f32.mrf.mxu0 }
 0x128   : > { %v2099_v13 = vadd.f32 %v2098_v32, %v2097_v4  ;;  %v2162_v11 = vpop.f32.mrf.mxu1 }
 0x129   : > { %3134 = vst [vmem:[#allocation6_spill] sm:$0xff] %v2994_v8  ;;  %v2163_v27 = vadd.f32 %v2162_v11, %v2161_v12  ;;  %v2100_v15 = vpop.f32.mrf.mxu0 }
 0x12a   : > { %v2164_v20 = vpop.f32.mrf.mxu1 }
 0x12b   : > { %v2996_v21 = vadd.f32 %v2163_v27, %v2099_v13  ;;  %v2101_v22 = vpop.f32.mrf.mxu0 }
 0x12c   : > { %v2102_v26 = vadd.f32 %v2101_v22, %v2100_v15  ;;  %v2165_v29 = vpop.f32.mrf.mxu1 }
 0x12d   : > { %3135 = vst [vmem:[#allocation7_spill] sm:$0xff] %v2996_v21  ;;  %v2166_v30 = vadd.f32 %v2165_v29, %v2164_v20  ;;  %v2183_v34 = vpop.f32.mrf.mxu0 }
 0x12e   : > { %v2247_v5 = vpop.f32.mrf.mxu1 }
 0x12f   : > { %v2998_v31 = vadd.f32 %v2166_v30, %v2102_v26  ;;  %v2184_v28 = vpop.f32.mrf.mxu0 }
 0x130   : > { %v2185_v46 = vadd.f32 %v2184_v28, %v2183_v34  ;;  %v2248_v38 = vpop.f32.mrf.mxu1 }
 0x131   : > { %3136 = vst [vmem:[#allocation8_spill] sm:$0xff] %v2998_v31  ;;  %v2186_v39 = vpop.f32.mrf.mxu0  ;;  %v2249_v48 = vadd.f32 %v2248_v38, %v2247_v5 }
 0x132   : > { %v1036_v33 = vadd.f32 %v2185_v46, %v2968_v25  ;;  %v2250_v52 = vpop.f32.mrf.mxu1 }
 0x133   : > { %v2187_v1 = vpop.f32.mrf.mxu0 }
 0x134   : > { %v2251_v7 = vpop.f32.mrf.mxu1  ;;  %v3001_v37 = vadd.f32 %v2249_v48, %v1036_v33  ;;  %v2188_v48 = vadd.f32 %v2187_v1, %v2186_v39 }
 0x135   : > { %v2189_v58 = vpop.f32.mrf.mxu0 }
 0x136   : > { %3137 = vst [vmem:[#allocation9_spill] sm:$0xff] %v3001_v37  ;;  %v2253_v2 = vpop.f32.mrf.mxu1 }
 0x137   : > { %v2190_v60 = vpop.f32.mrf.mxu0 }
 0x138   : > { %v2254_v0 = vpop.f32.mrf.mxu1  ;;  %v2191_v31 = vadd.f32 %v2190_v60, %v2189_v58 }
 0x139   : > { %v2192_v16 = vpop.f32.mrf.mxu0  ;;  %v2255_v49 = vadd.f32 %v2254_v0, %v2253_v2 }
 0x13a   : > { %v2256_v17 = vpop.f32.mrf.mxu1  ;;  %v1038_v18 = vadd.f32 %v2191_v31, %v2972_v57 }
 0x13b   : > { %v2193_v24 = vpop.f32.mrf.mxu0 }
 0x13c   : > { %v2257_v41 = vpop.f32.mrf.mxu1  ;;  %v2194_v37 = vadd.f32 %v2193_v24, %v2192_v16  ;;  %v1330_v0 = vadd.f32 %v2255_v49, %v1038_v18 }
 0x13d   : > { %v2195_v36 = vpop.f32.mrf.mxu0 }
 0x13e   : > { %v2259_v40 = vpop.f32.mrf.mxu1  ;;  %v1039_v39 = vadd.f32 %v2194_v37, %v2974_v47 }
 0x13f   : > { %v2196_v50 = vpop.f32.mrf.mxu0 }
 0x140   : > { %v2260_v9 = vpop.f32.mrf.mxu1 }
 0x141   : > { %v2198_v42 = vpop.f32.mrf.mxu0 }
 0x142   : > { %v2262_v25 = vpop.f32.mrf.mxu1 }
 0x143   : > { %v2199_v44 = vpop.f32.mrf.mxu0 }
 0x144   : > { %v2263_v51 = vpop.f32.mrf.mxu1  ;;  %v2200_v10 = vadd.f32 %v2199_v44, %v2198_v42  ;;  %v2258_v42 = vadd.f32 %v2257_v41, %v2256_v17 }
 0x145   : > { %v2201_v53 = vpop.f32.mrf.mxu0  ;;  %v2264_v57 = vadd.f32 %v2263_v51, %v2262_v25  ;;  %v3145_v25 = vld [vmem:[#allocation3_spill] sm:$0xff] }
 0x146   : > { %v2265_v54 = vpop.f32.mrf.mxu1  ;;  %v1041_v16 = vadd.f32 %v2200_v10, %v2978_v14  ;;  %v1331_v14 = vadd.f32 %v2258_v42, %v1039_v39 }
 0x147   : > { %v2202_v55 = vpop.f32.mrf.mxu0 }
 0x148   : > { %v2266_v6 = vpop.f32.mrf.mxu1 }
 0x149   : > { %v2204_v59 = vpop.f32.mrf.mxu0  ;;  %v2267_v31 = vadd.f32 %v2266_v6, %v2265_v54  ;;  %v3146_v6 = vld [vmem:[#allocation4_spill] sm:$0xff] }
 0x14a   : > { %v3003_v56 = vpop.f32.mrf.mxu1 }
 0x14b   : > { %3138 = vst [vmem:[#allocation10_spill] sm:$0xff] %v3003_v56  ;;  %v2205_v61 = vpop.f32.mrf.mxu0  ;;  %v2252_v56 = vadd.f32 %v2251_v7, %v2250_v52 }
 0x14c   : > { %v3005_v62 = vpop.f32.mrf.mxu1 }
 0x14d   : > { %3139 = vst [vmem:[#allocation11_spill] sm:$0xff] %v3005_v62  ;;  %v2207_v3 = vpop.f32.mrf.mxu0  ;;  %v1037_v62 = vadd.f32 %v2188_v48, %v2970_v43 }
 0x14e   : > { %v3007_v4 = vpop.f32.mrf.mxu1 }
 0x14f   : > { %3140 = vst [vmem:[#allocation12_spill] sm:$0xff] %v3007_v4  ;;  %v2208_v12 = vpop.f32.mrf.mxu0  ;;  %v1329_v10 = vadd.f32 %v2252_v56, %v1037_v62 }
 0x150   : > { %v3009_v32 = vpop.f32.mrf.mxu1  ;;  %v2209_v43 = vadd.f32 %v2208_v12, %v2207_v3  ;;  %v3151_v12 = vld [vmem:[#allocation5_spill] sm:$0xff] }
 0x151   : > { %3141 = vst [vmem:[#allocation13_spill] sm:$0xff] %v3009_v32  ;;  %v2210_v13 = vpop.f32.mrf.mxu0  ;;  %v2203_v32 = vadd.f32 %v2202_v55, %v2201_v53  ;;  %v2261_v53 = vadd.f32 %v2260_v9, %v2259_v40  ;;  %v3144_v40 = vld [vmem:[#allocation2_spill] sm:$0xff] }
 0x152   : > { %v3011_v11 = vpop.f32.mrf.mxu1  ;;  %v1044_v9 = vadd.f32 %v2209_v43, %v3144_v40  ;;  %v3147_v49 = vld [vmem:[#allocation10_spill] sm:$0xff] }
 0x153   : > { %3142 = vst [vmem:[#allocation14_spill] sm:$0xff] %v3011_v11  ;;  %v2211_v27 = vpop.f32.mrf.mxu0  ;;  %v2197_v11 = vadd.f32 %v2196_v50, %v2195_v36  ;;  %v1042_v24 = vadd.f32 %v2203_v32, %v2980_v23  ;;  %v2206_v36 = vadd.f32 %v2205_v61, %v2204_v59  ;;  %v3031_v59 = vadd.f32 %v2264_v57, %v1041_v16 }
 0x154   : > { %v3013_v15 = vpop.f32.mrf.mxu1  ;;  %v2212_v52 = vadd.f32 %v2211_v27, %v2210_v13 }
 0x155   : > { %3143 = vst [vmem:[#allocation15_spill] sm:$0xff] %v3013_v15  ;;  %v2213_v20 = vpop.f32.mrf.mxu0  ;;  %v1040_v60 = vadd.f32 %v2197_v11, %v2976_v63  ;;  %v1043_v23 = vadd.f32 %v2206_v36, %v2982_v35  ;;  %v3027_v17 = vadd.f32 %v2267_v31, %v1042_v24  ;;  %v3148_v35 = vld [vmem:[#allocation11_spill] sm:$0xff] }
 0x156   : > { %v2277_v22 = vpop.f32.mrf.mxu1  ;;  %v1045_v51 = vadd.f32 %v2212_v52, %v3145_v25  ;;  %v2270_v18 = vadd.f32 %v3148_v35, %v3147_v49  ;;  %v3149_v56 = vld [vmem:[#allocation12_spill] sm:$0xff] }
 0x157   : > { %v2214_v26 = vpop.f32.mrf.mxu0  ;;  %v3029_v41 = vadd.f32 %v2261_v53, %v1040_v60 }
 0x158   : > { %v2278_v29 = vpop.f32.mrf.mxu1  ;;  %v2215_v1 = vadd.f32 %v2214_v26, %v2213_v20  ;;  %v3150_v62 = vld [vmem:[#allocation13_spill] sm:$0xff]  ;;  %v3053_v60 = vadd.f32 %v2270_v18, %v1043_v23 }
 0x159   : > { %v2216_v30 = vpop.f32.mrf.mxu0  ;;  %v2279_v54 = vadd.f32 %v2278_v29, %v2277_v22  ;;  %v2273_v3 = vadd.f32 %v3150_v62, %v3149_v56 }
 0x15a   : > { %v2280_v34 = vpop.f32.mrf.mxu1  ;;  %v1046_v37 = vadd.f32 %v2215_v1, %v2988_v19  ;;  %v3152_v27 = vld [vmem:[#allocation14_spill] sm:$0xff] }
 0x15b   : > { %v2217_v5 = vpop.f32.mrf.mxu0  ;;  %v1336_v24 = vadd.f32 %v2273_v3, %v1044_v9 }
 0x15c   : > { %v2281_v28 = vpop.f32.mrf.mxu1  ;;  %v2218_v7 = vadd.f32 %v2217_v5, %v2216_v30  ;;  %v3153_v20 = vld [vmem:[#allocation15_spill] sm:$0xff]  ;;  %v3050_v5 = vld [vmem:[%s3127_s3] ss:$0 sm:$0xff] }
 0x15d   : > { %v2219_v46 = vpop.f32.mrf.mxu0  ;;  %v2276_v22 = vadd.f32 %v3153_v20, %v3152_v27  ;;  %v2282_v26 = vadd.f32 %v2281_v28, %v2280_v34  ;;  %v3154_v28 = vld [vmem:[#allocation7_spill] sm:$0xff] }
 0x15e   : > { %v2283_v38 = vpop.f32.mrf.mxu1  ;;  %v1047_v19 = vadd.f32 %v2218_v7, %v3146_v6 }
 0x15f   : > { %v2220_v33 = vpop.f32.mrf.mxu0  ;;  %v1337_v34 = vadd.f32 %v2276_v22, %v1045_v51 }
 0x160   : > { %v2284_v8 = vpop.f32.mrf.mxu1  ;;  %v2221_v2 = vadd.f32 %v2220_v33, %v2219_v46  ;;  %v1338_v46 = vadd.f32 %v2279_v54, %v1046_v37  ;;  %v1339_v36 = vadd.f32 %v2282_v26, %v1047_v19  ;;  %v3157_v37 = vld [vmem:[#allocation6_spill] sm:$0xff] }
 0x161   : > { %v2222_v21 = vpop.f32.mrf.mxu0  ;;  %v2285_v33 = vadd.f32 %v2284_v8, %v2283_v38  ;;  %v3060_v8 = vld [vmem:[%s3128_s4] ss:$0 sm:$0xff] }
 0x162   : > { %v3015_v15 = vpop.f32.mrf.mxu1  ;;  %v1048_v32 = vadd.f32 %v2221_v2, %v3151_v12 }
 0x163   : > { %v2223_v4 = vpop.f32.mrf.mxu0 }
 0x164   : > { %v3018_v45 = vpop.f32.mrf.mxu1  ;;  %v2224_v48 = vadd.f32 %v2223_v4, %v2222_v21  ;;  %v3155_v21 = vld [vmem:[#allocation9_spill] sm:$0xff]  ;;  %v1340_v52 = vadd.f32 %v2285_v33, %v1048_v32 }
 0x165   : > { %v2225_v58 = vpop.f32.mrf.mxu0  ;;  %v2288_v7 = vadd.f32 %v3018_v45, %v3015_v15 }
 0x166   : > { %v2289_v50 = vpop.f32.mrf.mxu1 }
 0x167   : > { %v2226_v44 = vpop.f32.mrf.mxu0 }
 0x168   : > { %v2290_v47 = vpop.f32.mrf.mxu1  ;;  %v2227_v13 = vadd.f32 %v2226_v44, %v2225_v58  ;;  %v3156_v44 = vld [vmem:[#allocation8_spill] sm:$0xff] }
 0x169   : > { %v2228_v63 = vpop.f32.mrf.mxu0 }
 0x16a   : > { %v2292_v55 = vpop.f32.mrf.mxu1  ;;  %v1050_v42 = vadd.f32 %v2227_v13, %v3154_v28 }
 0x16b   : > { %v2229_v61 = vpop.f32.mrf.mxu0 }
 0x16c   : > { %v2293_v11 = vpop.f32.mrf.mxu1  ;;  %v2230_v29 = vadd.f32 %v2229_v61, %v2228_v63  ;;  %v1049_v63 = vadd.f32 %v2224_v48, %v3157_v37 }
 0x16d   : > { %v2329_v30 = vpop.f32.mrf.mxu0  ;;  %v2294_v25 = vadd.f32 %v2293_v11, %v2292_v55 }
 0x16e   : > { %v1533_v39 = vadd.f32 %v2329_v30, %v1330_v0  ;;  %v2337_v1 = vpop.f32.mrf.mxu1  ;;  %v1051_v53 = vadd.f32 %v2230_v29, %v3156_v44  ;;  %v2291_v0 = vadd.f32 %v2290_v47, %v2289_v50  ;;  %v1341_v44 = vadd.f32 %v2288_v7, %v1049_v63 }
 0x16f   : > { %v1541_v58 = vadd.f32 %v2337_v1, %v1338_v46  ;;  %v1468_v16 = vpop.f32.mrf.mxu0 }
 0x170   : > { %v1556_v43 = vmul.f32 %v3050_v5, %v1533_v39  ;;  %v1531_v4 = vadd.f32 %v1468_v16, %v3155_v21  ;;  %v1500_v38 = vpop.f32.mrf.mxu1  ;;  %v1342_v61 = vadd.f32 %v2291_v0, %v1050_v42  ;;  %v1343_v18 = vadd.f32 %v2294_v25, %v1051_v53 }
 0x171   : > { %v1564_v57 = vmul.f32 %v3050_v5, %v1541_v58  ;;  %v1539_v31 = vadd.f32 %v1500_v38, %v1336_v24  ;;  %v2330_v2 = vpop.f32.mrf.mxu0 }
 0x172   : > { %v1554_v23 = vmul.f32 %v3050_v5, %v1531_v4  ;;  %v1534_v40 = vadd.f32 %v2330_v2, %v1331_v14  ;;  %v2338_v9 = vpop.f32.mrf.mxu1  ;;  %v1579_v45 = vadd.f32 %v3060_v8, %v1556_v43 }
 0x173   : > { %v1562_v15 = vmul.f32 %v3050_v5, %v1539_v31  ;;  %v1542_v51 = vadd.f32 %v2338_v9, %v1339_v36  ;;  %v1471_v54 = vpop.f32.mrf.mxu0  ;;  %v1587_v6 = vadd.f32 %v3060_v8, %v1564_v57 }
 0x174   : > { %v1557_v19 = vmul.f32 %v3050_v5, %v1534_v40  ;;  %v1532_v50 = vadd.f32 %v1471_v54, %v1329_v10  ;;  %v1503_v47 = vpop.f32.mrf.mxu1  ;;  %v1577_v49 = vadd.f32 %v3060_v8, %v1554_v23  ;;  %v1595_v10 = vmax.f32 %v1579_v45, 0.0 }
 0x175   : > { %v1565_v14 = vmul.f32 %v3050_v5, %v1542_v51  ;;  %v1540_v35 = vadd.f32 %v1503_v47, %v1337_v34  ;;  %v2333_v55 = vpop.f32.mrf.mxu0  ;;  %v1585_v56 = vadd.f32 %v3060_v8, %v1562_v15  ;;  %v1603_v22 = vmax.f32 %v1587_v6, 0.0 }
 0x176   : > { %v1580_v62 = vadd.f32 %v3060_v8, %v1557_v19  ;;  %v1555_v3 = vmul.f32 %v3050_v5, %v1532_v50  ;;  %v1537_v12 = vadd.f32 %v2333_v55, %v3027_v17  ;;  %v2341_v32 = vpop.f32.mrf.mxu1  ;;  %v1593_v33 = vmax.f32 %v1577_v49, 0.0 }
 0x177   : > { %v1588_v13 = vadd.f32 %v3060_v8, %v1565_v14  ;;  %v1563_v11 = vmul.f32 %v3050_v5, %v1540_v35  ;;  %v1545_v27 = vadd.f32 %v2341_v32, %v1342_v61  ;;  %v1484_v20 = vpop.f32.mrf.mxu0  ;;  %v1601_v58 = vmax.f32 %v1585_v56, 0.0 }
 0x178   : > { %v1596_v26 = vmax.f32 %v1580_v62, 0.0  ;;  %v1578_v29 = vadd.f32 %v3060_v8, %v1555_v3  ;;  %v1535_v30 = vadd.f32 %v1484_v20, %v3029_v41  ;;  %v1516_v46 = vpop.f32.mrf.mxu1  ;;  %v1560_v36 = vmul.f32 %v3050_v5, %v1537_v12 }
 0x179   : > { %v1604_v17 = vmax.f32 %v1588_v13, 0.0  ;;  %v1586_v48 = vadd.f32 %v3060_v8, %v1563_v11  ;;  %v1543_v39 = vadd.f32 %v1516_v46, %v1340_v52  ;;  %v2334_v1 = vpop.f32.mrf.mxu0  ;;  %v1568_v42 = vmul.f32 %v3050_v5, %v1545_v27 }
 0x17a   : > { %v2000_v16 = vpack.c.bf16 %v1596_v26, %v1595_v10  ;;  %v1594_v24 = vmax.f32 %v1578_v29, 0.0  ;;  %v2342_v41 = vpop.f32.mrf.mxu1  ;;  %v1558_v43 = vmul.f32 %v3050_v5, %v1535_v30  ;;  %v1538_v52 = vadd.f32 %v2334_v1, %v3053_v60 }
 0x17b   : > { %v2020_v34 = vpack.c.bf16 %v1604_v17, %v1603_v22  ;;  %v1602_v28 = vmax.f32 %v1586_v48, 0.0  ;;  %v1487_v21 = vpop.f32.mrf.mxu0  ;;  %v1566_v38 = vmul.f32 %v3050_v5, %v1543_v39  ;;  %v1546_v31 = vadd.f32 %v2342_v41, %v1343_v18 }
 0x17c   : > { %2032 = vst [vmem:[%s3092_s23 + $0x8] sm:$0xff] %v2000_v16   ;;  %v1995_v4 = vpack.c.bf16 %v1594_v24, %v1593_v33  ;;  %v1519_v53 = vpop.f32.mrf.mxu1  ;;  %v1583_v2 = vadd.f32 %v3060_v8, %v1560_v36  ;;  %v1561_v37 = vmul.f32 %v3050_v5, %v1538_v52  ;;  %v1536_v0 = vadd.f32 %v1487_v21, %v3031_v59 }
 0x17d   : > { %2036 = vst [vmem:[%s3092_s23 + $0x28] sm:$0xff] %v2020_v34   ;;  %v2015_v57 = vpack.c.bf16 %v1602_v28, %v1601_v58  ;;  %v1544_v23 = vadd.f32 %v1519_v53, %v1341_v44  ;;  %v1591_v40 = vadd.f32 %v3060_v8, %v1568_v42  ;;  %v1581_v9 = vadd.f32 %v3060_v8, %v1558_v43 }
 0x17e   : > { %1996 = vst [vmem:[%s3092_s23] sm:$0xff] %v1995_v4   ;;  %v1569_v60 = vmul.f32 %v3050_v5, %v1546_v31  ;;  %v1589_v7 = vadd.f32 %v3060_v8, %v1566_v38  ;;  %v1584_v63 = vadd.f32 %v3060_v8, %v1561_v37  ;;  %v1559_v25 = vmul.f32 %v3050_v5, %v1536_v0 }
 0x17f   : > { %2035 = vst [vmem:[%s3092_s23 + $0x20] sm:$0xff] %v2015_v57   ;;  %v1567_v45 = vmul.f32 %v3050_v5, %v1544_v23  ;;  %v1599_v59 = vmax.f32 %v1583_v2, 0.0  ;;  %v1607_v19 = vmax.f32 %v1591_v40, 0.0  ;;  %v1597_v50 = vmax.f32 %v1581_v9, 0.0 }
 0x180   : > { %v1592_v15 = vadd.f32 %v3060_v8, %v1569_v60  ;;  %v1600_v51 = vmax.f32 %v1584_v63, 0.0  ;;  %v1582_v54 = vadd.f32 %v3060_v8, %v1559_v25  ;;  %v1605_v61 = vmax.f32 %v1589_v7, 0.0 }
 0x181   : > { %v1590_v6 = vadd.f32 %v3060_v8, %v1567_v45 }
 0x182   : > { %v1608_v47 = vmax.f32 %v1592_v15, 0.0  ;;  %v2010_v49 = vpack.c.bf16 %v1600_v51, %v1599_v59  ;;  %v1598_v14 = vmax.f32 %v1582_v54, 0.0 }
 0x183   : > { %v1606_v35 = vmax.f32 %v1590_v6, 0.0 }
 0x184   : > { %v2030_v55 = vpack.c.bf16 %v1608_v47, %v1607_v19  ;;  %2034 = vst [vmem:[%s3092_s23 + $0x18] sm:$0xff] %v2010_v49   ;;  %v2005_v5 = vpack.c.bf16 %v1598_v14, %v1597_v50 }
 0x185   : > { %v2025_v18 = vpack.c.bf16 %v1606_v35, %v1605_v61 }
 0x186   : > { %2038 = vst [vmem:[%s3092_s23 + $0x38] sm:$0xff] %v2030_v55   ;;  %2033 = vst [vmem:[%s3092_s23 + $0x10] sm:$0xff] %v2005_v5  }
 0x187   : > { %2037 = vst [vmem:[%s3092_s23 + $0x30] sm:$0xff] %v2025_v18  }
 0x188 PF: > { %s15_s18 = sadd.s32 1, %s2445_s18  }
 0x189   : > { %p12_p4 = scmp.ge.s32.totalorder %s15_s18, 5  }
 0x18b   :  { %14 = sbr.rel (!%p12_p4) target bundleno = 1 (0x1), region = 76 }

// kernel: _lambda_.22
= control target key start
LH: loop header
LB: loop body
LE: loop exit
PB: predicated region body
PF: predicated region fallthrough
CT: control target
= control target key end

     0   :  { %v472_v0 = vmov 0.0   ;;  %vm473_vm0 = vmmov 0   ;;  %s684_s1 = inlined_call_operand.vmem [shape: bf16[128,128], index: 1, kind: input, shape index: {}]   ;;  %s685_s0 = inlined_call_operand.vmem [shape: bf16[144,128], index: 0, kind: input, shape index: {}]   ;;  %s686_s2 = inlined_call_operand.vmem [shape: f32[1,128], index: 2, kind: input, shape index: {}]   ;;  %s687_s3 = inlined_call_operand.vmem [shape: f32[1,128], index: 3, kind: input, shape index: {}]   ;;  %s688_s4 = inlined_call_operand.vmem [shape: f32[144,128], index: 4, kind: output, shape index: {}]  }
   0x1   :  { %385 = vmatprep.subr.bf16.mxu0 %v472_v0  ;;  %v455_v1 = vld [vmem:[%s684_s1 + $0x38] sm:$0xff]   ;;  %437 = vmatprep.subr.bf16.mxu1 %v472_v0  ;;  %v456_v2 = vld [vmem:[%s684_s1 + $0x30] sm:$0xff]   ;;  %v457_v3 = vld [vmem:[%s684_s1 + $0x28] sm:$0xff]  }
   0x2   :  { %401 = vmatprep.mubr.msk.bf16.mxu0 %vm473_vm0, %v472_v0  ;;  %421 = vmatprep.mubr.msk.bf16.mxu1 %vm473_vm0, %v472_v0  ;;  %v458_v4 = vld [vmem:[%s684_s1 + $0x20] sm:$0xff]   ;;  %v459_v5 = vld [vmem:[%s684_s1 + $0x18] sm:$0xff]   ;;  %v460_v6 = vld [vmem:[%s684_s1 + $0x10] sm:$0xff]  }
   0x3   :  { %386 = vmatpush3.bf16.msra.mxu0 %v455_v1  ;;  %445 = vmatpush3.bf16.msra.mxu1 %v455_v1  ;;  %v461_v7 = vld [vmem:[%s684_s1 + $0x8] sm:$0xff]   ;;  %v462_v8 = vld [vmem:[%s684_s1] sm:$0xff]   ;;  %v466_v12 = vld [vmem:[%s685_s0 + $0x30] sm:$0xff]  }
   0x4   :  { %387 = vmatprep.subr.bf16.mxu0 %v472_v0  ;;  %438 = vmatprep.subr.bf16.mxu1 %v472_v0  ;;  %v463_v9 = vld [vmem:[%s685_s0] sm:$0xff]   ;;  %v464_v10 = vld [vmem:[%s685_s0 + $0x28] sm:$0xff]   ;;  %v467_v13 = vld [vmem:[%s685_s0 + $0x10] sm:$0xff]  }
   0x5   :  { %v465_v11 = vld [vmem:[%s685_s0 + $0x8] sm:$0xff]   ;;  %v468_v14 = vld [vmem:[%s685_s0 + $0x38] sm:$0xff]   ;;  %v470_v16 = vld [vmem:[%s685_s0 + $0x40] sm:$0xff]  }
   0x6   :  { %v469_v15 = vld [vmem:[%s685_s0 + $0x18] sm:$0xff]   ;;  %v471_v17 = vld [vmem:[%s685_s0 + $0x20] sm:$0xff]  }
   0x7   :  { %388 = vmatpush3.bf16.msra.mxu0 %v456_v2  ;;  %446 = vmatpush3.bf16.msra.mxu1 %v456_v2  ;;  %v587_v18 = vld [vmem:[%s686_s2] ss:$0 sm:$0xff] }
   0x8   :  { %389 = vmatprep.subr.bf16.mxu0 %v472_v0  ;;  %439 = vmatprep.subr.bf16.mxu1 %v472_v0  ;;  %v592_v20 = vld [vmem:[%s687_s3] ss:$0 sm:$0xff] }
   0xb   :  { %390 = vmatpush3.bf16.msra.mxu0 %v457_v3  ;;  %447 = vmatpush3.bf16.msra.mxu1 %v457_v3 }
   0xc   :  { %391 = vmatprep.subr.bf16.mxu0 %v472_v0  ;;  %440 = vmatprep.subr.bf16.mxu1 %v472_v0 }
   0xf   :  { %392 = vmatpush3.bf16.msra.mxu0 %v458_v4  ;;  %448 = vmatpush3.bf16.msra.mxu1 %v458_v4 }
  0x10   :  { %393 = vmatprep.subr.bf16.mxu0 %v472_v0  ;;  %441 = vmatprep.subr.bf16.mxu1 %v472_v0 }
  0x13   :  { %394 = vmatpush3.bf16.msra.mxu0 %v459_v5  ;;  %449 = vmatpush3.bf16.msra.mxu1 %v459_v5 }
  0x14   :  { %395 = vmatprep.subr.bf16.mxu0 %v472_v0  ;;  %442 = vmatprep.subr.bf16.mxu1 %v472_v0 }
  0x17   :  { %396 = vmatpush3.bf16.msra.mxu0 %v460_v6  ;;  %450 = vmatpush3.bf16.msra.mxu1 %v460_v6 }
  0x18   :  { %397 = vmatprep.subr.bf16.mxu0 %v472_v0  ;;  %443 = vmatprep.subr.bf16.mxu1 %v472_v0 }
  0x1b   :  { %398 = vmatpush3.bf16.msra.mxu0 %v461_v7  ;;  %451 = vmatpush3.bf16.msra.mxu1 %v461_v7 }
  0x1c   :  { %399 = vmatprep.subr.bf16.mxu0 %v472_v0  ;;  %444 = vmatprep.subr.bf16.mxu1 %v472_v0 }
  0x1f   :  { %400 = vmatpush3.bf16.msra.mxu0 %v462_v8  ;;  %452 = vmatpush3.bf16.msra.mxu1 %v462_v8 }
  0x22   :  { %402 = vmatmul.mubr.bf16.vlgmr.msra.gmra.mxu0 %v463_v9  ;;  %422 = vmatmul.mubr.bf16.vlgmr.msra.gmra.mxu1 %v464_v10 }
  0x23   :  { %405 = vmatprep.mubr.msk.bf16.mxu0 %vm473_vm0, %v472_v0  ;;  %425 = vmatprep.mubr.msk.bf16.mxu1 %vm473_vm0, %v472_v0 }
  0x2a   :  { %406 = vmatmul.mubr.bf16.gmra.mxu0 %v465_v11  ;;  %426 = vmatmul.mubr.bf16.gmra.mxu1 %v466_v12 }
  0x2b   :  { %409 = vmatprep.mubr.msk.bf16.mxu0 %vm473_vm0, %v472_v0  ;;  %429 = vmatprep.mubr.msk.bf16.mxu1 %vm473_vm0, %v472_v0 }
  0x32   :  { %410 = vmatmul.mubr.bf16.gmra.mxu0 %v467_v13  ;;  %430 = vmatmul.mubr.bf16.gmra.mxu1 %v468_v14 }
  0x33   :  { %413 = vmatprep.mubr.msk.bf16.mxu0 %vm473_vm0, %v472_v0  ;;  %433 = vmatprep.mubr.msk.bf16.mxu1 %vm473_vm0, %v472_v0 }
  0x3a   :  { %414 = vmatmul.mubr.bf16.gmra.mxu0 %v469_v15  ;;  %434 = vmatmul.mubr.bf16.gmra.mxu1 %v470_v16 }
  0x3b   :  { %417 = vmatprep.mubr.msk.bf16.mxu0 %vm473_vm0, %v472_v0 }
  0x42   :  { %418 = vmatmul.mubr.bf16.gmra.mxu0 %v471_v17 }
  0xe2   :  { %v188_v19 = vpop.f32.mrf.mxu0  ;;  %v228_v21 = vpop.f32.mrf.mxu1 }
  0xe3   :  { %v266_v22 = vmul.f32 %v587_v18, %v188_v19  ;;  %v276_v23 = vmul.f32 %v587_v18, %v228_v21 }
  0xe4   :  { %v403_v24 = vpop.f32.mrf.mxu0  ;;  %v423_v25 = vpop.f32.mrf.mxu1 }
  0xe5   :  { %v291_v26 = vadd.f32 %v592_v20, %v266_v22  ;;  %v301_v27 = vadd.f32 %v592_v20, %v276_v23 }
  0xe6   :  { %v191_v28 = vpop.f32.mrf.mxu0  ;;  %v231_v29 = vpop.f32.mrf.mxu1 }
  0xe7   :  { %v309_v30 = vmax.f32 %v291_v26, 0.0  ;;  %v319_v31 = vmax.f32 %v301_v27, 0.0  ;;  %v267_v32 = vmul.f32 %v587_v18, %v191_v28  ;;  %v277_v33 = vmul.f32 %v587_v18, %v231_v29 }
  0xe8   :  { %v404_v34 = vpop.f32.mrf.mxu0  ;;  %v424_v35 = vpop.f32.mrf.mxu1 }
  0xe9   :  { %327 = vst [vmem:[%s688_s4] sm:$0xff] %v309_v30  ;;  %337 = vst [vmem:[%s688_s4 + $0x50] sm:$0xff] %v319_v31  ;;  %v292_v36 = vadd.f32 %v592_v20, %v267_v32  ;;  %v302_v37 = vadd.f32 %v592_v20, %v277_v33 }
  0xea   :  { %v196_v38 = vpop.f32.mrf.mxu0  ;;  %v236_v39 = vpop.f32.mrf.mxu1 }
  0xeb   :  { %v310_v40 = vmax.f32 %v292_v36, 0.0  ;;  %v320_v41 = vmax.f32 %v302_v37, 0.0  ;;  %v268_v42 = vmul.f32 %v587_v18, %v196_v38  ;;  %v278_v43 = vmul.f32 %v587_v18, %v236_v39 }
  0xec   :  { %v407_v44 = vpop.f32.mrf.mxu0  ;;  %v427_v45 = vpop.f32.mrf.mxu1 }
  0xed   :  { %328 = vst [vmem:[%s688_s4 + $0x8] sm:$0xff] %v310_v40  ;;  %338 = vst [vmem:[%s688_s4 + $0x58] sm:$0xff] %v320_v41  ;;  %v293_v46 = vadd.f32 %v592_v20, %v268_v42  ;;  %v303_v47 = vadd.f32 %v592_v20, %v278_v43 }
  0xee   :  { %v199_v48 = vpop.f32.mrf.mxu0  ;;  %v239_v49 = vpop.f32.mrf.mxu1 }
  0xef   :  { %v311_v50 = vmax.f32 %v293_v46, 0.0  ;;  %v321_v51 = vmax.f32 %v303_v47, 0.0  ;;  %v269_v52 = vmul.f32 %v587_v18, %v199_v48  ;;  %v279_v53 = vmul.f32 %v587_v18, %v239_v49 }
  0xf0   :  { %v408_v54 = vpop.f32.mrf.mxu0  ;;  %v428_v55 = vpop.f32.mrf.mxu1 }
  0xf1   :  { %329 = vst [vmem:[%s688_s4 + $0x10] sm:$0xff] %v311_v50  ;;  %339 = vst [vmem:[%s688_s4 + $0x60] sm:$0xff] %v321_v51  ;;  %v294_v56 = vadd.f32 %v592_v20, %v269_v52  ;;  %v304_v57 = vadd.f32 %v592_v20, %v279_v53 }
  0xf2   :  { %v204_v58 = vpop.f32.mrf.mxu0  ;;  %v244_v59 = vpop.f32.mrf.mxu1 }
  0xf3   :  { %v312_v60 = vmax.f32 %v294_v56, 0.0  ;;  %v322_v61 = vmax.f32 %v304_v57, 0.0  ;;  %v270_v62 = vmul.f32 %v587_v18, %v204_v58  ;;  %v280_v63 = vmul.f32 %v587_v18, %v244_v59 }
  0xf4   :  { %v411_v0 = vpop.f32.mrf.mxu0  ;;  %v431_v1 = vpop.f32.mrf.mxu1 }
  0xf5   :  { %330 = vst [vmem:[%s688_s4 + $0x18] sm:$0xff] %v312_v60  ;;  %340 = vst [vmem:[%s688_s4 + $0x68] sm:$0xff] %v322_v61  ;;  %v295_v2 = vadd.f32 %v592_v20, %v270_v62  ;;  %v305_v3 = vadd.f32 %v592_v20, %v280_v63 }
  0xf6   :  { %v207_v4 = vpop.f32.mrf.mxu0  ;;  %v247_v5 = vpop.f32.mrf.mxu1 }
  0xf7   :  { %v313_v6 = vmax.f32 %v295_v2, 0.0  ;;  %v323_v7 = vmax.f32 %v305_v3, 0.0  ;;  %v271_v8 = vmul.f32 %v587_v18, %v207_v4  ;;  %v281_v9 = vmul.f32 %v587_v18, %v247_v5 }
  0xf8   :  { %v412_v10 = vpop.f32.mrf.mxu0  ;;  %v432_v11 = vpop.f32.mrf.mxu1 }
  0xf9   :  { %331 = vst [vmem:[%s688_s4 + $0x20] sm:$0xff] %v313_v6  ;;  %341 = vst [vmem:[%s688_s4 + $0x70] sm:$0xff] %v323_v7  ;;  %v296_v12 = vadd.f32 %v592_v20, %v271_v8  ;;  %v306_v13 = vadd.f32 %v592_v20, %v281_v9 }
  0xfa   :  { %v212_v14 = vpop.f32.mrf.mxu0  ;;  %v252_v15 = vpop.f32.mrf.mxu1 }
  0xfb   :  { %v314_v16 = vmax.f32 %v296_v12, 0.0  ;;  %v324_v17 = vmax.f32 %v306_v13, 0.0  ;;  %v272_v19 = vmul.f32 %v587_v18, %v212_v14  ;;  %v282_v21 = vmul.f32 %v587_v18, %v252_v15 }
  0xfc   :  { %v415_v22 = vpop.f32.mrf.mxu0  ;;  %v435_v23 = vpop.f32.mrf.mxu1 }
  0xfd   :  { %332 = vst [vmem:[%s688_s4 + $0x28] sm:$0xff] %v314_v16  ;;  %342 = vst [vmem:[%s688_s4 + $0x78] sm:$0xff] %v324_v17  ;;  %v297_v24 = vadd.f32 %v592_v20, %v272_v19  ;;  %v307_v25 = vadd.f32 %v592_v20, %v282_v21 }
  0xfe   :  { %v215_v26 = vpop.f32.mrf.mxu0  ;;  %v255_v27 = vpop.f32.mrf.mxu1 }
  0xff   :  { %v315_v28 = vmax.f32 %v297_v24, 0.0  ;;  %v325_v29 = vmax.f32 %v307_v25, 0.0  ;;  %v273_v30 = vmul.f32 %v587_v18, %v215_v26  ;;  %v283_v31 = vmul.f32 %v587_v18, %v255_v27 }
 0x100   :  { %v416_v32 = vpop.f32.mrf.mxu0  ;;  %v436_v33 = vpop.f32.mrf.mxu1 }
 0x101   :  { %333 = vst [vmem:[%s688_s4 + $0x30] sm:$0xff] %v315_v28  ;;  %343 = vst [vmem:[%s688_s4 + $0x80] sm:$0xff] %v325_v29  ;;  %v298_v34 = vadd.f32 %v592_v20, %v273_v30  ;;  %v308_v35 = vadd.f32 %v592_v20, %v283_v31 }
 0x102   :  { %v220_v36 = vpop.f32.mrf.mxu0 }
 0x103   :  { %v316_v37 = vmax.f32 %v298_v34, 0.0  ;;  %v326_v38 = vmax.f32 %v308_v35, 0.0  ;;  %v274_v39 = vmul.f32 %v587_v18, %v220_v36 }
 0x104   :  { %v419_v40 = vpop.f32.mrf.mxu0 }
 0x105   :  { %334 = vst [vmem:[%s688_s4 + $0x38] sm:$0xff] %v316_v37  ;;  %344 = vst [vmem:[%s688_s4 + $0x88] sm:$0xff] %v326_v38  ;;  %v299_v41 = vadd.f32 %v592_v20, %v274_v39 }
 0x106   :  { %v223_v42 = vpop.f32.mrf.mxu0 }
 0x107   :  { %v317_v43 = vmax.f32 %v299_v41, 0.0  ;;  %v275_v44 = vmul.f32 %v587_v18, %v223_v42 }
 0x108   :  { %v420_v45 = vpop.f32.mrf.mxu0 }
 0x109   :  { %335 = vst [vmem:[%s688_s4 + $0x40] sm:$0xff] %v317_v43  ;;  %v300_v46 = vadd.f32 %v592_v20, %v275_v44 }
 0x10b   :  { %v318_v47 = vmax.f32 %v300_v46, 0.0 }
 0x10d   :  { %336 = vst [vmem:[%s688_s4 + $0x48] sm:$0xff] %v318_v47 }

// kernel: _lambda_.21
= control target key start
LH: loop header
LB: loop body
LE: loop exit
PB: predicated region body
PF: predicated region fallthrough
CT: control target
= control target key end

     0   :  { %v1043_v0 = vmov 0.0   ;;  %vm1044_vm0 = vmmov 0   ;;  %s1363_s1 = inlined_call_operand.vmem [shape: bf16[128,128], index: 1, kind: input, shape index: {}]   ;;  %s1364_s3 = inlined_call_operand.vmem [shape: bf16[128,128], index: 3, kind: input, shape index: {}]   ;;  %s1365_s0 = inlined_call_operand.vmem [shape: bf16[144,128], index: 0, kind: input, shape index: {}]   ;;  %s1366_s2 = inlined_call_operand.vmem [shape: bf16[144,128], index: 2, kind: input, shape index: {}]   ;;  %s1367_s6 = inlined_call_operand.vmem [shape: f32[1,128], index: 6, kind: input, shape index: {}]   ;;  %s1368_s4 = inlined_call_operand.vmem [shape: f32[1,128], index: 4, kind: input, shape index: {}]   ;;  %s1369_s7 = inlined_call_operand.vmem [shape: f32[1,128], index: 7, kind: input, shape index: {}]   ;;  %s1370_s5 = inlined_call_operand.vmem [shape: f32[1,128], index: 5, kind: input, shape index: {}]   ;;  %s1371_s8 = inlined_call_operand.vmem [shape: bf16[144,128], index: 8, kind: output, shape index: {}]  }
   0x1   :  { %903 = vmatprep.subr.bf16.mxu0 %v1043_v0  ;;  %955 = vmatprep.subr.bf16.mxu1 %v1043_v0  ;;  %v1009_v1 = vld [vmem:[%s1363_s1 + $0x38] sm:$0xff]   ;;  %v1011_v3 = vld [vmem:[%s1363_s1 + $0x30] sm:$0xff]   ;;  %v1013_v5 = vld [vmem:[%s1363_s1 + $0x28] sm:$0xff]  }
   0x2   :  { %v1010_v2 = vld [vmem:[%s1364_s3 + $0x38] sm:$0xff]   ;;  %919 = vmatprep.mubr.msk.bf16.mxu0 %vm1044_vm0, %v1043_v0  ;;  %971 = vmatprep.mubr.msk.bf16.mxu1 %vm1044_vm0, %v1043_v0  ;;  %v1012_v4 = vld [vmem:[%s1364_s3 + $0x30] sm:$0xff]   ;;  %v1014_v6 = vld [vmem:[%s1364_s3 + $0x28] sm:$0xff]  }
   0x3   :  { %904 = vmatpush3.bf16.msra.mxu0 %v1009_v1  ;;  %956 = vmatpush3.bf16.msra.mxu1 %v1010_v2  ;;  %v1015_v7 = vld [vmem:[%s1363_s1 + $0x20] sm:$0xff]   ;;  %v1017_v9 = vld [vmem:[%s1363_s1 + $0x18] sm:$0xff]   ;;  %v1019_v11 = vld [vmem:[%s1363_s1 + $0x10] sm:$0xff]  }
   0x4   :  { %905 = vmatprep.subr.bf16.mxu0 %v1043_v0  ;;  %957 = vmatprep.subr.bf16.mxu1 %v1043_v0  ;;  %v1016_v8 = vld [vmem:[%s1364_s3 + $0x20] sm:$0xff]   ;;  %v1018_v10 = vld [vmem:[%s1364_s3 + $0x18] sm:$0xff]   ;;  %v1020_v12 = vld [vmem:[%s1364_s3 + $0x10] sm:$0xff]  }
   0x5   :  { %v1021_v13 = vld [vmem:[%s1363_s1 + $0x8] sm:$0xff]   ;;  %v1023_v15 = vld [vmem:[%s1363_s1] sm:$0xff]   ;;  %v1029_v21 = vld [vmem:[%s1365_s0 + $0x10] sm:$0xff]  }
   0x6   :  { %v1022_v14 = vld [vmem:[%s1364_s3 + $0x8] sm:$0xff]   ;;  %v1024_v16 = vld [vmem:[%s1364_s3] sm:$0xff]   ;;  %v1030_v22 = vld [vmem:[%s1366_s2 + $0x10] sm:$0xff]  }
   0x7   :  { %906 = vmatpush3.bf16.msra.mxu0 %v1011_v3  ;;  %958 = vmatpush3.bf16.msra.mxu1 %v1012_v4  ;;  %v1025_v17 = vld [vmem:[%s1365_s0] sm:$0xff]   ;;  %v1027_v19 = vld [vmem:[%s1365_s0 + $0x8] sm:$0xff]   ;;  %v1031_v23 = vld [vmem:[%s1365_s0 + $0x18] sm:$0xff]  }
   0x8   :  { %907 = vmatprep.subr.bf16.mxu0 %v1043_v0  ;;  %959 = vmatprep.subr.bf16.mxu1 %v1043_v0  ;;  %v1026_v18 = vld [vmem:[%s1366_s2] sm:$0xff]   ;;  %v1028_v20 = vld [vmem:[%s1366_s2 + $0x8] sm:$0xff]   ;;  %v1032_v24 = vld [vmem:[%s1366_s2 + $0x18] sm:$0xff]  }
   0x9   :  { %v1033_v25 = vld [vmem:[%s1365_s0 + $0x20] sm:$0xff]   ;;  %v1035_v27 = vld [vmem:[%s1365_s0 + $0x28] sm:$0xff]   ;;  %v1037_v29 = vld [vmem:[%s1365_s0 + $0x30] sm:$0xff]  }
   0xa   :  { %v1034_v26 = vld [vmem:[%s1366_s2 + $0x20] sm:$0xff]   ;;  %v1036_v28 = vld [vmem:[%s1366_s2 + $0x28] sm:$0xff]   ;;  %v1038_v30 = vld [vmem:[%s1366_s2 + $0x30] sm:$0xff]  }
   0xb   :  { %908 = vmatpush3.bf16.msra.mxu0 %v1013_v5  ;;  %960 = vmatpush3.bf16.msra.mxu1 %v1014_v6  ;;  %v1039_v31 = vld [vmem:[%s1365_s0 + $0x38] sm:$0xff]   ;;  %v1041_v33 = vld [vmem:[%s1365_s0 + $0x40] sm:$0xff]  }
   0xc   :  { %909 = vmatprep.subr.bf16.mxu0 %v1043_v0  ;;  %961 = vmatprep.subr.bf16.mxu1 %v1043_v0  ;;  %v1040_v32 = vld [vmem:[%s1366_s2 + $0x38] sm:$0xff]   ;;  %v1042_v34 = vld [vmem:[%s1366_s2 + $0x40] sm:$0xff]  }
   0xd   :  { %v1247_v35 = vld [vmem:[%s1367_s6] ss:$0 sm:$0xff] }
   0xe   :  { %v1252_v36 = vld [vmem:[%s1368_s4] ss:$0 sm:$0xff] }
   0xf   :  { %910 = vmatpush3.bf16.msra.mxu0 %v1015_v7  ;;  %962 = vmatpush3.bf16.msra.mxu1 %v1016_v8  ;;  %v1258_v39 = vld [vmem:[%s1369_s7] ss:$0 sm:$0xff] }
  0x10   :  { %911 = vmatprep.subr.bf16.mxu0 %v1043_v0  ;;  %963 = vmatprep.subr.bf16.mxu1 %v1043_v0  ;;  %v1263_v41 = vld [vmem:[%s1370_s5] ss:$0 sm:$0xff] }
  0x13   :  { %912 = vmatpush3.bf16.msra.mxu0 %v1017_v9  ;;  %964 = vmatpush3.bf16.msra.mxu1 %v1018_v10 }
  0x14   :  { %913 = vmatprep.subr.bf16.mxu0 %v1043_v0  ;;  %965 = vmatprep.subr.bf16.mxu1 %v1043_v0 }
  0x17   :  { %914 = vmatpush3.bf16.msra.mxu0 %v1019_v11  ;;  %966 = vmatpush3.bf16.msra.mxu1 %v1020_v12 }
  0x18   :  { %915 = vmatprep.subr.bf16.mxu0 %v1043_v0  ;;  %967 = vmatprep.subr.bf16.mxu1 %v1043_v0 }
  0x1b   :  { %916 = vmatpush3.bf16.msra.mxu0 %v1021_v13  ;;  %968 = vmatpush3.bf16.msra.mxu1 %v1022_v14 }
  0x1c   :  { %917 = vmatprep.subr.bf16.mxu0 %v1043_v0  ;;  %969 = vmatprep.subr.bf16.mxu1 %v1043_v0 }
  0x1f   :  { %918 = vmatpush3.bf16.msra.mxu0 %v1023_v15  ;;  %970 = vmatpush3.bf16.msra.mxu1 %v1024_v16 }
  0x22   :  { %920 = vmatmul.mubr.bf16.vlgmr.msra.gmra.mxu0 %v1025_v17  ;;  %972 = vmatmul.mubr.bf16.vlgmr.msra.gmra.mxu1 %v1026_v18 }
  0x23   :  { %923 = vmatprep.mubr.msk.bf16.mxu0 %vm1044_vm0, %v1043_v0  ;;  %975 = vmatprep.mubr.msk.bf16.mxu1 %vm1044_vm0, %v1043_v0 }
  0x2a   :  { %924 = vmatmul.mubr.bf16.gmra.mxu0 %v1027_v19  ;;  %976 = vmatmul.mubr.bf16.gmra.mxu1 %v1028_v20 }
  0x2b   :  { %927 = vmatprep.mubr.msk.bf16.mxu0 %vm1044_vm0, %v1043_v0  ;;  %979 = vmatprep.mubr.msk.bf16.mxu1 %vm1044_vm0, %v1043_v0 }
  0x32   :  { %928 = vmatmul.mubr.bf16.gmra.mxu0 %v1029_v21  ;;  %980 = vmatmul.mubr.bf16.gmra.mxu1 %v1030_v22 }
  0x33   :  { %931 = vmatprep.mubr.msk.bf16.mxu0 %vm1044_vm0, %v1043_v0  ;;  %983 = vmatprep.mubr.msk.bf16.mxu1 %vm1044_vm0, %v1043_v0 }
  0x3a   :  { %932 = vmatmul.mubr.bf16.gmra.mxu0 %v1031_v23  ;;  %984 = vmatmul.mubr.bf16.gmra.mxu1 %v1032_v24 }
  0x3b   :  { %935 = vmatprep.mubr.msk.bf16.mxu0 %vm1044_vm0, %v1043_v0  ;;  %987 = vmatprep.mubr.msk.bf16.mxu1 %vm1044_vm0, %v1043_v0 }
  0x42   :  { %936 = vmatmul.mubr.bf16.gmra.mxu0 %v1033_v25  ;;  %988 = vmatmul.mubr.bf16.gmra.mxu1 %v1034_v26 }
  0x43   :  { %939 = vmatprep.mubr.msk.bf16.mxu0 %vm1044_vm0, %v1043_v0  ;;  %991 = vmatprep.mubr.msk.bf16.mxu1 %vm1044_vm0, %v1043_v0 }
  0x4a   :  { %940 = vmatmul.mubr.bf16.gmra.mxu0 %v1035_v27  ;;  %992 = vmatmul.mubr.bf16.gmra.mxu1 %v1036_v28 }
  0x4b   :  { %943 = vmatprep.mubr.msk.bf16.mxu0 %vm1044_vm0, %v1043_v0  ;;  %995 = vmatprep.mubr.msk.bf16.mxu1 %vm1044_vm0, %v1043_v0 }
  0x52   :  { %944 = vmatmul.mubr.bf16.gmra.mxu0 %v1037_v29  ;;  %996 = vmatmul.mubr.bf16.gmra.mxu1 %v1038_v30 }
  0x53   :  { %947 = vmatprep.mubr.msk.bf16.mxu0 %vm1044_vm0, %v1043_v0  ;;  %999 = vmatprep.mubr.msk.bf16.mxu1 %vm1044_vm0, %v1043_v0 }
  0x5a   :  { %948 = vmatmul.mubr.bf16.gmra.mxu0 %v1039_v31  ;;  %1000 = vmatmul.mubr.bf16.gmra.mxu1 %v1040_v32 }
  0x5b   :  { %951 = vmatprep.mubr.msk.bf16.mxu0 %vm1044_vm0, %v1043_v0  ;;  %1003 = vmatprep.mubr.msk.bf16.mxu1 %vm1044_vm0, %v1043_v0 }
  0x62   :  { %952 = vmatmul.mubr.bf16.gmra.mxu0 %v1041_v33  ;;  %1004 = vmatmul.mubr.bf16.gmra.mxu1 %v1042_v34 }
  0xe2   :  { %v200_v37 = vpop.f32.mrf.mxu0  ;;  %v491_v40 = vpop.f32.mrf.mxu1 }
  0xe3   :  { %v278_v38 = vmul.f32 %v1247_v35, %v200_v37  ;;  %v569_v42 = vmul.f32 %v1252_v36, %v491_v40 }
  0xe4   :  { %v921_v43 = vpop.f32.mrf.mxu0  ;;  %v973_v44 = vpop.f32.mrf.mxu1 }
  0xe5   :  { %v303_v45 = vadd.f32 %v1258_v39, %v278_v38  ;;  %v594_v46 = vadd.f32 %v1263_v41, %v569_v42 }
  0xe6   :  { %v203_v47 = vpop.f32.mrf.mxu0  ;;  %v494_v49 = vpop.f32.mrf.mxu1 }
  0xe7   :  { %v279_v48 = vmul.f32 %v1247_v35, %v203_v47  ;;  %v570_v50 = vmul.f32 %v1252_v36, %v494_v49  ;;  %v612_v54 = vadd.f32 %v594_v46, %v303_v45 }
  0xe8   :  { %v922_v51 = vpop.f32.mrf.mxu0  ;;  %v974_v53 = vpop.f32.mrf.mxu1 }
  0xe9   :  { %v304_v52 = vadd.f32 %v1258_v39, %v279_v48  ;;  %v595_v55 = vadd.f32 %v1263_v41, %v570_v50  ;;  %v630_v63 = vmax.f32 %v612_v54, 0.0 }
  0xea   :  { %v208_v56 = vpop.f32.mrf.mxu0  ;;  %v499_v58 = vpop.f32.mrf.mxu1 }
  0xeb   :  { %v280_v57 = vmul.f32 %v1247_v35, %v208_v56  ;;  %v613_v59 = vadd.f32 %v595_v55, %v304_v52  ;;  %v571_v60 = vmul.f32 %v1252_v36, %v499_v58 }
  0xec   :  { %v925_v61 = vpop.f32.mrf.mxu0  ;;  %v977_v62 = vpop.f32.mrf.mxu1 }
  0xed   :  { %v631_v0 = vmax.f32 %v613_v59, 0.0  ;;  %v305_v1 = vadd.f32 %v1258_v39, %v280_v57  ;;  %v596_v2 = vadd.f32 %v1263_v41, %v571_v60 }
  0xee   :  { %v211_v3 = vpop.f32.mrf.mxu0  ;;  %v502_v5 = vpop.f32.mrf.mxu1 }
  0xef   :  { %v281_v4 = vmul.f32 %v1247_v35, %v211_v3  ;;  %v819_v6 = vpack.c.bf16 %v631_v0, %v630_v63  ;;  %v572_v7 = vmul.f32 %v1252_v36, %v502_v5  ;;  %v614_v11 = vadd.f32 %v596_v2, %v305_v1 }
  0xf0   :  { %v926_v8 = vpop.f32.mrf.mxu0  ;;  %v978_v10 = vpop.f32.mrf.mxu1 }
  0xf1   :  { %v306_v9 = vadd.f32 %v1258_v39, %v281_v4  ;;  %820 = vst [vmem:[%s1371_s8] sm:$0xff] %v819_v6   ;;  %v597_v12 = vadd.f32 %v1263_v41, %v572_v7  ;;  %v632_v20 = vmax.f32 %v614_v11, 0.0 }
  0xf2   :  { %v216_v13 = vpop.f32.mrf.mxu0  ;;  %v507_v15 = vpop.f32.mrf.mxu1 }
  0xf3   :  { %v282_v14 = vmul.f32 %v1247_v35, %v216_v13  ;;  %v615_v16 = vadd.f32 %v597_v12, %v306_v9  ;;  %v573_v17 = vmul.f32 %v1252_v36, %v507_v15 }
  0xf4   :  { %v929_v18 = vpop.f32.mrf.mxu0  ;;  %v981_v19 = vpop.f32.mrf.mxu1 }
  0xf5   :  { %v633_v21 = vmax.f32 %v615_v16, 0.0  ;;  %v307_v22 = vadd.f32 %v1258_v39, %v282_v14  ;;  %v598_v23 = vadd.f32 %v1263_v41, %v573_v17 }
  0xf6   :  { %v219_v24 = vpop.f32.mrf.mxu0  ;;  %v510_v26 = vpop.f32.mrf.mxu1 }
  0xf7   :  { %v283_v25 = vmul.f32 %v1247_v35, %v219_v24  ;;  %v824_v27 = vpack.c.bf16 %v633_v21, %v632_v20  ;;  %v574_v28 = vmul.f32 %v1252_v36, %v510_v26  ;;  %v616_v32 = vadd.f32 %v598_v23, %v307_v22 }
  0xf8   :  { %v930_v29 = vpop.f32.mrf.mxu0  ;;  %v982_v31 = vpop.f32.mrf.mxu1 }
  0xf9   :  { %v308_v30 = vadd.f32 %v1258_v39, %v283_v25  ;;  %861 = vst [vmem:[%s1371_s8 + $0x8] sm:$0xff] %v824_v27   ;;  %v599_v33 = vadd.f32 %v1263_v41, %v574_v28  ;;  %v634_v45 = vmax.f32 %v616_v32, 0.0 }
  0xfa   :  { %v224_v34 = vpop.f32.mrf.mxu0  ;;  %v515_v38 = vpop.f32.mrf.mxu1 }
  0xfb   :  { %v284_v37 = vmul.f32 %v1247_v35, %v224_v34  ;;  %v617_v40 = vadd.f32 %v599_v33, %v308_v30  ;;  %v575_v42 = vmul.f32 %v1252_v36, %v515_v38 }
  0xfc   :  { %v933_v43 = vpop.f32.mrf.mxu0  ;;  %v985_v44 = vpop.f32.mrf.mxu1 }
  0xfd   :  { %v635_v46 = vmax.f32 %v617_v40, 0.0  ;;  %v309_v47 = vadd.f32 %v1258_v39, %v284_v37  ;;  %v600_v48 = vadd.f32 %v1263_v41, %v575_v42 }
  0xfe   :  { %v227_v49 = vpop.f32.mrf.mxu0  ;;  %v518_v51 = vpop.f32.mrf.mxu1 }
  0xff   :  { %v285_v50 = vmul.f32 %v1247_v35, %v227_v49  ;;  %v829_v52 = vpack.c.bf16 %v635_v46, %v634_v45  ;;  %v576_v53 = vmul.f32 %v1252_v36, %v518_v51  ;;  %v618_v57 = vadd.f32 %v600_v48, %v309_v47 }
 0x100   :  { %v934_v54 = vpop.f32.mrf.mxu0  ;;  %v986_v56 = vpop.f32.mrf.mxu1 }
 0x101   :  { %v310_v55 = vadd.f32 %v1258_v39, %v285_v50  ;;  %862 = vst [vmem:[%s1371_s8 + $0x10] sm:$0xff] %v829_v52   ;;  %v601_v58 = vadd.f32 %v1263_v41, %v576_v53  ;;  %v636_v2 = vmax.f32 %v618_v57, 0.0 }
 0x102   :  { %v232_v59 = vpop.f32.mrf.mxu0  ;;  %v523_v61 = vpop.f32.mrf.mxu1 }
 0x103   :  { %v286_v60 = vmul.f32 %v1247_v35, %v232_v59  ;;  %v619_v62 = vadd.f32 %v601_v58, %v310_v55  ;;  %v577_v63 = vmul.f32 %v1252_v36, %v523_v61 }
 0x104   :  { %v937_v0 = vpop.f32.mrf.mxu0  ;;  %v989_v1 = vpop.f32.mrf.mxu1 }
 0x105   :  { %v637_v3 = vmax.f32 %v619_v62, 0.0  ;;  %v311_v4 = vadd.f32 %v1258_v39, %v286_v60  ;;  %v602_v5 = vadd.f32 %v1263_v41, %v577_v63 }
 0x106   :  { %v235_v6 = vpop.f32.mrf.mxu0  ;;  %v526_v8 = vpop.f32.mrf.mxu1 }
 0x107   :  { %v287_v7 = vmul.f32 %v1247_v35, %v235_v6  ;;  %v834_v9 = vpack.c.bf16 %v637_v3, %v636_v2  ;;  %v578_v10 = vmul.f32 %v1252_v36, %v526_v8  ;;  %v620_v14 = vadd.f32 %v602_v5, %v311_v4 }
 0x108   :  { %v938_v11 = vpop.f32.mrf.mxu0  ;;  %v990_v13 = vpop.f32.mrf.mxu1 }
 0x109   :  { %v312_v12 = vadd.f32 %v1258_v39, %v287_v7  ;;  %863 = vst [vmem:[%s1371_s8 + $0x18] sm:$0xff] %v834_v9   ;;  %v603_v15 = vadd.f32 %v1263_v41, %v578_v10  ;;  %v638_v23 = vmax.f32 %v620_v14, 0.0 }
 0x10a   :  { %v240_v16 = vpop.f32.mrf.mxu0  ;;  %v531_v18 = vpop.f32.mrf.mxu1 }
 0x10b   :  { %v288_v17 = vmul.f32 %v1247_v35, %v240_v16  ;;  %v621_v19 = vadd.f32 %v603_v15, %v312_v12  ;;  %v579_v20 = vmul.f32 %v1252_v36, %v531_v18 }
 0x10c   :  { %v941_v21 = vpop.f32.mrf.mxu0  ;;  %v993_v22 = vpop.f32.mrf.mxu1 }
 0x10d   :  { %v639_v24 = vmax.f32 %v621_v19, 0.0  ;;  %v313_v25 = vadd.f32 %v1258_v39, %v288_v17  ;;  %v604_v26 = vadd.f32 %v1263_v41, %v579_v20 }
 0x10e   :  { %v243_v27 = vpop.f32.mrf.mxu0  ;;  %v534_v29 = vpop.f32.mrf.mxu1 }
 0x10f   :  { %v289_v28 = vmul.f32 %v1247_v35, %v243_v27  ;;  %v839_v30 = vpack.c.bf16 %v639_v24, %v638_v23  ;;  %v580_v31 = vmul.f32 %v1252_v36, %v534_v29  ;;  %v622_v37 = vadd.f32 %v604_v26, %v313_v25 }
 0x110   :  { %v942_v32 = vpop.f32.mrf.mxu0  ;;  %v994_v34 = vpop.f32.mrf.mxu1 }
 0x111   :  { %v314_v33 = vadd.f32 %v1258_v39, %v289_v28  ;;  %864 = vst [vmem:[%s1371_s8 + $0x20] sm:$0xff] %v839_v30   ;;  %v605_v38 = vadd.f32 %v1263_v41, %v580_v31  ;;  %v640_v48 = vmax.f32 %v622_v37, 0.0 }
 0x112   :  { %v248_v40 = vpop.f32.mrf.mxu0  ;;  %v539_v43 = vpop.f32.mrf.mxu1 }
 0x113   :  { %v290_v42 = vmul.f32 %v1247_v35, %v248_v40  ;;  %v623_v44 = vadd.f32 %v605_v38, %v314_v33  ;;  %v581_v45 = vmul.f32 %v1252_v36, %v539_v43 }
 0x114   :  { %v945_v46 = vpop.f32.mrf.mxu0  ;;  %v997_v47 = vpop.f32.mrf.mxu1 }
 0x115   :  { %v641_v49 = vmax.f32 %v623_v44, 0.0  ;;  %v315_v50 = vadd.f32 %v1258_v39, %v290_v42  ;;  %v606_v51 = vadd.f32 %v1263_v41, %v581_v45 }
 0x116   :  { %v251_v52 = vpop.f32.mrf.mxu0  ;;  %v542_v54 = vpop.f32.mrf.mxu1 }
 0x117   :  { %v291_v53 = vmul.f32 %v1247_v35, %v251_v52  ;;  %v844_v55 = vpack.c.bf16 %v641_v49, %v640_v48  ;;  %v582_v56 = vmul.f32 %v1252_v36, %v542_v54  ;;  %v624_v60 = vadd.f32 %v606_v51, %v315_v50 }
 0x118   :  { %v946_v57 = vpop.f32.mrf.mxu0  ;;  %v998_v59 = vpop.f32.mrf.mxu1 }
 0x119   :  { %v316_v58 = vadd.f32 %v1258_v39, %v291_v53  ;;  %865 = vst [vmem:[%s1371_s8 + $0x28] sm:$0xff] %v844_v55   ;;  %v607_v61 = vadd.f32 %v1263_v41, %v582_v56  ;;  %v642_v5 = vmax.f32 %v624_v60, 0.0 }
 0x11a   :  { %v256_v62 = vpop.f32.mrf.mxu0  ;;  %v547_v0 = vpop.f32.mrf.mxu1 }
 0x11b   :  { %v292_v63 = vmul.f32 %v1247_v35, %v256_v62  ;;  %v625_v1 = vadd.f32 %v607_v61, %v316_v58  ;;  %v583_v2 = vmul.f32 %v1252_v36, %v547_v0 }
 0x11c   :  { %v949_v3 = vpop.f32.mrf.mxu0  ;;  %v1001_v4 = vpop.f32.mrf.mxu1 }
 0x11d   :  { %v643_v6 = vmax.f32 %v625_v1, 0.0  ;;  %v317_v7 = vadd.f32 %v1258_v39, %v292_v63  ;;  %v608_v8 = vadd.f32 %v1263_v41, %v583_v2 }
 0x11e   :  { %v259_v9 = vpop.f32.mrf.mxu0  ;;  %v550_v11 = vpop.f32.mrf.mxu1 }
 0x11f   :  { %v293_v10 = vmul.f32 %v1247_v35, %v259_v9  ;;  %v849_v12 = vpack.c.bf16 %v643_v6, %v642_v5  ;;  %v584_v13 = vmul.f32 %v1252_v36, %v550_v11  ;;  %v626_v17 = vadd.f32 %v608_v8, %v317_v7 }
 0x120   :  { %v950_v14 = vpop.f32.mrf.mxu0  ;;  %v1002_v16 = vpop.f32.mrf.mxu1 }
 0x121   :  { %v318_v15 = vadd.f32 %v1258_v39, %v293_v10  ;;  %866 = vst [vmem:[%s1371_s8 + $0x30] sm:$0xff] %v849_v12   ;;  %v609_v18 = vadd.f32 %v1263_v41, %v584_v13  ;;  %v644_v27 = vmax.f32 %v626_v17, 0.0 }
 0x122   :  { %v264_v19 = vpop.f32.mrf.mxu0  ;;  %v555_v21 = vpop.f32.mrf.mxu1 }
 0x123   :  { %v294_v20 = vmul.f32 %v1247_v35, %v264_v19  ;;  %v627_v22 = vadd.f32 %v609_v18, %v318_v15  ;;  %v585_v23 = vmul.f32 %v1252_v36, %v555_v21 }
 0x124   :  { %v953_v24 = vpop.f32.mrf.mxu0  ;;  %v1005_v26 = vpop.f32.mrf.mxu1 }
 0x125   :  { %v319_v25 = vadd.f32 %v1258_v39, %v294_v20  ;;  %v645_v28 = vmax.f32 %v627_v22, 0.0  ;;  %v610_v29 = vadd.f32 %v1263_v41, %v585_v23 }
 0x126   :  { %v267_v30 = vpop.f32.mrf.mxu0  ;;  %v558_v32 = vpop.f32.mrf.mxu1 }
 0x127   :  { %v295_v31 = vmul.f32 %v1247_v35, %v267_v30  ;;  %v854_v33 = vpack.c.bf16 %v645_v28, %v644_v27  ;;  %v628_v34 = vadd.f32 %v610_v29, %v319_v25  ;;  %v586_v37 = vmul.f32 %v1252_v36, %v558_v32 }
 0x128   :  { %v954_v38 = vpop.f32.mrf.mxu0  ;;  %v1006_v42 = vpop.f32.mrf.mxu1 }
 0x129   :  { %v320_v40 = vadd.f32 %v1258_v39, %v295_v31  ;;  %867 = vst [vmem:[%s1371_s8 + $0x38] sm:$0xff] %v854_v33   ;;  %v611_v43 = vadd.f32 %v1263_v41, %v586_v37  ;;  %v646_v45 = vmax.f32 %v628_v34, 0.0 }
 0x12b   :  { %v629_v44 = vadd.f32 %v611_v43, %v320_v40 }
 0x12d   :  { %v647_v46 = vmax.f32 %v629_v44, 0.0 }
 0x12f   :  { %v859_v47 = vpack.c.bf16 %v647_v46, %v646_v45 }
 0x131   :  { %868 = vst [vmem:[%s1371_s8 + $0x40] sm:$0xff] %v859_v47  }

// kernel: _lambda_.25
= control target key start
LH: loop header
LB: loop body
LE: loop exit
PB: predicated region body
PF: predicated region fallthrough
CT: control target
= control target key end

     0   :  { %v278_v0 = vmov 0.0   ;;  %vm279_vm0 = vmmov 0   ;;  %s362_s1 = inlined_call_operand.vmem [shape: bf16[128,128], index: 1, kind: input, shape index: {}]   ;;  %s363_s0 = inlined_call_operand.vmem [shape: bf16[36,128], index: 0, kind: input, shape index: {}]   ;;  %s364_s2 = inlined_call_operand.vmem [shape: f32[1,128], index: 2, kind: input, shape index: {}]   ;;  %s365_s3 = inlined_call_operand.vmem [shape: f32[1,128], index: 3, kind: input, shape index: {}]   ;;  %s366_s4 = inlined_call_operand.vmem [shape: f32[36,128], index: 4, kind: output, shape index: {}]  }
   0x1   :  { %221 = vmatprep.subr.bf16.mxu0 %v278_v0  ;;  %249 = vmatprep.subr.bf16.mxu1 %v278_v0  ;;  %v267_v1 = vld [vmem:[%s362_s1 + $0x38] sm:$0xff]   ;;  %v268_v2 = vld [vmem:[%s362_s1 + $0x30] sm:$0xff]   ;;  %v269_v3 = vld [vmem:[%s362_s1 + $0x28] sm:$0xff]  }
   0x2   :  { %237 = vmatprep.mubr.msk.bf16.mxu0 %vm279_vm0, %v278_v0  ;;  %241 = vmatprep.mubr.msk.bf16.mxu1 %vm279_vm0, %v278_v0  ;;  %v270_v4 = vld [vmem:[%s362_s1 + $0x20] sm:$0xff]   ;;  %v271_v5 = vld [vmem:[%s362_s1 + $0x18] sm:$0xff]   ;;  %v272_v6 = vld [vmem:[%s362_s1 + $0x10] sm:$0xff]  }
   0x3   :  { %222 = vmatpush3.bf16.msra.mxu0 %v267_v1  ;;  %257 = vmatpush3.bf16.msra.mxu1 %v267_v1  ;;  %v273_v7 = vld [vmem:[%s362_s1 + $0x8] sm:$0xff]   ;;  %v274_v8 = vld [vmem:[%s362_s1] sm:$0xff]   ;;  %v277_v11 = vld [vmem:[%s363_s0 + $0x10] ss:$0 sps:$4 sm:$0x33]  }
   0x4   :  { %223 = vmatprep.subr.bf16.mxu0 %v278_v0  ;;  %250 = vmatprep.subr.bf16.mxu1 %v278_v0  ;;  %v275_v9 = vld [vmem:[%s363_s0] sm:$0xff]   ;;  %v276_v10 = vld [vmem:[%s363_s0 + $0x8] sm:$0xff]  }
   0x5   :  { %v208_v12 = vld [vmem:[%s364_s2] ss:$0 sm:$0xff] }
   0x6   :  { %v209_v14 = vld [vmem:[%s365_s3] ss:$0 sm:$0xff] }
   0x7   :  { %224 = vmatpush3.bf16.msra.mxu0 %v268_v2  ;;  %258 = vmatpush3.bf16.msra.mxu1 %v268_v2 }
   0x8   :  { %225 = vmatprep.subr.bf16.mxu0 %v278_v0  ;;  %251 = vmatprep.subr.bf16.mxu1 %v278_v0 }
   0xb   :  { %226 = vmatpush3.bf16.msra.mxu0 %v269_v3  ;;  %259 = vmatpush3.bf16.msra.mxu1 %v269_v3 }
   0xc   :  { %227 = vmatprep.subr.bf16.mxu0 %v278_v0  ;;  %252 = vmatprep.subr.bf16.mxu1 %v278_v0 }
   0xf   :  { %228 = vmatpush3.bf16.msra.mxu0 %v270_v4  ;;  %260 = vmatpush3.bf16.msra.mxu1 %v270_v4 }
  0x10   :  { %229 = vmatprep.subr.bf16.mxu0 %v278_v0  ;;  %253 = vmatprep.subr.bf16.mxu1 %v278_v0 }
  0x13   :  { %230 = vmatpush3.bf16.msra.mxu0 %v271_v5  ;;  %261 = vmatpush3.bf16.msra.mxu1 %v271_v5 }
  0x14   :  { %231 = vmatprep.subr.bf16.mxu0 %v278_v0  ;;  %254 = vmatprep.subr.bf16.mxu1 %v278_v0 }
  0x17   :  { %232 = vmatpush3.bf16.msra.mxu0 %v272_v6  ;;  %262 = vmatpush3.bf16.msra.mxu1 %v272_v6 }
  0x18   :  { %233 = vmatprep.subr.bf16.mxu0 %v278_v0  ;;  %255 = vmatprep.subr.bf16.mxu1 %v278_v0 }
  0x1b   :  { %234 = vmatpush3.bf16.msra.mxu0 %v273_v7  ;;  %263 = vmatpush3.bf16.msra.mxu1 %v273_v7 }
  0x1c   :  { %235 = vmatprep.subr.bf16.mxu0 %v278_v0  ;;  %256 = vmatprep.subr.bf16.mxu1 %v278_v0 }
  0x1f   :  { %236 = vmatpush3.bf16.msra.mxu0 %v274_v8  ;;  %264 = vmatpush3.bf16.msra.mxu1 %v274_v8 }
  0x22   :  { %238 = vmatmul.mubr.bf16.vlgmr.msra.gmra.mxu0 %v275_v9  ;;  %242 = vmatmul.mubr.bf16.vlgmr.msra.gmra.mxu1 %v276_v10 }
  0x23   :  { %245 = vmatprep.mubr.msk.bf16.mxu1 %vm279_vm0, %v278_v0 }
  0x2a   :  { %246 = vmatmul.mubr.bf16.gmra.mxu1 %v277_v11 }
  0xe2   :  { %v137_v13 = vpop.f32.mrf.mxu0  ;;  %v145_v15 = vpop.f32.mrf.mxu1 }
  0xe3   :  { %v166_v16 = vmul.f32 %v208_v12, %v137_v13  ;;  %v168_v17 = vmul.f32 %v208_v12, %v145_v15 }
  0xe4   :  { %v239_v18 = vpop.f32.mrf.mxu0  ;;  %v243_v19 = vpop.f32.mrf.mxu1 }
  0xe5   :  { %v178_v20 = vadd.f32 %v209_v14, %v166_v16  ;;  %v180_v21 = vadd.f32 %v209_v14, %v168_v17 }
  0xe6   :  { %v140_v22 = vpop.f32.mrf.mxu0  ;;  %v148_v23 = vpop.f32.mrf.mxu1 }
  0xe7   :  { %v183_v24 = vmax.f32 %v178_v20, 0.0  ;;  %v185_v25 = vmax.f32 %v180_v21, 0.0  ;;  %v167_v26 = vmul.f32 %v208_v12, %v140_v22  ;;  %v169_v27 = vmul.f32 %v208_v12, %v148_v23 }
  0xe8   :  { %v240_v28 = vpop.f32.mrf.mxu0  ;;  %v244_v29 = vpop.f32.mrf.mxu1 }
  0xe9   :  { %188 = vst [vmem:[%s366_s4] sm:$0xff] %v183_v24  ;;  %190 = vst [vmem:[%s366_s4 + $0x10] sm:$0xff] %v185_v25  ;;  %v179_v30 = vadd.f32 %v209_v14, %v167_v26  ;;  %v181_v31 = vadd.f32 %v209_v14, %v169_v27 }
  0xea   :  { %v153_v32 = vpop.f32.mrf.mxu1 }
  0xeb   :  { %v184_v33 = vmax.f32 %v179_v30, 0.0  ;;  %v186_v34 = vmax.f32 %v181_v31, 0.0  ;;  %v170_v35 = vmul.f32 %v208_v12, %v153_v32 }
  0xec   :  { %v247_v36 = vpop.f32.mrf.mxu1 }
  0xed   :  { %189 = vst [vmem:[%s366_s4 + $0x8] sm:$0xff] %v184_v33  ;;  %191 = vst [vmem:[%s366_s4 + $0x18] sm:$0xff] %v186_v34  ;;  %v182_v37 = vadd.f32 %v209_v14, %v170_v35 }
  0xee   :  { %v156_v38 = vpop.f32.mrf.mxu1 }
  0xef   :  { %v187_v39 = vmax.f32 %v182_v37, 0.0 }
  0xf0   :  { %v248_v40 = vpop.f32.mrf.mxu1 }
  0xf1   :  { %192 = vst [vmem:[%s366_s4 + $0x20] sm:$0xf] %v187_v39 }

// kernel: _lambda_.24
= control target key start
LH: loop header
LB: loop body
LE: loop exit
PB: predicated region body
PF: predicated region fallthrough
CT: control target
= control target key end

     0   :  { %v549_v0 = vmov 0.0   ;;  %vm550_vm0 = vmmov 0   ;;  %s711_s1 = inlined_call_operand.vmem [shape: bf16[128,128], index: 1, kind: input, shape index: {}]   ;;  %s712_s3 = inlined_call_operand.vmem [shape: bf16[128,128], index: 3, kind: input, shape index: {}]   ;;  %s713_s0 = inlined_call_operand.vmem [shape: bf16[36,128], index: 0, kind: input, shape index: {}]   ;;  %s714_s2 = inlined_call_operand.vmem [shape: bf16[36,128], index: 2, kind: input, shape index: {}]   ;;  %s715_s6 = inlined_call_operand.vmem [shape: f32[1,128], index: 6, kind: input, shape index: {}]   ;;  %s716_s4 = inlined_call_operand.vmem [shape: f32[1,128], index: 4, kind: input, shape index: {}]   ;;  %s717_s7 = inlined_call_operand.vmem [shape: f32[1,128], index: 7, kind: input, shape index: {}]   ;;  %s718_s5 = inlined_call_operand.vmem [shape: f32[1,128], index: 5, kind: input, shape index: {}]   ;;  %s719_s8 = inlined_call_operand.vmem [shape: bf16[36,128], index: 8, kind: output, shape index: {}]  }
   0x1   :  { %469 = vmatprep.subr.bf16.mxu0 %v549_v0  ;;  %497 = vmatprep.subr.bf16.mxu1 %v549_v0  ;;  %v527_v1 = vld [vmem:[%s711_s1 + $0x38] sm:$0xff]   ;;  %v529_v3 = vld [vmem:[%s711_s1 + $0x30] sm:$0xff]   ;;  %v531_v5 = vld [vmem:[%s711_s1 + $0x28] sm:$0xff]  }
   0x2   :  { %v528_v2 = vld [vmem:[%s712_s3 + $0x38] sm:$0xff]   ;;  %485 = vmatprep.mubr.msk.bf16.mxu0 %vm550_vm0, %v549_v0  ;;  %513 = vmatprep.mubr.msk.bf16.mxu1 %vm550_vm0, %v549_v0  ;;  %v530_v4 = vld [vmem:[%s712_s3 + $0x30] sm:$0xff]   ;;  %v532_v6 = vld [vmem:[%s712_s3 + $0x28] sm:$0xff]  }
   0x3   :  { %470 = vmatpush3.bf16.msra.mxu0 %v527_v1  ;;  %498 = vmatpush3.bf16.msra.mxu1 %v528_v2  ;;  %v533_v7 = vld [vmem:[%s711_s1 + $0x20] sm:$0xff]   ;;  %v535_v9 = vld [vmem:[%s711_s1 + $0x18] sm:$0xff]   ;;  %v537_v11 = vld [vmem:[%s711_s1 + $0x10] sm:$0xff]  }
   0x4   :  { %471 = vmatprep.subr.bf16.mxu0 %v549_v0  ;;  %499 = vmatprep.subr.bf16.mxu1 %v549_v0  ;;  %v534_v8 = vld [vmem:[%s712_s3 + $0x20] sm:$0xff]   ;;  %v536_v10 = vld [vmem:[%s712_s3 + $0x18] sm:$0xff]   ;;  %v538_v12 = vld [vmem:[%s712_s3 + $0x10] sm:$0xff]  }
   0x5   :  { %v539_v13 = vld [vmem:[%s711_s1 + $0x8] sm:$0xff]   ;;  %v541_v15 = vld [vmem:[%s711_s1] sm:$0xff]   ;;  %v547_v21 = vld [vmem:[%s713_s0 + $0x10] ss:$0 sps:$4 sm:$0x33]  }
   0x6   :  { %v540_v14 = vld [vmem:[%s712_s3 + $0x8] sm:$0xff]   ;;  %v542_v16 = vld [vmem:[%s712_s3] sm:$0xff]   ;;  %v548_v22 = vld [vmem:[%s714_s2 + $0x10] ss:$0 sps:$4 sm:$0x33]  }
   0x7   :  { %472 = vmatpush3.bf16.msra.mxu0 %v529_v3  ;;  %500 = vmatpush3.bf16.msra.mxu1 %v530_v4  ;;  %v543_v17 = vld [vmem:[%s713_s0] sm:$0xff]   ;;  %v545_v19 = vld [vmem:[%s713_s0 + $0x8] sm:$0xff]  }
   0x8   :  { %473 = vmatprep.subr.bf16.mxu0 %v549_v0  ;;  %501 = vmatprep.subr.bf16.mxu1 %v549_v0  ;;  %v544_v18 = vld [vmem:[%s714_s2] sm:$0xff]   ;;  %v546_v20 = vld [vmem:[%s714_s2 + $0x8] sm:$0xff]  }
   0x9   :  { %v411_v23 = vld [vmem:[%s715_s6] ss:$0 sm:$0xff] }
   0xa   :  { %v424_v24 = vld [vmem:[%s716_s4] ss:$0 sm:$0xff] }
   0xb   :  { %474 = vmatpush3.bf16.msra.mxu0 %v531_v5  ;;  %502 = vmatpush3.bf16.msra.mxu1 %v532_v6  ;;  %v412_v27 = vld [vmem:[%s717_s7] ss:$0 sm:$0xff] }
   0xc   :  { %475 = vmatprep.subr.bf16.mxu0 %v549_v0  ;;  %503 = vmatprep.subr.bf16.mxu1 %v549_v0  ;;  %v425_v29 = vld [vmem:[%s718_s5] ss:$0 sm:$0xff] }
   0xf   :  { %476 = vmatpush3.bf16.msra.mxu0 %v533_v7  ;;  %504 = vmatpush3.bf16.msra.mxu1 %v534_v8 }
  0x10   :  { %477 = vmatprep.subr.bf16.mxu0 %v549_v0  ;;  %505 = vmatprep.subr.bf16.mxu1 %v549_v0 }
  0x13   :  { %478 = vmatpush3.bf16.msra.mxu0 %v535_v9  ;;  %506 = vmatpush3.bf16.msra.mxu1 %v536_v10 }
  0x14   :  { %479 = vmatprep.subr.bf16.mxu0 %v549_v0  ;;  %507 = vmatprep.subr.bf16.mxu1 %v549_v0 }
  0x17   :  { %480 = vmatpush3.bf16.msra.mxu0 %v537_v11  ;;  %508 = vmatpush3.bf16.msra.mxu1 %v538_v12 }
  0x18   :  { %481 = vmatprep.subr.bf16.mxu0 %v549_v0  ;;  %509 = vmatprep.subr.bf16.mxu1 %v549_v0 }
  0x1b   :  { %482 = vmatpush3.bf16.msra.mxu0 %v539_v13  ;;  %510 = vmatpush3.bf16.msra.mxu1 %v540_v14 }
  0x1c   :  { %483 = vmatprep.subr.bf16.mxu0 %v549_v0  ;;  %511 = vmatprep.subr.bf16.mxu1 %v549_v0 }
  0x1f   :  { %484 = vmatpush3.bf16.msra.mxu0 %v541_v15  ;;  %512 = vmatpush3.bf16.msra.mxu1 %v542_v16 }
  0x22   :  { %486 = vmatmul.mubr.bf16.vlgmr.msra.gmra.mxu0 %v543_v17  ;;  %514 = vmatmul.mubr.bf16.vlgmr.msra.gmra.mxu1 %v544_v18 }
  0x23   :  { %489 = vmatprep.mubr.msk.bf16.mxu0 %vm550_vm0, %v549_v0  ;;  %517 = vmatprep.mubr.msk.bf16.mxu1 %vm550_vm0, %v549_v0 }
  0x2a   :  { %490 = vmatmul.mubr.bf16.gmra.mxu0 %v545_v19  ;;  %518 = vmatmul.mubr.bf16.gmra.mxu1 %v546_v20 }
  0x2b   :  { %493 = vmatprep.mubr.msk.bf16.mxu0 %vm550_vm0, %v549_v0  ;;  %521 = vmatprep.mubr.msk.bf16.mxu1 %vm550_vm0, %v549_v0 }
  0x32   :  { %494 = vmatmul.mubr.bf16.gmra.mxu0 %v547_v21  ;;  %522 = vmatmul.mubr.bf16.gmra.mxu1 %v548_v22 }
  0xe2   :  { %v149_v25 = vpop.f32.mrf.mxu0  ;;  %v314_v28 = vpop.f32.mrf.mxu1 }
  0xe3   :  { %v178_v26 = vmul.f32 %v411_v23, %v149_v25  ;;  %v343_v30 = vmul.f32 %v424_v24, %v314_v28 }
  0xe4   :  { %v487_v31 = vpop.f32.mrf.mxu0  ;;  %v515_v32 = vpop.f32.mrf.mxu1 }
  0xe5   :  { %v190_v33 = vadd.f32 %v412_v27, %v178_v26  ;;  %v355_v34 = vadd.f32 %v425_v29, %v343_v30 }
  0xe6   :  { %v152_v35 = vpop.f32.mrf.mxu0  ;;  %v317_v37 = vpop.f32.mrf.mxu1 }
  0xe7   :  { %v179_v36 = vmul.f32 %v411_v23, %v152_v35  ;;  %v344_v38 = vmul.f32 %v424_v24, %v317_v37  ;;  %v360_v42 = vadd.f32 %v355_v34, %v190_v33 }
  0xe8   :  { %v488_v39 = vpop.f32.mrf.mxu0  ;;  %v516_v41 = vpop.f32.mrf.mxu1 }
  0xe9   :  { %v191_v40 = vadd.f32 %v412_v27, %v179_v36  ;;  %v356_v43 = vadd.f32 %v425_v29, %v344_v38  ;;  %v365_v51 = vmax.f32 %v360_v42, 0.0 }
  0xea   :  { %v157_v44 = vpop.f32.mrf.mxu0  ;;  %v322_v46 = vpop.f32.mrf.mxu1 }
  0xeb   :  { %v180_v45 = vmul.f32 %v411_v23, %v157_v44  ;;  %v361_v47 = vadd.f32 %v356_v43, %v191_v40  ;;  %v345_v48 = vmul.f32 %v424_v24, %v322_v46 }
  0xec   :  { %v491_v49 = vpop.f32.mrf.mxu0  ;;  %v519_v50 = vpop.f32.mrf.mxu1 }
  0xed   :  { %v366_v52 = vmax.f32 %v361_v47, 0.0  ;;  %v192_v53 = vadd.f32 %v412_v27, %v180_v45  ;;  %v357_v54 = vadd.f32 %v425_v29, %v345_v48 }
  0xee   :  { %v160_v55 = vpop.f32.mrf.mxu0  ;;  %v325_v57 = vpop.f32.mrf.mxu1 }
  0xef   :  { %v181_v56 = vmul.f32 %v411_v23, %v160_v55  ;;  %v439_v58 = vpack.c.bf16 %v366_v52, %v365_v51  ;;  %v346_v59 = vmul.f32 %v424_v24, %v325_v57  ;;  %v362_v63 = vadd.f32 %v357_v54, %v192_v53 }
  0xf0   :  { %v492_v60 = vpop.f32.mrf.mxu0  ;;  %v520_v62 = vpop.f32.mrf.mxu1 }
  0xf1   :  { %v193_v61 = vadd.f32 %v412_v27, %v181_v56  ;;  %440 = vst [vmem:[%s719_s8] sm:$0xff] %v439_v58   ;;  %v358_v0 = vadd.f32 %v425_v29, %v346_v59  ;;  %v367_v9 = vmax.f32 %v362_v63, 0.0 }
  0xf2   :  { %v165_v1 = vpop.f32.mrf.mxu0  ;;  %v330_v3 = vpop.f32.mrf.mxu1 }
  0xf3   :  { %v182_v2 = vmul.f32 %v411_v23, %v165_v1  ;;  %v363_v4 = vadd.f32 %v358_v0, %v193_v61  ;;  %v347_v5 = vmul.f32 %v424_v24, %v330_v3 }
  0xf4   :  { %v495_v6 = vpop.f32.mrf.mxu0  ;;  %v523_v8 = vpop.f32.mrf.mxu1 }
  0xf5   :  { %v194_v7 = vadd.f32 %v412_v27, %v182_v2  ;;  %v368_v10 = vmax.f32 %v363_v4, 0.0  ;;  %v359_v11 = vadd.f32 %v425_v29, %v347_v5 }
  0xf6   :  { %v168_v12 = vpop.f32.mrf.mxu0  ;;  %v333_v13 = vpop.f32.mrf.mxu1 }
  0xf7   :  { %v444_v14 = vpack.c.bf16 %v368_v10, %v367_v9  ;;  %v364_v15 = vadd.f32 %v359_v11, %v194_v7 }
  0xf8   :  { %v496_v16 = vpop.f32.mrf.mxu0  ;;  %v524_v17 = vpop.f32.mrf.mxu1 }
  0xf9   :  { %446 = vst [vmem:[%s719_s8 + $0x8] sm:$0xff] %v444_v14   ;;  %v369_v18 = vmax.f32 %v364_v15, 0.0 }
  0xfb   :  { %v435_v19 = vpack.c.bf16 %v369_v18, %v369_v18 }
  0xfd   :  { %395 = vst [vmem:[%s719_s8 + $0x10] sm:$0x3] %v435_v19 }

// kernel: _lambda_.23
= control target key start
LH: loop header
LB: loop body
LE: loop exit
PB: predicated region body
PF: predicated region fallthrough
CT: control target
= control target key end

     0   :  { %vm2048_vm0 = vmmov 0   ;;  %s2976_s2 = inlined_call_operand.vmem [shape: bf16[1152,128], index: 2, kind: input, shape index: {}]   ;;  %s2977_s0 = inlined_call_operand.vmem [shape: f32[128,128], index: 0, kind: input, shape index: {}]   ;;  %s2978_s1 = inlined_call_operand.vmem [shape: f32[128,128], index: 1, kind: input, shape index: {}]   ;;  %s2979_s3 = inlined_call_operand.vmem [shape: f32[1,128], index: 3, kind: input, shape index: {}]   ;;  %s2980_s4 = inlined_call_operand.vmem [shape: f32[1,128], index: 4, kind: input, shape index: {}]   ;;  %s2981_s5 = inlined_call_operand.vmem [shape: bf16[112,128], index: 5, kind: output, shape index: {}]  }
   0x1   :  { %v1975_v0 = vld [vmem:[%s2976_s2 + $0xf8] sm:$0xff]   ;;  %v1977_v2 = vld [vmem:[%s2976_s2 + $0xf0] sm:$0xff]   ;;  %v1979_v4 = vld [vmem:[%s2976_s2 + $0xe8] sm:$0xff]  }
   0x2   :  { %v1976_v1 = vld [vmem:[%s2976_s2 + $0xb8] sm:$0xff]   ;;  %1957 = vmatprep.subr.bf16.mxu1 %v1975_v0  ;;  %1666 = vmatprep.subr.bf16.mxu0 %v1975_v0  ;;  %v1978_v3 = vld [vmem:[%s2976_s2 + $0xb0] sm:$0xff]   ;;  %v1980_v5 = vld [vmem:[%s2976_s2 + $0xa8] sm:$0xff]  }
   0x3   :  { %1965 = vmatpush3.bf16.msra.mxu1 %v1976_v1  ;;  %1667 = vmatpush3.bf16.msra.mxu0 %v1976_v1  ;;  %v1981_v6 = vld [vmem:[%s2976_s2 + $0xe0] sm:$0xff]   ;;  %v1983_v8 = vld [vmem:[%s2976_s2 + $0xd8] sm:$0xff]   ;;  %v1985_v10 = vld [vmem:[%s2976_s2 + $0xd0] sm:$0xff]  }
   0x4   :  { %1958 = vmatprep.subr.bf16.mxu1 %v1977_v2  ;;  %1668 = vmatprep.subr.bf16.mxu0 %v1977_v2  ;;  %v1982_v7 = vld [vmem:[%s2976_s2 + $0xa0] sm:$0xff]   ;;  %v1984_v9 = vld [vmem:[%s2976_s2 + $0x98] sm:$0xff]   ;;  %v1448_v12 = vld [vmem:[%s2977_s0 + $0x4c] sm:$0xff] }
   0x5   :  { %v1447_v11 = vld [vmem:[%s2977_s0 + $0x44] sm:$0xff]  ;;  %v1440_v15 = vld [vmem:[%s2977_s0 + $0xc] sm:$0xff]  ;;  %v1991_v26 = vld [vmem:[%s2976_s2 + $0x78] sm:$0xff]  }
   0x6   :  { %v1439_v13 = vld [vmem:[%s2977_s0 + $0x4] sm:$0xff]  ;;  %v141_v14 = vpack.c.bf16 %v1448_v12, %v1447_v11  ;;  %v1986_v17 = vld [vmem:[%s2976_s2 + $0x90] sm:$0xff]   ;;  %v1993_v27 = vld [vmem:[%s2976_s2 + $0x178] sm:$0xff]  }
   0x7   :  { %1966 = vmatpush3.bf16.msra.mxu1 %v1978_v3  ;;  %1669 = vmatpush3.bf16.msra.mxu0 %v1978_v3  ;;  %v137_v16 = vpack.c.bf16 %v1440_v15, %v1439_v13  ;;  %v1987_v18 = vld [vmem:[%s2976_s2 + $0xc8] sm:$0xff]   ;;  %v1989_v20 = vld [vmem:[%s2976_s2 + $0xc0] sm:$0xff]   ;;  %v2166_v28 = vld [vmem:[%s2977_s0 + $0x11] sm:$0xff] }
   0x8   :  { %1959 = vmatprep.subr.bf16.mxu1 %v1979_v4  ;;  %1670 = vmatprep.subr.bf16.mxu0 %v1979_v4  ;;  %v1988_v19 = vld [vmem:[%s2976_s2 + $0x88] sm:$0xff]   ;;  %v1990_v21 = vld [vmem:[%s2976_s2 + $0x80] sm:$0xff]   ;;  %v1992_v29 = vld [vmem:[%s2976_s2 + $0x38] sm:$0xff]  }
   0x9   :  { %336 = vmatprep.mubr.bf16.mxu1 %v141_v14  ;;  %304 = vmatprep.mubr.bf16.mxu0 %v137_v16  ;;  %v2142_v22 = vld [vmem:[%s2977_s0 + $0x41] sm:$0xff]  ;;  %v2147_v23 = vld [vmem:[%s2977_s0 + $0x49] sm:$0xff]  ;;  %v1994_v30 = vld [vmem:[%s2976_s2 + $0x138] sm:$0xff]  }
   0xa   :  { %v1425_v24 = vld [vmem:[%s2977_s0 + $0x1] sm:$0xff]  ;;  %v2155_v25 = vld [vmem:[%s2977_s0 + $0x9] sm:$0xff]  ;;  %v1441_v31 = vld [vmem:[%s2977_s0 + $0x14] sm:$0xff]  ;;  %v118_v33 = vpack.c.bf16 %v2147_v23, %v2142_v22 }
   0xb   :  { %1967 = vmatpush3.bf16.msra.mxu1 %v1980_v5  ;;  %1671 = vmatpush3.bf16.msra.mxu0 %v1980_v5  ;;  %v1114_v32 = vpack.c.bf16 %v2166_v28, %v2155_v25  ;;  %v114_v34 = vpack.c.bf16 %v2155_v25, %v1425_v24  ;;  %v1995_v35 = vld [vmem:[%s2976_s2 + $0x70] sm:$0xff]   ;;  %v1442_v36 = vld [vmem:[%s2977_s0 + $0x1c] sm:$0xff]  ;;  %v1999_v46 = vld [vmem:[%s2976_s2 + $0x68] sm:$0xff]  }
   0xc   :  { %1960 = vmatprep.subr.bf16.mxu1 %v1981_v6  ;;  %1672 = vmatprep.subr.bf16.mxu0 %v1981_v6  ;;  %v1449_v37 = vld [vmem:[%s2977_s0 + $0x54] sm:$0xff]  ;;  %v1450_v38 = vld [vmem:[%s2977_s0 + $0x5c] sm:$0xff]  ;;  %v138_v43 = vpack.c.bf16 %v1442_v36, %v1441_v31  ;;  %v2001_v49 = vld [vmem:[%s2976_s2 + $0x168] sm:$0xff]  }
   0xd   :  { %v1997_v39 = vld [vmem:[%s2976_s2 + $0x170] sm:$0xff]   ;;  %v142_v44 = vpack.c.bf16 %v1450_v38, %v1449_v37  ;;  %v2216_v47 = vld [vmem:[%s2977_s0 + $0x19] sm:$0xff]  ;;  %v2000_v50 = vld [vmem:[%s2976_s2 + $0x28] sm:$0xff]  }
   0xe   :  { %v2200_v40 = vld [vmem:[%s2977_s0 + $0x51] sm:$0xff]  ;;  %v2221_v48 = vld [vmem:[%s2977_s0 + $0x59] sm:$0xff]  ;;  %v2002_v51 = vld [vmem:[%s2976_s2 + $0x128] sm:$0xff]   ;;  %v115_v53 = vpack.c.bf16 %v2216_v47, %v2166_v28 }
   0xf   :  { %1968 = vmatpush3.bf16.msra.mxu1 %v1982_v7  ;;  %1673 = vmatpush3.bf16.msra.mxu0 %v1982_v7  ;;  %v1996_v41 = vld [vmem:[%s2976_s2 + $0x30] sm:$0xff]   ;;  %v1118_v45 = vpack.c.bf16 %v2200_v40, %v2147_v23  ;;  %v1443_v52 = vld [vmem:[%s2977_s0 + $0x24] sm:$0xff]  ;;  %v119_v54 = vpack.c.bf16 %v2221_v48, %v2200_v40  ;;  %v2007_v0 = vld [vmem:[%s2976_s2 + $0x58] sm:$0xff]  }
  0x10   :  { %1961 = vmatprep.subr.bf16.mxu1 %v1983_v8  ;;  %1674 = vmatprep.subr.bf16.mxu0 %v1983_v8  ;;  %v1998_v42 = vld [vmem:[%s2976_s2 + $0x130] sm:$0xff]   ;;  %v2003_v56 = vld [vmem:[%s2976_s2 + $0x60] sm:$0xff]   ;;  %v2009_v6 = vld [vmem:[%s2976_s2 + $0x158] sm:$0xff]  }
  0x11   :  { %v1444_v55 = vld [vmem:[%s2977_s0 + $0x2c] sm:$0xff]  ;;  %v2248_v57 = vld [vmem:[%s2977_s0 + $0x21] sm:$0xff]  ;;  %v2008_v8 = vld [vmem:[%s2976_s2 + $0x18] sm:$0xff]  }
  0x12   :  { %v2005_v58 = vld [vmem:[%s2976_s2 + $0x160] sm:$0xff]   ;;  %v1115_v59 = vpack.c.bf16 %v2248_v57, %v2216_v47  ;;  %v139_v62 = vpack.c.bf16 %v1444_v55, %v1443_v52  ;;  %v1452_v1 = vld [vmem:[%s2977_s0 + $0x6c] sm:$0xff]  ;;  %v1445_v14 = vld [vmem:[%s2977_s0 + $0x34] sm:$0xff] }
  0x13   :  { %1969 = vmatpush3.bf16.msra.mxu1 %v1984_v9  ;;  %1675 = vmatpush3.bf16.msra.mxu0 %v1984_v9  ;;  %v2004_v60 = vld [vmem:[%s2976_s2 + $0x20] sm:$0xff]   ;;  %v2273_v2 = vld [vmem:[%s2977_s0 + $0x29] sm:$0xff]  ;;  %v2010_v9 = vld [vmem:[%s2976_s2 + $0x118] sm:$0xff]  }
  0x14   :  { %1962 = vmatprep.subr.bf16.mxu1 %v1985_v10  ;;  %1676 = vmatprep.subr.bf16.mxu0 %v1985_v10  ;;  %v2006_v61 = vld [vmem:[%s2976_s2 + $0x120] sm:$0xff]   ;;  %v2283_v5 = vld [vmem:[%s2977_s0 + $0x69] sm:$0xff]  ;;  %v116_v10 = vpack.c.bf16 %v2273_v2, %v2248_v57  ;;  %v2399_v55 = vld [vmem:[%s2978_s1 + $0x18] sm:$0xff] }
  0x15   :  { %v1451_v63 = vld [vmem:[%s2977_s0 + $0x64] sm:$0xff]  ;;  %v2011_v12 = vld [vmem:[%s2976_s2 + $0x50] sm:$0xff]   ;;  %v1446_v15 = vld [vmem:[%s2977_s0 + $0x3c] sm:$0xff] }
  0x16   :  { %v143_v3 = vpack.c.bf16 %v1452_v1, %v1451_v63  ;;  %v2278_v4 = vld [vmem:[%s2977_s0 + $0x61] sm:$0xff]  ;;  %v2013_v13 = vld [vmem:[%s2976_s2 + $0x150] sm:$0xff]  }
  0x17   :  { %1970 = vmatpush3.bf16.msra.mxu1 %v1986_v17  ;;  %1677 = vmatpush3.bf16.msra.mxu0 %v1986_v17  ;;  %v1119_v7 = vpack.c.bf16 %v2278_v4, %v2221_v48  ;;  %v120_v11 = vpack.c.bf16 %v2283_v5, %v2278_v4  ;;  %v2012_v16 = vld [vmem:[%s2976_s2 + $0x10] sm:$0xff]   ;;  %v2015_v24 = vld [vmem:[%s2976_s2 + $0x48] sm:$0xff]   ;;  %v2022_v36 = vld [vmem:[%s2976_s2 + $0x100] sm:$0xff]  }
  0x18   :  { %1963 = vmatprep.subr.bf16.mxu1 %v1987_v18  ;;  %1678 = vmatprep.subr.bf16.mxu0 %v1987_v18  ;;  %v2014_v17 = vld [vmem:[%s2976_s2 + $0x110] sm:$0xff]   ;;  %v140_v18 = vpack.c.bf16 %v1446_v15, %v1445_v14  ;;  %v2018_v31 = vld [vmem:[%s2976_s2 + $0x108] sm:$0xff]   ;;  %v45_v37 = vld [vmem:[%s2978_s1] sm:$0xff] }
  0x19   :  { %v2364_v38 = vld [vmem:[%s2978_s1 + $0x8] sm:$0xff]  ;;  %v2416_v63 = vld [vmem:[%s2977_s0 + $0x10] sm:$0xff] }
  0x1a   :  { %v1501_v1 = vld [vmem:[%s2977_s0 + $0x15] sm:$0xff] }
  0x1b   :  { %1971 = vmatpush3.bf16.msra.mxu1 %v1988_v19  ;;  %1679 = vmatpush3.bf16.msra.mxu0 %v1988_v19  ;;  %v2321_v19 = vld [vmem:[%s2977_s0 + $0x31] sm:$0xff] }
  0x1c   :  { %1964 = vmatprep.subr.bf16.mxu1 %v1989_v20  ;;  %1680 = vmatprep.subr.bf16.mxu0 %v1989_v20  ;;  %v2326_v20 = vld [vmem:[%s2977_s0 + $0x39] sm:$0xff]  ;;  %v1542_v23 = vld [vmem:[%s2977_s0 + $0x70] sm:$0xff] }
  0x1d   :  { %v1586_v40 = vld [vmem:[%s2977_s0 + $0x71] sm:$0xff] }
  0x1f   :  { %1972 = vmatpush3.bf16.msra.mxu1 %v1990_v21  ;;  %1681 = vmatpush3.bf16.msra.mxu0 %v1990_v21  ;;  %v1116_v21 = vpack.c.bf16 %v2321_v19, %v2273_v2 }
  0x20   :  { %1724 = vmatprep.subr.bf16.mxu1 %v1991_v26  ;;  %1782 = vmatprep.subr.bf16.mxu0 %v1993_v27  ;;  %v1117_v26 = vpack.c.bf16 %v2142_v22, %v2326_v20  ;;  %v2017_v27 = vld [vmem:[%s2976_s2 + $0x148] sm:$0xff]   ;;  %v1556_v22 = vld [vmem:[%s2978_s1 + $0x70] sm:$0xff] }
  0x22   :  { %337 = vmatmul.mubr.bf16.vlgmr.msra.gmra.mxu1 %v118_v33  ;;  %305 = vmatmul.mubr.bf16.vlgmr.msra.gmra.mxu0 %v114_v34  ;;  %v2019_v33 = vld [vmem:[%s2976_s2 + $0x40] sm:$0xff]  }
  0x23   :  { %1725 = vmatpush3.bf16.msra.mxu1 %v1992_v29  ;;  %1783 = vmatpush3.bf16.msra.mxu0 %v1994_v30  ;;  %v2016_v29 = vld [vmem:[%s2976_s2 + $0x8] sm:$0xff]   ;;  %v117_v30 = vpack.c.bf16 %v2326_v20, %v2321_v19  ;;  %v2021_v34 = vld [vmem:[%s2976_s2 + $0x140] sm:$0xff]   ;;  %v1120_v20 = vpack.c.bf16 %v1586_v40, %v2283_v5 }
  0x24   :  { %1726 = vmatprep.subr.bf16.mxu1 %v1995_v35  ;;  %1784 = vmatprep.subr.bf16.mxu0 %v1997_v39  ;;  %v2020_v35 = vld [vmem:[%s2976_s2] sm:$0xff]   ;;  %v59_v39 = vpack.c.bf16 %v2364_v38, %v45_v37 }
  0x25   :  { %312 = vmatprep.mubr.bf16.mxu0 %v138_v43  ;;  %344 = vmatprep.mubr.bf16.mxu1 %v142_v44  ;;  %v1499_v43 = vld [vmem:[%s2977_s0 + $0x5] sm:$0xff]  ;;  %v1500_v44 = vld [vmem:[%s2977_s0 + $0xd] sm:$0xff] }
  0x26   :  { %v2033_v37 = vld [vmem:[%s2976_s2 + $0x1a0] sm:$0xff]  }
  0x27   :  { %1727 = vmatpush3.bf16.msra.mxu1 %v1996_v41  ;;  %1785 = vmatpush3.bf16.msra.mxu0 %v1998_v42  ;;  %v23_v41 = vld [vmem:[%s2977_s0] sm:$0xff]  ;;  %v2373_v42 = vld [vmem:[%s2977_s0 + $0x8] sm:$0xff] }
  0x28   :  { %1728 = vmatprep.subr.bf16.mxu1 %v1999_v46  ;;  %1786 = vmatprep.subr.bf16.mxu0 %v2001_v49  ;;  %v584_v46 = vpack.c.bf16 %v1500_v44, %v1499_v43  ;;  %v2023_v49 = vld [vmem:[%s2976_s2 + $0x1f8] sm:$0xff]   ;;  %v37_v52 = vpack.c.bf16 %v2373_v42, %v23_v41 }
  0x29   :  { %v2502_v41 = vld [vmem:[%s2978_s1 + $0x38] sm:$0xff] }
  0x2a   :  { %313 = vmatmul.mubr.bf16.gmra.mxu0 %v115_v53  ;;  %345 = vmatmul.mubr.bf16.gmra.mxu1 %v119_v54  ;;  %v2394_v54 = vld [vmem:[%s2978_s1 + $0x10] sm:$0xff] }
  0x2b   :  { %1729 = vmatpush3.bf16.msra.mxu1 %v2000_v50  ;;  %1787 = vmatpush3.bf16.msra.mxu0 %v2002_v51  ;;  %v1485_v50 = vld [vmem:[%s2978_s1 + $0x4] sm:$0xff]  ;;  %v1486_v51 = vld [vmem:[%s2978_s1 + $0xc] sm:$0xff]  ;;  %v1505_v43 = vld [vmem:[%s2977_s0 + $0x35] sm:$0xff] }
  0x2c   :  { %1730 = vmatprep.subr.bf16.mxu1 %v2003_v56  ;;  %1788 = vmatprep.subr.bf16.mxu0 %v2005_v58  ;;  %v561_v53 = vpack.c.bf16 %v1486_v51, %v1485_v50  ;;  %v2024_v56 = vld [vmem:[%s2976_s2 + $0x1b8] sm:$0xff]   ;;  %v60_v58 = vpack.c.bf16 %v2399_v55, %v2394_v54 }
  0x2d   :  { %320 = vmatprep.mubr.bf16.mxu0 %v139_v62  ;;  %352 = vmatprep.mubr.bf16.mxu1 %v143_v3  ;;  %v2026_v62 = vld [vmem:[%s2976_s2 + $0x238] sm:$0xff]  }
  0x2e   :  { %v1502_v3 = vld [vmem:[%s2977_s0 + $0x1d] sm:$0xff] }
  0x2f   :  { %1731 = vmatpush3.bf16.msra.mxu1 %v2004_v60  ;;  %1789 = vmatpush3.bf16.msra.mxu0 %v2006_v61  ;;  %v2047_v60 = vmov 0.0   ;;  %v2025_v61 = vld [vmem:[%s2976_s2 + $0x1f0] sm:$0xff]  }
  0x30   :  { %1732 = vmatprep.subr.bf16.mxu1 %v2007_v0  ;;  %1790 = vmatprep.subr.bf16.mxu0 %v2009_v6  ;;  %v2421_v0 = vld [vmem:[%s2977_s0 + $0x18] sm:$0xff]  ;;  %v585_v6 = vpack.c.bf16 %v1502_v3, %v1501_v1  ;;  %v2543_v3 = vld [vmem:[%s2978_s1 + $0x40] sm:$0xff] }
  0x31   :  { %v38_v14 = vpack.c.bf16 %v2421_v0, %v2416_v63  ;;  %v1492_v1 = vld [vmem:[%s2978_s1 + $0x3c] sm:$0xff]  ;;  %v863_v28 = vpack.c.bf16 %v2543_v3, %v2502_v41 }
  0x32   :  { %321 = vmatmul.mubr.bf16.gmra.mxu0 %v116_v10  ;;  %353 = vmatmul.mubr.bf16.gmra.mxu1 %v120_v11  ;;  %v1488_v10 = vld [vmem:[%s2978_s1 + $0x1c] sm:$0xff]  ;;  %v2028_v11 = vld [vmem:[%s2976_s2 + $0x1e8] sm:$0xff]  }
  0x33   :  { %1733 = vmatpush3.bf16.msra.mxu1 %v2008_v8  ;;  %1791 = vmatpush3.bf16.msra.mxu0 %v2010_v9  ;;  %v2027_v8 = vld [vmem:[%s2976_s2 + $0x1b0] sm:$0xff]  }
  0x34   :  { %1734 = vmatprep.subr.bf16.mxu1 %v2011_v12  ;;  %1792 = vmatprep.subr.bf16.mxu0 %v2013_v13  ;;  %v1487_v9 = vld [vmem:[%s2978_s1 + $0x14] sm:$0xff]  ;;  %v2448_v13 = vld [vmem:[%s2978_s1 + $0x20] sm:$0xff] }
  0x35   :  { %328 = vmatprep.mubr.bf16.mxu0 %v140_v18  ;;  %489 = vmatprep.mubr.bf16.mxu1 %v59_v39  ;;  %v2029_v12 = vld [vmem:[%s2976_s2 + $0x230] sm:$0xff]   ;;  %v562_v15 = vpack.c.bf16 %v1488_v10, %v1487_v9  ;;  %v2030_v18 = vld [vmem:[%s2976_s2 + $0x1a8] sm:$0xff]  }
  0x36   :  { %v2497_v39 = vld [vmem:[%s2978_s1 + $0x30] sm:$0xff] }
  0x37   :  { %1735 = vmatpush3.bf16.msra.mxu1 %v2012_v16  ;;  %1793 = vmatpush3.bf16.msra.mxu0 %v2014_v17  ;;  %v2455_v16 = vld [vmem:[%s2978_s1 + $0x28] sm:$0xff]  ;;  %v62_v50 = vpack.c.bf16 %v2502_v41, %v2497_v39  ;;  %v2037_v10 = vld [vmem:[%s2976_s2 + $0x1d0] sm:$0xff]  }
  0x38   :  { %1736 = vmatprep.subr.bf16.mxu1 %v2015_v24  ;;  %1794 = vmatprep.subr.bf16.mxu0 %v2017_v27  ;;  %v61_v17 = vpack.c.bf16 %v2455_v16, %v2448_v13  ;;  %v1503_v24 = vld [vmem:[%s2977_s0 + $0x25] sm:$0xff]  ;;  %v1504_v27 = vld [vmem:[%s2977_s0 + $0x2d] sm:$0xff] }
  0x39   :  { %v1508_v9 = vld [vmem:[%s2977_s0 + $0x4d] sm:$0xff] }
  0x3a   :  { %329 = vmatmul.mubr.bf16.gmra.mxu0 %v117_v30  ;;  %v2476_v30 = vld [vmem:[%s2977_s0 + $0x28] sm:$0xff] }
  0x3b   :  { %1737 = vmatpush3.bf16.msra.mxu1 %v2016_v29  ;;  %1795 = vmatpush3.bf16.msra.mxu0 %v2018_v31  ;;  %v2471_v29 = vld [vmem:[%s2977_s0 + $0x20] sm:$0xff]  ;;  %v586_v31 = vpack.c.bf16 %v1504_v27, %v1503_v24  ;;  %v2578_v27 = vld [vmem:[%s2977_s0 + $0x48] sm:$0xff] }
  0x3c   :  { %1738 = vmatprep.subr.bf16.mxu1 %v2019_v33  ;;  %1796 = vmatprep.subr.bf16.mxu0 %v2021_v34  ;;  %v1489_v33 = vld [vmem:[%s2978_s1 + $0x24] sm:$0xff]  ;;  %v1490_v34 = vld [vmem:[%s2978_s1 + $0x2c] sm:$0xff]  ;;  %v39_v44 = vpack.c.bf16 %v2476_v30, %v2471_v29 }
  0x3d   :  { %751 = vmatprep.mubr.bf16.mxu0 %v584_v46  ;;  %v563_v46 = vpack.c.bf16 %v1490_v34, %v1489_v33  ;;  %v2573_v24 = vld [vmem:[%s2977_s0 + $0x40] sm:$0xff]  ;;  %v1494_v33 = vld [vmem:[%s2978_s1 + $0x4c] sm:$0xff] }
  0x3e   :  { %v2590_v34 = vld [vmem:[%s2978_s1 + $0x50] sm:$0xff] }
  0x3f   :  { %1739 = vmatpush3.bf16.msra.mxu1 %v2020_v35  ;;  %1797 = vmatpush3.bf16.msra.mxu0 %v2022_v36  ;;  %v2031_v35 = vld [vmem:[%s2976_s2 + $0x1e0] sm:$0xff]   ;;  %v2032_v36 = vld [vmem:[%s2976_s2 + $0x228] sm:$0xff]  }
  0x40   :  { %1840 = vmatprep.subr.bf16.mxu1 %v2023_v49  ;;  %1913 = vmatprep.subr.bf16.mxu0 %v2047_v60  ;;  %v1506_v49 = vld [vmem:[%s2977_s0 + $0x3d] sm:$0xff] }
  0x41   :  { %v587_v51 = vpack.c.bf16 %v1506_v49, %v1505_v43  ;;  %v2040_v43 = vld [vmem:[%s2976_s2 + $0x1c8] sm:$0xff]   ;;  %v41_v49 = vpack.c.bf16 %v2578_v27, %v2573_v24 }
  0x42   :  { %490 = vmatmul.mubr.bf16.vlgmr.msra.gmra.mxu1 %v37_v52  ;;  %752 = vmatmul.mubr.bf16.vlgmr.msra.gmra.mxu0 %v561_v53  ;;  %v2034_v52 = vld [vmem:[%s2976_s2 + $0x1d8] sm:$0xff]   ;;  %v2035_v53 = vld [vmem:[%s2976_s2 + $0x220] sm:$0xff]  }
  0x43   :  { %1841 = vmatpush3.bf16.msra.mxu1 %v2024_v56  ;;  %497 = vmatprep.mubr.bf16.mxu1 %v60_v58  ;;  %v2036_v56 = vld [vmem:[%s2976_s2 + $0x198] sm:$0xff]   ;;  %v2527_v58 = vld [vmem:[%s2977_s0 + $0x30] sm:$0xff] }
  0x44   :  { %1842 = vmatprep.subr.bf16.mxu1 %v2025_v61  ;;  %1914 = vmatpush3.bf16.msra.mxu0 %v2026_v62  ;;  %v2532_v61 = vld [vmem:[%s2977_s0 + $0x38] sm:$0xff]  ;;  %v840_v25 = vpack.c.bf16 %v2527_v58, %v2476_v30 }
  0x45   :  { %759 = vmatprep.mubr.bf16.mxu0 %v585_v6  ;;  %1915 = vmatprep.subr.bf16.mxu0 %v2047_v60  ;;  %v1491_v62 = vld [vmem:[%s2978_s1 + $0x34] sm:$0xff]  ;;  %v2548_v6 = vld [vmem:[%s2978_s1 + $0x48] sm:$0xff] }
  0x46   :  { %v864_v47 = vpack.c.bf16 %v2590_v34, %v2548_v6 }
  0x47   :  { %1843 = vmatpush3.bf16.msra.mxu1 %v2027_v8  ;;  %v1507_v8 = vld [vmem:[%s2977_s0 + $0x45] sm:$0xff] }
  0x48   :  { %1844 = vmatprep.subr.bf16.mxu1 %v2028_v11  ;;  %1916 = vmatpush3.bf16.msra.mxu0 %v2029_v12  ;;  %v40_v11 = vpack.c.bf16 %v2532_v61, %v2527_v58  ;;  %v564_v12 = vpack.c.bf16 %v1492_v1, %v1491_v62  ;;  %v2628_v62 = vld [vmem:[%s2977_s0 + $0x58] sm:$0xff] }
  0x49   :  { %1917 = vmatprep.subr.bf16.mxu0 %v2047_v60  ;;  %v1495_v1 = vld [vmem:[%s2978_s1 + $0x54] sm:$0xff] }
  0x4a   :  { %498 = vmatmul.mubr.bf16.gmra.mxu1 %v38_v14  ;;  %760 = vmatmul.mubr.bf16.gmra.mxu0 %v562_v15  ;;  %v2038_v14 = vld [vmem:[%s2976_s2 + $0x218] sm:$0xff]   ;;  %v63_v15 = vpack.c.bf16 %v2548_v6, %v2543_v3 }
  0x4b   :  { %505 = vmatprep.mubr.bf16.mxu1 %v61_v17  ;;  %1845 = vmatpush3.bf16.msra.mxu1 %v2030_v18  ;;  %v588_v17 = vpack.c.bf16 %v1508_v9, %v1507_v8  ;;  %v2039_v18 = vld [vmem:[%s2976_s2 + $0x190] sm:$0xff]   ;;  %v1496_v8 = vld [vmem:[%s2978_s1 + $0x5c] sm:$0xff]  ;;  %v2044_v9 = vld [vmem:[%s2976_s2 + $0x208] sm:$0xff]  }
  0x4c   :  { %767 = vmatprep.mubr.bf16.mxu0 %v586_v31  ;;  %1846 = vmatprep.subr.bf16.mxu1 %v2031_v35  ;;  %v1493_v31 = vld [vmem:[%s2978_s1 + $0x44] sm:$0xff]  ;;  %v2595_v35 = vld [vmem:[%s2978_s1 + $0x58] sm:$0xff] }
  0x4d   :  { %1918 = vmatpush3.bf16.msra.mxu0 %v2032_v36  ;;  %v1509_v36 = vld [vmem:[%s2977_s0 + $0x55] sm:$0xff] }
  0x4e   :  { %1919 = vmatprep.subr.bf16.mxu0 %v2047_v60 }
  0x4f   :  { %1847 = vmatpush3.bf16.msra.mxu1 %v2033_v37  ;;  %v1510_v37 = vld [vmem:[%s2977_s0 + $0x5d] sm:$0xff] }
  0x50   :  { %1848 = vmatprep.subr.bf16.mxu1 %v2034_v52  ;;  %v589_v52 = vpack.c.bf16 %v1510_v37, %v1509_v36  ;;  %v35_v37 = vld [vmem:[%s2977_s0 + $0x60] sm:$0xff] }
  0x51   :  { %1920 = vmatpush3.bf16.msra.mxu0 %v2035_v53  ;;  %v2043_v53 = vld [vmem:[%s2976_s2 + $0x1c0] sm:$0xff]   ;;  %v843_v2 = vpack.c.bf16 %v35_v37, %v2628_v62 }
  0x52   :  { %506 = vmatmul.mubr.bf16.gmra.mxu1 %v39_v44  ;;  %768 = vmatmul.mubr.bf16.gmra.mxu0 %v563_v46  ;;  %v2041_v44 = vld [vmem:[%s2976_s2 + $0x210] sm:$0xff]   ;;  %v2042_v46 = vld [vmem:[%s2976_s2 + $0x188] sm:$0xff]  }
  0x53   :  { %513 = vmatprep.mubr.bf16.mxu1 %v62_v50  ;;  %775 = vmatprep.mubr.bf16.mxu0 %v587_v51  ;;  %v565_v50 = vpack.c.bf16 %v1494_v33, %v1493_v31  ;;  %v64_v51 = vpack.c.bf16 %v2595_v35, %v2590_v34  ;;  %v566_v31 = vpack.c.bf16 %v1496_v8, %v1495_v1 }
  0x54   :  { %1849 = vmatpush3.bf16.msra.mxu1 %v2036_v56  ;;  %1921 = vmatprep.subr.bf16.mxu0 %v2047_v60  ;;  %v2623_v56 = vld [vmem:[%s2977_s0 + $0x50] sm:$0xff] }
  0x55   :  { %1850 = vmatprep.subr.bf16.mxu1 %v2037_v10  ;;  %1922 = vmatpush3.bf16.msra.mxu0 %v2038_v14  ;;  %v57_v10 = vld [vmem:[%s2978_s1 + $0x60] sm:$0xff]  ;;  %v842_v57 = vpack.c.bf16 %v2623_v56, %v2578_v27 }
  0x56   :  { %1923 = vmatprep.subr.bf16.mxu0 %v2047_v60  ;;  %v1511_v14 = vld [vmem:[%s2977_s0 + $0x65] sm:$0xff] }
  0x58   :  { %1851 = vmatpush3.bf16.msra.mxu1 %v2039_v18  ;;  %v42_v18 = vpack.c.bf16 %v2628_v62, %v2623_v56 }
  0x59   :  { %1852 = vmatprep.subr.bf16.mxu1 %v2040_v43  ;;  %1924 = vmatpush3.bf16.msra.mxu0 %v2041_v44  ;;  %v36_v43 = vld [vmem:[%s2977_s0 + $0x68] sm:$0xff] }
  0x5a   :  { %514 = vmatmul.mubr.bf16.gmra.mxu1 %v40_v11  ;;  %776 = vmatmul.mubr.bf16.gmra.mxu0 %v564_v12  ;;  %v2045_v11 = vld [vmem:[%s2976_s2 + $0x180] sm:$0xff]   ;;  %v2648_v12 = vld [vmem:[%s2978_s1 + $0x68] sm:$0xff] }
  0x5b   :  { %521 = vmatprep.mubr.bf16.mxu1 %v63_v15  ;;  %783 = vmatprep.mubr.bf16.mxu0 %v588_v17  ;;  %v1512_v15 = vld [vmem:[%s2977_s0 + $0x6d] sm:$0xff]  ;;  %v2046_v17 = vld [vmem:[%s2976_s2 + $0x200] sm:$0xff]   ;;  %v65_v33 = vpack.c.bf16 %v2648_v12, %v57_v10  ;;  %v866_v19 = vpack.c.bf16 %v1556_v22, %v2648_v12 }
  0x5c   :  { %1853 = vmatpush3.bf16.msra.mxu1 %v2042_v46  ;;  %1925 = vmatprep.subr.bf16.mxu0 %v2047_v60  ;;  %v590_v36 = vpack.c.bf16 %v1512_v15, %v1511_v14  ;;  %v1497_v44 = vld [vmem:[%s2978_s1 + $0x64] sm:$0xff]  ;;  %v1498_v46 = vld [vmem:[%s2978_s1 + $0x6c] sm:$0xff] }
  0x5d   :  { %1854 = vmatprep.subr.bf16.mxu1 %v2043_v53  ;;  %1926 = vmatpush3.bf16.msra.mxu0 %v2044_v9  ;;  %v861_v53 = vpack.c.bf16 %v2448_v13, %v2399_v55 }
  0x5e   :  { %1927 = vmatprep.subr.bf16.mxu0 %v2047_v60 }
  0x60   :  { %1855 = vmatpush3.bf16.msra.mxu1 %v2045_v11 }
  0x61   :  { %1928 = vmatpush3.bf16.msra.mxu0 %v2046_v17 }
  0x62   :  { %522 = vmatmul.mubr.bf16.gmra.mxu1 %v41_v49  ;;  %784 = vmatmul.mubr.bf16.gmra.mxu0 %v565_v50  ;;  %v43_v49 = vpack.c.bf16 %v36_v43, %v35_v37  ;;  %v567_v50 = vpack.c.bf16 %v1498_v46, %v1497_v44 }
  0x63   :  { %529 = vmatprep.mubr.bf16.mxu1 %v64_v51  ;;  %791 = vmatprep.mubr.bf16.mxu0 %v589_v52  ;;  %v860_v51 = vpack.c.bf16 %v2394_v54, %v2364_v38  ;;  %v838_v52 = vpack.c.bf16 %v2416_v63, %v2373_v42  ;;  %v839_v38 = vpack.c.bf16 %v2471_v29, %v2421_v0 }
  0x64   :  { %v862_v54 = vpack.c.bf16 %v2497_v39, %v2455_v16 }
  0x6a   :  { %530 = vmatmul.mubr.bf16.gmra.mxu1 %v42_v18  ;;  %792 = vmatmul.mubr.bf16.gmra.mxu0 %v566_v31 }
  0x6b   :  { %537 = vmatprep.mubr.bf16.mxu1 %v65_v33  ;;  %799 = vmatprep.mubr.bf16.mxu0 %v590_v36 }
  0x72   :  { %538 = vmatmul.mubr.bf16.gmra.mxu1 %v43_v49  ;;  %800 = vmatmul.mubr.bf16.gmra.mxu0 %v567_v50 }
  0x73   :  { %1027 = vmatprep.mubr.bf16.mxu1 %v860_v51  ;;  %1929 = vmatprep.mubr.msk.bf16.mxu0 %vm2048_vm0, %v2047_v60 }
  0x7a   :  { %1028 = vmatmul.mubr.bf16.vlgmr.msra.gmra.mxu1 %v838_v52  ;;  %1930 = vmatmul.mubr.bf16.vlgmr.msra.gmra.mxu0 %v1114_v32  ;;  %v841_v32 = vpack.c.bf16 %v2573_v24, %v2532_v61 }
  0x7b   :  { %1035 = vmatprep.mubr.bf16.mxu1 %v861_v53  ;;  %1933 = vmatprep.mubr.msk.bf16.mxu0 %vm2048_vm0, %v2047_v60 }
  0x82   :  { %1036 = vmatmul.mubr.bf16.gmra.mxu1 %v839_v38  ;;  %1934 = vmatmul.mubr.bf16.gmra.mxu0 %v1115_v59  ;;  %v865_v59 = vpack.c.bf16 %v57_v10, %v2595_v35 }
  0x83   :  { %1043 = vmatprep.mubr.bf16.mxu1 %v862_v54  ;;  %1937 = vmatprep.mubr.msk.bf16.mxu0 %vm2048_vm0, %v2047_v60 }
  0x8a   :  { %1044 = vmatmul.mubr.bf16.gmra.mxu1 %v840_v25  ;;  %1938 = vmatmul.mubr.bf16.gmra.mxu0 %v1116_v21 }
  0x8b   :  { %1051 = vmatprep.mubr.bf16.mxu1 %v863_v28  ;;  %1941 = vmatprep.mubr.msk.bf16.mxu0 %vm2048_vm0, %v2047_v60 }
  0x92   :  { %1052 = vmatmul.mubr.bf16.gmra.mxu1 %v841_v32  ;;  %1942 = vmatmul.mubr.bf16.gmra.mxu0 %v1117_v26 }
  0x93   :  { %1059 = vmatprep.mubr.bf16.mxu1 %v864_v47  ;;  %1945 = vmatprep.mubr.msk.bf16.mxu0 %vm2048_vm0, %v2047_v60 }
  0x9a   :  { %1060 = vmatmul.mubr.bf16.gmra.mxu1 %v842_v57  ;;  %1946 = vmatmul.mubr.bf16.gmra.mxu0 %v1118_v45  ;;  %v844_v45 = vpack.c.bf16 %v1542_v23, %v36_v43 }
  0x9b   :  { %1067 = vmatprep.mubr.bf16.mxu1 %v865_v59  ;;  %1949 = vmatprep.mubr.msk.bf16.mxu0 %vm2048_vm0, %v2047_v60 }
  0xa2   :  { %1068 = vmatmul.mubr.bf16.gmra.mxu1 %v843_v2  ;;  %1950 = vmatmul.mubr.bf16.gmra.mxu0 %v1119_v7 }
  0xa3   :  { %1075 = vmatprep.mubr.bf16.mxu1 %v866_v19  ;;  %1953 = vmatprep.mubr.msk.bf16.mxu0 %vm2048_vm0, %v2047_v60 }
  0xaa   :  { %1076 = vmatmul.mubr.bf16.gmra.mxu1 %v844_v45  ;;  %1954 = vmatmul.mubr.bf16.gmra.mxu0 %v1120_v20 }
  0xe2   :  { %v1706_v21 = vpop.f32.mrf.mxu1  ;;  %v1682_v48 = vpop.f32.mrf.mxu0 }
  0xe4   :  { %v1707_v4 = vpop.f32.mrf.mxu1  ;;  %v1683_v7 = vpop.f32.mrf.mxu0 }
  0xe5   :  { %v2740_v26 = vadd.f32 %v1707_v4, %v1706_v21  ;;  %v2742_v42 = vadd.f32 %v1683_v7, %v1682_v48 }
  0xe6   :  { %v1709_v55 = vpop.f32.mrf.mxu1  ;;  %v1685_v63 = vpop.f32.mrf.mxu0 }
  0xe8   :  { %v1710_v60 = vpop.f32.mrf.mxu1  ;;  %v1686_v0 = vpop.f32.mrf.mxu0 }
  0xe9   :  { %v2744_v13 = vadd.f32 %v1710_v60, %v1709_v55  ;;  %v2746_v16 = vadd.f32 %v1686_v0, %v1685_v63 }
  0xea   :  { %v1688_v29 = vpop.f32.mrf.mxu0  ;;  %v1712_v5 = vpop.f32.mrf.mxu1 }
  0xec   :  { %v1689_v30 = vpop.f32.mrf.mxu0  ;;  %v1713_v39 = vpop.f32.mrf.mxu1 }
  0xed   :  { %v2748_v41 = vadd.f32 %v1689_v30, %v1688_v29  ;;  %v2750_v58 = vadd.f32 %v1713_v39, %v1712_v5 }
  0xee   :  { %v1691_v61 = vpop.f32.mrf.mxu0  ;;  %v1715_v3 = vpop.f32.mrf.mxu1 }
  0xef   :  { %2982 = vst [vmem:[#allocation2_spill] sm:$0xff] %v2750_v58 }
  0xf0   :  { %v1692_v6 = vpop.f32.mrf.mxu0  ;;  %v1716_v24 = vpop.f32.mrf.mxu1 }
  0xf1   :  { %v2752_v27 = vadd.f32 %v1692_v6, %v1691_v61  ;;  %v2754_v34 = vadd.f32 %v1716_v24, %v1715_v3 }
  0xf2   :  { %v1694_v35 = vpop.f32.mrf.mxu0  ;;  %v1718_v56 = vpop.f32.mrf.mxu1 }
  0xf3   :  { %2983 = vst [vmem:[#allocation3_spill] sm:$0xff] %v2754_v34 }
  0xf4   :  { %v1695_v62 = vpop.f32.mrf.mxu0  ;;  %v1719_v1 = vpop.f32.mrf.mxu1 }
  0xf5   :  { %v2756_v8 = vadd.f32 %v1695_v62, %v1694_v35  ;;  %v2758_v9 = vadd.f32 %v1719_v1, %v1718_v56 }
  0xf6   :  { %v1697_v10 = vpop.f32.mrf.mxu0  ;;  %v1721_v11 = vpop.f32.mrf.mxu1 }
  0xf7   :  { %2984 = vst [vmem:[#allocation4_spill] sm:$0xff] %v2758_v9 }
  0xf8   :  { %v1698_v12 = vpop.f32.mrf.mxu0  ;;  %v1722_v14 = vpop.f32.mrf.mxu1 }
  0xf9   :  { %v2760_v15 = vadd.f32 %v1698_v12, %v1697_v10  ;;  %v2762_v17 = vadd.f32 %v1722_v14, %v1721_v11 }
  0xfa   :  { %v1700_v18 = vpop.f32.mrf.mxu0 }
  0xfb   :  { %2985 = vst [vmem:[#allocation5_spill] sm:$0xff] %v2762_v17 }
  0xfc   :  { %v1701_v31 = vpop.f32.mrf.mxu0 }
  0xfd   :  { %v2764_v33 = vadd.f32 %v1701_v31, %v1700_v18 }
  0xfe   :  { %v1703_v36 = vpop.f32.mrf.mxu0 }
 0x100   :  { %v1704_v37 = vpop.f32.mrf.mxu0 }
 0x101   :  { %v2766_v43 = vadd.f32 %v1704_v37, %v1703_v36 }
 0x102   :  { %v1740_v44 = vpop.f32.mrf.mxu1  ;;  %v1798_v46 = vpop.f32.mrf.mxu0 }
 0x104   :  { %v1741_v49 = vpop.f32.mrf.mxu1  ;;  %v1799_v50 = vpop.f32.mrf.mxu0 }
 0x105   :  { %v1742_v34 = vadd.f32 %v1741_v49, %v1740_v44 }
 0x106   :  { %v1743_v51 = vpop.f32.mrf.mxu1  ;;  %v2768_v52 = vpop.f32.mrf.mxu0 }
 0x108   :  { %v1744_v53 = vpop.f32.mrf.mxu1  ;;  %v1802_v38 = vpop.f32.mrf.mxu0 }
 0x10a   :  { %v1746_v54 = vpop.f32.mrf.mxu1  ;;  %v2770_v25 = vpop.f32.mrf.mxu0 }
 0x10c   :  { %v1747_v28 = vpop.f32.mrf.mxu1  ;;  %v2772_v32 = vpop.f32.mrf.mxu0 }
 0x10d   :  { %v1748_v44 = vadd.f32 %v1747_v28, %v1746_v54 }
 0x10e   :  { %v1749_v47 = vpop.f32.mrf.mxu1  ;;  %v2774_v57 = vpop.f32.mrf.mxu0 }
 0x110   :  { %v1750_v59 = vpop.f32.mrf.mxu1  ;;  %v2776_v22 = vpop.f32.mrf.mxu0 }
 0x112   :  { %v2778_v2 = vpop.f32.mrf.mxu1  ;;  %v2780_v19 = vpop.f32.mrf.mxu0 }
 0x114   :  { %v2782_v23 = vpop.f32.mrf.mxu1  ;;  %v2784_v40 = vpop.f32.mrf.mxu0 }
 0x116   :  { %v2786_v45 = vpop.f32.mrf.mxu1  ;;  %v2788_v20 = vpop.f32.mrf.mxu0 }
 0x118   :  { %v2790_v21 = vpop.f32.mrf.mxu1  ;;  %v2792_v48 = vpop.f32.mrf.mxu0 }
 0x11a   :  { %v2794_v4 = vpop.f32.mrf.mxu1  ;;  %v2796_v7 = vpop.f32.mrf.mxu0 }
 0x11c   :  { %v2798_v55 = vpop.f32.mrf.mxu1  ;;  %v2800_v63 = vpop.f32.mrf.mxu0 }
 0x11e   :  { %v2802_v60 = vpop.f32.mrf.mxu1  ;;  %v2804_v0 = vpop.f32.mrf.mxu0 }
 0x120   :  { %v2806_v29 = vpop.f32.mrf.mxu1  ;;  %v2808_v5 = vpop.f32.mrf.mxu0 }
 0x122   :  { %v2810_v30 = vpop.f32.mrf.mxu1  ;;  %v2812_v39 = vpop.f32.mrf.mxu0 }
 0x124   :  { %v2814_v61 = vpop.f32.mrf.mxu1  ;;  %v2816_v3 = vpop.f32.mrf.mxu0 }
 0x126   :  { %v2818_v6 = vpop.f32.mrf.mxu1  ;;  %v2820_v24 = vpop.f32.mrf.mxu0 }
 0x127   :  { %2986 = vst [vmem:[#allocation6_spill] sm:$0xff] %v2820_v24 }
 0x128   :  { %v2822_v35 = vpop.f32.mrf.mxu1  ;;  %v2824_v56 = vpop.f32.mrf.mxu0 }
 0x129   :  { %2987 = vst [vmem:[#allocation7_spill] sm:$0xff] %v2824_v56 }
 0x12a   :  { %v2826_v62 = vpop.f32.mrf.mxu1  ;;  %v2828_v1 = vpop.f32.mrf.mxu0 }
 0x12b   :  { %2988 = vst [vmem:[#allocation8_spill] sm:$0xff] %v2828_v1 }
 0x12c   :  { %v2830_v10 = vpop.f32.mrf.mxu1  ;;  %v2832_v11 = vpop.f32.mrf.mxu0 }
 0x12d   :  { %2989 = vst [vmem:[#allocation9_spill] sm:$0xff] %v2830_v10  ;;  %2990 = vst [vmem:[#allocation10_spill] sm:$0xff] %v2832_v11  ;;  %v1751_v10 = vadd.f32 %v1750_v59, %v1749_v47  ;;  %v2874_v47 = vld [vmem:[%s2980_s4] ss:$0 sm:$0xff] }
 0x12e   :  { %v2834_v12 = vpop.f32.mrf.mxu1  ;;  %v2836_v14 = vpop.f32.mrf.mxu0 }
 0x12f   :  { %2991 = vst [vmem:[#allocation11_spill] sm:$0xff] %v2834_v12  ;;  %2992 = vst [vmem:[#allocation12_spill] sm:$0xff] %v2836_v14  ;;  %v1745_v12 = vadd.f32 %v1744_v53, %v1743_v51  ;;  %v503_v28 = vadd.f32 %v1751_v10, %v2752_v27 }
 0x130   :  { %v2838_v18 = vpop.f32.mrf.mxu1  ;;  %v2840_v31 = vpop.f32.mrf.mxu0 }
 0x131   :  { %2993 = vst [vmem:[#allocation13_spill] sm:$0xff] %v2838_v18  ;;  %2994 = vst [vmem:[#allocation14_spill] sm:$0xff] %v2840_v31  ;;  %v492_v31 = vadd.f32 %v1742_v34, %v2742_v42  ;;  %v1800_v18 = vadd.f32 %v1799_v50, %v1798_v46  ;;  %v2864_v42 = vld [vmem:[%s2979_s3] ss:$0 sm:$0xff]  ;;  %v1806_v50 = vadd.f32 %v2772_v32, %v2770_v25 }
 0x132   :  { %v2842_v36 = vpop.f32.mrf.mxu1  ;;  %v2844_v37 = vpop.f32.mrf.mxu0  ;;  %v1754_v25 = vadd.f32 %v2782_v23, %v2778_v2 }
 0x133   :  { %2995 = vst [vmem:[#allocation15_spill] sm:$0xff] %v2842_v36  ;;  %2996 = vst [vmem:[#allocation16_spill] sm:$0xff] %v2844_v37  ;;  %v495_v37 = vadd.f32 %v1745_v12, %v2746_v16  ;;  %v500_v16 = vadd.f32 %v1748_v44, %v2748_v41 }
 0x134   :  { %v2846_v17 = vpop.f32.mrf.mxu1  ;;  %v2848_v9 = vpop.f32.mrf.mxu0  ;;  %v508_v44 = vadd.f32 %v1754_v25, %v2756_v8 }
 0x135   :  { %2997 = vst [vmem:[#allocation17_spill] sm:$0xff] %v2846_v17  ;;  %2998 = vst [vmem:[#allocation18_spill] sm:$0xff] %v2848_v9  ;;  %v808_v9 = vadd.f32 %v1800_v18, %v492_v31  ;;  %v810_v41 = vadd.f32 %v1806_v50, %v500_v16 }
 0x136   :  { %v2850_v58 = vpop.f32.mrf.mxu1  ;;  %v2852_v11 = vpop.f32.mrf.mxu0 }
 0x137   :  { %2999 = vst [vmem:[#allocation19_spill] sm:$0xff] %v2850_v58  ;;  %3000 = vst [vmem:[#allocation20_spill] sm:$0xff] %v2852_v11  ;;  %v1803_v58 = vadd.f32 %v1802_v38, %v2768_v52 }
 0x138   :  { %v2854_v1 = vpop.f32.mrf.mxu1  ;;  %v2856_v14 = vpop.f32.mrf.mxu0 }
 0x139   :  { %3001 = vst [vmem:[#allocation21_spill] sm:$0xff] %v2854_v1  ;;  %v809_v1 = vadd.f32 %v1803_v58, %v495_v37  ;;  %v1757_v37 = vadd.f32 %v2790_v21, %v2786_v45 }
 0x13a   :  { %v1856_v36 = vpop.f32.mrf.mxu1  ;;  %v1219_v56 = vpop.f32.mrf.mxu0 }
 0x13c   :  { %v1857_v17 = vpop.f32.mrf.mxu1  ;;  %v1931_v24 = vpop.f32.mrf.mxu0 }
 0x13d   :  { %v1858_v49 = vadd.f32 %v1857_v17, %v1856_v36  ;;  %v1812_v36 = vadd.f32 %v2784_v40, %v2780_v19  ;;  %v511_v19 = vadd.f32 %v1757_v37, %v2760_v15  ;;  %v1760_v40 = vadd.f32 %v2798_v55, %v2794_v4 }
 0x13e   :  { %v1859_v11 = vpop.f32.mrf.mxu1  ;;  %v1222_v51 = vpop.f32.mrf.mxu0 }
 0x13f   :  { %v1084_v53 = vadd.f32 %v1858_v49, %v808_v9 }
 0x140   :  { %v1860_v34 = vpop.f32.mrf.mxu1  ;;  %v1932_v46 = vpop.f32.mrf.mxu0 }
 0x141   :  { %v1274_v17 = vadd.f32 %v1219_v56, %v1084_v53  ;;  %v1861_v54 = vadd.f32 %v1860_v34, %v1859_v11  ;;  %v1809_v11 = vadd.f32 %v2776_v22, %v2774_v57 }
 0x142   :  { %v1862_v52 = vpop.f32.mrf.mxu1  ;;  %v1227_v38 = vpop.f32.mrf.mxu0 }
 0x143   :  { %v1295_v9 = vmul.f32 %v2864_v42, %v1274_v17  ;;  %v1085_v58 = vadd.f32 %v1861_v54, %v809_v1  ;;  %v811_v31 = vadd.f32 %v1809_v11, %v503_v28  ;;  %v812_v17 = vadd.f32 %v1812_v36, %v508_v44 }
 0x144   :  { %v1863_v59 = vpop.f32.mrf.mxu1  ;;  %v1935_v24 = vpop.f32.mrf.mxu0  ;;  %v1821_v44 = vadd.f32 %v2808_v5, %v2804_v0 }
 0x145   :  { %v1275_v32 = vadd.f32 %v1222_v51, %v1085_v58  ;;  %v1864_v56 = vadd.f32 %v1863_v59, %v1862_v52  ;;  %v1316_v27 = vadd.f32 %v2874_v47, %v1295_v9  ;;  %v516_v59 = vadd.f32 %v1760_v40, %v2764_v33 }
 0x146   :  { %v1865_v12 = vpop.f32.mrf.mxu1  ;;  %v1230_v1 = vpop.f32.mrf.mxu0  ;;  %v1818_v24 = vadd.f32 %v2800_v63, %v2796_v7  ;;  %v1766_v7 = vadd.f32 %v2814_v61, %v2810_v30 }
 0x147   :  { %v1296_v10 = vmul.f32 %v2864_v42, %v1275_v32  ;;  %v1086_v18 = vadd.f32 %v1864_v56, %v810_v41  ;;  %v1330_v34 = vmax.f32 %v1316_v27, 0.0 }
 0x148   :  { %v1866_v2 = vpop.f32.mrf.mxu1  ;;  %v1936_v23 = vpop.f32.mrf.mxu0  ;;  %v814_v33 = vadd.f32 %v1818_v24, %v516_v59  ;;  %v3005_v24 = vld [vmem:[#allocation8_spill] sm:$0xff] }
 0x149   :  { %v1317_v57 = vadd.f32 %v2874_v47, %v1296_v10  ;;  %v1276_v22 = vadd.f32 %v1227_v38, %v1086_v18  ;;  %v1867_v49 = vadd.f32 %v1866_v2, %v1865_v12  ;;  %v1815_v38 = vadd.f32 %v2792_v48, %v2788_v20 }
 0x14a   :  { %v1868_v51 = vpop.f32.mrf.mxu1  ;;  %v1235_v53 = vpop.f32.mrf.mxu0  ;;  %v1763_v20 = vadd.f32 %v2806_v29, %v2802_v60 }
 0x14b   :  { %v1331_v46 = vmax.f32 %v1317_v57, 0.0  ;;  %v1297_v16 = vmul.f32 %v2864_v42, %v1276_v22  ;;  %v1087_v50 = vadd.f32 %v1867_v49, %v811_v31  ;;  %v813_v55 = vadd.f32 %v1815_v38, %v511_v19  ;;  %v3003_v38 = vld [vmem:[#allocation6_spill] sm:$0xff] }
 0x14c   :  { %v1869_v45 = vpop.f32.mrf.mxu1  ;;  %v1939_v21 = vpop.f32.mrf.mxu0  ;;  %v519_v36 = vadd.f32 %v1763_v20, %v2766_v43  ;;  %v524_v22 = vadd.f32 %v1766_v7, %v2740_v26  ;;  %v1824_v43 = vadd.f32 %v2816_v3, %v2812_v39  ;;  %v1769_v49 = vadd.f32 %v2822_v35, %v2818_v6  ;;  %v3002_v6 = vld [vmem:[#allocation9_spill] sm:$0xff] }
 0x14d   :  { %v1628_v8 = vpack.c.bf16 %v1331_v46, %v1330_v34  ;;  %v1277_v54 = vadd.f32 %v1230_v1, %v1087_v50  ;;  %v1870_v52 = vadd.f32 %v1869_v45, %v1868_v51  ;;  %v1318_v15 = vadd.f32 %v2874_v47, %v1297_v16  ;;  %v3008_v20 = vld [vmem:[#allocation13_spill] sm:$0xff] }
 0x14e   :  { %v1871_v9 = vpop.f32.mrf.mxu1  ;;  %v1238_v58 = vpop.f32.mrf.mxu0  ;;  %v815_v0 = vadd.f32 %v1821_v44, %v519_v36  ;;  %v816_v21 = vadd.f32 %v1824_v43, %v524_v22  ;;  %v527_v39 = vadd.f32 %v1769_v49, %v2744_v13  ;;  %v1772_v35 = vadd.f32 %v3002_v6, %v2826_v62  ;;  %v3006_v62 = vld [vmem:[#allocation10_spill] sm:$0xff]  ;;  %v3013_v49 = vld [vmem:[#allocation12_spill] sm:$0xff]  ;;  %v3019_v6 = vld [vmem:[#allocation21_spill] sm:$0xff] }
 0x14f   :  { %1629 = vst [vmem:[%s2981_s5] sm:$0xff] %v1628_v8   ;;  %v1298_v28 = vmul.f32 %v2864_v42, %v1277_v54  ;;  %v1088_v4 = vadd.f32 %v1870_v52, %v812_v17  ;;  %v1332_v1 = vmax.f32 %v1318_v15, 0.0 }
 0x150   :  { %v1872_v41 = vpop.f32.mrf.mxu1  ;;  %v1940_v25 = vpop.f32.mrf.mxu0 }
 0x151   :  { %v1319_v48 = vadd.f32 %v2874_v47, %v1298_v28  ;;  %v1278_v32 = vadd.f32 %v1235_v53, %v1088_v4  ;;  %v1873_v56 = vadd.f32 %v1872_v41, %v1871_v9  ;;  %v3004_v9 = vld [vmem:[#allocation7_spill] sm:$0xff]  ;;  %v1830_v41 = vadd.f32 %v3006_v62, %v3005_v24  ;;  %v3020_v24 = vld [vmem:[#allocation5_spill] sm:$0xff] }
 0x152   :  { %v1874_v11 = vpop.f32.mrf.mxu1  ;;  %v1243_v12 = vpop.f32.mrf.mxu0  ;;  %v3007_v25 = vld [vmem:[#allocation11_spill] sm:$0xff] }
 0x153   :  { %v1333_v27 = vmax.f32 %v1319_v48, 0.0  ;;  %v1299_v10 = vmul.f32 %v2864_v42, %v1278_v32  ;;  %v1089_v18 = vadd.f32 %v1873_v56, %v813_v55  ;;  %v1775_v48 = vadd.f32 %v3008_v20, %v3007_v25 }
 0x154   :  { %v1875_v63 = vpop.f32.mrf.mxu1  ;;  %v1943_v31 = vpop.f32.mrf.mxu0 }
 0x155   :  { %v1633_v60 = vpack.c.bf16 %v1333_v27, %v1332_v1  ;;  %v1279_v29 = vadd.f32 %v1238_v58, %v1089_v18  ;;  %v1876_v37 = vadd.f32 %v1875_v63, %v1874_v11  ;;  %v1320_v57 = vadd.f32 %v2874_v47, %v1299_v10  ;;  %v3009_v11 = vld [vmem:[#allocation2_spill] sm:$0xff] }
 0x156   :  { %v1877_v2 = vpop.f32.mrf.mxu1  ;;  %v1246_v23 = vpop.f32.mrf.mxu0  ;;  %v1827_v58 = vadd.f32 %v3004_v9, %v3003_v38 }
 0x157   :  { %1660 = vst [vmem:[%s2981_s5 + $0x8] sm:$0xff] %v1633_v60   ;;  %v1300_v30 = vmul.f32 %v2864_v42, %v1279_v29  ;;  %v1090_v61 = vadd.f32 %v1876_v37, %v814_v33  ;;  %v1334_v19 = vmax.f32 %v1320_v57, 0.0  ;;  %v3010_v60 = vld [vmem:[#allocation3_spill] sm:$0xff] }
 0x158   :  { %v1878_v51 = vpop.f32.mrf.mxu1  ;;  %v1944_v53 = vpop.f32.mrf.mxu0  ;;  %v817_v59 = vadd.f32 %v1827_v58, %v527_v39  ;;  %v535_v29 = vadd.f32 %v1775_v48, %v3010_v60  ;;  %v3011_v37 = vld [vmem:[#allocation15_spill] sm:$0xff] }
 0x159   :  { %v1321_v5 = vadd.f32 %v2874_v47, %v1300_v30  ;;  %v1280_v34 = vadd.f32 %v1243_v12, %v1090_v61  ;;  %v1879_v46 = vadd.f32 %v1878_v51, %v1877_v2  ;;  %v532_v12 = vadd.f32 %v1772_v35, %v3009_v11  ;;  %v3012_v2 = vld [vmem:[#allocation17_spill] sm:$0xff]  ;;  %v3014_v51 = vld [vmem:[#allocation14_spill] sm:$0xff] }
 0x15a   :  { %v1880_v16 = vpop.f32.mrf.mxu1  ;;  %v1251_v50 = vpop.f32.mrf.mxu0  ;;  %v1833_v53 = vadd.f32 %v3014_v51, %v3013_v49 }
 0x15b   :  { %v1335_v40 = vmax.f32 %v1321_v5, 0.0  ;;  %v1301_v45 = vmul.f32 %v2864_v42, %v1280_v34  ;;  %v1091_v26 = vadd.f32 %v1879_v46, %v815_v0  ;;  %v818_v30 = vadd.f32 %v1830_v41, %v532_v12 }
 0x15c   :  { %v1881_v3 = vpop.f32.mrf.mxu1  ;;  %v1947_v17 = vpop.f32.mrf.mxu0 }
 0x15d   :  { %v1638_v8 = vpack.c.bf16 %v1335_v40, %v1334_v19  ;;  %v1281_v54 = vadd.f32 %v1246_v23, %v1091_v26  ;;  %v1882_v52 = vadd.f32 %v1881_v3, %v1880_v16  ;;  %v1322_v4 = vadd.f32 %v2874_v47, %v1301_v45  ;;  %v3015_v19 = vld [vmem:[#allocation4_spill] sm:$0xff]  ;;  %v3017_v26 = vld [vmem:[#allocation18_spill] sm:$0xff]  ;;  %v3018_v17 = vld [vmem:[#allocation19_spill] sm:$0xff] }
 0x15e   :  { %v1883_v15 = vpop.f32.mrf.mxu1  ;;  %v1254_v28 = vpop.f32.mrf.mxu0  ;;  %v1778_v23 = vadd.f32 %v3012_v2, %v3011_v37  ;;  %v3016_v45 = vld [vmem:[#allocation16_spill] sm:$0xff]  ;;  %v1781_v35 = vadd.f32 %v3019_v6, %v3018_v17 }
 0x15f   :  { %1661 = vst [vmem:[%s2981_s5 + $0x10] sm:$0xff] %v1638_v8   ;;  %v1302_v13 = vmul.f32 %v2864_v42, %v1281_v54  ;;  %v1092_v55 = vadd.f32 %v1882_v52, %v816_v21  ;;  %v1336_v7 = vmax.f32 %v1322_v4, 0.0  ;;  %v1836_v21 = vadd.f32 %v3017_v26, %v3016_v45 }
 0x160   :  { %v1884_v32 = vpop.f32.mrf.mxu1  ;;  %v1948_v56 = vpop.f32.mrf.mxu0  ;;  %v540_v40 = vadd.f32 %v1778_v23, %v3015_v19  ;;  %v543_v62 = vadd.f32 %v1781_v35, %v3020_v24 }
 0x161   :  { %v1323_v1 = vadd.f32 %v2874_v47, %v1302_v13  ;;  %v1282_v27 = vadd.f32 %v1251_v50, %v1092_v55  ;;  %v1885_v10 = vadd.f32 %v1884_v32, %v1883_v15  ;;  %v819_v50 = vadd.f32 %v1833_v53, %v535_v29  ;;  %v3021_v56 = vld [vmem:[#allocation20_spill] sm:$0xff] }
 0x162   :  { %v1886_v18 = vpop.f32.mrf.mxu1  ;;  %v1259_v33 = vpop.f32.mrf.mxu0  ;;  %v820_v13 = vadd.f32 %v1836_v21, %v540_v40  ;;  %v1839_v11 = vadd.f32 %v2856_v14, %v3021_v56 }
 0x163   :  { %v1337_v63 = vmax.f32 %v1323_v1, 0.0  ;;  %v1303_v31 = vmul.f32 %v2864_v42, %v1282_v27  ;;  %v1093_v36 = vadd.f32 %v1885_v10, %v817_v59 }
 0x164   :  { %v1887_v44 = vpop.f32.mrf.mxu1  ;;  %v1951_v57 = vpop.f32.mrf.mxu0 }
 0x165   :  { %v1643_v61 = vpack.c.bf16 %v1337_v63, %v1336_v7  ;;  %v1283_v22 = vadd.f32 %v1254_v28, %v1093_v36  ;;  %v1888_v43 = vadd.f32 %v1887_v44, %v1886_v18  ;;  %v1324_v34 = vadd.f32 %v2874_v47, %v1303_v31 }
 0x166   :  { %v1889_v0 = vpop.f32.mrf.mxu1  ;;  %v1262_v5 = vpop.f32.mrf.mxu0 }
 0x167   :  { %1662 = vst [vmem:[%s2981_s5 + $0x18] sm:$0xff] %v1643_v61   ;;  %v1304_v46 = vmul.f32 %v2864_v42, %v1283_v22  ;;  %v1094_v16 = vadd.f32 %v1888_v43, %v818_v30  ;;  %v1338_v58 = vmax.f32 %v1324_v34, 0.0 }
 0x168   :  { %v1890_v39 = vpop.f32.mrf.mxu1  ;;  %v1952_v3 = vpop.f32.mrf.mxu0 }
 0x169   :  { %v1325_v8 = vadd.f32 %v2874_v47, %v1304_v46  ;;  %v1284_v54 = vadd.f32 %v1259_v33, %v1094_v16  ;;  %v1891_v52 = vadd.f32 %v1890_v39, %v1889_v0  ;;  %v821_v33 = vadd.f32 %v1839_v11, %v543_v62 }
 0x16a   :  { %v1892_v38 = vpop.f32.mrf.mxu1  ;;  %v1267_v9 = vpop.f32.mrf.mxu0 }
 0x16b   :  { %v1339_v15 = vmax.f32 %v1325_v8, 0.0  ;;  %v1305_v28 = vmul.f32 %v2864_v42, %v1284_v54  ;;  %v1095_v4 = vadd.f32 %v1891_v52, %v819_v50 }
 0x16c   :  { %v1893_v55 = vpop.f32.mrf.mxu1  ;;  %v1955_v59 = vpop.f32.mrf.mxu0 }
 0x16d   :  { %v1648_v41 = vpack.c.bf16 %v1339_v15, %v1338_v58  ;;  %v1285_v25 = vadd.f32 %v1262_v5, %v1095_v4  ;;  %v1894_v20 = vadd.f32 %v1893_v55, %v1892_v38  ;;  %v1326_v12 = vadd.f32 %v2874_v47, %v1305_v28 }
 0x16e   :  { %v1895_v48 = vpop.f32.mrf.mxu1  ;;  %v1270_v32 = vpop.f32.mrf.mxu0 }
 0x16f   :  { %1663 = vst [vmem:[%s2981_s5 + $0x20] sm:$0xff] %v1648_v41   ;;  %v1306_v1 = vmul.f32 %v2864_v42, %v1285_v25  ;;  %v1096_v27 = vadd.f32 %v1894_v20, %v820_v13  ;;  %v1340_v36 = vmax.f32 %v1326_v12, 0.0 }
 0x170   :  { %v1896_v10 = vpop.f32.mrf.mxu1  ;;  %v1956_v18 = vpop.f32.mrf.mxu0 }
 0x171   :  { %v1327_v7 = vadd.f32 %v2874_v47, %v1306_v1  ;;  %v1286_v63 = vadd.f32 %v1267_v9, %v1096_v27  ;;  %v1897_v31 = vadd.f32 %v1896_v10, %v1895_v48 }
 0x173   :  { %v1341_v60 = vmax.f32 %v1327_v7, 0.0  ;;  %v1307_v14 = vmul.f32 %v2864_v42, %v1286_v63  ;;  %v1097_v29 = vadd.f32 %v1897_v31, %v821_v33 }
 0x175   :  { %v1653_v37 = vpack.c.bf16 %v1341_v60, %v1340_v36  ;;  %v1287_v2 = vadd.f32 %v1270_v32, %v1097_v29  ;;  %v1328_v23 = vadd.f32 %v2874_v47, %v1307_v14 }
 0x177   :  { %1664 = vst [vmem:[%s2981_s5 + $0x28] sm:$0xff] %v1653_v37   ;;  %v1308_v44 = vmul.f32 %v2864_v42, %v1287_v2  ;;  %v1342_v30 = vmax.f32 %v1328_v23, 0.0 }
 0x179   :  { %v1329_v57 = vadd.f32 %v2874_v47, %v1308_v44 }
 0x17b   :  { %v1343_v61 = vmax.f32 %v1329_v57, 0.0 }
 0x17d   :  { %v1658_v22 = vpack.c.bf16 %v1343_v61, %v1342_v30 }
 0x17f   :  { %1665 = vst [vmem:[%s2981_s5 + $0x30] sm:$0xff] %v1658_v22  }

// kernel: _lambda_.27
= control target key start
LH: loop header
LB: loop body
LE: loop exit
PB: predicated region body
PF: predicated region fallthrough
CT: control target
= control target key end

     0   :  { %v618_v0 = vmov 0.0   ;;  %vm619_vm0 = vmmov 0   ;;  %vm375_vm1 = vcmask 293888   ;;  %vm382_vm2 = vcmask 1043456   ;;  %s790_s1 = inlined_call_operand.vmem [shape: bf16[128,128], index: 1, kind: input, shape index: {}]   ;;  %s791_s3 = inlined_call_operand.vmem [shape: bf16[128,128], index: 3, kind: input, shape index: {}]   ;;  %s792_s0 = inlined_call_operand.vmem [shape: bf16[36,128], index: 0, kind: input, shape index: {}]   ;;  %s793_s2 = inlined_call_operand.vmem [shape: bf16[36,128], index: 2, kind: input, shape index: {}]   ;;  %s794_s8 = inlined_call_operand.vmem [shape: f32[12,36], index: 8, kind: input, shape index: {}]   ;;  %s795_s6 = inlined_call_operand.vmem [shape: f32[1,128], index: 6, kind: input, shape index: {}]   ;;  %s796_s4 = inlined_call_operand.vmem [shape: f32[1,128], index: 4, kind: input, shape index: {}]   ;;  %s797_s7 = inlined_call_operand.vmem [shape: f32[1,128], index: 7, kind: input, shape index: {}]   ;;  %s798_s5 = inlined_call_operand.vmem [shape: f32[1,128], index: 5, kind: input, shape index: {}]   ;;  %s799_s9 = inlined_call_operand.vmem [shape: f32[12,128], index: 9, kind: output, shape index: {}]  }
   0x1   :  { %525 = vmatprep.subr.bf16.mxu0 %v618_v0  ;;  %553 = vmatprep.subr.bf16.mxu1 %v618_v0  ;;  %v596_v1 = vld [vmem:[%s790_s1 + $0x38] sm:$0xff]   ;;  %v598_v3 = vld [vmem:[%s790_s1 + $0x30] sm:$0xff]   ;;  %v600_v5 = vld [vmem:[%s790_s1 + $0x28] sm:$0xff]  }
   0x2   :  { %v597_v2 = vld [vmem:[%s791_s3 + $0x38] sm:$0xff]   ;;  %541 = vmatprep.mubr.msk.bf16.mxu0 %vm619_vm0, %v618_v0  ;;  %569 = vmatprep.mubr.msk.bf16.mxu1 %vm619_vm0, %v618_v0  ;;  %v599_v4 = vld [vmem:[%s791_s3 + $0x30] sm:$0xff]   ;;  %v601_v6 = vld [vmem:[%s791_s3 + $0x28] sm:$0xff]  }
   0x3   :  { %526 = vmatpush3.bf16.msra.mxu0 %v596_v1  ;;  %554 = vmatpush3.bf16.msra.mxu1 %v597_v2  ;;  %v602_v7 = vld [vmem:[%s790_s1 + $0x20] sm:$0xff]   ;;  %v604_v9 = vld [vmem:[%s790_s1 + $0x18] sm:$0xff]   ;;  %v606_v11 = vld [vmem:[%s790_s1 + $0x10] sm:$0xff]  }
   0x4   :  { %527 = vmatprep.subr.bf16.mxu0 %v618_v0  ;;  %555 = vmatprep.subr.bf16.mxu1 %v618_v0  ;;  %v603_v8 = vld [vmem:[%s791_s3 + $0x20] sm:$0xff]   ;;  %v605_v10 = vld [vmem:[%s791_s3 + $0x18] sm:$0xff]   ;;  %v607_v12 = vld [vmem:[%s791_s3 + $0x10] sm:$0xff]  }
   0x5   :  { %v608_v13 = vld [vmem:[%s790_s1 + $0x8] sm:$0xff]   ;;  %v610_v15 = vld [vmem:[%s790_s1] sm:$0xff]   ;;  %v616_v21 = vld [vmem:[%s792_s0 + $0x10] ss:$0 sps:$4 sm:$0x33]  }
   0x6   :  { %v609_v14 = vld [vmem:[%s791_s3 + $0x8] sm:$0xff]   ;;  %v611_v16 = vld [vmem:[%s791_s3] sm:$0xff]   ;;  %v617_v22 = vld [vmem:[%s793_s2 + $0x10] ss:$0 sps:$4 sm:$0x33]  }
   0x7   :  { %528 = vmatpush3.bf16.msra.mxu0 %v598_v3  ;;  %556 = vmatpush3.bf16.msra.mxu1 %v599_v4  ;;  %v612_v17 = vld [vmem:[%s792_s0] sm:$0xff]   ;;  %v614_v19 = vld [vmem:[%s792_s0 + $0x8] sm:$0xff]  }
   0x8   :  { %529 = vmatprep.subr.bf16.mxu0 %v618_v0  ;;  %557 = vmatprep.subr.bf16.mxu1 %v618_v0  ;;  %v613_v18 = vld [vmem:[%s793_s2] sm:$0xff]   ;;  %v615_v20 = vld [vmem:[%s793_s2 + $0x8] sm:$0xff]  }
   0x9   :  { %v373_v23 = vld [vmem:[%s794_s8] sm:$0xff] }
   0xa   :  { %v478_v37 = vld [vmem:[%s795_s6] ss:$0 sm:$0xff] }
   0xb   :  { %530 = vmatpush3.bf16.msra.mxu0 %v600_v5  ;;  %558 = vmatpush3.bf16.msra.mxu1 %v601_v6  ;;  %v491_v38 = vld [vmem:[%s796_s4] ss:$0 sm:$0xff] }
   0xc   :  { %531 = vmatprep.subr.bf16.mxu0 %v618_v0  ;;  %559 = vmatprep.subr.bf16.mxu1 %v618_v0  ;;  %v479_v47 = vld [vmem:[%s797_s7] ss:$0 sm:$0xff] }
   0xd   :  { %v492_v48 = vld [vmem:[%s798_s5] ss:$0 sm:$0xff] }
   0xf   :  { %532 = vmatpush3.bf16.msra.mxu0 %v602_v7  ;;  %560 = vmatpush3.bf16.msra.mxu1 %v603_v8 }
  0x10   :  { %533 = vmatprep.subr.bf16.mxu0 %v618_v0  ;;  %561 = vmatprep.subr.bf16.mxu1 %v618_v0 }
  0x13   :  { %534 = vmatpush3.bf16.msra.mxu0 %v604_v9  ;;  %562 = vmatpush3.bf16.msra.mxu1 %v605_v10 }
  0x14   :  { %535 = vmatprep.subr.bf16.mxu0 %v618_v0  ;;  %563 = vmatprep.subr.bf16.mxu1 %v618_v0 }
  0x17   :  { %536 = vmatpush3.bf16.msra.mxu0 %v606_v11  ;;  %564 = vmatpush3.bf16.msra.mxu1 %v607_v12 }
  0x18   :  { %537 = vmatprep.subr.bf16.mxu0 %v618_v0  ;;  %565 = vmatprep.subr.bf16.mxu1 %v618_v0 }
  0x1b   :  { %538 = vmatpush3.bf16.msra.mxu0 %v608_v13  ;;  %566 = vmatpush3.bf16.msra.mxu1 %v609_v14 }
  0x1c   :  { %539 = vmatprep.subr.bf16.mxu0 %v618_v0  ;;  %567 = vmatprep.subr.bf16.mxu1 %v618_v0 }
  0x1f   :  { %540 = vmatpush3.bf16.msra.mxu0 %v610_v15  ;;  %568 = vmatpush3.bf16.msra.mxu1 %v611_v16 }
  0x22   :  { %542 = vmatmul.mubr.bf16.vlgmr.msra.gmra.mxu0 %v612_v17  ;;  %570 = vmatmul.mubr.bf16.vlgmr.msra.gmra.mxu1 %v613_v18  ;;  %v374_v18 = vld [vmem:[%s794_s8 + $0x8] sm:$0xf] }
  0x23   :  { %545 = vmatprep.mubr.msk.bf16.mxu0 %vm619_vm0, %v618_v0  ;;  %573 = vmatprep.mubr.msk.bf16.mxu1 %vm619_vm0, %v618_v0 }
  0x2a   :  { %546 = vmatmul.mubr.bf16.gmra.mxu0 %v614_v19  ;;  %574 = vmatmul.mubr.bf16.gmra.mxu1 %v615_v20 }
  0x2b   :  { %549 = vmatprep.mubr.msk.bf16.mxu0 %vm619_vm0, %v618_v0  ;;  %577 = vmatprep.mubr.msk.bf16.mxu1 %vm619_vm0, %v618_v0 }
  0x32   :  { %550 = vmatmul.mubr.bf16.gmra.mxu0 %v616_v21  ;;  %578 = vmatmul.mubr.bf16.gmra.mxu1 %v617_v22 }
  0x33   :  { %591 = vmatprep.mubr.msk.f32.mxu0 %vm375_vm1, %v373_v23 }
  0xe2   :  { %v152_v24 = vpop.f32.mrf.mxu0  ;;  %v317_v25 = vpop.f32.mrf.mxu1 }
  0xe3   :  { %v181_v57 = vmul.f32 %v478_v37, %v152_v24  ;;  %v346_v60 = vmul.f32 %v491_v38, %v317_v25 }
  0xe4   :  { %v543_v26 = vpop.f32.mrf.mxu0  ;;  %v571_v27 = vpop.f32.mrf.mxu1 }
  0xe5   :  { %v193_v8 = vadd.f32 %v479_v47, %v181_v57  ;;  %v358_v9 = vadd.f32 %v492_v48, %v346_v60 }
  0xe6   :  { %v155_v28 = vpop.f32.mrf.mxu0  ;;  %v320_v29 = vpop.f32.mrf.mxu1 }
  0xe7   :  { %v182_v49 = vmul.f32 %v478_v37, %v155_v28  ;;  %v347_v52 = vmul.f32 %v491_v38, %v320_v29  ;;  %v363_v15 = vadd.f32 %v358_v9, %v193_v8 }
  0xe8   :  { %v544_v30 = vpop.f32.mrf.mxu0  ;;  %v572_v31 = vpop.f32.mrf.mxu1 }
  0xe9   :  { %v194_v2 = vadd.f32 %v479_v47, %v182_v49  ;;  %v359_v3 = vadd.f32 %v492_v48, %v347_v52  ;;  %v368_v17 = vmax.f32 %v363_v15, 0.0 }
  0xea   :  { %v160_v32 = vpop.f32.mrf.mxu0  ;;  %v325_v33 = vpop.f32.mrf.mxu1 }
  0xeb   :  { %v183_v44 = vmul.f32 %v478_v37, %v160_v32  ;;  %v348_v45 = vmul.f32 %v491_v38, %v325_v33  ;;  %v364_v13 = vadd.f32 %v359_v3, %v194_v2 }
  0xec   :  { %v547_v34 = vpop.f32.mrf.mxu0  ;;  %v575_v35 = vpop.f32.mrf.mxu1 }
  0xed   :  { %v195_v61 = vadd.f32 %v479_v47, %v183_v44  ;;  %v360_v62 = vadd.f32 %v492_v48, %v348_v45  ;;  %v369_v16 = vmax.f32 %v364_v13, 0.0 }
  0xee   :  { %v163_v36 = vpop.f32.mrf.mxu0  ;;  %v328_v39 = vpop.f32.mrf.mxu1 }
  0xef   :  { %v184_v40 = vmul.f32 %v478_v37, %v163_v36  ;;  %v349_v41 = vmul.f32 %v491_v38, %v328_v39  ;;  %v365_v11 = vadd.f32 %v360_v62, %v195_v61 }
  0xf0   :  { %v548_v42 = vpop.f32.mrf.mxu0  ;;  %v576_v43 = vpop.f32.mrf.mxu1 }
  0xf1   :  { %v196_v53 = vadd.f32 %v479_v47, %v184_v40  ;;  %v361_v54 = vadd.f32 %v492_v48, %v349_v41  ;;  %v370_v14 = vmax.f32 %v365_v11, 0.0 }
  0xf2   :  { %v168_v46 = vpop.f32.mrf.mxu0  ;;  %v333_v51 = vpop.f32.mrf.mxu1 }
  0xf3   :  { %v185_v50 = vmul.f32 %v478_v37, %v168_v46  ;;  %v350_v55 = vmul.f32 %v491_v38, %v333_v51  ;;  %v366_v6 = vadd.f32 %v361_v54, %v196_v53 }
  0xf4   :  { %v551_v56 = vpop.f32.mrf.mxu0  ;;  %v579_v59 = vpop.f32.mrf.mxu1 }
  0xf5   :  { %v197_v58 = vadd.f32 %v479_v47, %v185_v50  ;;  %v362_v63 = vadd.f32 %v492_v48, %v350_v55  ;;  %v371_v12 = vmax.f32 %v366_v6, 0.0 }
  0xf6   :  { %v171_v0 = vpop.f32.mrf.mxu0  ;;  %v336_v1 = vpop.f32.mrf.mxu1 }
  0xf7   :  { %v367_v4 = vadd.f32 %v362_v63, %v197_v58 }
  0xf8   :  { %v552_v5 = vpop.f32.mrf.mxu0  ;;  %v580_v7 = vpop.f32.mrf.mxu1 }
  0xf9   :  { %v372_v10 = vmax.f32 %v367_v4, 0.0 }
  0xfb   :  { %581 = vmatprep.subr.msk.mxu0 %vm382_vm2, %v372_v10 }
  0xfc   :  { %582 = vmatpush3.msk.msra.mxu0 %vm382_vm2, %v372_v10 }
  0xfd   :  { %583 = vmatprep.subr.mxu0 %v371_v12 }
  0xfe   :  { %584 = vmatpush3.msra.mxu0 %v371_v12 }
  0xff   :  { %585 = vmatprep.subr.mxu0 %v370_v14 }
 0x100   :  { %586 = vmatpush3.msra.mxu0 %v370_v14 }
 0x101   :  { %587 = vmatprep.subr.mxu0 %v369_v16 }
 0x102   :  { %588 = vmatpush3.msra.mxu0 %v369_v16 }
 0x103   :  { %589 = vmatprep.subr.mxu0 %v368_v17 }
 0x104   :  { %590 = vmatpush3.msra.mxu0 %v368_v17 }
 0x105   :  { %592 = vmatmul.mubr.msk.f32.vlgmr.msra.gmra.mxu0 %vm375_vm1, %v374_v18 }
 0x1c5   :  { %v593_v19 = vpop.f32.mrf.mxu0 }
 0x1c6   :  { %462 = vst [vmem:[%s799_s9 + $0x8] sm:$0xf] %v593_v19 }
 0x1c7   :  { %v452_v20 = vpop.f32.mrf.mxu0 }
 0x1c8   :  { %461 = vst [vmem:[%s799_s9] sm:$0xff] %v452_v20 }

// kernel: _lambda_.26
= control target key start
LH: loop header
LB: loop body
LE: loop exit
PB: predicated region body
PF: predicated region fallthrough
CT: control target
= control target key end

     0   :  { %vm1775_vm0 = vmmov 0   ;;  %s2439_s1 = inlined_call_operand.vmem [shape: bf16[1152,128], index: 1, kind: input, shape index: {}]   ;;  %s2440_s0 = inlined_call_operand.vmem [shape: f32[96,128], index: 0, kind: input, shape index: {}]   ;;  %s2441_s2 = inlined_call_operand.vmem [shape: f32[1,128], index: 2, kind: input, shape index: {}]   ;;  %s2442_s3 = inlined_call_operand.vmem [shape: f32[1,128], index: 3, kind: input, shape index: {}]   ;;  %s2443_s4 = inlined_call_operand.vmem [shape: bf16[80,128], index: 4, kind: output, shape index: {}]  }
   0x1   :  { %v1702_v0 = vld [vmem:[%s2439_s1 + $0xf8] sm:$0xff]   ;;  %v1706_v4 = vld [vmem:[%s2439_s1 + $0xf0] sm:$0xff]   ;;  %v1710_v8 = vld [vmem:[%s2439_s1 + $0xe8] sm:$0xff]  }
   0x2   :  { %v1703_v1 = vld [vmem:[%s2439_s1 + $0x78] sm:$0xff]   ;;  %1451 = vmatprep.subr.bf16.mxu0 %v1702_v0  ;;  %v1707_v5 = vld [vmem:[%s2439_s1 + $0x70] sm:$0xff]   ;;  %v1711_v9 = vld [vmem:[%s2439_s1 + $0x68] sm:$0xff]  }
   0x3   :  { %v1704_v2 = vld [vmem:[%s2439_s1 + $0xb8] sm:$0xff]   ;;  %1497 = vmatprep.subr.bf16.mxu1 %v1703_v1  ;;  %v1708_v6 = vld [vmem:[%s2439_s1 + $0xb0] sm:$0xff]   ;;  %v1712_v10 = vld [vmem:[%s2439_s1 + $0xa8] sm:$0xff]  }
   0x4   :  { %v1705_v3 = vld [vmem:[%s2439_s1 + $0x38] sm:$0xff]   ;;  %1452 = vmatpush3.bf16.msra.mxu0 %v1704_v2  ;;  %v1709_v7 = vld [vmem:[%s2439_s1 + $0x30] sm:$0xff]   ;;  %v1713_v11 = vld [vmem:[%s2439_s1 + $0x28] sm:$0xff]  }
   0x5   :  { %1498 = vmatpush3.bf16.msra.mxu1 %v1705_v3  ;;  %1453 = vmatprep.subr.bf16.mxu0 %v1706_v4  ;;  %v1714_v12 = vld [vmem:[%s2439_s1 + $0xe0] sm:$0xff]   ;;  %v1718_v16 = vld [vmem:[%s2439_s1 + $0xd8] sm:$0xff]   ;;  %v1722_v20 = vld [vmem:[%s2439_s1 + $0xd0] sm:$0xff]  }
   0x6   :  { %1499 = vmatprep.subr.bf16.mxu1 %v1707_v5  ;;  %v1715_v13 = vld [vmem:[%s2439_s1 + $0x60] sm:$0xff]   ;;  %v1719_v17 = vld [vmem:[%s2439_s1 + $0x58] sm:$0xff]   ;;  %v1723_v21 = vld [vmem:[%s2439_s1 + $0x50] sm:$0xff]  }
   0x7   :  { %v1716_v14 = vld [vmem:[%s2439_s1 + $0xa0] sm:$0xff]   ;;  %v1720_v18 = vld [vmem:[%s2439_s1 + $0x98] sm:$0xff]   ;;  %v1724_v22 = vld [vmem:[%s2439_s1 + $0x90] sm:$0xff]  }
   0x8   :  { %1454 = vmatpush3.bf16.msra.mxu0 %v1708_v6  ;;  %v1717_v15 = vld [vmem:[%s2439_s1 + $0x20] sm:$0xff]   ;;  %v1721_v19 = vld [vmem:[%s2439_s1 + $0x18] sm:$0xff]   ;;  %v1725_v23 = vld [vmem:[%s2439_s1 + $0x10] sm:$0xff]  }
   0x9   :  { %1500 = vmatpush3.bf16.msra.mxu1 %v1709_v7  ;;  %1455 = vmatprep.subr.bf16.mxu0 %v1710_v8  ;;  %v1726_v24 = vld [vmem:[%s2439_s1 + $0xc8] sm:$0xff]   ;;  %v1730_v28 = vld [vmem:[%s2439_s1 + $0xc0] sm:$0xff]   ;;  %v1734_v44 = vld [vmem:[%s2439_s1 + $0x178] sm:$0xff]  }
   0xa   :  { %1501 = vmatprep.subr.bf16.mxu1 %v1711_v9  ;;  %v1727_v25 = vld [vmem:[%s2439_s1 + $0x48] sm:$0xff]   ;;  %v1731_v29 = vld [vmem:[%s2439_s1 + $0x40] sm:$0xff]   ;;  %v1735_v45 = vld [vmem:[%s2439_s1 + $0x138] sm:$0xff]  }
   0xb   :  { %v1728_v26 = vld [vmem:[%s2439_s1 + $0x88] sm:$0xff]   ;;  %v1732_v30 = vld [vmem:[%s2439_s1 + $0x80] sm:$0xff]   ;;  %v1736_v46 = vld [vmem:[%s2439_s1 + $0x170] sm:$0xff]  }
   0xc   :  { %1456 = vmatpush3.bf16.msra.mxu0 %v1712_v10  ;;  %v1729_v27 = vld [vmem:[%s2439_s1 + $0x8] sm:$0xff]   ;;  %v1733_v31 = vld [vmem:[%s2439_s1] sm:$0xff]   ;;  %v1737_v47 = vld [vmem:[%s2439_s1 + $0x130] sm:$0xff]  }
   0xd   :  { %1502 = vmatpush3.bf16.msra.mxu1 %v1713_v11  ;;  %1457 = vmatprep.subr.bf16.mxu0 %v1714_v12  ;;  %v1268_v32 = vld [vmem:[%s2440_s0 + $0x5] sm:$0xff]  ;;  %v1269_v33 = vld [vmem:[%s2440_s0 + $0xd] sm:$0xff]  ;;  %v1270_v48 = vld [vmem:[%s2440_s0 + $0x15] sm:$0xff] }
   0xe   :  { %1503 = vmatprep.subr.bf16.mxu1 %v1715_v13  ;;  %v1248_v34 = vld [vmem:[%s2440_s0 + $0x1] sm:$0xff]  ;;  %v113_v35 = vpack.c.bf16 %v1269_v33, %v1268_v32  ;;  %v1249_v36 = vld [vmem:[%s2440_s0 + $0x9] sm:$0xff]  ;;  %v1250_v50 = vld [vmem:[%s2440_s0 + $0x11] sm:$0xff] }
   0xf   :  { %v1258_v37 = vld [vmem:[%s2440_s0 + $0x2] sm:$0xff]  ;;  %v1915_v38 = vld [vmem:[%s2440_s0 + $0xa] sm:$0xff]  ;;  %v47_v39 = vpack.c.bf16 %v1249_v36, %v1248_v34  ;;  %v1251_v51 = vld [vmem:[%s2440_s0 + $0x19] sm:$0xff] }
  0x10   :  { %1458 = vmatpush3.bf16.msra.mxu0 %v1716_v14  ;;  %v96_v40 = vpack.c.bf16 %v1915_v38, %v1258_v37  ;;  %v20_v41 = vld [vmem:[%s2440_s0] sm:$0xff]  ;;  %v21_v42 = vld [vmem:[%s2440_s0 + $0x8] sm:$0xff]  ;;  %278 = vmatprep.mubr.bf16.mxu0 %v113_v35  ;;  %v48_v53 = vpack.c.bf16 %v1251_v51, %v1250_v50  ;;  %v1951_v54 = vld [vmem:[%s2440_s0 + $0x12] sm:$0xff] }
  0x11   :  { %1504 = vmatpush3.bf16.msra.mxu1 %v1717_v15  ;;  %1459 = vmatprep.subr.bf16.mxu0 %v1718_v16  ;;  %v30_v43 = vpack.c.bf16 %v21_v42, %v20_v41  ;;  %v1271_v49 = vld [vmem:[%s2440_s0 + $0x1d] sm:$0xff]  ;;  %v22_v56 = vld [vmem:[%s2440_s0 + $0x10] sm:$0xff]  ;;  %v1740_v62 = vld [vmem:[%s2439_s1 + $0x168] sm:$0xff]  }
  0x12   :  { %1505 = vmatprep.subr.bf16.mxu1 %v1719_v17  ;;  %447 = vmatprep.mubr.bf16.mxu1 %v47_v39  ;;  %v114_v52 = vpack.c.bf16 %v1271_v49, %v1270_v48  ;;  %v1956_v55 = vld [vmem:[%s2440_s0 + $0x1a] sm:$0xff]  ;;  %v1741_v63 = vld [vmem:[%s2439_s1 + $0x128] sm:$0xff]   ;;  %v1742_v0 = vld [vmem:[%s2439_s1 + $0x1f0] sm:$0xff]  }
  0x13   :  { %v97_v57 = vpack.c.bf16 %v1956_v55, %v1951_v54  ;;  %v23_v58 = vld [vmem:[%s2440_s0 + $0x18] sm:$0xff]  ;;  %v1743_v1 = vld [vmem:[%s2439_s1 + $0x1b0] sm:$0xff]   ;;  %v1272_v2 = vld [vmem:[%s2440_s0 + $0x25] sm:$0xff] }
  0x14   :  { %1460 = vmatpush3.bf16.msra.mxu0 %v1720_v18  ;;  %v31_v59 = vpack.c.bf16 %v23_v58, %v22_v56  ;;  %v1738_v60 = vld [vmem:[%s2439_s1 + $0x1f8] sm:$0xff]   ;;  %v1273_v3 = vld [vmem:[%s2440_s0 + $0x2d] sm:$0xff]  ;;  %v1252_v5 = vld [vmem:[%s2440_s0 + $0x21] sm:$0xff] }
  0x15   :  { %1506 = vmatpush3.bf16.msra.mxu1 %v1721_v19  ;;  %1461 = vmatprep.subr.bf16.mxu0 %v1722_v20  ;;  %v1739_v61 = vld [vmem:[%s2439_s1 + $0x1b8] sm:$0xff]   ;;  %v115_v4 = vpack.c.bf16 %v1273_v3, %v1272_v2  ;;  %v1253_v6 = vld [vmem:[%s2440_s0 + $0x29] sm:$0xff]  ;;  %v1744_v8 = vld [vmem:[%s2439_s1 + $0x160] sm:$0xff]  }
  0x16   :  { %1507 = vmatprep.subr.bf16.mxu1 %v1723_v21  ;;  %v49_v7 = vpack.c.bf16 %v1253_v6, %v1252_v5  ;;  %v2002_v9 = vld [vmem:[%s2440_s0 + $0x22] sm:$0xff]  ;;  %v2007_v10 = vld [vmem:[%s2440_s0 + $0x2a] sm:$0xff]  ;;  %v1748_v18 = vld [vmem:[%s2439_s1 + $0x158] sm:$0xff]   ;;  %v745_v5 = vpack.c.bf16 %v1951_v54, %v1915_v38  ;;  %v1774_v6 = vmov 0.0  }
  0x17   :  { %v24_v11 = vld [vmem:[%s2440_s0 + $0x20] sm:$0xff]  ;;  %v25_v12 = vld [vmem:[%s2440_s0 + $0x28] sm:$0xff]  ;;  %v98_v13 = vpack.c.bf16 %v2007_v10, %v2002_v9  ;;  %v1750_v20 = vld [vmem:[%s2439_s1 + $0x118] sm:$0xff]  }
  0x18   :  { %1462 = vmatpush3.bf16.msra.mxu0 %v1724_v22  ;;  %v32_v14 = vpack.c.bf16 %v25_v12, %v24_v11  ;;  %v1745_v15 = vld [vmem:[%s2439_s1 + $0x120] sm:$0xff]   ;;  %v1746_v16 = vld [vmem:[%s2439_s1 + $0x1e8] sm:$0xff]   ;;  %v1274_v22 = vld [vmem:[%s2440_s0 + $0x35] sm:$0xff] }
  0x19   :  { %1508 = vmatpush3.bf16.msra.mxu1 %v1725_v23  ;;  %1463 = vmatprep.subr.bf16.mxu0 %v1726_v24  ;;  %v1747_v17 = vld [vmem:[%s2439_s1 + $0x1a8] sm:$0xff]   ;;  %v1749_v19 = vld [vmem:[%s2439_s1 + $0x1e0] sm:$0xff]   ;;  %v1254_v24 = vld [vmem:[%s2440_s0 + $0x31] sm:$0xff] }
  0x1a   :  { %1509 = vmatprep.subr.bf16.mxu1 %v1727_v25  ;;  %v1751_v21 = vld [vmem:[%s2439_s1 + $0x1a0] sm:$0xff]   ;;  %v27_v32 = vld [vmem:[%s2440_s0 + $0x38] sm:$0xff]  ;;  %v1753_v35 = vld [vmem:[%s2439_s1 + $0x150] sm:$0xff]  }
  0x1b   :  { %v1275_v23 = vld [vmem:[%s2440_s0 + $0x3d] sm:$0xff]  ;;  %v1755_v37 = vld [vmem:[%s2439_s1 + $0x110] sm:$0xff]   ;;  %v1758_v41 = vld [vmem:[%s2439_s1 + $0x148] sm:$0xff]  }
  0x1c   :  { %1464 = vmatpush3.bf16.msra.mxu0 %v1728_v26  ;;  %v116_v25 = vpack.c.bf16 %v1275_v23, %v1274_v22  ;;  %v1255_v26 = vld [vmem:[%s2440_s0 + $0x39] sm:$0xff]  ;;  %v1756_v39 = vld [vmem:[%s2439_s1 + $0x1d0] sm:$0xff]   ;;  %v1276_v42 = vld [vmem:[%s2440_s0 + $0x45] sm:$0xff] }
  0x1d   :  { %1510 = vmatpush3.bf16.msra.mxu1 %v1729_v27  ;;  %1465 = vmatprep.subr.bf16.mxu0 %v1730_v28  ;;  %v2053_v27 = vld [vmem:[%s2440_s0 + $0x32] sm:$0xff]  ;;  %v2058_v28 = vld [vmem:[%s2440_s0 + $0x3a] sm:$0xff]  ;;  %v1759_v48 = vld [vmem:[%s2439_s1 + $0x108] sm:$0xff]  }
  0x1e   :  { %1511 = vmatprep.subr.bf16.mxu1 %v1731_v29  ;;  %v50_v29 = vpack.c.bf16 %v1255_v26, %v1254_v24  ;;  %v1752_v34 = vld [vmem:[%s2439_s1 + $0x1d8] sm:$0xff]   ;;  %v2107_v49 = vld [vmem:[%s2440_s0 + $0x42] sm:$0xff]  ;;  %v2112_v50 = vld [vmem:[%s2440_s0 + $0x4a] sm:$0xff] }
  0x1f   :  { %v1754_v36 = vld [vmem:[%s2439_s1 + $0x198] sm:$0xff]   ;;  %v28_v51 = vld [vmem:[%s2440_s0 + $0x40] sm:$0xff]  ;;  %v1761_v58 = vld [vmem:[%s2439_s1 + $0x188] sm:$0xff]  }
  0x20   :  { %1466 = vmatpush3.bf16.msra.mxu0 %v1732_v30  ;;  %v99_v30 = vpack.c.bf16 %v2058_v28, %v2053_v27  ;;  %v1356_v2 = vld [vmem:[%s2440_s0 + $0xb] sm:$0xff]  ;;  %v1357_v3 = vld [vmem:[%s2440_s0 + $0x13] sm:$0xff] }
  0x21   :  { %1512 = vmatpush3.bf16.msra.mxu1 %v1733_v31  ;;  %1543 = vmatprep.subr.bf16.mxu0 %v1734_v44  ;;  %v26_v31 = vld [vmem:[%s2440_s0 + $0x30] sm:$0xff]  ;;  %v1256_v44 = vld [vmem:[%s2440_s0 + $0x41] sm:$0xff]  ;;  %v1766_v12 = vld [vmem:[%s2439_s1 + $0x238] sm:$0xff]  }
  0x22   :  { %1589 = vmatprep.subr.bf16.mxu1 %v1738_v60  ;;  %v33_v33 = vpack.c.bf16 %v27_v32, %v26_v31  ;;  %v1763_v60 = vld [vmem:[%s2439_s1 + $0x100] sm:$0xff]   ;;  %v1767_v38 = vld [vmem:[%s2439_s1 + $0x230] sm:$0xff]   ;;  %v1768_v26 = vld [vmem:[%s2439_s1 + $0x228] sm:$0xff]  }
  0x23   :  { %279 = vmatmul.mubr.bf16.vlgmr.msra.gmra.mxu0 %v96_v40  ;;  %v1757_v40 = vld [vmem:[%s2439_s1 + $0x190] sm:$0xff]   ;;  %v1769_v31 = vld [vmem:[%s2439_s1 + $0x220] sm:$0xff]  }
  0x24   :  { %448 = vmatmul.mubr.bf16.vlgmr.msra.gmra.mxu1 %v30_v43  ;;  %1544 = vmatpush3.bf16.msra.mxu0 %v1735_v45  ;;  %v1277_v43 = vld [vmem:[%s2440_s0 + $0x4d] sm:$0xff]  ;;  %v1322_v54 = vld [vmem:[%s2440_s0 + $0x17] sm:$0xff] }
  0x25   :  { %1545 = vmatprep.subr.bf16.mxu0 %v1736_v46  ;;  %286 = vmatprep.mubr.bf16.mxu0 %v114_v52  ;;  %v1257_v45 = vld [vmem:[%s2440_s0 + $0x49] sm:$0xff]  ;;  %v117_v46 = vpack.c.bf16 %v1277_v43, %v1276_v42  ;;  %v100_v52 = vpack.c.bf16 %v2112_v50, %v2107_v49  ;;  %v1361_v23 = vld [vmem:[%s2440_s0 + $0x33] sm:$0xff] }
  0x26   :  { %455 = vmatprep.mubr.bf16.mxu1 %v48_v53  ;;  %1590 = vmatpush3.bf16.msra.mxu1 %v1739_v61  ;;  %v29_v53 = vld [vmem:[%s2440_s0 + $0x48] sm:$0xff]  ;;  %v1764_v61 = vld [vmem:[%s2439_s1 + $0x1c0] sm:$0xff]   ;;  %v1326_v32 = vld [vmem:[%s2440_s0 + $0x37] sm:$0xff] }
  0x27   :  { %1591 = vmatprep.subr.bf16.mxu1 %v1742_v0  ;;  %v34_v56 = vpack.c.bf16 %v29_v53, %v28_v51  ;;  %v1321_v0 = vld [vmem:[%s2440_s0 + $0xf] sm:$0xff]  ;;  %v1328_v43 = vld [vmem:[%s2440_s0 + $0x47] sm:$0xff] }
  0x28   :  { %1546 = vmatpush3.bf16.msra.mxu0 %v1737_v47  ;;  %v51_v47 = vpack.c.bf16 %v1257_v45, %v1256_v44  ;;  %v1360_v22 = vld [vmem:[%s2440_s0 + $0x2b] sm:$0xff]  ;;  %v1316_v42 = vld [vmem:[%s2440_s0 + $0x36] sm:$0xff] }
  0x29   :  { %1547 = vmatprep.subr.bf16.mxu0 %v1740_v62  ;;  %v1765_v62 = vld [vmem:[%s2439_s1 + $0x180] sm:$0xff]   ;;  %v1329_v44 = vld [vmem:[%s2440_s0 + $0x4f] sm:$0xff] }
  0x2a   :  { %1592 = vmatpush3.bf16.msra.mxu1 %v1743_v1  ;;  %v1364_v45 = vld [vmem:[%s2440_s0 + $0x4b] sm:$0xff]  ;;  %v521_v51 = vpack.c.bf16 %v1329_v44, %v1328_v43 }
  0x2b   :  { %287 = vmatmul.mubr.bf16.gmra.mxu0 %v97_v57  ;;  %1593 = vmatprep.subr.bf16.mxu1 %v1746_v16  ;;  %v1760_v57 = vld [vmem:[%s2439_s1 + $0x1c8] sm:$0xff]  }
  0x2c   :  { %456 = vmatmul.mubr.bf16.gmra.mxu1 %v31_v59  ;;  %1548 = vmatpush3.bf16.msra.mxu0 %v1741_v63  ;;  %v1762_v59 = vld [vmem:[%s2439_s1 + $0x140] sm:$0xff]   ;;  %v1772_v53 = vld [vmem:[%s2439_s1 + $0x208] sm:$0xff]  }
  0x2d   :  { %294 = vmatprep.mubr.bf16.mxu0 %v115_v4  ;;  %463 = vmatprep.mubr.bf16.mxu1 %v49_v7  ;;  %v1320_v63 = vld [vmem:[%s2440_s0 + $0x7] sm:$0xff]  ;;  %v762_v7 = vpack.c.bf16 %v1357_v3, %v1356_v2 }
  0x2e   :  { %1549 = vmatprep.subr.bf16.mxu0 %v1744_v8  ;;  %1594 = vmatpush3.bf16.msra.mxu1 %v1747_v17  ;;  %v517_v1 = vpack.c.bf16 %v1321_v0, %v1320_v63  ;;  %v1310_v4 = vld [vmem:[%s2440_s0 + $0x6] sm:$0xff]  ;;  %v1311_v8 = vld [vmem:[%s2440_s0 + $0xe] sm:$0xff]  ;;  %v1312_v17 = vld [vmem:[%s2440_s0 + $0x16] sm:$0xff] }
  0x2f   :  { %1595 = vmatprep.subr.bf16.mxu1 %v1749_v19  ;;  %v500_v11 = vpack.c.bf16 %v1311_v8, %v1310_v4  ;;  %v1359_v16 = vld [vmem:[%s2440_s0 + $0x23] sm:$0xff]  ;;  %v1390_v3 = vld [vmem:[%s2440_s0 + $0x4c] sm:$0xff]  ;;  %v1391_v4 = vld [vmem:[%s2440_s0 + $0x54] sm:$0xff] }
  0x30   :  { %1550 = vmatpush3.bf16.msra.mxu0 %v1745_v15  ;;  %v1358_v15 = vld [vmem:[%s2440_s0 + $0x1b] sm:$0xff]  ;;  %v1385_v2 = vld [vmem:[%s2440_s0 + $0x24] sm:$0xff]  ;;  %v1386_v8 = vld [vmem:[%s2440_s0 + $0x2c] sm:$0xff] }
  0x31   :  { %1551 = vmatprep.subr.bf16.mxu0 %v1748_v18  ;;  %v763_v18 = vpack.c.bf16 %v1359_v16, %v1358_v15  ;;  %v1313_v19 = vld [vmem:[%s2440_s0 + $0x1e] sm:$0xff] }
  0x32   :  { %1596 = vmatpush3.bf16.msra.mxu1 %v1751_v21  ;;  %v1325_v21 = vld [vmem:[%s2440_s0 + $0x2f] sm:$0xff]  ;;  %v501_v24 = vpack.c.bf16 %v1313_v19, %v1312_v17 }
  0x33   :  { %295 = vmatmul.mubr.bf16.gmra.mxu0 %v98_v13  ;;  %1597 = vmatprep.subr.bf16.mxu1 %v1752_v34  ;;  %v1323_v13 = vld [vmem:[%s2440_s0 + $0x1f] sm:$0xff] }
  0x34   :  { %464 = vmatmul.mubr.bf16.gmra.mxu1 %v32_v14  ;;  %1552 = vmatpush3.bf16.msra.mxu0 %v1750_v20  ;;  %v518_v14 = vpack.c.bf16 %v1323_v13, %v1322_v54  ;;  %v1324_v20 = vld [vmem:[%s2440_s0 + $0x27] sm:$0xff]  ;;  %v1362_v34 = vld [vmem:[%s2440_s0 + $0x3b] sm:$0xff] }
  0x35   :  { %302 = vmatprep.mubr.bf16.mxu0 %v116_v25  ;;  %471 = vmatprep.mubr.bf16.mxu1 %v50_v29  ;;  %v746_v25 = vpack.c.bf16 %v2002_v9, %v1956_v55  ;;  %v519_v29 = vpack.c.bf16 %v1325_v21, %v1324_v20  ;;  %v1314_v55 = vld [vmem:[%s2440_s0 + $0x26] sm:$0xff]  ;;  %v1315_v9 = vld [vmem:[%s2440_s0 + $0x2e] sm:$0xff] }
  0x36   :  { %1553 = vmatprep.subr.bf16.mxu0 %v1753_v35  ;;  %1598 = vmatpush3.bf16.msra.mxu1 %v1754_v36  ;;  %v1363_v35 = vld [vmem:[%s2440_s0 + $0x43] sm:$0xff]  ;;  %v502_v36 = vpack.c.bf16 %v1315_v9, %v1314_v55 }
  0x37   :  { %1599 = vmatprep.subr.bf16.mxu1 %v1756_v39  ;;  %v1770_v39 = vld [vmem:[%s2439_s1 + $0x218] sm:$0xff]  }
  0x38   :  { %1554 = vmatpush3.bf16.msra.mxu0 %v1755_v37  ;;  %v747_v37 = vpack.c.bf16 %v2053_v27, %v2007_v10  ;;  %v1317_v10 = vld [vmem:[%s2440_s0 + $0x3e] sm:$0xff]  ;;  %v1771_v27 = vld [vmem:[%s2439_s1 + $0x210] sm:$0xff]  }
  0x39   :  { %1555 = vmatprep.subr.bf16.mxu0 %v1758_v41  ;;  %v765_v41 = vpack.c.bf16 %v1363_v35, %v1362_v34 }
  0x3a   :  { %1600 = vmatpush3.bf16.msra.mxu1 %v1757_v40 }
  0x3b   :  { %303 = vmatmul.mubr.bf16.gmra.mxu0 %v99_v30  ;;  %1601 = vmatprep.subr.bf16.mxu1 %v1760_v57  ;;  %v764_v30 = vpack.c.bf16 %v1361_v23, %v1360_v22  ;;  %v1773_v57 = vld [vmem:[%s2439_s1 + $0x200] sm:$0xff]  }
  0x3c   :  { %472 = vmatmul.mubr.bf16.gmra.mxu1 %v33_v33  ;;  %310 = vmatprep.mubr.bf16.mxu0 %v117_v46  ;;  %v1327_v33 = vld [vmem:[%s2440_s0 + $0x3f] sm:$0xff]  ;;  %v1365_v46 = vld [vmem:[%s2440_s0 + $0x53] sm:$0xff] }
  0x3d   :  { %479 = vmatprep.mubr.bf16.mxu1 %v51_v47  ;;  %1556 = vmatpush3.bf16.msra.mxu0 %v1759_v48  ;;  %v520_v40 = vpack.c.bf16 %v1327_v33, %v1326_v32  ;;  %v503_v47 = vpack.c.bf16 %v1317_v10, %v1316_v42  ;;  %v748_v48 = vpack.c.bf16 %v2107_v49, %v2058_v28  ;;  %v1318_v28 = vld [vmem:[%s2440_s0 + $0x46] sm:$0xff]  ;;  %v1319_v49 = vld [vmem:[%s2440_s0 + $0x4e] sm:$0xff] }
  0x3e   :  { %1602 = vmatpush3.bf16.msra.mxu1 %v1761_v58  ;;  %1557 = vmatprep.subr.bf16.mxu0 %v1762_v59  ;;  %v504_v58 = vpack.c.bf16 %v1319_v49, %v1318_v28 }
  0x3f   :  { %1603 = vmatprep.subr.bf16.mxu1 %v1764_v61  ;;  %v1388_v61 = vld [vmem:[%s2440_s0 + $0x3c] sm:$0xff] }
  0x41   :  { %1558 = vmatpush3.bf16.msra.mxu0 %v1763_v60  ;;  %v1382_v60 = vld [vmem:[%s2440_s0 + $0xc] sm:$0xff] }
  0x42   :  { %1648 = vmatprep.subr.bf16.mxu0 %v1774_v6  ;;  %1604 = vmatpush3.bf16.msra.mxu1 %v1765_v62  ;;  %v1389_v62 = vld [vmem:[%s2440_s0 + $0x44] sm:$0xff] }
  0x43   :  { %311 = vmatmul.mubr.bf16.gmra.mxu0 %v100_v52  ;;  %1684 = vmatprep.subr.bf16.mxu1 %v1774_v6  ;;  %v766_v52 = vpack.c.bf16 %v1365_v46, %v1364_v45  ;;  %v993_v0 = vpack.c.bf16 %v1389_v62, %v1388_v61 }
  0x44   :  { %480 = vmatmul.mubr.bf16.gmra.mxu1 %v34_v56  ;;  %682 = vmatprep.mubr.bf16.mxu0 %v517_v1  ;;  %v1355_v56 = vld [vmem:[%s2440_s0 + $0x52] sm:$0xff]  ;;  %v1384_v1 = vld [vmem:[%s2440_s0 + $0x1c] sm:$0xff] }
  0x45   :  { %927 = vmatprep.mubr.bf16.mxu1 %v762_v7  ;;  %v749_v59 = vpack.c.bf16 %v1355_v56, %v2112_v50  ;;  %v1383_v50 = vld [vmem:[%s2440_s0 + $0x14] sm:$0xff]  ;;  %v994_v7 = vpack.c.bf16 %v1391_v4, %v1390_v3 }
  0x46   :  { %v990_v63 = vpack.c.bf16 %v1383_v50, %v1382_v60 }
  0x4b   :  { %683 = vmatmul.mubr.bf16.vlgmr.msra.gmra.mxu0 %v500_v11  ;;  %v1387_v11 = vld [vmem:[%s2440_s0 + $0x34] sm:$0xff] }
  0x4c   :  { %928 = vmatmul.mubr.bf16.vlgmr.msra.gmra.mxu1 %v745_v5  ;;  %1649 = vmatpush3.bf16.msra.mxu0 %v1766_v12  ;;  %v991_v5 = vpack.c.bf16 %v1385_v2, %v1384_v1 }
  0x4d   :  { %1692 = vmatpush3.bf16.msra.mxu1 %v1766_v12  ;;  %1650 = vmatprep.subr.bf16.mxu0 %v1774_v6  ;;  %v992_v12 = vpack.c.bf16 %v1387_v11, %v1386_v8 }
  0x4e   :  { %690 = vmatprep.mubr.bf16.mxu0 %v518_v14  ;;  %935 = vmatprep.mubr.bf16.mxu1 %v763_v18 }
  0x4f   :  { %1685 = vmatprep.subr.bf16.mxu1 %v1774_v6 }
  0x50   :  { %1651 = vmatpush3.bf16.msra.mxu0 %v1767_v38 }
  0x51   :  { %1693 = vmatpush3.bf16.msra.mxu1 %v1767_v38  ;;  %1652 = vmatprep.subr.bf16.mxu0 %v1774_v6 }
  0x52   :  { %1686 = vmatprep.subr.bf16.mxu1 %v1774_v6 }
  0x53   :  { %691 = vmatmul.mubr.bf16.gmra.mxu0 %v501_v24 }
  0x54   :  { %936 = vmatmul.mubr.bf16.gmra.mxu1 %v746_v25  ;;  %1653 = vmatpush3.bf16.msra.mxu0 %v1768_v26 }
  0x55   :  { %698 = vmatprep.mubr.bf16.mxu0 %v519_v29  ;;  %943 = vmatprep.mubr.bf16.mxu1 %v764_v30 }
  0x56   :  { %1654 = vmatprep.subr.bf16.mxu0 %v1774_v6  ;;  %1694 = vmatpush3.bf16.msra.mxu1 %v1768_v26 }
  0x57   :  { %1687 = vmatprep.subr.bf16.mxu1 %v1774_v6 }
  0x58   :  { %1655 = vmatpush3.bf16.msra.mxu0 %v1769_v31 }
  0x59   :  { %1656 = vmatprep.subr.bf16.mxu0 %v1774_v6 }
  0x5a   :  { %1695 = vmatpush3.bf16.msra.mxu1 %v1769_v31 }
  0x5b   :  { %699 = vmatmul.mubr.bf16.gmra.mxu0 %v502_v36  ;;  %1688 = vmatprep.subr.bf16.mxu1 %v1774_v6 }
  0x5c   :  { %944 = vmatmul.mubr.bf16.gmra.mxu1 %v747_v37  ;;  %1657 = vmatpush3.bf16.msra.mxu0 %v1770_v39 }
  0x5d   :  { %706 = vmatprep.mubr.bf16.mxu0 %v520_v40  ;;  %951 = vmatprep.mubr.bf16.mxu1 %v765_v41 }
  0x5e   :  { %1696 = vmatpush3.bf16.msra.mxu1 %v1770_v39  ;;  %1658 = vmatprep.subr.bf16.mxu0 %v1774_v6 }
  0x5f   :  { %1689 = vmatprep.subr.bf16.mxu1 %v1774_v6 }
  0x60   :  { %1659 = vmatpush3.bf16.msra.mxu0 %v1771_v27 }
  0x61   :  { %1660 = vmatprep.subr.bf16.mxu0 %v1774_v6 }
  0x62   :  { %1697 = vmatpush3.bf16.msra.mxu1 %v1771_v27 }
  0x63   :  { %707 = vmatmul.mubr.bf16.gmra.mxu0 %v503_v47  ;;  %1690 = vmatprep.subr.bf16.mxu1 %v1774_v6 }
  0x64   :  { %952 = vmatmul.mubr.bf16.gmra.mxu1 %v748_v48  ;;  %714 = vmatprep.mubr.bf16.mxu0 %v521_v51 }
  0x65   :  { %959 = vmatprep.mubr.bf16.mxu1 %v766_v52  ;;  %1661 = vmatpush3.bf16.msra.mxu0 %v1772_v53 }
  0x66   :  { %1698 = vmatpush3.bf16.msra.mxu1 %v1772_v53  ;;  %1662 = vmatprep.subr.bf16.mxu0 %v1774_v6 }
  0x67   :  { %1691 = vmatprep.subr.bf16.mxu1 %v1774_v6 }
  0x69   :  { %1663 = vmatpush3.bf16.msra.mxu0 %v1773_v57 }
  0x6a   :  { %1699 = vmatpush3.bf16.msra.mxu1 %v1773_v57 }
  0x6b   :  { %715 = vmatmul.mubr.bf16.gmra.mxu0 %v504_v58 }
  0x6c   :  { %960 = vmatmul.mubr.bf16.gmra.mxu1 %v749_v59  ;;  %1664 = vmatprep.mubr.msk.bf16.mxu0 %vm1775_vm0, %v1774_v6 }
  0x6d   :  { %1676 = vmatprep.mubr.msk.bf16.mxu1 %vm1775_vm0, %v1774_v6 }
  0x73   :  { %1665 = vmatmul.mubr.bf16.vlgmr.msra.gmra.mxu0 %v990_v63 }
  0x74   :  { %1677 = vmatmul.mubr.bf16.vlgmr.msra.gmra.mxu1 %v993_v0  ;;  %1668 = vmatprep.mubr.msk.bf16.mxu0 %vm1775_vm0, %v1774_v6 }
  0x75   :  { %1680 = vmatprep.mubr.msk.bf16.mxu1 %vm1775_vm0, %v1774_v6 }
  0x7b   :  { %1669 = vmatmul.mubr.bf16.gmra.mxu0 %v991_v5 }
  0x7c   :  { %1681 = vmatmul.mubr.bf16.gmra.mxu1 %v994_v7  ;;  %1672 = vmatprep.mubr.msk.bf16.mxu0 %vm1775_vm0, %v1774_v6 }
  0x83   :  { %1673 = vmatmul.mubr.bf16.gmra.mxu0 %v992_v12 }
  0xe3   :  { %v1467_v38 = vpop.f32.mrf.mxu0 }
  0xe4   :  { %v1513_v54 = vpop.f32.mrf.mxu1 }
  0xe5   :  { %v1468_v13 = vpop.f32.mrf.mxu0 }
  0xe6   :  { %v1469_v14 = vadd.f32 %v1468_v13, %v1467_v38  ;;  %v1514_v15 = vpop.f32.mrf.mxu1 }
  0xe7   :  { %v1515_v16 = vadd.f32 %v1514_v15, %v1513_v54  ;;  %v1470_v17 = vpop.f32.mrf.mxu0 }
  0xe8   :  { %v1516_v18 = vpop.f32.mrf.mxu1 }
  0xe9   :  { %v2322_v19 = vadd.f32 %v1515_v16, %v1469_v14  ;;  %v1471_v6 = vpop.f32.mrf.mxu0 }
  0xea   :  { %v1472_v20 = vadd.f32 %v1471_v6, %v1470_v17  ;;  %v1517_v21 = vpop.f32.mrf.mxu1 }
  0xeb   :  { %v1518_v22 = vadd.f32 %v1517_v21, %v1516_v18  ;;  %v1473_v23 = vpop.f32.mrf.mxu0 }
  0xec   :  { %v1519_v24 = vpop.f32.mrf.mxu1 }
  0xed   :  { %v2324_v25 = vadd.f32 %v1518_v22, %v1472_v20  ;;  %v1474_v26 = vpop.f32.mrf.mxu0 }
  0xee   :  { %v1475_v29 = vadd.f32 %v1474_v26, %v1473_v23  ;;  %v1520_v30 = vpop.f32.mrf.mxu1 }
  0xef   :  { %v1521_v55 = vadd.f32 %v1520_v30, %v1519_v24  ;;  %v1476_v9 = vpop.f32.mrf.mxu0 }
  0xf0   :  { %v1522_v31 = vpop.f32.mrf.mxu1 }
  0xf1   :  { %v2326_v32 = vadd.f32 %v1521_v55, %v1475_v29  ;;  %v1477_v33 = vpop.f32.mrf.mxu0 }
  0xf2   :  { %v1478_v34 = vadd.f32 %v1477_v33, %v1476_v9  ;;  %v1523_v35 = vpop.f32.mrf.mxu1 }
  0xf3   :  { %v1524_v36 = vadd.f32 %v1523_v35, %v1522_v31  ;;  %v1479_v37 = vpop.f32.mrf.mxu0 }
  0xf4   :  { %v1525_v39 = vpop.f32.mrf.mxu1 }
  0xf5   :  { %v2328_v40 = vadd.f32 %v1524_v36, %v1478_v34  ;;  %v1480_v41 = vpop.f32.mrf.mxu0 }
  0xf6   :  { %v1526_v42 = vpop.f32.mrf.mxu1  ;;  %v1481_v10 = vadd.f32 %v1480_v41, %v1479_v37 }
  0xf7   :  { %v1527_v27 = vadd.f32 %v1526_v42, %v1525_v39  ;;  %v1482_v43 = vpop.f32.mrf.mxu0 }
  0xf8   :  { %v1528_v44 = vpop.f32.mrf.mxu1 }
  0xf9   :  { %v2330_v45 = vadd.f32 %v1527_v27, %v1481_v10  ;;  %v1483_v46 = vpop.f32.mrf.mxu0 }
  0xfa   :  { %v1529_v47 = vpop.f32.mrf.mxu1  ;;  %v1484_v48 = vadd.f32 %v1483_v46, %v1482_v43 }
  0xfb   :  { %v1530_v51 = vadd.f32 %v1529_v47, %v1528_v44  ;;  %v1485_v53 = vpop.f32.mrf.mxu0 }
  0xfc   :  { %v1531_v28 = vpop.f32.mrf.mxu1 }
  0xfd   :  { %v2332_v52 = vadd.f32 %v1530_v51, %v1484_v48  ;;  %v1486_v49 = vpop.f32.mrf.mxu0 }
  0xfe   :  { %v1532_v56 = vpop.f32.mrf.mxu1  ;;  %v1487_v37 = vadd.f32 %v1486_v49, %v1485_v53 }
  0xff   :  { %2444 = vst [vmem:[#allocation2_spill] sm:$0xff] %v2332_v52  ;;  %v1488_v57 = vpop.f32.mrf.mxu0  ;;  %v1533_v39 = vadd.f32 %v1532_v56, %v1531_v28 }
 0x100   :  { %v1534_v58 = vpop.f32.mrf.mxu1 }
 0x101   :  { %v1489_v59 = vpop.f32.mrf.mxu0  ;;  %v474_v46 = vadd.f32 %v1533_v39, %v1487_v37 }
 0x102   :  { %v1535_v60 = vpop.f32.mrf.mxu1  ;;  %v1490_v47 = vadd.f32 %v1489_v59, %v1488_v57 }
 0x103   :  { %v1491_v50 = vpop.f32.mrf.mxu0  ;;  %v1536_v48 = vadd.f32 %v1535_v60, %v1534_v58 }
 0x104   :  { %v1537_v61 = vpop.f32.mrf.mxu1 }
 0x105   :  { %v1492_v62 = vpop.f32.mrf.mxu0 }
 0x106   :  { %v1538_v63 = vpop.f32.mrf.mxu1  ;;  %v1493_v53 = vadd.f32 %v1492_v62, %v1491_v50  ;;  %v2375_v50 = vld [vmem:[%s2441_s2] ss:$0 sm:$0xff] }
 0x107   :  { %v2334_v0 = vpop.f32.mrf.mxu0  ;;  %v1539_v28 = vadd.f32 %v1538_v63, %v1537_v61 }
 0x108   :  { %v2336_v1 = vpop.f32.mrf.mxu1 }
 0x109   :  { %v2338_v2 = vpop.f32.mrf.mxu0 }
 0x10a   :  { %v2340_v3 = vpop.f32.mrf.mxu1  ;;  %v1496_v62 = vadd.f32 %v2338_v2, %v2334_v0 }
 0x10b   :  { %v1559_v4 = vpop.f32.mrf.mxu0  ;;  %v1542_v63 = vadd.f32 %v2340_v3, %v2336_v1 }
 0x10c   :  { %v1605_v5 = vpop.f32.mrf.mxu1 }
 0x10d   :  { %v1560_v7 = vpop.f32.mrf.mxu0 }
 0x10e   :  { %v1606_v8 = vpop.f32.mrf.mxu1  ;;  %v1561_v41 = vadd.f32 %v1560_v7, %v1559_v4  ;;  %v477_v4 = vadd.f32 %v1536_v48, %v1490_v47 }
 0x10f   :  { %v1562_v11 = vpop.f32.mrf.mxu0 }
 0x110   :  { %v1608_v12 = vpop.f32.mrf.mxu1  ;;  %v723_v51 = vadd.f32 %v1561_v41, %v2322_v19 }
 0x111   :  { %v1563_v38 = vpop.f32.mrf.mxu0 }
 0x112   :  { %v1609_v54 = vpop.f32.mrf.mxu1 }
 0x113   :  { %v1565_v13 = vpop.f32.mrf.mxu0  ;;  %v1610_v7 = vadd.f32 %v1609_v54, %v1608_v12 }
 0x114   :  { %v2342_v14 = vpop.f32.mrf.mxu1 }
 0x115   :  { %v1566_v15 = vpop.f32.mrf.mxu0 }
 0x116   :  { %v2344_v16 = vpop.f32.mrf.mxu1 }
 0x117   :  { %v2346_v17 = vpop.f32.mrf.mxu0  ;;  %v1613_v54 = vadd.f32 %v2344_v16, %v2342_v14 }
 0x118   :  { %v2348_v18 = vpop.f32.mrf.mxu1 }
 0x119   :  { %v2350_v6 = vpop.f32.mrf.mxu0 }
 0x11a   :  { %v2352_v20 = vpop.f32.mrf.mxu1  ;;  %v1570_v1 = vadd.f32 %v2350_v6, %v2346_v17 }
 0x11b   :  { %v2354_v21 = vpop.f32.mrf.mxu0 }
 0x11c   :  { %v2356_v22 = vpop.f32.mrf.mxu1 }
 0x11d   :  { %2445 = vst [vmem:[#allocation3_spill] sm:$0xff] %v2356_v22  ;;  %v2358_v23 = vpop.f32.mrf.mxu0 }
 0x11e   :  { %v2360_v24 = vpop.f32.mrf.mxu1 }
 0x11f   :  { %2446 = vst [vmem:[#allocation4_spill] sm:$0xff] %v2360_v24  ;;  %v2362_v26 = vpop.f32.mrf.mxu0 }
 0x120   :  { %2447 = vst [vmem:[#allocation5_spill] sm:$0xff] %v2362_v26  ;;  %v2364_v29 = vpop.f32.mrf.mxu1 }
 0x121   :  { %2448 = vst [vmem:[#allocation6_spill] sm:$0xff] %v2364_v29  ;;  %v2366_v30 = vpop.f32.mrf.mxu0 }
 0x122   :  { %2449 = vst [vmem:[#allocation7_spill] sm:$0xff] %v2366_v30  ;;  %v2368_v55 = vpop.f32.mrf.mxu1  ;;  %v1564_v30 = vadd.f32 %v1563_v38, %v1562_v11 }
 0x123   :  { %2450 = vst [vmem:[#allocation8_spill] sm:$0xff] %v2368_v55  ;;  %v1577_v9 = vpop.f32.mrf.mxu0  ;;  %v1607_v55 = vadd.f32 %v1606_v8, %v1605_v5  ;;  %v482_v8 = vadd.f32 %v1539_v28, %v1493_v53 }
 0x124   :  { %v1623_v31 = vpop.f32.mrf.mxu1  ;;  %v724_v19 = vadd.f32 %v1564_v30, %v2324_v25  ;;  %v2451_v28 = vld [vmem:[#allocation3_spill] sm:$0xff] }
 0x125   :  { %v1578_v33 = vpop.f32.mrf.mxu0  ;;  %v968_v58 = vadd.f32 %v1607_v55, %v723_v51  ;;  %v485_v55 = vadd.f32 %v1542_v63, %v1496_v62 }
 0x126   :  { %v1624_v34 = vpop.f32.mrf.mxu1  ;;  %v1579_v27 = vadd.f32 %v1578_v33, %v1577_v9  ;;  %v1567_v9 = vadd.f32 %v1566_v15, %v1565_v13  ;;  %v969_v30 = vadd.f32 %v1610_v7, %v724_v19 }
 0x127   :  { %v1580_v35 = vpop.f32.mrf.mxu0  ;;  %v1625_v24 = vadd.f32 %v1624_v34, %v1623_v31  ;;  %v1573_v31 = vadd.f32 %v2358_v23, %v2354_v21  ;;  %v2453_v7 = vld [vmem:[#allocation5_spill] sm:$0xff] }
 0x128   :  { %v1626_v36 = vpop.f32.mrf.mxu1  ;;  %v729_v26 = vadd.f32 %v1579_v27, %v474_v46  ;;  %v725_v25 = vadd.f32 %v1567_v9, %v2326_v32  ;;  %v2391_v32 = vld [vmem:[%s2442_s3] ss:$0 sm:$0xff]  ;;  %v1616_v27 = vadd.f32 %v2352_v20, %v2348_v18 }
 0x129   :  { %v1581_v42 = vpop.f32.mrf.mxu0  ;;  %v727_v53 = vadd.f32 %v1573_v31, %v2330_v45 }
 0x12a   :  { %v1627_v10 = vpop.f32.mrf.mxu1  ;;  %v1582_v22 = vadd.f32 %v1581_v42, %v1580_v35  ;;  %v974_v5 = vadd.f32 %v1625_v24, %v729_v26 }
 0x12b   :  { %v1583_v43 = vpop.f32.mrf.mxu0  ;;  %v1628_v60 = vadd.f32 %v1627_v10, %v1626_v36  ;;  %v970_v36 = vadd.f32 %v1613_v54, %v725_v25  ;;  %v726_v10 = vadd.f32 %v1570_v1, %v2328_v40  ;;  %v2454_v40 = vld [vmem:[#allocation7_spill] sm:$0xff]  ;;  %v2456_v54 = vld [vmem:[#allocation6_spill] sm:$0xff] }
 0x12c   :  { %v1629_v44 = vpop.f32.mrf.mxu1  ;;  %v730_v59 = vadd.f32 %v1582_v22, %v477_v4  ;;  %v1576_v9 = vadd.f32 %v2454_v40, %v2453_v7 }
 0x12d   :  { %v1584_v29 = vpop.f32.mrf.mxu0 }
 0x12e   :  { %v1630_v52 = vpop.f32.mrf.mxu1  ;;  %v1585_v33 = vadd.f32 %v1584_v29, %v1583_v43  ;;  %v975_v0 = vadd.f32 %v1628_v60, %v730_v59  ;;  %v971_v59 = vadd.f32 %v1616_v27, %v726_v10 }
 0x12f   :  { %v1586_v49 = vpop.f32.mrf.mxu0  ;;  %v1631_v15 = vadd.f32 %v1630_v52, %v1629_v44 }
 0x130   :  { %v1632_v56 = vpop.f32.mrf.mxu1  ;;  %v731_v13 = vadd.f32 %v1585_v33, %v482_v8 }
 0x131   :  { %v1587_v37 = vpop.f32.mrf.mxu0 }
 0x132   :  { %v1633_v57 = vpop.f32.mrf.mxu1  ;;  %v1588_v2 = vadd.f32 %v1587_v37, %v1586_v49  ;;  %v976_v39 = vadd.f32 %v1631_v15, %v731_v13  ;;  %v2452_v49 = vld [vmem:[#allocation4_spill] sm:$0xff] }
 0x133   :  { %v1093_v11 = vpop.f32.mrf.mxu0  ;;  %v1634_v44 = vadd.f32 %v1633_v57, %v1632_v56  ;;  %v1619_v4 = vadd.f32 %v2452_v49, %v2451_v28  ;;  %v2457_v13 = vld [vmem:[#allocation8_spill] sm:$0xff] }
 0x134   :  { %v1117_v61 = vpop.f32.mrf.mxu1  ;;  %v1132_v12 = vadd.f32 %v1093_v11, %v968_v58  ;;  %v732_v43 = vadd.f32 %v1588_v2, %v485_v55  ;;  %v1622_v15 = vadd.f32 %v2457_v13, %v2456_v54 }
 0x135   :  { %v1138_v38 = vadd.f32 %v1117_v61, %v974_v5  ;;  %v1666_v22 = vpop.f32.mrf.mxu0 }
 0x136   :  { %v1678_v24 = vpop.f32.mrf.mxu1  ;;  %v1149_v26 = vmul.f32 %v2375_v50, %v1132_v12  ;;  %v977_v5 = vadd.f32 %v1634_v44, %v732_v43  ;;  %v972_v22 = vadd.f32 %v1619_v4, %v727_v53 }
 0x137   :  { %v1155_v29 = vmul.f32 %v2375_v50, %v1138_v38  ;;  %v1096_v3 = vpop.f32.mrf.mxu0  ;;  %v2455_v38 = vld [vmem:[#allocation2_spill] sm:$0xff] }
 0x138   :  { %v1120_v14 = vpop.f32.mrf.mxu1  ;;  %v1133_v52 = vadd.f32 %v1096_v3, %v969_v30  ;;  %v1166_v17 = vadd.f32 %v2391_v32, %v1149_v26  ;;  %v728_v25 = vadd.f32 %v1576_v9, %v2455_v38 }
 0x139   :  { %v1139_v16 = vadd.f32 %v1120_v14, %v975_v0  ;;  %v1667_v34 = vpop.f32.mrf.mxu0  ;;  %v1172_v6 = vadd.f32 %v2391_v32, %v1155_v29 }
 0x13a   :  { %v1679_v35 = vpop.f32.mrf.mxu1  ;;  %v1150_v41 = vmul.f32 %v2375_v50, %v1133_v52  ;;  %v1176_v20 = vmax.f32 %v1166_v17, 0.0 }
 0x13b   :  { %v1156_v42 = vmul.f32 %v2375_v50, %v1139_v16  ;;  %v1101_v21 = vpop.f32.mrf.mxu0  ;;  %v1182_v56 = vmax.f32 %v1172_v6, 0.0  ;;  %v973_v16 = vadd.f32 %v1622_v15, %v728_v25 }
 0x13c   :  { %v1125_v23 = vpop.f32.mrf.mxu1  ;;  %v1167_v46 = vadd.f32 %v2391_v32, %v1150_v41  ;;  %v1134_v48 = vadd.f32 %v1101_v21, %v970_v36 }
 0x13d   :  { %v1173_v47 = vadd.f32 %v2391_v32, %v1156_v42  ;;  %v1140_v51 = vadd.f32 %v1125_v23, %v976_v39  ;;  %v1670_v33 = vpop.f32.mrf.mxu0 }
 0x13e   :  { %v1682_v18 = vpop.f32.mrf.mxu1  ;;  %v1177_v37 = vmax.f32 %v1167_v46, 0.0  ;;  %v1151_v58 = vmul.f32 %v2375_v50, %v1134_v48 }
 0x13f   :  { %v1183_v57 = vmax.f32 %v1173_v47, 0.0  ;;  %v1157_v19 = vmul.f32 %v2375_v50, %v1140_v51  ;;  %v1104_v60 = vpop.f32.mrf.mxu0 }
 0x140   :  { %v1128_v45 = vpop.f32.mrf.mxu1  ;;  %v1425_v8 = vpack.c.bf16 %v1177_v37, %v1176_v20  ;;  %v1135_v61 = vadd.f32 %v1104_v60, %v971_v59  ;;  %v1168_v24 = vadd.f32 %v2391_v32, %v1151_v58 }
 0x141   :  { %v1440_v11 = vpack.c.bf16 %v1183_v57, %v1182_v56  ;;  %v1141_v62 = vadd.f32 %v1128_v45, %v977_v5  ;;  %v1671_v63 = vpop.f32.mrf.mxu0  ;;  %v1174_v26 = vadd.f32 %v2391_v32, %v1157_v19 }
 0x142   :  { %v1683_v12 = vpop.f32.mrf.mxu1  ;;  %1426 = vst [vmem:[%s2443_s4] sm:$0xff] %v1425_v8   ;;  %v1152_v29 = vmul.f32 %v2375_v50, %v1135_v61  ;;  %v1178_v55 = vmax.f32 %v1168_v24, 0.0 }
 0x143   :  { %1449 = vst [vmem:[%s2443_s4 + $0x18] sm:$0xff] %v1440_v11   ;;  %v1158_v30 = vmul.f32 %v2375_v50, %v1141_v62  ;;  %v1109_v0 = vpop.f32.mrf.mxu0  ;;  %v1184_v31 = vmax.f32 %v1174_v26, 0.0 }
 0x144   :  { %v1136_v1 = vadd.f32 %v1109_v0, %v972_v22  ;;  %v1169_v2 = vadd.f32 %v2391_v32, %v1152_v29 }
 0x145   :  { %v1175_v3 = vadd.f32 %v2391_v32, %v1158_v30  ;;  %v1674_v14 = vpop.f32.mrf.mxu0 }
 0x146   :  { %v1153_v52 = vmul.f32 %v2375_v50, %v1136_v1  ;;  %v1179_v34 = vmax.f32 %v1169_v2, 0.0 }
 0x147   :  { %v1185_v35 = vmax.f32 %v1175_v3, 0.0  ;;  %v1112_v36 = vpop.f32.mrf.mxu0 }
 0x148   :  { %v1137_v39 = vadd.f32 %v1112_v36, %v973_v16  ;;  %v1430_v17 = vpack.c.bf16 %v1179_v34, %v1178_v55  ;;  %v1170_v42 = vadd.f32 %v2391_v32, %v1153_v52 }
 0x149   :  { %v1445_v6 = vpack.c.bf16 %v1185_v35, %v1184_v31  ;;  %v1675_v41 = vpop.f32.mrf.mxu0 }
 0x14a   :  { %v1154_v10 = vmul.f32 %v2375_v50, %v1137_v39  ;;  %1447 = vst [vmem:[%s2443_s4 + $0x8] sm:$0xff] %v1430_v17   ;;  %v1180_v43 = vmax.f32 %v1170_v42, 0.0 }
 0x14b   :  { %1450 = vst [vmem:[%s2443_s4 + $0x20] sm:$0xff] %v1445_v6  }
 0x14c   :  { %v1171_v27 = vadd.f32 %v2391_v32, %v1154_v10 }
 0x14e   :  { %v1181_v44 = vmax.f32 %v1171_v27, 0.0 }
 0x150   :  { %v1435_v21 = vpack.c.bf16 %v1181_v44, %v1180_v43 }
 0x152   :  { %1448 = vst [vmem:[%s2443_s4 + $0x10] sm:$0xff] %v1435_v21  }

</bundles_post_ra>
